<compile_context>
chip_gen: v7x
topology: tpu7x:2x2x1
jax: 0.10.0
libtpu: 0.0.40
codegen_flags: <defaults>
</compile_context>

<pallas_src>
import functools

import jax
import jax.numpy as jnp
from jax import lax
from jax.experimental import pallas as pl
from jax.experimental.pallas import tpu as pltpu


# Production tile caps.  Lane/K tiles prefer 256-alignment (2x256x256 MXUs on
# v6e/v7x; v5e only needs 128).  At the small demo shapes most dims fall below
# the caps, so blocks fall back to full extents (still pipelined over the grid).
_TM_CAP = 256   # rows (sublane) tile cap
_TN_CAP = 512   # output cols (lane) tile cap
_TK_CAP = 512   # contraction tile cap (K-tiled matmul) — raised per feedback


def _vmem_limits():
    """(default, generous) scoped-VMEM limits.  Generous limit is used by the
    attention call and scales with physical VMEM (128 MiB on v5e/v6e -> ~96
    MiB; 64 MiB on v7x -> stays at the conservative 32 MiB)."""
    base = 32 * 1024 * 1024
    generous = base
    try:
        cap = int(pltpu.get_tpu_info().vmem_capacity_bytes)
        generous = max(base, min(cap - 32 * 1024 * 1024, 100 * 1024 * 1024))
    except Exception:
        pass
    return base, generous


_VMEM_LIMIT, _VMEM_LIMIT_ATTN = _vmem_limits()


def _sublane_tile(m, cap=_TM_CAP):
    """Largest multiple of 8 dividing m that is <= cap (else the full dim)."""
    if m <= cap:
        return m
    t = (cap // 8) * 8
    while t >= 8:
        if m % t == 0:
            return t
        t -= 8
    return m


def _lane_tile(n, cap=_TN_CAP):
    """Largest 256-(or 128-)aligned divisor of n that is <= cap (else full)."""
    if n <= cap:
        return n
    for align in (256, 128):
        if n % align == 0:
            t = (cap // align) * align
            while t >= align:
                if n % t == 0:
                    return t
                t -= align
    return n


def _maybe_buffered(block_shape, index_map, bufs=None):
    """BlockSpec with optional deeper pipelining; falls back cleanly if the
    installed jax does not accept pipeline_mode."""
    if bufs is not None and bufs > 2:
        try:
            return pl.BlockSpec(block_shape, index_map,
                                pipeline_mode=pl.Buffered(bufs))
        except Exception:
            pass
    return pl.BlockSpec(block_shape, index_map)


def _gelu(x):
    # TODO(synk): tanh-approx GELU (EUP tanh); PyTorch default is exact erf.
    c = 0.7978845608028654  # sqrt(2/pi)
    return 0.5 * x * (1.0 + jnp.tanh(c * (x + 0.044715 * x * x * x)))


# ----------------------------------------------------------------------------
# Matmul kernels (bf16 in / f32 accumulate), with fused LN / bias / GELU / res
# ----------------------------------------------------------------------------

def _matmul_bias_kernel(x_ref, w_ref, b_ref, o_ref, *, activation):
    acc = jnp.dot(x_ref[...], w_ref[...], preferred_element_type=jnp.float32)
    acc = acc + b_ref[...].astype(jnp.float32)
    if activation == "gelu":
        acc = _gelu(acc)
    o_ref[...] = acc.astype(o_ref.dtype)


def _ln_matmul_bias_kernel(x_ref, g_ref, bb_ref, w_ref, b_ref, o_ref, xn_ref,
                           *, activation, eps):
    # LayerNorm (f32 stats) computed ONCE per row tile into a VMEM bf16
    # scratch (j == 0), then reused for every N tile of this row block.
    @pl.when(pl.program_id(1) == 0)
    def _():
        x = x_ref[...].astype(jnp.float32)
        mu = jnp.mean(x, axis=-1, keepdims=True)
        var = jnp.mean(jnp.square(x - mu), axis=-1, keepdims=True)
        xn = (x - mu) * lax.rsqrt(var + eps)
        xn = xn * g_ref[...].astype(jnp.float32) + bb_ref[...].astype(jnp.float32)
        xn_ref[...] = xn.astype(xn_ref.dtype)

    acc = jnp.dot(xn_ref[...], w_ref[...], preferred_element_type=jnp.float32)
    acc = acc + b_ref[...].astype(jnp.float32)
    if activation == "gelu":
        acc = _gelu(acc)
    o_ref[...] = acc.astype(o_ref.dtype)


def matmul_bias(x, w, b, activation=None, ln=None, out_dtype=jnp.bfloat16,
                eps=1e-6):
    """y = [LN(x)] @ w + b (+ optional GELU).  Grid over (M, N); K stays whole
    inside the block (the fused LayerNorm reduces over the full feature dim)."""
    M, K = x.shape
    K2, N = w.shape
    assert K == K2
    tm = _sublane_tile(M)
    tn = _lane_tile(N)
    grid = (M // tm, N // tn)
    x_spec = pl.BlockSpec((tm, K), lambda i, j: (i, 0))
    w_spec = _maybe_buffered((K, tn), lambda i, j: (0, j),
                             bufs=3 if grid[1] > 2 else None)
    b_spec = pl.BlockSpec((1, tn), lambda i, j: (0, j))
    o_spec = pl.BlockSpec((tm, tn), lambda i, j: (i, j))

    if ln is None:
        kernel = functools.partial(_matmul_bias_kernel, activation=activation)
        return pl.pallas_call(
            kernel, grid=grid,
            in_specs=[x_spec, w_spec, b_spec],
            out_specs=o_spec,
            out_shape=jax.ShapeDtypeStruct((M, N), out_dtype),
            compiler_params=pltpu.CompilerParams(
                dimension_semantics=("parallel", "parallel"),
                vmem_limit_bytes=_VMEM_LIMIT),
        )(x, w, b.reshape(1, N))

    g, bb = ln
    v_spec = pl.BlockSpec((1, K), lambda i, j: (0, 0))
    kernel = functools.partial(_ln_matmul_bias_kernel, activation=activation,
                               eps=eps)
    return pl.pallas_call(
        kernel, grid=grid,
        in_specs=[x_spec, v_spec, v_spec, w_spec, b_spec],
        out_specs=o_spec,
        out_shape=jax.ShapeDtypeStruct((M, N), out_dtype),
        scratch_shapes=[pltpu.VMEM((tm, K), jnp.bfloat16)],
        compiler_params=pltpu.CompilerParams(
            # j carries the cached-LN dependency -> "arbitrary" (not sharded)
            dimension_semantics=("parallel", "arbitrary"),
            vmem_limit_bytes=_VMEM_LIMIT),
    )(x, g.reshape(1, K), bb.reshape(1, K), w, b.reshape(1, N))


def _matmul_bias_res_kernel(x_ref, w_ref, b_ref, r_ref, o_ref, acc_ref, *,
                            activation):
    @pl.when(pl.program_id(2) == 0)
    def _():
        acc_ref[...] = jnp.zeros_like(acc_ref)

    acc_ref[...] += jnp.dot(x_ref[...], w_ref[...],
                            preferred_element_type=jnp.float32)

    @pl.when(pl.program_id(2) == pl.num_programs(2) - 1)
    def _():
        acc = acc_ref[...] + b_ref[...].astype(jnp.float32)
        if activation == "gelu":
            acc = _gelu(acc)
        o_ref[...] = (acc + r_ref[...].astype(jnp.float32)).astype(o_ref.dtype)


def matmul_bias_residual(x, w, b, residual, activation=None,
                         out_dtype=jnp.bfloat16):
    """y = residual + (x @ w + b): K-tiled matmul with a f32 VMEM accumulator,
    bias and residual fused into the k==last epilogue."""
    M, K = x.shape
    K2, N = w.shape
    assert K == K2 and residual.shape == (M, N)
    tm = _sublane_tile(M)
    tn = _lane_tile(N)
    tk = _lane_tile(K, cap=_TK_CAP)
    grid = (M // tm, N // tn, K // tk)
    n_w_steps = grid[1] * grid[2]
    kernel = functools.partial(_matmul_bias_res_kernel, activation=activation)
    return pl.pallas_call(
        kernel,
        grid=grid,
        in_specs=[
            pl.BlockSpec((tm, tk), lambda i, j, k: (i, k)),
            _maybe_buffered((tk, tn), lambda i, j, k: (k, j),
                            bufs=3 if n_w_steps > 2 else None),
            pl.BlockSpec((1, tn), lambda i, j, k: (0, j)),
            pl.BlockSpec((tm, tn), lambda i, j, k: (i, j)),
        ],
        out_specs=pl.BlockSpec((tm, tn), lambda i, j, k: (i, j)),
        out_shape=jax.ShapeDtypeStruct((M, N), out_dtype),
        scratch_shapes=[pltpu.VMEM((tm, tn), jnp.float32)],
        compiler_params=pltpu.CompilerParams(
            dimension_semantics=("parallel", "parallel", "arbitrary"),
            vmem_limit_bytes=_VMEM_LIMIT),
    )(x, w, b.reshape(1, N), residual)


# ----------------------------------------------------------------------------
# LayerNorm (standalone — only used for the final norm)
# ----------------------------------------------------------------------------

def _layernorm_kernel(x_ref, g_ref, b_ref, o_ref, *, eps):
    x = x_ref[...].astype(jnp.float32)
    mu = jnp.mean(x, axis=-1, keepdims=True)
    var = jnp.mean(jnp.square(x - mu), axis=-1, keepdims=True)
    y = (x - mu) * lax.rsqrt(var + eps)
    y = y * g_ref[...].astype(jnp.float32) + b_ref[...].astype(jnp.float32)
    o_ref[...] = y.astype(o_ref.dtype)


def layernorm(x, g, b, eps=1e-6, out_dtype=jnp.float32):
    M, D = x.shape
    tm = _sublane_tile(M)
    return pl.pallas_call(
        functools.partial(_layernorm_kernel, eps=eps),
        grid=(M // tm,),
        in_specs=[pl.BlockSpec((tm, D), lambda i: (i, 0)),
                  pl.BlockSpec((1, D), lambda i: (0, 0)),
                  pl.BlockSpec((1, D), lambda i: (0, 0))],
        out_specs=pl.BlockSpec((tm, D), lambda i: (i, 0)),
        out_shape=jax.ShapeDtypeStruct((M, D), out_dtype),
        compiler_params=pltpu.CompilerParams(
            dimension_semantics=("parallel",),
            vmem_limit_bytes=_VMEM_LIMIT),
    )(x, g.reshape(1, D), b.reshape(1, D))


# ----------------------------------------------------------------------------
# Attention: grid over (batch, query tile); heads split in-kernel, per-head
# stores into lane slices of the output (no concat).  Softmax scale is folded
# into the Q projection weights at parameter-prep time.
# ----------------------------------------------------------------------------

def _attn_kernel(mask_ref, q_ref, kv_ref, o_ref, *, heads, dh):
    mask = mask_ref[...]                   # (1, S_pad) f32 additive key mask
    q_all = q_ref[0]                       # (tq, D) bf16  (pre-scaled Q columns)
    kv = kv_ref[0]                         # (S_pad, 3D) bf16, resident across q tiles
    D = heads * dh
    # TODO(synk): for S ~ 1e3+ (v7x's 64 MiB VMEM) additionally tile the key
    # axis with an online-softmax (m, l, acc) accumulator to cap the (tq, S)
    # score tile; at moderate S the (tq, S) tile per head already fits.
    for h in range(heads):                 # static unroll; heads is small
        q = q_all[:, h * dh:(h + 1) * dh]
        k = kv[:, D + h * dh:D + (h + 1) * dh]
        v = kv[:, 2 * D + h * dh:2 * D + (h + 1) * dh]
        s = lax.dot_general(q, k, (((1,), (1,)), ((), ())),
                            preferred_element_type=jnp.float32)
        s = s + mask                       # scale already folded into Q weights
        s = s - jnp.max(s, axis=-1, keepdims=True)
        p = jnp.exp(s)
        p = p * pl.reciprocal(jnp.sum(p, axis=-1, keepdims=True), approx=True)
        out_h = jnp.dot(p.astype(v.dtype), v,
                        preferred_element_type=jnp.float32)
        # per-head store: head registers retire before the next head starts
        o_ref[0, :, h * dh:(h + 1) * dh] = out_h.astype(o_ref.dtype)


def multihead_attention(qkv, attn_bias, *, heads, tq):
    """qkv: (B, S_pad, 3*D), columns laid out [Q | K | V] with heads contiguous
    on the lane axis (Q columns pre-scaled by 1/sqrt(dh)).  Returns a
    lane-dense (B, S_pad, D) output."""
    B, S_pad, threeD = qkv.shape
    D = threeD // 3
    dh = D // heads
    assert S_pad % tq == 0
    kernel = functools.partial(_attn_kernel, heads=heads, dh=dh)
    return pl.pallas_call(
        kernel,
        grid=(B, S_pad // tq),
        in_specs=[pl.BlockSpec((1, S_pad), lambda b, qi: (0, 0)),
                  # Q view of the qkv slab: only the first D columns, tiled on q
                  pl.BlockSpec((1, tq, D), lambda b, qi: (b, qi, 0)),
                  # full K/V slab, resident across query tiles of the same batch
                  pl.BlockSpec((1, S_pad, threeD), lambda b, qi: (b, 0, 0))],
        out_specs=pl.BlockSpec((1, tq, D), lambda b, qi: (b, qi, 0)),
        out_shape=jax.ShapeDtypeStruct((B, S_pad, D), jnp.bfloat16),
        compiler_params=pltpu.CompilerParams(
            dimension_semantics=("parallel", "parallel"),
            vmem_limit_bytes=_VMEM_LIMIT_ATTN),
    )(attn_bias, qkv, qkv)


# ----------------------------------------------------------------------------
# Synthetic backbone (the wrapped `model`) built on the kernels above
# ----------------------------------------------------------------------------

def init_backbone_params(key, *, in_chans, patch, embed_dim, depth, heads,
                         mlp_ratio, num_patches):
    std = 0.02
    D = embed_dim
    dh = D // heads
    q_scale = 1.0 / (dh ** 0.5)
    hidden = mlp_ratio * D
    keys = list(jax.random.split(key, 4 + depth))

    def nrm(k, shape):
        return std * jax.random.normal(k, shape, dtype=jnp.float32)

    params = {
        # big weight matrices in bf16 (MXU native); everything else stays f32
        "pe_w": nrm(keys[0], (in_chans * patch * patch, D)).astype(jnp.bfloat16),
        "pe_b": jnp.zeros((D,), jnp.float32),
        "cls": nrm(keys[1], (1, 1, D)),
        "pos": nrm(keys[2], (1, num_patches + 1, D)),
        "ln_g": jnp.ones((D,), jnp.float32),
        "ln_b": jnp.zeros((D,), jnp.float32),
        "blocks": [],
    }
    for d in range(depth):
        bk = jax.random.split(keys[4 + d], 4)
        qkv_w = nrm(bk[0], (D, 3 * D))
        qkv_b = jnp.zeros((3 * D,), jnp.float32)
        # fold the 1/sqrt(dh) softmax scale into the Q columns (free at prep)
        qkv_w = qkv_w.at[:, :D].multiply(q_scale)
        qkv_b = qkv_b.at[:D].multiply(q_scale)
        params["blocks"].append({
            "ln1_g": jnp.ones((D,), jnp.float32),
            "ln1_b": jnp.zeros((D,), jnp.float32),
            # qkv columns: [Q_h0..Q_hH | K_h0..K_hH | V_h0..V_hH]
            "qkv_w": qkv_w.astype(jnp.bfloat16),
            "qkv_b": qkv_b,
            "proj_w": nrm(bk[1], (D, D)).astype(jnp.bfloat16),
            "proj_b": jnp.zeros((D,), jnp.float32),
            "ln2_g": jnp.ones((D,), jnp.float32),
            "ln2_b": jnp.zeros((D,), jnp.float32),
            "fc1_w": nrm(bk[2], (D, hidden)).astype(jnp.bfloat16),
            "fc1_b": jnp.zeros((hidden,), jnp.float32),
            "fc2_w": nrm(bk[3], (hidden, D)).astype(jnp.bfloat16),
            "fc2_b": jnp.zeros((D,), jnp.float32),
        })
    return params


def _extract_patches(x, P):
    # x: (B, C, H, W) NCHW -> (B, N, C*P*P); patch-flatten order (c, ph, pw)
    # matches PyTorch Conv2d(weight (D, C, P, P)) as a matmul.
    B, C, H, W = x.shape
    gh, gw = H // P, W // P
    x = x.reshape(B, C, gh, P, gw, P)
    x = x.transpose(0, 2, 4, 1, 3, 5)          # (B, gh, gw, C, P, P)
    return x.reshape(B, gh * gw, C * P * P)


def forward_features(params, x, *, patch, embed_dim, heads):
    B, C, H, W = x.shape
    D = embed_dim
    gh, gw = H // patch, W // patch
    N = gh * gw
    S = N + 1
    S_pad = ((S + 7) // 8) * 8                  # pad token axis to sublane mult
    tq = _sublane_tile(S_pad, cap=128)          # attention query tile

    patches = _extract_patches(x, patch).reshape(B * N, C * patch * patch)
    patches = patches.astype(jnp.bfloat16)
    # patch embedding emitted in f32 so the cls/pos add keeps full precision
    tok = matmul_bias(patches, params["pe_w"], params["pe_b"],
                      out_dtype=jnp.float32).reshape(B, N, D)
    cls = jnp.broadcast_to(params["cls"], (B, 1, D))
    tok = jnp.concatenate([cls, tok], axis=1) + params["pos"]        # (B, S, D) f32
    tok = jnp.pad(tok, ((0, 0), (0, S_pad - S), (0, 0)))             # (B, S_pad, D)
    tok = tok.astype(jnp.bfloat16).reshape(B * S_pad, D)             # bf16 slab

    # additive key-padding mask, precomputed once (hoisted out of the kernel)
    attn_bias = jnp.where(jnp.arange(S_pad) < S, 0.0, -1e30)
    attn_bias = attn_bias.reshape(1, S_pad).astype(jnp.float32)

    for blk in params["blocks"]:
        # LN1 fused into the QKV projection (LN cached per row tile in VMEM)
        qkv = matmul_bias(tok, blk["qkv_w"], blk["qkv_b"],
                          ln=(blk["ln1_g"], blk["ln1_b"]))           # (B*S_pad, 3D)
        attn = multihead_attention(qkv.reshape(B, S_pad, 3 * D), attn_bias,
                                   heads=heads, tq=tq)               # (B, S_pad, D)
        # output projection with the residual fused into the epilogue
        tok = matmul_bias_residual(attn.reshape(B * S_pad, D),
                                   blk["proj_w"], blk["proj_b"], tok)
        # LN2 + fc1 + GELU fused; fc2 + residual fused
        h = matmul_bias(tok, blk["fc1_w"], blk["fc1_b"], activation="gelu",
                        ln=(blk["ln2_g"], blk["ln2_b"]))
        tok = matmul_bias_residual(h, blk["fc2_w"], blk["fc2_b"], tok)

    tok = layernorm(tok, params["ln_g"], params["ln_b"])             # f32
    return tok.reshape(B, S_pad, D)[:, :S]                           # (B, 1+N, D)


# ----------------------------------------------------------------------------
# PDNWrapper.forward equivalent: out = model(x); return (out, [out])
# ----------------------------------------------------------------------------

def pdn_wrapper_forward(params, x, *, patch, embed_dim, heads, out_res):
    """x: (B, C, H, W) NCHW.  The wrapped model maps it to a
    (B, embed_dim, h, w) feature map; the wrapper returns (out, [out])."""
    B = x.shape[0]
    feats = forward_features(params, x, patch=patch, embed_dim=embed_dim,
                             heads=heads)                            # (B, 1+N, D)
    feats = feats[:, 1:]                                             # drop CLS
    h, w = out_res
    out = feats.transpose(0, 2, 1).reshape(B, embed_dim, h, w)       # b c h w
    return out, [out]


# ----------------------------------------------------------------------------

if __name__ == "__main__":
    # Small, self-consistent configuration:
    #   image 32x32, patch 4 -> 8x8 patch grid -> out_res=(8, 8)
    #   embed 128, 4 heads, hidden 512 (exercises the K-tiled accumulator path)
    B, C, H, W = 2, 3, 32, 32
    PATCH = 4
    EMBED_DIM = 128
    HEADS = 4
    DEPTH = 2
    MLP_RATIO = 4
    OUT_RES = (H // PATCH, W // PATCH)
    N_PATCHES = OUT_RES[0] * OUT_RES[1]

    key = jax.random.PRNGKey(0)
    k_params, k_x = jax.random.split(key)
    params = init_backbone_params(
        k_params, in_chans=C, patch=PATCH, embed_dim=EMBED_DIM, depth=DEPTH,
        heads=HEADS, mlp_ratio=MLP_RATIO, num_patches=N_PATCHES)
    x = jax.random.normal(k_x, (B, C, H, W), dtype=jnp.float32)

    fwd = jax.jit(functools.partial(
        pdn_wrapper_forward, patch=PATCH, embed_dim=EMBED_DIM, heads=HEADS,
        out_res=OUT_RES))
    out, out_list = fwd(params, x)
    jax.block_until_ready(out)
    jax.block_until_ready(out_list[0])

    assert out.shape == (B, EMBED_DIM, OUT_RES[0], OUT_RES[1]), out.shape
    assert out_list[0].shape == out.shape
    assert bool(jnp.all(jnp.isfinite(out)))
    print("KERNEL_OK")
</pallas_src>

<mosaic_0001>
module attributes {stable_mosaic.version = 11 : i64} {
  func.func @_matmul_bias_kernel(%arg0: i32, %arg1: i32, %arg2: memref<128x48xbf16, #tpu.memory_space<vmem>>, %arg3: memref<48x128xbf16, #tpu.memory_space<vmem>>, %arg4: memref<1x128xf32, #tpu.memory_space<vmem>>, %arg5: memref<128x128xf32, #tpu.memory_space<vmem>>) attributes {dimension_semantics = [#tpu.dimension_semantics<parallel>, #tpu.dimension_semantics<parallel>], iteration_bounds = array<i64: 1, 1>, scalar_prefetch = 0 : i64, scratch_operands = 0 : i64, tpu.core_type = #tpu.core_type<tc>, window_params = [{transform_indices = @transform_0, window_bounds = array<i64: 128, 48>}, {transform_indices = @transform_1, window_bounds = array<i64: 48, 128>}, {transform_indices = @transform_2, window_bounds = array<i64: 1, 128>}, {transform_indices = @transform_3, window_bounds = array<i64: 128, 128>}]} {
    %c0 = arith.constant 0 : index
    %c0_0 = arith.constant 0 : index
    %0 = vector.load %arg2[%c0, %c0_0] : memref<128x48xbf16, #tpu.memory_space<vmem>>, vector<128x48xbf16>
    %c0_1 = arith.constant 0 : index
    %c0_2 = arith.constant 0 : index
    %1 = vector.load %arg3[%c0_1, %c0_2] : memref<48x128xbf16, #tpu.memory_space<vmem>>, vector<48x128xbf16>
    %cst = arith.constant dense<0.000000e+00> : vector<128x128xf32>
    %2 = tpu.matmul %0, %1, %cst {dimension_numbers = #tpu.dot_dimension_numbers<[1], [0], [0], [1], [0, 0, 1, 1], [], []>} : vector<128x48xbf16>, vector<48x128xbf16>, vector<128x128xf32> -> vector<128x128xf32>
    %c0_3 = arith.constant 0 : index
    %c0_4 = arith.constant 0 : index
    %3 = vector.load %arg4[%c0_3, %c0_4] : memref<1x128xf32, #tpu.memory_space<vmem>>, vector<1x128xf32>
    %4 = vector.broadcast %3 : vector<1x128xf32> to vector<128x128xf32>
    %5 = arith.addf %2, %4 : vector<128x128xf32>
    %c0_5 = arith.constant 0 : index
    %c0_6 = arith.constant 0 : index
    %6 = vector.load %arg5[%c0_5, %c0_6] : memref<128x128xf32, #tpu.memory_space<vmem>>, vector<128x128xf32>
    tpu.vector_store %arg5[%c0_5, %c0_6], %5 {strides = array<i32>} : memref<128x128xf32, #tpu.memory_space<vmem>>, vector<128x128xf32>,
    return
  }
  func.func @transform_0(%arg0: i32, %arg1: i32) -> (i32, i32) {
    %c0_i32 = arith.constant 0 : i32
    %c0_i32_0 = arith.constant 0 : i32
    return %arg0, %c0_i32 : i32, i32
  }
  func.func @transform_1(%arg0: i32, %arg1: i32) -> (i32, i32) {
    %c0_i32 = arith.constant 0 : i32
    %c0_i32_0 = arith.constant 0 : i32
    return %c0_i32, %arg1 : i32, i32
  }
  func.func @transform_2(%arg0: i32, %arg1: i32) -> (i32, i32) {
    %c0_i32 = arith.constant 0 : i32
    %c0_i32_0 = arith.constant 0 : i32
    return %c0_i32, %arg1 : i32, i32
  }
  func.func @transform_3(%arg0: i32, %arg1: i32) -> (i32, i32) {
    %c0_i32 = arith.constant 0 : i32
    return %arg0, %arg1 : i32, i32
  }
}

module attributes {stable_mosaic.version = 11 : i64} {
  func.func @_ln_matmul_bias_kernel(%arg0: i32, %arg1: i32, %arg2: memref<144x128xbf16, #tpu.memory_space<vmem>>, %arg3: memref<1x128xf32, #tpu.memory_space<vmem>>, %arg4: memref<1x128xf32, #tpu.memory_space<vmem>>, %arg5: memref<128x384xbf16, #tpu.memory_space<vmem>>, %arg6: memref<1x384xf32, #tpu.memory_space<vmem>>, %arg7: memref<144x384xbf16, #tpu.memory_space<vmem>>, %arg8: memref<144x128xbf16, #tpu.memory_space<vmem>>) attributes {dimension_semantics = [#tpu.dimension_semantics<parallel>, #tpu.dimension_semantics<arbitrary>], iteration_bounds = array<i64: 1, 1>, scalar_prefetch = 0 : i64, scratch_operands = 1 : i64, tpu.core_type = #tpu.core_type<tc>, window_params = [{transform_indices = @transform_0, window_bounds = array<i64: 144, 128>}, {pipeline_mode = #tpu.pipeline_mode<synchronous>, transform_indices = @transform_1, window_bounds = array<i64: 1, 128>}, {pipeline_mode = #tpu.pipeline_mode<synchronous>, transform_indices = @transform_2, window_bounds = array<i64: 1, 128>}, {transform_indices = @transform_3, window_bounds = array<i64: 128, 384>}, {transform_indices = @transform_4, window_bounds = array<i64: 1, 384>}, {transform_indices = @transform_5, window_bounds = array<i64: 144, 384>}]} {
    %c0_i32 = arith.constant 0 : i32
    %0 = arith.cmpi eq, %arg1, %c0_i32 : i32
    %1 = arith.extui %0 : i1 to i32
    %c0_i32_0 = arith.constant 0 : i32
    %2 = arith.cmpi ne, %1, %c0_i32_0 : i32
    scf.if %2 {
      %c0_8 = arith.constant 0 : index
      %c0_9 = arith.constant 0 : index
      %11 = vector.load %arg2[%c0_8, %c0_9] : memref<144x128xbf16, #tpu.memory_space<vmem>>, vector<144x128xbf16>
      %12 = arith.extf %11 : vector<144x128xbf16> to vector<144x128xf32>
      %cst_10 = arith.constant dense<0.000000e+00> : vector<144xf32>
      %13 = vector.multi_reduction <add>, %12, %cst_10 [1] : vector<144x128xf32> to vector<144xf32>
      %14 = vector.shape_cast %13 : vector<144xf32> to vector<144x1xf32>
      %cst_11 = arith.constant 1.280000e+02 : f32
      %15 = vector.broadcast %cst_11 : f32 to vector<144x1xf32>
      %16 = arith.divf %14, %15 : vector<144x1xf32>
      %17 = vector.broadcast %16 : vector<144x1xf32> to vector<144x128xf32>
      %18 = arith.subf %12, %17 : vector<144x128xf32>
      %19 = arith.mulf %18, %18 : vector<144x128xf32>
      %cst_12 = arith.constant dense<0.000000e+00> : vector<144xf32>
      %20 = vector.multi_reduction <add>, %19, %cst_12 [1] : vector<144x128xf32> to vector<144xf32>
      %21 = vector.shape_cast %20 : vector<144xf32> to vector<144x1xf32>
      %cst_13 = arith.constant 1.280000e+02 : f32
      %22 = vector.broadcast %cst_13 : f32 to vector<144x1xf32>
      %23 = arith.divf %21, %22 : vector<144x1xf32>
      %24 = vector.broadcast %16 : vector<144x1xf32> to vector<144x128xf32>
      %25 = arith.subf %12, %24 : vector<144x128xf32>
      %cst_14 = arith.constant 9.99999997E-7 : f32
      %26 = vector.broadcast %cst_14 : f32 to vector<144x1xf32>
      %27 = arith.addf %23, %26 : vector<144x1xf32>
      %28 = math.rsqrt %27 : vector<144x1xf32>
      %29 = vector.broadcast %28 : vector<144x1xf32> to vector<144x128xf32>
      %30 = arith.mulf %25, %29 : vector<144x128xf32>
      %c0_15 = arith.constant 0 : index
      %c0_16 = arith.constant 0 : index
      %31 = vector.load %arg3[%c0_15, %c0_16] : memref<1x128xf32, #tpu.memory_space<vmem>>, vector<1x128xf32>
      %32 = vector.broadcast %31 : vector<1x128xf32> to vector<144x128xf32>
      %33 = arith.mulf %30, %32 : vector<144x128xf32>
      %c0_17 = arith.constant 0 : index
      %c0_18 = arith.constant 0 : index
      %34 = vector.load %arg4[%c0_17, %c0_18] : memref<1x128xf32, #tpu.memory_space<vmem>>, vector<1x128xf32>
      %35 = vector.broadcast %34 : vector<1x128xf32> to vector<144x128xf32>
      %36 = arith.addf %33, %35 : vector<144x128xf32>
      %37 = arith.truncf %36 : vector<144x128xf32> to vector<144x128xbf16>
      %c0_19 = arith.constant 0 : index
      %c0_20 = arith.constant 0 : index
      %38 = vector.load %arg8[%c0_19, %c0_20] : memref<144x128xbf16, #tpu.memory_space<vmem>>, vector<144x128xbf16>
      tpu.vector_store %arg8[%c0_19, %c0_20], %37 {strides = array<i32>} : memref<144x128xbf16, #tpu.memory_space<vmem>>, vector<144x128xbf16>,
    } else {
    }
    %c0 = arith.constant 0 : index
    %c0_1 = arith.constant 0 : index
    %3 = vector.load %arg8[%c0, %c0_1] : memref<144x128xbf16, #tpu.memory_space<vmem>>, vector<144x128xbf16>
    %c0_2 = arith.constant 0 : index
    %c0_3 = arith.constant 0 : index
    %4 = vector.load %arg5[%c0_2, %c0_3] : memref<128x384xbf16, #tpu.memory_space<vmem>>, vector<128x384xbf16>
    %cst = arith.constant dense<0.000000e+00> : vector<144x384xf32>
    %5 = tpu.matmul %3, %4, %cst {dimension_numbers = #tpu.dot_dimension_numbers<[1], [0], [0], [1], [0, 0, 1, 1], [], []>} : vector<144x128xbf16>, vector<128x384xbf16>, vector<144x384xf32> -> vector<144x384xf32>
    %c0_4 = arith.constant 0 : index
    %c0_5 = arith.constant 0 : index
    %6 = vector.load %arg6[%c0_4, %c0_5] : memref<1x384xf32, #tpu.memory_space<vmem>>, vector<1x384xf32>
    %7 = vector.broadcast %6 : vector<1x384xf32> to vector<144x384xf32>
    %8 = arith.addf %5, %7 : vector<144x384xf32>
    %9 = arith.truncf %8 : vector<144x384xf32> to vector<144x384xbf16>
    %c0_6 = arith.constant 0 : index
    %c0_7 = arith.constant 0 : index
    %10 = vector.load %arg7[%c0_6, %c0_7] : memref<144x384xbf16, #tpu.memory_space<vmem>>, vector<144x384xbf16>
    tpu.vector_store %arg7[%c0_6, %c0_7], %9 {strides = array<i32>} : memref<144x384xbf16, #tpu.memory_space<vmem>>, vector<144x384xbf16>,
    return
  }
  func.func @transform_0(%arg0: i32, %arg1: i32) -> (i32, i32) {
    %c0_i32 = arith.constant 0 : i32
    %c0_i32_0 = arith.constant 0 : i32
    return %arg0, %c0_i32 : i32, i32
  }
  func.func @transform_1(%arg0: i32, %arg1: i32) -> (i32, i32) {
    %c0_i32 = arith.constant 0 : i32
    %c0_i32_0 = arith.constant 0 : i32
    %c0_i32_1 = arith.constant 0 : i32
    return %c0_i32, %c0_i32_0 : i32, i32
  }
  func.func @transform_2(%arg0: i32, %arg1: i32) -> (i32, i32) {
    %c0_i32 = arith.constant 0 : i32
    %c0_i32_0 = arith.constant 0 : i32
    %c0_i32_1 = arith.constant 0 : i32
    return %c0_i32, %c0_i32_0 : i32, i32
  }
  func.func @transform_3(%arg0: i32, %arg1: i32) -> (i32, i32) {
    %c0_i32 = arith.constant 0 : i32
    %c0_i32_0 = arith.constant 0 : i32
    return %c0_i32, %arg1 : i32, i32
  }
  func.func @transform_4(%arg0: i32, %arg1: i32) -> (i32, i32) {
    %c0_i32 = arith.constant 0 : i32
    %c0_i32_0 = arith.constant 0 : i32
    return %c0_i32, %arg1 : i32, i32
  }
  func.func @transform_5(%arg0: i32, %arg1: i32) -> (i32, i32) {
    %c0_i32 = arith.constant 0 : i32
    return %arg0, %arg1 : i32, i32
  }
}

module attributes {stable_mosaic.version = 11 : i64} {
  func.func @_attn_kernel(%arg0: i32, %arg1: i32, %arg2: memref<1x72xf32, #tpu.memory_space<vmem>>, %arg3: memref<1x72x128xbf16, #tpu.memory_space<vmem>>, %arg4: memref<1x72x384xbf16, #tpu.memory_space<vmem>>, %arg5: memref<1x72x128xbf16, #tpu.memory_space<vmem>>) attributes {dimension_semantics = [#tpu.dimension_semantics<parallel>, #tpu.dimension_semantics<parallel>], iteration_bounds = array<i64: 2, 1>, scalar_prefetch = 0 : i64, scratch_operands = 0 : i64, tpu.core_type = #tpu.core_type<tc>, window_params = [{pipeline_mode = #tpu.pipeline_mode<synchronous>, transform_indices = @transform_0, window_bounds = array<i64: 1, 72>}, {transform_indices = @transform_1, window_bounds = array<i64: 1, 72, 128>}, {transform_indices = @transform_2, window_bounds = array<i64: 1, 72, 384>}, {transform_indices = @transform_3, window_bounds = array<i64: 1, 72, 128>}]} {
    %c0 = arith.constant 0 : index
    %c0_0 = arith.constant 0 : index
    %0 = vector.load %arg2[%c0, %c0_0] : memref<1x72xf32, #tpu.memory_space<vmem>>, vector<1x72xf32>
    %c0_1 = arith.constant 0 : index
    %c0_2 = arith.constant 0 : index
    %c0_3 = arith.constant 0 : index
    %1 = vector.load %arg3[%c0_1, %c0_2, %c0_3] : memref<1x72x128xbf16, #tpu.memory_space<vmem>>, vector<1x72x128xbf16>
    %2 = vector.shape_cast %1 : vector<1x72x128xbf16> to vector<72x128xbf16>
    %c0_4 = arith.constant 0 : index
    %c0_5 = arith.constant 0 : index
    %c0_6 = arith.constant 0 : index
    %3 = vector.load %arg4[%c0_4, %c0_5, %c0_6] : memref<1x72x384xbf16, #tpu.memory_space<vmem>>, vector<1x72x384xbf16>
    %4 = vector.shape_cast %3 : vector<1x72x384xbf16> to vector<72x384xbf16>
    %5 = vector.extract_strided_slice %2 {offsets = [0, 0], sizes = [72, 32], strides = [1, 1]} : vector<72x128xbf16> to vector<72x32xbf16>
    %6 = vector.extract_strided_slice %4 {offsets = [0, 128], sizes = [72, 32], strides = [1, 1]} : vector<72x384xbf16> to vector<72x32xbf16>
    %7 = vector.extract_strided_slice %4 {offsets = [0, 256], sizes = [72, 32], strides = [1, 1]} : vector<72x384xbf16> to vector<72x32xbf16>
    %cst = arith.constant dense<0.000000e+00> : vector<72x72xf32>
    %8 = tpu.matmul %5, %6, %cst {dimension_numbers = #tpu.dot_dimension_numbers<[1], [1], [0], [0], [0, 0, 1, 0], [], []>} : vector<72x32xbf16>, vector<72x32xbf16>, vector<72x72xf32> -> vector<72x72xf32>
    %9 = vector.broadcast %0 : vector<1x72xf32> to vector<72x72xf32>
    %10 = arith.addf %8, %9 : vector<72x72xf32>
    %cst_7 = arith.constant dense<0xFF800000> : vector<72xf32>
    %11 = vector.multi_reduction <maximumf>, %10, %cst_7 [1] : vector<72x72xf32> to vector<72xf32>
    %12 = vector.shape_cast %11 : vector<72xf32> to vector<72x1xf32>
    %13 = vector.broadcast %12 : vector<72x1xf32> to vector<72x72xf32>
    %14 = arith.subf %10, %13 : vector<72x72xf32>
    %15 = math.exp %14 : vector<72x72xf32>
    %cst_8 = arith.constant dense<0.000000e+00> : vector<72xf32>
    %16 = vector.multi_reduction <add>, %15, %cst_8 [1] : vector<72x72xf32> to vector<72xf32>
    %17 = vector.shape_cast %16 : vector<72xf32> to vector<72x1xf32>
    %18 = tpu.reciprocal %17 {approx = true} : vector<72x1xf32> -> vector<72x1xf32>
    %19 = vector.broadcast %18 : vector<72x1xf32> to vector<72x72xf32>
    %20 = arith.mulf %15, %19 : vector<72x72xf32>
    %21 = arith.truncf %20 : vector<72x72xf32> to vector<72x72xbf16>
    %cst_9 = arith.constant dense<0.000000e+00> : vector<72x32xf32>
    %22 = tpu.matmul %21, %7, %cst_9 {dimension_numbers = #tpu.dot_dimension_numbers<[1], [0], [0], [1], [0, 0, 1, 1], [], []>} : vector<72x72xbf16>, vector<72x32xbf16>, vector<72x32xf32> -> vector<72x32xf32>
    %23 = arith.truncf %22 : vector<72x32xf32> to vector<72x32xbf16>
    %c0_10 = arith.constant 0 : index
    %c0_11 = arith.constant 0 : index
    %c0_12 = arith.constant 0 : index
    %24 = vector.load %arg5[%c0_10, %c0_11, %c0_12] : memref<1x72x128xbf16, #tpu.memory_space<vmem>>, vector<1x72x32xbf16>
    %25 = vector.shape_cast %24 : vector<1x72x32xbf16> to vector<72x32xbf16>
    %26 = vector.shape_cast %23 : vector<72x32xbf16> to vector<1x72x32xbf16>
    tpu.vector_store %arg5[%c0_10, %c0_11, %c0_12], %26 {strides = array<i32>} : memref<1x72x128xbf16, #tpu.memory_space<vmem>>, vector<1x72x32xbf16>,
    %27 = vector.extract_strided_slice %2 {offsets = [0, 32], sizes = [72, 32], strides = [1, 1]} : vector<72x128xbf16> to vector<72x32xbf16>
    %28 = vector.extract_strided_slice %4 {offsets = [0, 160], sizes = [72, 32], strides = [1, 1]} : vector<72x384xbf16> to vector<72x32xbf16>
    %29 = vector.extract_strided_slice %4 {offsets = [0, 288], sizes = [72, 32], strides = [1, 1]} : vector<72x384xbf16> to vector<72x32xbf16>
    %cst_13 = arith.constant dense<0.000000e+00> : vector<72x72xf32>
    %30 = tpu.matmul %27, %28, %cst_13 {dimension_numbers = #tpu.dot_dimension_numbers<[1], [1], [0], [0], [0, 0, 1, 0], [], []>} : vector<72x32xbf16>, vector<72x32xbf16>, vector<72x72xf32> -> vector<72x72xf32>
    %31 = vector.broadcast %0 : vector<1x72xf32> to vector<72x72xf32>
    %32 = arith.addf %30, %31 : vector<72x72xf32>
    %cst_14 = arith.constant dense<0xFF800000> : vector<72xf32>
    %33 = vector.multi_reduction <maximumf>, %32, %cst_14 [1] : vector<72x72xf32> to vector<72xf32>
    %34 = vector.shape_cast %33 : vector<72xf32> to vector<72x1xf32>
    %35 = vector.broadcast %34 : vector<72x1xf32> to vector<72x72xf32>
    %36 = arith.subf %32, %35 : vector<72x72xf32>
    %37 = math.exp %36 : vector<72x72xf32>
    %cst_15 = arith.constant dense<0.000000e+00> : vector<72xf32>
    %38 = vector.multi_reduction <add>, %37, %cst_15 [1] : vector<72x72xf32> to vector<72xf32>
    %39 = vector.shape_cast %38 : vector<72xf32> to vector<72x1xf32>
    %40 = tpu.reciprocal %39 {approx = true} : vector<72x1xf32> -> vector<72x1xf32>
    %41 = vector.broadcast %40 : vector<72x1xf32> to vector<72x72xf32>
    %42 = arith.mulf %37, %41 : vector<72x72xf32>
    %43 = arith.truncf %42 : vector<72x72xf32> to vector<72x72xbf16>
    %cst_16 = arith.constant dense<0.000000e+00> : vector<72x32xf32>
    %44 = tpu.matmul %43, %29, %cst_16 {dimension_numbers = #tpu.dot_dimension_numbers<[1], [0], [0], [1], [0, 0, 1, 1], [], []>} : vector<72x72xbf16>, vector<72x32xbf16>, vector<72x32xf32> -> vector<72x32xf32>
    %45 = arith.truncf %44 : vector<72x32xf32> to vector<72x32xbf16>
    %c0_17 = arith.constant 0 : index
    %c0_18 = arith.constant 0 : index
    %c32 = arith.constant 32 : index
    %46 = vector.load %arg5[%c0_17, %c0_18, %c32] : memref<1x72x128xbf16, #tpu.memory_space<vmem>>, vector<1x72x32xbf16>
    %47 = vector.shape_cast %46 : vector<1x72x32xbf16> to vector<72x32xbf16>
    %48 = vector.shape_cast %45 : vector<72x32xbf16> to vector<1x72x32xbf16>
    tpu.vector_store %arg5[%c0_17, %c0_18, %c32], %48 {strides = array<i32>} : memref<1x72x128xbf16, #tpu.memory_space<vmem>>, vector<1x72x32xbf16>,
    %49 = vector.extract_strided_slice %2 {offsets = [0, 64], sizes = [72, 32], strides = [1, 1]} : vector<72x128xbf16> to vector<72x32xbf16>
    %50 = vector.extract_strided_slice %4 {offsets = [0, 192], sizes = [72, 32], strides = [1, 1]} : vector<72x384xbf16> to vector<72x32xbf16>
    %51 = vector.extract_strided_slice %4 {offsets = [0, 320], sizes = [72, 32], strides = [1, 1]} : vector<72x384xbf16> to vector<72x32xbf16>
    %cst_19 = arith.constant dense<0.000000e+00> : vector<72x72xf32>
    %52 = tpu.matmul %49, %50, %cst_19 {dimension_numbers = #tpu.dot_dimension_numbers<[1], [1], [0], [0], [0, 0, 1, 0], [], []>} : vector<72x32xbf16>, vector<72x32xbf16>, vector<72x72xf32> -> vector<72x72xf32>
    %53 = vector.broadcast %0 : vector<1x72xf32> to vector<72x72xf32>
    %54 = arith.addf %52, %53 : vector<72x72xf32>
    %cst_20 = arith.constant dense<0xFF800000> : vector<72xf32>
    %55 = vector.multi_reduction <maximumf>, %54, %cst_20 [1] : vector<72x72xf32> to vector<72xf32>
    %56 = vector.shape_cast %55 : vector<72xf32> to vector<72x1xf32>
    %57 = vector.broadcast %56 : vector<72x1xf32> to vector<72x72xf32>
    %58 = arith.subf %54, %57 : vector<72x72xf32>
    %59 = math.exp %58 : vector<72x72xf32>
    %cst_21 = arith.constant dense<0.000000e+00> : vector<72xf32>
    %60 = vector.multi_reduction <add>, %59, %cst_21 [1] : vector<72x72xf32> to vector<72xf32>
    %61 = vector.shape_cast %60 : vector<72xf32> to vector<72x1xf32>
    %62 = tpu.reciprocal %61 {approx = true} : vector<72x1xf32> -> vector<72x1xf32>
    %63 = vector.broadcast %62 : vector<72x1xf32> to vector<72x72xf32>
    %64 = arith.mulf %59, %63 : vector<72x72xf32>
    %65 = arith.truncf %64 : vector<72x72xf32> to vector<72x72xbf16>
    %cst_22 = arith.constant dense<0.000000e+00> : vector<72x32xf32>
    %66 = tpu.matmul %65, %51, %cst_22 {dimension_numbers = #tpu.dot_dimension_numbers<[1], [0], [0], [1], [0, 0, 1, 1], [], []>} : vector<72x72xbf16>, vector<72x32xbf16>, vector<72x32xf32> -> vector<72x32xf32>
    %67 = arith.truncf %66 : vector<72x32xf32> to vector<72x32xbf16>
    %c0_23 = arith.constant 0 : index
    %c0_24 = arith.constant 0 : index
    %c64 = arith.constant 64 : index
    %68 = vector.load %arg5[%c0_23, %c0_24, %c64] : memref<1x72x128xbf16, #tpu.memory_space<vmem>>, vector<1x72x32xbf16>
    %69 = vector.shape_cast %68 : vector<1x72x32xbf16> to vector<72x32xbf16>
    %70 = vector.shape_cast %67 : vector<72x32xbf16> to vector<1x72x32xbf16>
    tpu.vector_store %arg5[%c0_23, %c0_24, %c64], %70 {strides = array<i32>} : memref<1x72x128xbf16, #tpu.memory_space<vmem>>, vector<1x72x32xbf16>,
    %71 = vector.extract_strided_slice %2 {offsets = [0, 96], sizes = [72, 32], strides = [1, 1]} : vector<72x128xbf16> to vector<72x32xbf16>
    %72 = vector.extract_strided_slice %4 {offsets = [0, 224], sizes = [72, 32], strides = [1, 1]} : vector<72x384xbf16> to vector<72x32xbf16>
    %73 = vector.extract_strided_slice %4 {offsets = [0, 352], sizes = [72, 32], strides = [1, 1]} : vector<72x384xbf16> to vector<72x32xbf16>
    %cst_25 = arith.constant dense<0.000000e+00> : vector<72x72xf32>
    %74 = tpu.matmul %71, %72, %cst_25 {dimension_numbers = #tpu.dot_dimension_numbers<[1], [1], [0], [0], [0, 0, 1, 0], [], []>} : vector<72x32xbf16>, vector<72x32xbf16>, vector<72x72xf32> -> vector<72x72xf32>
    %75 = vector.broadcast %0 : vector<1x72xf32> to vector<72x72xf32>
    %76 = arith.addf %74, %75 : vector<72x72xf32>
    %cst_26 = arith.constant dense<0xFF800000> : vector<72xf32>
    %77 = vector.multi_reduction <maximumf>, %76, %cst_26 [1] : vector<72x72xf32> to vector<72xf32>
    %78 = vector.shape_cast %77 : vector<72xf32> to vector<72x1xf32>
    %79 = vector.broadcast %78 : vector<72x1xf32> to vector<72x72xf32>
    %80 = arith.subf %76, %79 : vector<72x72xf32>
    %81 = math.exp %80 : vector<72x72xf32>
    %cst_27 = arith.constant dense<0.000000e+00> : vector<72xf32>
    %82 = vector.multi_reduction <add>, %81, %cst_27 [1] : vector<72x72xf32> to vector<72xf32>
    %83 = vector.shape_cast %82 : vector<72xf32> to vector<72x1xf32>
    %84 = tpu.reciprocal %83 {approx = true} : vector<72x1xf32> -> vector<72x1xf32>
    %85 = vector.broadcast %84 : vector<72x1xf32> to vector<72x72xf32>
    %86 = arith.mulf %81, %85 : vector<72x72xf32>
    %87 = arith.truncf %86 : vector<72x72xf32> to vector<72x72xbf16>
    %cst_28 = arith.constant dense<0.000000e+00> : vector<72x32xf32>
    %88 = tpu.matmul %87, %73, %cst_28 {dimension_numbers = #tpu.dot_dimension_numbers<[1], [0], [0], [1], [0, 0, 1, 1], [], []>} : vector<72x72xbf16>, vector<72x32xbf16>, vector<72x32xf32> -> vector<72x32xf32>
    %89 = arith.truncf %88 : vector<72x32xf32> to vector<72x32xbf16>
    %c0_29 = arith.constant 0 : index
    %c0_30 = arith.constant 0 : index
    %c96 = arith.constant 96 : index
    %90 = vector.load %arg5[%c0_29, %c0_30, %c96] : memref<1x72x128xbf16, #tpu.memory_space<vmem>>, vector<1x72x32xbf16>
    %91 = vector.shape_cast %90 : vector<1x72x32xbf16> to vector<72x32xbf16>
    %92 = vector.shape_cast %89 : vector<72x32xbf16> to vector<1x72x32xbf16>
    tpu.vector_store %arg5[%c0_29, %c0_30, %c96], %92 {strides = array<i32>} : memref<1x72x128xbf16, #tpu.memory_space<vmem>>, vector<1x72x32xbf16>,
    return
  }
  func.func @transform_0(%arg0: i32, %arg1: i32) -> (i32, i32) {
    %c0_i32 = arith.constant 0 : i32
    %c0_i32_0 = arith.constant 0 : i32
    %c0_i32_1 = arith.constant 0 : i32
    return %c0_i32, %c0_i32_0 : i32, i32
  }
  func.func @transform_1(%arg0: i32, %arg1: i32) -> (i32, i32, i32) {
    %c0_i32 = arith.constant 0 : i32
    %c0_i32_0 = arith.constant 0 : i32
    return %arg0, %arg1, %c0_i32 : i32, i32, i32
  }
  func.func @transform_2(%arg0: i32, %arg1: i32) -> (i32, i32, i32) {
    %c0_i32 = arith.constant 0 : i32
    %c0_i32_0 = arith.constant 0 : i32
    %c0_i32_1 = arith.constant 0 : i32
    return %arg0, %c0_i32, %c0_i32_0 : i32, i32, i32
  }
  func.func @transform_3(%arg0: i32, %arg1: i32) -> (i32, i32, i32) {
    %c0_i32 = arith.constant 0 : i32
    %c0_i32_0 = arith.constant 0 : i32
    return %arg0, %arg1, %c0_i32 : i32, i32, i32
  }
}

module attributes {stable_mosaic.version = 11 : i64} {
  func.func @_matmul_bias_res_kernel(%arg0: i32, %arg1: i32, %arg2: i32, %arg3: memref<144x128xbf16, #tpu.memory_space<vmem>>, %arg4: memref<128x128xbf16, #tpu.memory_space<vmem>>, %arg5: memref<1x128xf32, #tpu.memory_space<vmem>>, %arg6: memref<144x128xbf16, #tpu.memory_space<vmem>>, %arg7: memref<144x128xbf16, #tpu.memory_space<vmem>>, %arg8: memref<144x128xf32, #tpu.memory_space<vmem>>) attributes {dimension_semantics = [#tpu.dimension_semantics<parallel>, #tpu.dimension_semantics<parallel>, #tpu.dimension_semantics<arbitrary>], iteration_bounds = array<i64: 1, 1, 1>, scalar_prefetch = 0 : i64, scratch_operands = 1 : i64, tpu.core_type = #tpu.core_type<tc>, window_params = [{transform_indices = @transform_0, window_bounds = array<i64: 144, 128>}, {transform_indices = @transform_1, window_bounds = array<i64: 128, 128>}, {transform_indices = @transform_2, window_bounds = array<i64: 1, 128>}, {transform_indices = @transform_3, window_bounds = array<i64: 144, 128>}, {transform_indices = @transform_4, window_bounds = array<i64: 144, 128>}]} {
    %c0_i32 = arith.constant 0 : i32
    %0 = arith.cmpi eq, %arg2, %c0_i32 : i32
    %1 = arith.extui %0 : i1 to i32
    %c0_i32_0 = arith.constant 0 : i32
    %2 = arith.cmpi ne, %1, %c0_i32_0 : i32
    scf.if %2 {
      %cst_10 = arith.constant 0.000000e+00 : f32
      %12 = vector.broadcast %cst_10 : f32 to vector<144x128xf32>
      %c0_11 = arith.constant 0 : index
      %c0_12 = arith.constant 0 : index
      %13 = vector.load %arg8[%c0_11, %c0_12] : memref<144x128xf32, #tpu.memory_space<vmem>>, vector<144x128xf32>
      tpu.vector_store %arg8[%c0_11, %c0_12], %12 {strides = array<i32>} : memref<144x128xf32, #tpu.memory_space<vmem>>, vector<144x128xf32>,
    } else {
    }
    %c0 = arith.constant 0 : index
    %c0_1 = arith.constant 0 : index
    %3 = vector.load %arg8[%c0, %c0_1] : memref<144x128xf32, #tpu.memory_space<vmem>>, vector<144x128xf32>
    %c0_2 = arith.constant 0 : index
    %c0_3 = arith.constant 0 : index
    %4 = vector.load %arg3[%c0_2, %c0_3] : memref<144x128xbf16, #tpu.memory_space<vmem>>, vector<144x128xbf16>
    %c0_4 = arith.constant 0 : index
    %c0_5 = arith.constant 0 : index
    %5 = vector.load %arg4[%c0_4, %c0_5] : memref<128x128xbf16, #tpu.memory_space<vmem>>, vector<128x128xbf16>
    %cst = arith.constant dense<0.000000e+00> : vector<144x128xf32>
    %6 = tpu.matmul %4, %5, %cst {dimension_numbers = #tpu.dot_dimension_numbers<[1], [0], [0], [1], [0, 0, 1, 1], [], []>} : vector<144x128xbf16>, vector<128x128xbf16>, vector<144x128xf32> -> vector<144x128xf32>
    %7 = arith.addf %3, %6 : vector<144x128xf32>
    %c0_6 = arith.constant 0 : index
    %c0_7 = arith.constant 0 : index
    %8 = vector.load %arg8[%c0_6, %c0_7] : memref<144x128xf32, #tpu.memory_space<vmem>>, vector<144x128xf32>
    tpu.vector_store %arg8[%c0_6, %c0_7], %7 {strides = array<i32>} : memref<144x128xf32, #tpu.memory_space<vmem>>, vector<144x128xf32>,
    %c0_i32_8 = arith.constant 0 : i32
    %9 = arith.cmpi eq, %arg2, %c0_i32_8 : i32
    %10 = arith.extui %9 : i1 to i32
    %c0_i32_9 = arith.constant 0 : i32
    %11 = arith.cmpi ne, %10, %c0_i32_9 : i32
    scf.if %11 {
      %c0_10 = arith.constant 0 : index
      %c0_11 = arith.constant 0 : index
      %12 = vector.load %arg8[%c0_10, %c0_11] : memref<144x128xf32, #tpu.memory_space<vmem>>, vector<144x128xf32>
      %c0_12 = arith.constant 0 : index
      %c0_13 = arith.constant 0 : index
      %13 = vector.load %arg5[%c0_12, %c0_13] : memref<1x128xf32, #tpu.memory_space<vmem>>, vector<1x128xf32>
      %14 = vector.broadcast %13 : vector<1x128xf32> to vector<144x128xf32>
      %15 = arith.addf %12, %14 : vector<144x128xf32>
      %c0_14 = arith.constant 0 : index
      %c0_15 = arith.constant 0 : index
      %16 = vector.load %arg6[%c0_14, %c0_15] : memref<144x128xbf16, #tpu.memory_space<vmem>>, vector<144x128xbf16>
      %17 = arith.extf %16 : vector<144x128xbf16> to vector<144x128xf32>
      %18 = arith.addf %15, %17 : vector<144x128xf32>
      %19 = arith.truncf %18 : vector<144x128xf32> to vector<144x128xbf16>
      %c0_16 = arith.constant 0 : index
      %c0_17 = arith.constant 0 : index
      %20 = vector.load %arg7[%c0_16, %c0_17] : memref<144x128xbf16, #tpu.memory_space<vmem>>, vector<144x128xbf16>
      tpu.vector_store %arg7[%c0_16, %c0_17], %19 {strides = array<i32>} : memref<144x128xbf16, #tpu.memory_space<vmem>>, vector<144x128xbf16>,
    } else {
    }
    return
  }
  func.func @transform_0(%arg0: i32, %arg1: i32, %arg2: i32) -> (i32, i32) {
    %c0_i32 = arith.constant 0 : i32
    return %arg0, %arg2 : i32, i32
  }
  func.func @transform_1(%arg0: i32, %arg1: i32, %arg2: i32) -> (i32, i32) {
    %c0_i32 = arith.constant 0 : i32
    return %arg2, %arg1 : i32, i32
  }
  func.func @transform_2(%arg0: i32, %arg1: i32, %arg2: i32) -> (i32, i32) {
    %c0_i32 = arith.constant 0 : i32
    %c0_i32_0 = arith.constant 0 : i32
    return %c0_i32, %arg1 : i32, i32
  }
  func.func @transform_3(%arg0: i32, %arg1: i32, %arg2: i32) -> (i32, i32) {
    %c0_i32 = arith.constant 0 : i32
    return %arg0, %arg1 : i32, i32
  }
  func.func @transform_4(%arg0: i32, %arg1: i32, %arg2: i32) -> (i32, i32) {
    %c0_i32 = arith.constant 0 : i32
    return %arg0, %arg1 : i32, i32
  }
}

module attributes {stable_mosaic.version = 11 : i64} {
  func.func @_matmul_bias_res_kernel(%arg0: i32, %arg1: i32, %arg2: i32, %arg3: memref<144x512xbf16, #tpu.memory_space<vmem>>, %arg4: memref<512x128xbf16, #tpu.memory_space<vmem>>, %arg5: memref<1x128xf32, #tpu.memory_space<vmem>>, %arg6: memref<144x128xbf16, #tpu.memory_space<vmem>>, %arg7: memref<144x128xbf16, #tpu.memory_space<vmem>>, %arg8: memref<144x128xf32, #tpu.memory_space<vmem>>) attributes {dimension_semantics = [#tpu.dimension_semantics<parallel>, #tpu.dimension_semantics<parallel>, #tpu.dimension_semantics<arbitrary>], iteration_bounds = array<i64: 1, 1, 1>, scalar_prefetch = 0 : i64, scratch_operands = 1 : i64, tpu.core_type = #tpu.core_type<tc>, window_params = [{transform_indices = @transform_0, window_bounds = array<i64: 144, 512>}, {transform_indices = @transform_1, window_bounds = array<i64: 512, 128>}, {transform_indices = @transform_2, window_bounds = array<i64: 1, 128>}, {transform_indices = @transform_3, window_bounds = array<i64: 144, 128>}, {transform_indices = @transform_4, window_bounds = array<i64: 144, 128>}]} {
    %c0_i32 = arith.constant 0 : i32
    %0 = arith.cmpi eq, %arg2, %c0_i32 : i32
    %1 = arith.extui %0 : i1 to i32
    %c0_i32_0 = arith.constant 0 : i32
    %2 = arith.cmpi ne, %1, %c0_i32_0 : i32
    scf.if %2 {
      %cst_10 = arith.constant 0.000000e+00 : f32
      %12 = vector.broadcast %cst_10 : f32 to vector<144x128xf32>
      %c0_11 = arith.constant 0 : index
      %c0_12 = arith.constant 0 : index
      %13 = vector.load %arg8[%c0_11, %c0_12] : memref<144x128xf32, #tpu.memory_space<vmem>>, vector<144x128xf32>
      tpu.vector_store %arg8[%c0_11, %c0_12], %12 {strides = array<i32>} : memref<144x128xf32, #tpu.memory_space<vmem>>, vector<144x128xf32>,
    } else {
    }
    %c0 = arith.constant 0 : index
    %c0_1 = arith.constant 0 : index
    %3 = vector.load %arg8[%c0, %c0_1] : memref<144x128xf32, #tpu.memory_space<vmem>>, vector<144x128xf32>
    %c0_2 = arith.constant 0 : index
    %c0_3 = arith.constant 0 : index
    %4 = vector.load %arg3[%c0_2, %c0_3] : memref<144x512xbf16, #tpu.memory_space<vmem>>, vector<144x512xbf16>
    %c0_4 = arith.constant 0 : index
    %c0_5 = arith.constant 0 : index
    %5 = vector.load %arg4[%c0_4, %c0_5] : memref<512x128xbf16, #tpu.memory_space<vmem>>, vector<512x128xbf16>
    %cst = arith.constant dense<0.000000e+00> : vector<144x128xf32>
    %6 = tpu.matmul %4, %5, %cst {dimension_numbers = #tpu.dot_dimension_numbers<[1], [0], [0], [1], [0, 0, 1, 1], [], []>} : vector<144x512xbf16>, vector<512x128xbf16>, vector<144x128xf32> -> vector<144x128xf32>
    %7 = arith.addf %3, %6 : vector<144x128xf32>
    %c0_6 = arith.constant 0 : index
    %c0_7 = arith.constant 0 : index
    %8 = vector.load %arg8[%c0_6, %c0_7] : memref<144x128xf32, #tpu.memory_space<vmem>>, vector<144x128xf32>
    tpu.vector_store %arg8[%c0_6, %c0_7], %7 {strides = array<i32>} : memref<144x128xf32, #tpu.memory_space<vmem>>, vector<144x128xf32>,
    %c0_i32_8 = arith.constant 0 : i32
    %9 = arith.cmpi eq, %arg2, %c0_i32_8 : i32
    %10 = arith.extui %9 : i1 to i32
    %c0_i32_9 = arith.constant 0 : i32
    %11 = arith.cmpi ne, %10, %c0_i32_9 : i32
    scf.if %11 {
      %c0_10 = arith.constant 0 : index
      %c0_11 = arith.constant 0 : index
      %12 = vector.load %arg8[%c0_10, %c0_11] : memref<144x128xf32, #tpu.memory_space<vmem>>, vector<144x128xf32>
      %c0_12 = arith.constant 0 : index
      %c0_13 = arith.constant 0 : index
      %13 = vector.load %arg5[%c0_12, %c0_13] : memref<1x128xf32, #tpu.memory_space<vmem>>, vector<1x128xf32>
      %14 = vector.broadcast %13 : vector<1x128xf32> to vector<144x128xf32>
      %15 = arith.addf %12, %14 : vector<144x128xf32>
      %c0_14 = arith.constant 0 : index
      %c0_15 = arith.constant 0 : index
      %16 = vector.load %arg6[%c0_14, %c0_15] : memref<144x128xbf16, #tpu.memory_space<vmem>>, vector<144x128xbf16>
      %17 = arith.extf %16 : vector<144x128xbf16> to vector<144x128xf32>
      %18 = arith.addf %15, %17 : vector<144x128xf32>
      %19 = arith.truncf %18 : vector<144x128xf32> to vector<144x128xbf16>
      %c0_16 = arith.constant 0 : index
      %c0_17 = arith.constant 0 : index
      %20 = vector.load %arg7[%c0_16, %c0_17] : memref<144x128xbf16, #tpu.memory_space<vmem>>, vector<144x128xbf16>
      tpu.vector_store %arg7[%c0_16, %c0_17], %19 {strides = array<i32>} : memref<144x128xbf16, #tpu.memory_space<vmem>>, vector<144x128xbf16>,
    } else {
    }
    return
  }
  func.func @transform_0(%arg0: i32, %arg1: i32, %arg2: i32) -> (i32, i32) {
    %c0_i32 = arith.constant 0 : i32
    return %arg0, %arg2 : i32, i32
  }
  func.func @transform_1(%arg0: i32, %arg1: i32, %arg2: i32) -> (i32, i32) {
    %c0_i32 = arith.constant 0 : i32
    return %arg2, %arg1 : i32, i32
  }
  func.func @transform_2(%arg0: i32, %arg1: i32, %arg2: i32) -> (i32, i32) {
    %c0_i32 = arith.constant 0 : i32
    %c0_i32_0 = arith.constant 0 : i32
    return %c0_i32, %arg1 : i32, i32
  }
  func.func @transform_3(%arg0: i32, %arg1: i32, %arg2: i32) -> (i32, i32) {
    %c0_i32 = arith.constant 0 : i32
    return %arg0, %arg1 : i32, i32
  }
  func.func @transform_4(%arg0: i32, %arg1: i32, %arg2: i32) -> (i32, i32) {
    %c0_i32 = arith.constant 0 : i32
    return %arg0, %arg1 : i32, i32
  }
}

module attributes {stable_mosaic.version = 11 : i64} {
  func.func @_layernorm_kernel(%arg0: i32, %arg1: memref<144x128xbf16, #tpu.memory_space<vmem>>, %arg2: memref<1x128xf32, #tpu.memory_space<vmem>>, %arg3: memref<1x128xf32, #tpu.memory_space<vmem>>, %arg4: memref<144x128xf32, #tpu.memory_space<vmem>>) attributes {dimension_semantics = [#tpu.dimension_semantics<parallel>], iteration_bounds = array<i64: 1>, scalar_prefetch = 0 : i64, scratch_operands = 0 : i64, tpu.core_type = #tpu.core_type<tc>, window_params = [{transform_indices = @transform_0, window_bounds = array<i64: 144, 128>}, {pipeline_mode = #tpu.pipeline_mode<synchronous>, transform_indices = @transform_1, window_bounds = array<i64: 1, 128>}, {pipeline_mode = #tpu.pipeline_mode<synchronous>, transform_indices = @transform_2, window_bounds = array<i64: 1, 128>}, {transform_indices = @transform_3, window_bounds = array<i64: 144, 128>}]} {
    %c0 = arith.constant 0 : index
    %c0_0 = arith.constant 0 : index
    %0 = vector.load %arg1[%c0, %c0_0] : memref<144x128xbf16, #tpu.memory_space<vmem>>, vector<144x128xbf16>
    %1 = arith.extf %0 : vector<144x128xbf16> to vector<144x128xf32>
    %cst = arith.constant dense<0.000000e+00> : vector<144xf32>
    %2 = vector.multi_reduction <add>, %1, %cst [1] : vector<144x128xf32> to vector<144xf32>
    %3 = vector.shape_cast %2 : vector<144xf32> to vector<144x1xf32>
    %cst_1 = arith.constant 1.280000e+02 : f32
    %4 = vector.broadcast %cst_1 : f32 to vector<144x1xf32>
    %5 = arith.divf %3, %4 : vector<144x1xf32>
    %6 = vector.broadcast %5 : vector<144x1xf32> to vector<144x128xf32>
    %7 = arith.subf %1, %6 : vector<144x128xf32>
    %8 = arith.mulf %7, %7 : vector<144x128xf32>
    %cst_2 = arith.constant dense<0.000000e+00> : vector<144xf32>
    %9 = vector.multi_reduction <add>, %8, %cst_2 [1] : vector<144x128xf32> to vector<144xf32>
    %10 = vector.shape_cast %9 : vector<144xf32> to vector<144x1xf32>
    %cst_3 = arith.constant 1.280000e+02 : f32
    %11 = vector.broadcast %cst_3 : f32 to vector<144x1xf32>
    %12 = arith.divf %10, %11 : vector<144x1xf32>
    %13 = vector.broadcast %5 : vector<144x1xf32> to vector<144x128xf32>
    %14 = arith.subf %1, %13 : vector<144x128xf32>
    %cst_4 = arith.constant 9.99999997E-7 : f32
    %15 = vector.broadcast %cst_4 : f32 to vector<144x1xf32>
    %16 = arith.addf %12, %15 : vector<144x1xf32>
    %17 = math.rsqrt %16 : vector<144x1xf32>
    %18 = vector.broadcast %17 : vector<144x1xf32> to vector<144x128xf32>
    %19 = arith.mulf %14, %18 : vector<144x128xf32>
    %c0_5 = arith.constant 0 : index
    %c0_6 = arith.constant 0 : index
    %20 = vector.load %arg2[%c0_5, %c0_6] : memref<1x128xf32, #tpu.memory_space<vmem>>, vector<1x128xf32>
    %21 = vector.broadcast %20 : vector<1x128xf32> to vector<144x128xf32>
    %22 = arith.mulf %19, %21 : vector<144x128xf32>
    %c0_7 = arith.constant 0 : index
    %c0_8 = arith.constant 0 : index
    %23 = vector.load %arg3[%c0_7, %c0_8] : memref<1x128xf32, #tpu.memory_space<vmem>>, vector<1x128xf32>
    %24 = vector.broadcast %23 : vector<1x128xf32> to vector<144x128xf32>
    %25 = arith.addf %22, %24 : vector<144x128xf32>
    %c0_9 = arith.constant 0 : index
    %c0_10 = arith.constant 0 : index
    %26 = vector.load %arg4[%c0_9, %c0_10] : memref<144x128xf32, #tpu.memory_space<vmem>>, vector<144x128xf32>
    tpu.vector_store %arg4[%c0_9, %c0_10], %25 {strides = array<i32>} : memref<144x128xf32, #tpu.memory_space<vmem>>, vector<144x128xf32>,
    return
  }
  func.func @transform_0(%arg0: i32) -> (i32, i32) {
    %c0_i32 = arith.constant 0 : i32
    %c0_i32_0 = arith.constant 0 : i32
    return %arg0, %c0_i32 : i32, i32
  }
  func.func @transform_1(%arg0: i32) -> (i32, i32) {
    %c0_i32 = arith.constant 0 : i32
    %c0_i32_0 = arith.constant 0 : i32
    %c0_i32_1 = arith.constant 0 : i32
    return %c0_i32, %c0_i32_0 : i32, i32
  }
  func.func @transform_2(%arg0: i32) -> (i32, i32) {
    %c0_i32 = arith.constant 0 : i32
    %c0_i32_0 = arith.constant 0 : i32
    %c0_i32_1 = arith.constant 0 : i32
    return %c0_i32, %c0_i32_0 : i32, i32
  }
  func.func @transform_3(%arg0: i32) -> (i32, i32) {
    %c0_i32 = arith.constant 0 : i32
    %c0_i32_0 = arith.constant 0 : i32
    return %arg0, %c0_i32 : i32, i32
  }
}

module attributes {stable_mosaic.version = 11 : i64} {
  func.func @_ln_matmul_bias_kernel(%arg0: i32, %arg1: i32, %arg2: memref<144x128xbf16, #tpu.memory_space<vmem>>, %arg3: memref<1x128xf32, #tpu.memory_space<vmem>>, %arg4: memref<1x128xf32, #tpu.memory_space<vmem>>, %arg5: memref<128x512xbf16, #tpu.memory_space<vmem>>, %arg6: memref<1x512xf32, #tpu.memory_space<vmem>>, %arg7: memref<144x512xbf16, #tpu.memory_space<vmem>>, %arg8: memref<144x128xbf16, #tpu.memory_space<vmem>>) attributes {dimension_semantics = [#tpu.dimension_semantics<parallel>, #tpu.dimension_semantics<arbitrary>], iteration_bounds = array<i64: 1, 1>, scalar_prefetch = 0 : i64, scratch_operands = 1 : i64, tpu.core_type = #tpu.core_type<tc>, window_params = [{transform_indices = @transform_0, window_bounds = array<i64: 144, 128>}, {pipeline_mode = #tpu.pipeline_mode<synchronous>, transform_indices = @transform_1, window_bounds = array<i64: 1, 128>}, {pipeline_mode = #tpu.pipeline_mode<synchronous>, transform_indices = @transform_2, window_bounds = array<i64: 1, 128>}, {transform_indices = @transform_3, window_bounds = array<i64: 128, 512>}, {transform_indices = @transform_4, window_bounds = array<i64: 1, 512>}, {transform_indices = @transform_5, window_bounds = array<i64: 144, 512>}]} {
    %c0_i32 = arith.constant 0 : i32
    %0 = arith.cmpi eq, %arg1, %c0_i32 : i32
    %1 = arith.extui %0 : i1 to i32
    %c0_i32_0 = arith.constant 0 : i32
    %2 = arith.cmpi ne, %1, %c0_i32_0 : i32
    scf.if %2 {
      %c0_12 = arith.constant 0 : index
      %c0_13 = arith.constant 0 : index
      %24 = vector.load %arg2[%c0_12, %c0_13] : memref<144x128xbf16, #tpu.memory_space<vmem>>, vector<144x128xbf16>
      %25 = arith.extf %24 : vector<144x128xbf16> to vector<144x128xf32>
      %cst_14 = arith.constant dense<0.000000e+00> : vector<144xf32>
      %26 = vector.multi_reduction <add>, %25, %cst_14 [1] : vector<144x128xf32> to vector<144xf32>
      %27 = vector.shape_cast %26 : vector<144xf32> to vector<144x1xf32>
      %cst_15 = arith.constant 1.280000e+02 : f32
      %28 = vector.broadcast %cst_15 : f32 to vector<144x1xf32>
      %29 = arith.divf %27, %28 : vector<144x1xf32>
      %30 = vector.broadcast %29 : vector<144x1xf32> to vector<144x128xf32>
      %31 = arith.subf %25, %30 : vector<144x128xf32>
      %32 = arith.mulf %31, %31 : vector<144x128xf32>
      %cst_16 = arith.constant dense<0.000000e+00> : vector<144xf32>
      %33 = vector.multi_reduction <add>, %32, %cst_16 [1] : vector<144x128xf32> to vector<144xf32>
      %34 = vector.shape_cast %33 : vector<144xf32> to vector<144x1xf32>
      %cst_17 = arith.constant 1.280000e+02 : f32
      %35 = vector.broadcast %cst_17 : f32 to vector<144x1xf32>
      %36 = arith.divf %34, %35 : vector<144x1xf32>
      %37 = vector.broadcast %29 : vector<144x1xf32> to vector<144x128xf32>
      %38 = arith.subf %25, %37 : vector<144x128xf32>
      %cst_18 = arith.constant 9.99999997E-7 : f32
      %39 = vector.broadcast %cst_18 : f32 to vector<144x1xf32>
      %40 = arith.addf %36, %39 : vector<144x1xf32>
      %41 = math.rsqrt %40 : vector<144x1xf32>
      %42 = vector.broadcast %41 : vector<144x1xf32> to vector<144x128xf32>
      %43 = arith.mulf %38, %42 : vector<144x128xf32>
      %c0_19 = arith.constant 0 : index
      %c0_20 = arith.constant 0 : index
      %44 = vector.load %arg3[%c0_19, %c0_20] : memref<1x128xf32, #tpu.memory_space<vmem>>, vector<1x128xf32>
      %45 = vector.broadcast %44 : vector<1x128xf32> to vector<144x128xf32>
      %46 = arith.mulf %43, %45 : vector<144x128xf32>
      %c0_21 = arith.constant 0 : index
      %c0_22 = arith.constant 0 : index
      %47 = vector.load %arg4[%c0_21, %c0_22] : memref<1x128xf32, #tpu.memory_space<vmem>>, vector<1x128xf32>
      %48 = vector.broadcast %47 : vector<1x128xf32> to vector<144x128xf32>
      %49 = arith.addf %46, %48 : vector<144x128xf32>
      %50 = arith.truncf %49 : vector<144x128xf32> to vector<144x128xbf16>
      %c0_23 = arith.constant 0 : index
      %c0_24 = arith.constant 0 : index
      %51 = vector.load %arg8[%c0_23, %c0_24] : memref<144x128xbf16, #tpu.memory_space<vmem>>, vector<144x128xbf16>
      tpu.vector_store %arg8[%c0_23, %c0_24], %50 {strides = array<i32>} : memref<144x128xbf16, #tpu.memory_space<vmem>>, vector<144x128xbf16>,
    } else {
    }
    %c0 = arith.constant 0 : index
    %c0_1 = arith.constant 0 : index
    %3 = vector.load %arg8[%c0, %c0_1] : memref<144x128xbf16, #tpu.memory_space<vmem>>, vector<144x128xbf16>
    %c0_2 = arith.constant 0 : index
    %c0_3 = arith.constant 0 : index
    %4 = vector.load %arg5[%c0_2, %c0_3] : memref<128x512xbf16, #tpu.memory_space<vmem>>, vector<128x512xbf16>
    %cst = arith.constant dense<0.000000e+00> : vector<144x512xf32>
    %5 = tpu.matmul %3, %4, %cst {dimension_numbers = #tpu.dot_dimension_numbers<[1], [0], [0], [1], [0, 0, 1, 1], [], []>} : vector<144x128xbf16>, vector<128x512xbf16>, vector<144x512xf32> -> vector<144x512xf32>
    %c0_4 = arith.constant 0 : index
    %c0_5 = arith.constant 0 : index
    %6 = vector.load %arg6[%c0_4, %c0_5] : memref<1x512xf32, #tpu.memory_space<vmem>>, vector<1x512xf32>
    %7 = vector.broadcast %6 : vector<1x512xf32> to vector<144x512xf32>
    %8 = arith.addf %5, %7 : vector<144x512xf32>
    %cst_6 = arith.constant 5.000000e-01 : f32
    %9 = vector.broadcast %cst_6 : f32 to vector<144x512xf32>
    %10 = arith.mulf %9, %8 : vector<144x512xf32>
    %cst_7 = arith.constant 4.471500e-02 : f32
    %11 = vector.broadcast %cst_7 : f32 to vector<144x512xf32>
    %12 = arith.mulf %11, %8 : vector<144x512xf32>
    %13 = arith.mulf %12, %8 : vector<144x512xf32>
    %14 = arith.mulf %13, %8 : vector<144x512xf32>
    %15 = arith.addf %8, %14 : vector<144x512xf32>
    %cst_8 = arith.constant 0.797884583 : f32
    %16 = vector.broadcast %cst_8 : f32 to vector<144x512xf32>
    %17 = arith.mulf %16, %15 : vector<144x512xf32>
    %18 = math.tanh %17 : vector<144x512xf32>
    %cst_9 = arith.constant 1.000000e+00 : f32
    %19 = vector.broadcast %cst_9 : f32 to vector<144x512xf32>
    %20 = arith.addf %19, %18 : vector<144x512xf32>
    %21 = arith.mulf %10, %20 : vector<144x512xf32>
    %22 = arith.truncf %21 : vector<144x512xf32> to vector<144x512xbf16>
    %c0_10 = arith.constant 0 : index
    %c0_11 = arith.constant 0 : index
    %23 = vector.load %arg7[%c0_10, %c0_11] : memref<144x512xbf16, #tpu.memory_space<vmem>>, vector<144x512xbf16>
    tpu.vector_store %arg7[%c0_10, %c0_11], %22 {strides = array<i32>} : memref<144x512xbf16, #tpu.memory_space<vmem>>, vector<144x512xbf16>,
    return
  }
  func.func @transform_0(%arg0: i32, %arg1: i32) -> (i32, i32) {
    %c0_i32 = arith.constant 0 : i32
    %c0_i32_0 = arith.constant 0 : i32
    return %arg0, %c0_i32 : i32, i32
  }
  func.func @transform_1(%arg0: i32, %arg1: i32) -> (i32, i32) {
    %c0_i32 = arith.constant 0 : i32
    %c0_i32_0 = arith.constant 0 : i32
    %c0_i32_1 = arith.constant 0 : i32
    return %c0_i32, %c0_i32_0 : i32, i32
  }
  func.func @transform_2(%arg0: i32, %arg1: i32) -> (i32, i32) {
    %c0_i32 = arith.constant 0 : i32
    %c0_i32_0 = arith.constant 0 : i32
    %c0_i32_1 = arith.constant 0 : i32
    return %c0_i32, %c0_i32_0 : i32, i32
  }
  func.func @transform_3(%arg0: i32, %arg1: i32) -> (i32, i32) {
    %c0_i32 = arith.constant 0 : i32
    %c0_i32_0 = arith.constant 0 : i32
    return %c0_i32, %arg1 : i32, i32
  }
  func.func @transform_4(%arg0: i32, %arg1: i32) -> (i32, i32) {
    %c0_i32 = arith.constant 0 : i32
    %c0_i32_0 = arith.constant 0 : i32
    return %c0_i32, %arg1 : i32, i32
  }
  func.func @transform_5(%arg0: i32, %arg1: i32) -> (i32, i32) {
    %c0_i32 = arith.constant 0 : i32
    return %arg0, %arg1 : i32, i32
  }
}

</mosaic_0001>

<bundles_post_ra>
// kernel: pdn_wrapper_forward.12
= control target key start
LH: loop header
LB: loop body
LE: loop exit
PB: predicated region body
PF: predicated region fallthrough
CT: control target
= control target key end

     0   :  { %vm102_vm0 = vcmask 392192   ;;  %s426_s1 = inlined_call_operand.vmem [shape: bf16[48,128], index: 1, kind: input, shape index: {}]   ;;  %s427_s0 = inlined_call_operand.vmem [shape: bf16[128,48], index: 0, kind: input, shape index: {}]   ;;  %s428_s2 = inlined_call_operand.vmem [shape: f32[1,128], index: 2, kind: input, shape index: {}]   ;;  %s429_s3 = inlined_call_operand.vmem [shape: f32[128,128], index: 3, kind: output, shape index: {}]  }
   0x1   :  { %v303_v0 = vld [vmem:[%s426_s1] sm:$0xff]   ;;  %v304_v1 = vld [vmem:[%s426_s1 + $0x8] sm:$0xff]   ;;  %v305_v2 = vld [vmem:[%s426_s1 + $0x10] sm:$0xff]  }
   0x2   :  { %275 = vmatprep.subr.bf16.mxu0 %v303_v0  ;;  %297 = vmatprep.subr.bf16.mxu1 %v303_v0  ;;  %v306_v3 = vld [vmem:[%s427_s0] sm:$0xff]   ;;  %v308_v5 = vld [vmem:[%s427_s0 + $0x8] sm:$0xff]   ;;  %v310_v7 = vld [vmem:[%s427_s0 + $0x10] sm:$0xff]  }
   0x3   :  { %276 = vmatpush3.bf16.msra.mxu0 %v303_v0  ;;  %300 = vmatpush3.bf16.msra.mxu1 %v303_v0  ;;  %v307_v4 = vld [vmem:[%s427_s0 + $0x20] sm:$0xff]   ;;  %v309_v6 = vld [vmem:[%s427_s0 + $0x28] sm:$0xff]   ;;  %v311_v8 = vld [vmem:[%s427_s0 + $0x30] sm:$0xff]  }
   0x4   :  { %277 = vmatprep.subr.bf16.mxu0 %v304_v1  ;;  %298 = vmatprep.subr.bf16.mxu1 %v304_v1  ;;  %v312_v9 = vld [vmem:[%s427_s0 + $0x18] sm:$0xff]   ;;  %v244_v11 = vld [vmem:[%s428_s2] ss:$0 sm:$0xff] }
   0x5   :  { %281 = vmatprep.mubr.msk.bf16.mxu0 %vm102_vm0, %v306_v3  ;;  %289 = vmatprep.mubr.msk.bf16.mxu1 %vm102_vm0, %v307_v4  ;;  %v313_v10 = vld [vmem:[%s427_s0 + $0x38] sm:$0xff]  }
   0x7   :  { %278 = vmatpush3.bf16.msra.mxu0 %v304_v1  ;;  %301 = vmatpush3.bf16.msra.mxu1 %v304_v1 }
   0x8   :  { %279 = vmatprep.subr.bf16.mxu0 %v305_v2  ;;  %299 = vmatprep.subr.bf16.mxu1 %v305_v2 }
   0xb   :  { %280 = vmatpush3.bf16.msra.mxu0 %v305_v2  ;;  %302 = vmatpush3.bf16.msra.mxu1 %v305_v2 }
   0xe   :  { %282 = vmatmul.mubr.msk.bf16.vlgmr.msra.gmra.mrb[0].mxu0 %vm102_vm0, %v308_v5  ;;  %290 = vmatmul.mubr.msk.bf16.vlgmr.msra.gmra.mrb[0].mxu1 %vm102_vm0, %v309_v6 }
   0xf   :  { %285 = vmatprep.mubr.msk.bf16.mxu0 %vm102_vm0, %v310_v7  ;;  %293 = vmatprep.mubr.msk.bf16.mxu1 %vm102_vm0, %v311_v8 }
  0x16   :  { %286 = vmatmul.mubr.msk.bf16.gmra.mrb[4].mxu0 %vm102_vm0, %v312_v9  ;;  %294 = vmatmul.mubr.msk.bf16.gmra.mrb[4].mxu1 %vm102_vm0, %v313_v10 }
  0xe1   :  { %v283_v12 = vpop.f32.mrb[0].mxu0  ;;  %v291_v13 = vpop.f32.mrb[0].mxu1 }
  0xe2   :  { %v170_v14 = vadd.f32 %v283_v12, %v244_v11  ;;  %v202_v15 = vadd.f32 %v291_v13, %v244_v11  ;;  %v161_v16 = vpop.f32.mrb[1].mxu0  ;;  %v193_v17 = vpop.f32.mrb[1].mxu1 }
  0xe3   :  { %v162_v18 = vadd.f32 %v244_v11, %v161_v16  ;;  %v194_v19 = vadd.f32 %v244_v11, %v193_v17  ;;  %v284_v20 = vpop.f32.mrb[2].mxu0  ;;  %v292_v21 = vpop.f32.mrb[2].mxu1 }
  0xe4   :  { %226 = vst [vmem:[%s429_s3 + $0x10] sm:$0xff] %v170_v14  ;;  %234 = vst [vmem:[%s429_s3 + $0x50] sm:$0xff] %v202_v15  ;;  %v173_v22 = vadd.f32 %v284_v20, %v244_v11  ;;  %v205_v23 = vadd.f32 %v292_v21, %v244_v11  ;;  %v164_v24 = vpop.f32.mrb[3].mxu0  ;;  %v196_v25 = vpop.f32.mrb[3].mxu1 }
  0xe5   :  { %224 = vst [vmem:[%s429_s3] sm:$0xff] %v162_v18  ;;  %232 = vst [vmem:[%s429_s3 + $0x40] sm:$0xff] %v194_v19  ;;  %v165_v26 = vadd.f32 %v244_v11, %v164_v24  ;;  %v197_v27 = vadd.f32 %v244_v11, %v196_v25 }
  0xe6   :  { %227 = vst [vmem:[%s429_s3 + $0x18] sm:$0xff] %v173_v22  ;;  %235 = vst [vmem:[%s429_s3 + $0x58] sm:$0xff] %v205_v23 }
  0xe7   :  { %225 = vst [vmem:[%s429_s3 + $0x8] sm:$0xff] %v165_v26  ;;  %233 = vst [vmem:[%s429_s3 + $0x48] sm:$0xff] %v197_v27 }
  0xe9   :  { %v287_v28 = vpop.f32.mrb[4].mxu0  ;;  %v295_v29 = vpop.f32.mrb[4].mxu1 }
  0xea   :  { %v186_v30 = vadd.f32 %v287_v28, %v244_v11  ;;  %v218_v31 = vadd.f32 %v295_v29, %v244_v11  ;;  %v177_v32 = vpop.f32.mrb[5].mxu0  ;;  %v209_v33 = vpop.f32.mrb[5].mxu1 }
  0xeb   :  { %v178_v34 = vadd.f32 %v244_v11, %v177_v32  ;;  %v210_v35 = vadd.f32 %v244_v11, %v209_v33  ;;  %v288_v36 = vpop.f32.mrb[6].mxu0  ;;  %v296_v37 = vpop.f32.mrb[6].mxu1 }
  0xec   :  { %230 = vst [vmem:[%s429_s3 + $0x30] sm:$0xff] %v186_v30  ;;  %238 = vst [vmem:[%s429_s3 + $0x70] sm:$0xff] %v218_v31  ;;  %v189_v38 = vadd.f32 %v288_v36, %v244_v11  ;;  %v221_v39 = vadd.f32 %v296_v37, %v244_v11  ;;  %v180_v40 = vpop.f32.mrb[7].mxu0  ;;  %v212_v41 = vpop.f32.mrb[7].mxu1 }
  0xed   :  { %228 = vst [vmem:[%s429_s3 + $0x20] sm:$0xff] %v178_v34  ;;  %236 = vst [vmem:[%s429_s3 + $0x60] sm:$0xff] %v210_v35  ;;  %v181_v42 = vadd.f32 %v244_v11, %v180_v40  ;;  %v213_v43 = vadd.f32 %v244_v11, %v212_v41 }
  0xee   :  { %231 = vst [vmem:[%s429_s3 + $0x38] sm:$0xff] %v189_v38  ;;  %239 = vst [vmem:[%s429_s3 + $0x78] sm:$0xff] %v221_v39 }
  0xef   :  { %229 = vst [vmem:[%s429_s3 + $0x28] sm:$0xff] %v181_v42  ;;  %237 = vst [vmem:[%s429_s3 + $0x68] sm:$0xff] %v213_v43 }

// kernel: pdn_wrapper_forward.15
= control target key start
LH: loop header
LB: loop body
LE: loop exit
PB: predicated region body
PF: predicated region fallthrough
CT: control target
= control target key end

     0   :  { %v784_v0 = vmov 0.0   ;;  %vm785_vm0 = vmmov 0   ;;  %s973_s1 = inlined_call_operand.vmem [shape: bf16[128,128], index: 1, kind: input, shape index: {}]   ;;  %s974_s0 = inlined_call_operand.vmem [shape: bf16[144,128], index: 0, kind: input, shape index: {}]   ;;  %s975_s3 = inlined_call_operand.vmem [shape: bf16[144,128], index: 3, kind: input, shape index: {}]   ;;  %s976_s2 = inlined_call_operand.vmem [shape: f32[1,128], index: 2, kind: input, shape index: {}]   ;;  %s977_s4 = inlined_call_operand.vmem [shape: bf16[144,128], index: 4, kind: output, shape index: {}]  }
   0x1   :  { %697 = vmatprep.subr.bf16.mxu0 %v784_v0  ;;  %v767_v1 = vld [vmem:[%s973_s1] sm:$0xff]   ;;  %749 = vmatprep.subr.bf16.mxu1 %v784_v0  ;;  %v768_v2 = vld [vmem:[%s973_s1 + $0x8] sm:$0xff]   ;;  %v769_v3 = vld [vmem:[%s973_s1 + $0x10] sm:$0xff]  }
   0x2   :  { %713 = vmatprep.mubr.msk.bf16.mxu0 %vm785_vm0, %v784_v0  ;;  %733 = vmatprep.mubr.msk.bf16.mxu1 %vm785_vm0, %v784_v0  ;;  %v770_v4 = vld [vmem:[%s973_s1 + $0x18] sm:$0xff]   ;;  %v771_v5 = vld [vmem:[%s973_s1 + $0x20] sm:$0xff]   ;;  %v772_v6 = vld [vmem:[%s973_s1 + $0x28] sm:$0xff]  }
   0x3   :  { %698 = vmatpush3.bf16.msra.mxu0 %v767_v1  ;;  %757 = vmatpush3.bf16.msra.mxu1 %v767_v1  ;;  %v773_v7 = vld [vmem:[%s973_s1 + $0x30] sm:$0xff]   ;;  %v774_v8 = vld [vmem:[%s973_s1 + $0x38] sm:$0xff]   ;;  %v775_v9 = vld [vmem:[%s974_s0] sm:$0xff]  }
   0x4   :  { %699 = vmatprep.subr.bf16.mxu0 %v784_v0  ;;  %750 = vmatprep.subr.bf16.mxu1 %v784_v0  ;;  %v776_v10 = vld [vmem:[%s974_s0 + $0x28] sm:$0xff]   ;;  %v778_v12 = vld [vmem:[%s974_s0 + $0x30] sm:$0xff]   ;;  %v780_v14 = vld [vmem:[%s974_s0 + $0x38] sm:$0xff]  }
   0x5   :  { %v777_v11 = vld [vmem:[%s974_s0 + $0x8] sm:$0xff]   ;;  %v779_v13 = vld [vmem:[%s974_s0 + $0x10] sm:$0xff]   ;;  %v781_v15 = vld [vmem:[%s974_s0 + $0x18] sm:$0xff]  }
   0x6   :  { %v782_v16 = vld [vmem:[%s974_s0 + $0x40] sm:$0xff]   ;;  %v668_v18 = vld [vmem:[%s975_s3 + $0x28] sm:$0xff]   ;;  %v669_v38 = vld [vmem:[%s975_s3 + $0x30] sm:$0xff]  }
   0x7   :  { %700 = vmatpush3.bf16.msra.mxu0 %v768_v2  ;;  %758 = vmatpush3.bf16.msra.mxu1 %v768_v2  ;;  %v783_v17 = vld [vmem:[%s974_s0 + $0x20] sm:$0xff]   ;;  %v605_v21 = vunpack.c.l.bf16 %v668_v18  ;;  %v606_v30 = vunpack.c.h.bf16 %v668_v18  ;;  %v664_v42 = vld [vmem:[%s975_s3 + $0x8] sm:$0xff]   ;;  %v609_v45 = vunpack.c.l.bf16 %v669_v38  ;;  %v610_v54 = vunpack.c.h.bf16 %v669_v38  ;;  %v670_v62 = vld [vmem:[%s975_s3 + $0x38] sm:$0xff]  }
   0x8   :  { %701 = vmatprep.subr.bf16.mxu0 %v784_v0  ;;  %751 = vmatprep.subr.bf16.mxu1 %v784_v0  ;;  %v584_v19 = vld [vmem:[%s975_s3] sm:$0xff]   ;;  %v589_v47 = vunpack.c.l.bf16 %v664_v42  ;;  %v590_v51 = vunpack.c.h.bf16 %v664_v42  ;;  %v665_v2 = vld [vmem:[%s975_s3 + $0x10] sm:$0xff]  }
   0x9   :  { %v905_v20 = vld [vmem:[%s976_s2] ss:$0 sm:$0xff]  ;;  %v585_v23 = vunpack.c.l.bf16 %v584_v19  ;;  %v586_v27 = vunpack.c.h.bf16 %v584_v19 }
   0xb   :  { %702 = vmatpush3.bf16.msra.mxu0 %v769_v3  ;;  %759 = vmatpush3.bf16.msra.mxu1 %v769_v3 }
   0xc   :  { %703 = vmatprep.subr.bf16.mxu0 %v784_v0  ;;  %752 = vmatprep.subr.bf16.mxu1 %v784_v0 }
   0xf   :  { %704 = vmatpush3.bf16.msra.mxu0 %v770_v4  ;;  %760 = vmatpush3.bf16.msra.mxu1 %v770_v4 }
  0x10   :  { %705 = vmatprep.subr.bf16.mxu0 %v784_v0  ;;  %753 = vmatprep.subr.bf16.mxu1 %v784_v0 }
  0x13   :  { %706 = vmatpush3.bf16.msra.mxu0 %v771_v5  ;;  %761 = vmatpush3.bf16.msra.mxu1 %v771_v5  ;;  %v613_v5 = vunpack.c.l.bf16 %v670_v62 }
  0x14   :  { %707 = vmatprep.subr.bf16.mxu0 %v784_v0  ;;  %754 = vmatprep.subr.bf16.mxu1 %v784_v0 }
  0x17   :  { %708 = vmatpush3.bf16.msra.mxu0 %v772_v6  ;;  %762 = vmatpush3.bf16.msra.mxu1 %v772_v6 }
  0x18   :  { %709 = vmatprep.subr.bf16.mxu0 %v784_v0  ;;  %755 = vmatprep.subr.bf16.mxu1 %v784_v0 }
  0x1b   :  { %710 = vmatpush3.bf16.msra.mxu0 %v773_v7  ;;  %763 = vmatpush3.bf16.msra.mxu1 %v773_v7  ;;  %v593_v7 = vunpack.c.l.bf16 %v665_v2 }
  0x1c   :  { %711 = vmatprep.subr.bf16.mxu0 %v784_v0  ;;  %756 = vmatprep.subr.bf16.mxu1 %v784_v0 }
  0x1f   :  { %712 = vmatpush3.bf16.msra.mxu0 %v774_v8  ;;  %764 = vmatpush3.bf16.msra.mxu1 %v774_v8 }
  0x22   :  { %714 = vmatmul.mubr.bf16.vlgmr.msra.gmra.mrb[0].mxu0 %v775_v9  ;;  %734 = vmatmul.mubr.bf16.vlgmr.msra.gmra.mrb[0].mxu1 %v776_v10 }
  0x23   :  { %717 = vmatprep.mubr.msk.bf16.mxu0 %vm785_vm0, %v784_v0  ;;  %737 = vmatprep.mubr.msk.bf16.mxu1 %vm785_vm0, %v784_v0 }
  0x2a   :  { %718 = vmatmul.mubr.bf16.gmra.mrb[4].mxu0 %v777_v11  ;;  %738 = vmatmul.mubr.bf16.gmra.mrb[4].mxu1 %v778_v12  ;;  %v594_v11 = vunpack.c.h.bf16 %v665_v2 }
  0x2b   :  { %721 = vmatprep.mubr.msk.bf16.mxu0 %vm785_vm0, %v784_v0  ;;  %741 = vmatprep.mubr.msk.bf16.mxu1 %vm785_vm0, %v784_v0 }
  0x32   :  { %722 = vmatmul.mubr.bf16.gmra.mrb[8].mxu0 %v779_v13  ;;  %742 = vmatmul.mubr.bf16.gmra.mrb[8].mxu1 %v780_v14  ;;  %v614_v14 = vunpack.c.h.bf16 %v670_v62 }
  0x33   :  { %725 = vmatprep.mubr.msk.bf16.mxu0 %vm785_vm0, %v784_v0  ;;  %745 = vmatprep.mubr.msk.bf16.mxu1 %vm785_vm0, %v784_v0 }
  0x3a   :  { %726 = vmatmul.mubr.bf16.gmra.mrb[12].mxu0 %v781_v15  ;;  %746 = vmatmul.mubr.bf16.gmra.mrb[12].mxu1 %v782_v16 }
  0x3b   :  { %729 = vmatprep.mubr.msk.bf16.mxu0 %vm785_vm0, %v784_v0 }
  0x42   :  { %730 = vmatmul.mubr.bf16.gmra.mrb[16].mxu0 %v783_v17 }
  0xf5   :  { %v228_v22 = vpop.f32.mrb[0].mxu0  ;;  %v268_v24 = vpop.f32.mrb[0].mxu1 }
  0xf6   :  { %v363_v25 = vadd.f32 %v905_v20, %v228_v22  ;;  %v715_v26 = vpop.f32.mrb[1].mxu0  ;;  %v373_v28 = vadd.f32 %v905_v20, %v268_v24  ;;  %v735_v29 = vpop.f32.mrb[1].mxu1 }
  0xf7   :  { %v231_v31 = vpop.f32.mrb[2].mxu0  ;;  %v271_v32 = vpop.f32.mrb[2].mxu1 }
  0xf8   :  { %v364_v33 = vadd.f32 %v905_v20, %v231_v31  ;;  %v716_v34 = vpop.f32.mrb[3].mxu0  ;;  %v427_v35 = vadd.f32 %v605_v21, %v373_v28  ;;  %v374_v36 = vadd.f32 %v905_v20, %v271_v32  ;;  %v736_v37 = vpop.f32.mrb[3].mxu1  ;;  %v417_v39 = vadd.f32 %v585_v23, %v363_v25  ;;  %v671_v23 = vld [vmem:[%s975_s3 + $0x40] sm:$0xff]  }
  0xfa   :  { %v418_v40 = vadd.f32 %v586_v27, %v364_v33  ;;  %v428_v41 = vadd.f32 %v606_v30, %v374_v36  ;;  %v666_v27 = vld [vmem:[%s975_s3 + $0x18] sm:$0xff]   ;;  %v617_v30 = vunpack.c.l.bf16 %v671_v23 }
  0xfb   :  { %v597_v32 = vunpack.c.l.bf16 %v666_v27  ;;  %v598_v36 = vunpack.c.h.bf16 %v666_v27 }
  0xfc   :  { %v622_v43 = vpack.c.bf16 %v418_v40, %v417_v39  ;;  %v647_v44 = vpack.c.bf16 %v428_v41, %v427_v35  ;;  %v618_v39 = vunpack.c.h.bf16 %v671_v23 }
  0xfd   :  { %v236_v46 = vpop.f32.mrb[4].mxu0  ;;  %v276_v48 = vpop.f32.mrb[4].mxu1 }
  0xfe   :  { %623 = vst [vmem:[%s977_s4] sm:$0xff] %v622_v43   ;;  %676 = vst [vmem:[%s977_s4 + $0x28] sm:$0xff] %v647_v44   ;;  %v365_v49 = vadd.f32 %v905_v20, %v236_v46  ;;  %v719_v50 = vpop.f32.mrb[5].mxu0  ;;  %v375_v52 = vadd.f32 %v905_v20, %v276_v48  ;;  %v739_v53 = vpop.f32.mrb[5].mxu1 }
  0xff   :  { %v239_v55 = vpop.f32.mrb[6].mxu0  ;;  %v279_v56 = vpop.f32.mrb[6].mxu1  ;;  %v667_v50 = vld [vmem:[%s975_s3 + $0x20] sm:$0xff]  }
 0x100   :  { %v366_v57 = vadd.f32 %v905_v20, %v239_v55  ;;  %v720_v58 = vpop.f32.mrb[7].mxu0  ;;  %v429_v59 = vadd.f32 %v609_v45, %v375_v52  ;;  %v376_v60 = vadd.f32 %v905_v20, %v279_v56  ;;  %v740_v61 = vpop.f32.mrb[7].mxu1  ;;  %v419_v63 = vadd.f32 %v589_v47, %v365_v49 }
 0x101   :  { %v601_v55 = vunpack.c.l.bf16 %v667_v50 }
 0x102   :  { %v420_v0 = vadd.f32 %v590_v51, %v366_v57  ;;  %v430_v1 = vadd.f32 %v610_v54, %v376_v60  ;;  %v602_v57 = vunpack.c.h.bf16 %v667_v50 }
 0x104   :  { %v627_v3 = vpack.c.bf16 %v420_v0, %v419_v63  ;;  %v652_v4 = vpack.c.bf16 %v430_v1, %v429_v59 }
 0x105   :  { %v244_v6 = vpop.f32.mrb[8].mxu0  ;;  %v284_v8 = vpop.f32.mrb[8].mxu1 }
 0x106   :  { %672 = vst [vmem:[%s977_s4 + $0x8] sm:$0xff] %v627_v3   ;;  %677 = vst [vmem:[%s977_s4 + $0x30] sm:$0xff] %v652_v4   ;;  %v367_v9 = vadd.f32 %v905_v20, %v244_v6  ;;  %v723_v10 = vpop.f32.mrb[9].mxu0  ;;  %v377_v12 = vadd.f32 %v905_v20, %v284_v8  ;;  %v743_v13 = vpop.f32.mrb[9].mxu1 }
 0x107   :  { %v247_v15 = vpop.f32.mrb[10].mxu0  ;;  %v287_v16 = vpop.f32.mrb[10].mxu1 }
 0x108   :  { %v368_v17 = vadd.f32 %v905_v20, %v247_v15  ;;  %v724_v18 = vpop.f32.mrb[11].mxu0  ;;  %v431_v19 = vadd.f32 %v613_v5, %v377_v12  ;;  %v378_v21 = vadd.f32 %v905_v20, %v287_v16  ;;  %v744_v22 = vpop.f32.mrb[11].mxu1  ;;  %v421_v24 = vadd.f32 %v593_v7, %v367_v9 }
 0x10a   :  { %v422_v25 = vadd.f32 %v594_v11, %v368_v17  ;;  %v432_v26 = vadd.f32 %v614_v14, %v378_v21 }
 0x10c   :  { %v632_v28 = vpack.c.bf16 %v422_v25, %v421_v24  ;;  %v657_v29 = vpack.c.bf16 %v432_v26, %v431_v19 }
 0x10d   :  { %v252_v31 = vpop.f32.mrb[12].mxu0  ;;  %v292_v33 = vpop.f32.mrb[12].mxu1 }
 0x10e   :  { %673 = vst [vmem:[%s977_s4 + $0x10] sm:$0xff] %v632_v28   ;;  %678 = vst [vmem:[%s977_s4 + $0x38] sm:$0xff] %v657_v29   ;;  %v369_v34 = vadd.f32 %v905_v20, %v252_v31  ;;  %v727_v35 = vpop.f32.mrb[13].mxu0  ;;  %v379_v37 = vadd.f32 %v905_v20, %v292_v33  ;;  %v747_v38 = vpop.f32.mrb[13].mxu1 }
 0x10f   :  { %v255_v40 = vpop.f32.mrb[14].mxu0  ;;  %v295_v41 = vpop.f32.mrb[14].mxu1 }
 0x110   :  { %v370_v42 = vadd.f32 %v905_v20, %v255_v40  ;;  %v728_v43 = vpop.f32.mrb[15].mxu0  ;;  %v433_v44 = vadd.f32 %v617_v30, %v379_v37  ;;  %v380_v45 = vadd.f32 %v905_v20, %v295_v41  ;;  %v748_v46 = vpop.f32.mrb[15].mxu1  ;;  %v423_v47 = vadd.f32 %v597_v32, %v369_v34 }
 0x112   :  { %v424_v48 = vadd.f32 %v598_v36, %v370_v42  ;;  %v434_v49 = vadd.f32 %v618_v39, %v380_v45 }
 0x114   :  { %v637_v51 = vpack.c.bf16 %v424_v48, %v423_v47  ;;  %v662_v52 = vpack.c.bf16 %v434_v49, %v433_v44 }
 0x115   :  { %v260_v53 = vpop.f32.mrb[16].mxu0 }
 0x116   :  { %674 = vst [vmem:[%s977_s4 + $0x18] sm:$0xff] %v637_v51   ;;  %679 = vst [vmem:[%s977_s4 + $0x40] sm:$0xff] %v662_v52   ;;  %v371_v54 = vadd.f32 %v905_v20, %v260_v53  ;;  %v731_v56 = vpop.f32.mrb[17].mxu0 }
 0x117   :  { %v263_v58 = vpop.f32.mrb[18].mxu0 }
 0x118   :  { %v372_v59 = vadd.f32 %v905_v20, %v263_v58  ;;  %v732_v60 = vpop.f32.mrb[19].mxu0  ;;  %v425_v61 = vadd.f32 %v601_v55, %v371_v54 }
 0x11a   :  { %v426_v62 = vadd.f32 %v602_v57, %v372_v59 }
 0x11c   :  { %v642_v63 = vpack.c.bf16 %v426_v62, %v425_v61 }
 0x11e   :  { %675 = vst [vmem:[%s977_s4 + $0x20] sm:$0xff] %v642_v63  }

// kernel: pdn_wrapper_forward.13
= control target key start
LH: loop header
LB: loop body
LE: loop exit
PB: predicated region body
PF: predicated region fallthrough
CT: control target
= control target key end

     0   :  { %v1244_v28 = vmov 0.0   ;;  %vm1246_vm0 = vmmov 0   ;;  %s1817_s0 = inlined_call_operand.vmem [shape: bf16[144,128], index: 0, kind: input, shape index: {}]   ;;  %s1818_s3 = inlined_call_operand.vmem [shape: bf16[128,384], index: 3, kind: input, shape index: {}]   ;;  %s1819_s1 = inlined_call_operand.vmem [shape: f32[1,128], index: 1, kind: input, shape index: {}]   ;;  %s1820_s2 = inlined_call_operand.vmem [shape: f32[1,128], index: 2, kind: input, shape index: {}]   ;;  %s1821_s4 = inlined_call_operand.vmem [shape: f32[1,384], index: 4, kind: input, shape index: {}]   ;;  %s1822_s5 = inlined_call_operand.vmem [shape: bf16[144,384], index: 5, kind: output, shape index: {}]  }
   0x1   :  { %v1280_v0 = vld [vmem:[%s1817_s0] sm:$0xff]   ;;  %v1285_v1 = vld [vmem:[%s1817_s0 + $0x8] sm:$0xff]   ;;  %v1294_v6 = vld [vmem:[%s1817_s0 + $0x10] sm:$0xff]   ;;  %1121 = vmatprep.subr.bf16.mxu1 %v1244_v28  ;;  %1137 = vmatprep.mubr.msk.bf16.mxu1 %vm1246_vm0, %v1244_v28 }
   0x2   :  { %v1062_v2 = vunpack.c.l.bf16 %v1280_v0  ;;  %v1066_v3 = vunpack.c.l.bf16 %v1285_v1  ;;  %v1063_v4 = vunpack.c.h.bf16 %v1280_v0  ;;  %v1067_v5 = vunpack.c.h.bf16 %v1285_v1  ;;  %v1303_v9 = vld [vmem:[%s1817_s0 + $0x18] sm:$0xff]   ;;  %v1314_v12 = vld [vmem:[%s1817_s0 + $0x20] sm:$0xff]   ;;  %v1325_v15 = vld [vmem:[%s1817_s0 + $0x28] sm:$0xff]  }
   0x3   :  { %v1070_v7 = vunpack.c.l.bf16 %v1294_v6  ;;  %v1071_v8 = vunpack.c.h.bf16 %v1294_v6  ;;  %v1074_v10 = vunpack.c.l.bf16 %v1303_v9  ;;  %v1075_v11 = vunpack.c.h.bf16 %v1303_v9  ;;  %v1336_v18 = vld [vmem:[%s1817_s0 + $0x30] sm:$0xff]   ;;  %v1347_v21 = vld [vmem:[%s1817_s0 + $0x38] sm:$0xff]   ;;  %v1358_v24 = vld [vmem:[%s1817_s0 + $0x40] sm:$0xff]  }
   0x4   :  { %61 = vadd.xlane.f32.xlu0 %v1062_v2  ;;  %65 = vadd.xlane.f32.xlu1 %v1066_v3  ;;  %v1078_v13 = vunpack.c.l.bf16 %v1314_v12  ;;  %v1079_v14 = vunpack.c.h.bf16 %v1314_v12  ;;  %v1082_v16 = vunpack.c.l.bf16 %v1325_v15  ;;  %v1083_v17 = vunpack.c.h.bf16 %v1325_v15  ;;  %v1176_v27 = vld [vmem:[%s1818_s3 + $0x4] ss:$12 sps:$4 sm:$0xff]   ;;  %v1178_v29 = vld [vmem:[%s1818_s3] ss:$12 sps:$4 sm:$0xff]   ;;  %v1179_v30 = vld [vmem:[%s1818_s3 + $0x8] ss:$12 sps:$4 sm:$0xff]  }
   0x5   :  { %v1086_v19 = vunpack.c.l.bf16 %v1336_v18  ;;  %v1087_v20 = vunpack.c.h.bf16 %v1336_v18  ;;  %v1090_v22 = vunpack.c.l.bf16 %v1347_v21  ;;  %v1091_v23 = vunpack.c.h.bf16 %v1347_v21  ;;  %514 = vmatprep.subr.bf16.mxu0 %v1176_v27  ;;  %v1180_v31 = vld [vmem:[%s1818_s3 + $0x1c] ss:$12 sps:$4 sm:$0xff]   ;;  %1122 = vmatpush3.bf16.msra.mxu1 %v1179_v30  ;;  %v1182_v6 = vld [vmem:[%s1818_s3 + $0x18] ss:$12 sps:$4 sm:$0xff]  }
   0x6   :  { %v1094_v25 = vunpack.c.l.bf16 %v1358_v24  ;;  %v1095_v26 = vunpack.c.h.bf16 %v1358_v24  ;;  %515 = vmatpush1.bf16.msra.mxu0 %v1178_v29  ;;  %1123 = vmatprep.subr.bf16.mxu1 %v1244_v28  ;;  %v1191_v18 = vld [vmem:[%s1818_s3 + $0x50] ss:$12 sps:$4 sm:$0xff]   ;;  %v1195_v21 = vld [vmem:[%s1818_s3 + $0x68] ss:$12 sps:$4 sm:$0xff]  }
   0x7   :  { %516 = vmatprep.subr.bf16.mxu0 %v1180_v31 }
   0x8   :  { %63 = vadd.xlane.f32.xlu0 %v1063_v4  ;;  %67 = vadd.xlane.f32.xlu1 %v1067_v5 }
   0xa   :  { %517 = vmatpush1.bf16.msra.mxu0 %v1182_v6  ;;  %v1207_v6 = vld [vmem:[%s1818_s3 + $0xb0] ss:$12 sps:$4 sm:$0xff]  }
   0xc   :  { %69 = vadd.xlane.f32.xlu0 %v1070_v7  ;;  %71 = vadd.xlane.f32.xlu1 %v1071_v8 }
  0x10   :  { %73 = vadd.xlane.f32.xlu0 %v1074_v10  ;;  %75 = vadd.xlane.f32.xlu1 %v1075_v11 }
  0x14   :  { %77 = vadd.xlane.f32.xlu0 %v1078_v13  ;;  %79 = vadd.xlane.f32.xlu1 %v1079_v14 }
  0x18   :  { %81 = vadd.xlane.f32.xlu0 %v1082_v16  ;;  %83 = vadd.xlane.f32.xlu1 %v1083_v17 }
  0x1c   :  { %85 = vadd.xlane.f32.xlu0 %v1086_v19  ;;  %87 = vadd.xlane.f32.xlu1 %v1087_v20 }
  0x20   :  { %89 = vadd.xlane.f32.xlu0 %v1090_v22  ;;  %91 = vadd.xlane.f32.xlu1 %v1091_v23 }
  0x24   :  { %93 = vadd.xlane.f32.xlu0 %v1094_v25  ;;  %95 = vadd.xlane.f32.xlu1 %v1095_v26 }
  0x91   :  { %v62_v32 = vpop.xlane.xlu0 %61  ;;  %v66_v33 = vpop.xlane.xlu1 %65 }
  0x92   :  { %v98_v34 = vmul.f32 0.0078125, %v62_v32  ;;  %v100_v35 = vmul.f32 0.0078125, %v66_v33  ;;  %v1186_v32 = vld [vmem:[%s1818_s3 + $0x30] ss:$12 sps:$4 sm:$0xff]  }
  0x94   :  { %v1384_v36 = vsub.f32 %v1062_v2, %v98_v34  ;;  %v1386_v37 = vsub.f32 %v1066_v3, %v100_v35 }
  0x95   :  { %v64_v38 = vpop.xlane.xlu0 %63  ;;  %v68_v39 = vpop.xlane.xlu1 %67 }
  0x96   :  { %v99_v40 = vmul.f32 0.0078125, %v64_v38  ;;  %v134_v41 = vmul.f32 %v1384_v36, %v1384_v36  ;;  %v101_v42 = vmul.f32 0.0078125, %v68_v39  ;;  %v136_v45 = vmul.f32 %v1386_v37, %v1386_v37  ;;  %v1188_v39 = vld [vmem:[%s1818_s3 + $0x4c] ss:$12 sps:$4 sm:$0xff]  }
  0x98   :  { %v1390_v43 = vsub.f32 %v1063_v4, %v99_v40  ;;  %152 = vadd.xlane.f32.xlu0 %v134_v41  ;;  %v1394_v44 = vsub.f32 %v1067_v5, %v101_v42 }
  0x99   :  { %v70_v46 = vpop.xlane.xlu0 %69  ;;  %v72_v47 = vpop.xlane.xlu1 %71 }
  0x9a   :  { %v102_v48 = vmul.f32 0.0078125, %v70_v46  ;;  %v135_v49 = vmul.f32 %v1390_v43, %v1390_v43  ;;  %v103_v50 = vmul.f32 0.0078125, %v72_v47  ;;  %v137_v53 = vmul.f32 %v1394_v44, %v1394_v44 }
  0x9c   :  { %v1402_v51 = vsub.f32 %v1070_v7, %v102_v48  ;;  %156 = vadd.xlane.f32.xlu0 %v136_v45  ;;  %154 = vadd.xlane.f32.xlu1 %v135_v49  ;;  %v1406_v52 = vsub.f32 %v1071_v8, %v103_v50  ;;  %v1183_v7 = vld [vmem:[%s1818_s3 + $0x20] ss:$12 sps:$4 sm:$0xff]   ;;  %v1192_v49 = vld [vmem:[%s1818_s3 + $0x64] ss:$12 sps:$4 sm:$0xff]  }
  0x9d   :  { %v74_v54 = vpop.xlane.xlu0 %73  ;;  %v76_v55 = vpop.xlane.xlu1 %75  ;;  %1124 = vmatpush3.bf16.msra.mxu1 %v1183_v7  ;;  %v1245_v7 = vmov 0  }
  0x9e   :  { %v104_v56 = vmul.f32 0.0078125, %v74_v54  ;;  %v138_v57 = vmul.f32 %v1402_v51, %v1402_v51  ;;  %v105_v58 = vmul.f32 0.0078125, %v76_v55  ;;  %v139_v61 = vmul.f32 %v1406_v52, %v1406_v52  ;;  %1125 = vmatprep.subr.bf16.mxu1 %v1244_v28  ;;  %546 = vmatprep.mubr.bf16.mxu0 %v1245_v7 }
  0xa0   :  { %v1414_v59 = vsub.f32 %v1074_v10, %v104_v56  ;;  %158 = vadd.xlane.f32.xlu1 %v137_v53  ;;  %160 = vadd.xlane.f32.xlu0 %v138_v57  ;;  %v1418_v60 = vsub.f32 %v1075_v11, %v105_v58 }
  0xa1   :  { %v78_v62 = vpop.xlane.xlu0 %77  ;;  %v80_v63 = vpop.xlane.xlu1 %79 }
  0xa2   :  { %v106_v0 = vmul.f32 0.0078125, %v78_v62  ;;  %v140_v1 = vmul.f32 %v1414_v59, %v1414_v59  ;;  %v107_v2 = vmul.f32 0.0078125, %v80_v63  ;;  %v141_v5 = vmul.f32 %v1418_v60, %v1418_v60  ;;  %v1199_v62 = vld [vmem:[%s1818_s3 + $0x80] ss:$12 sps:$4 sm:$0xff]  }
  0xa3   :  { %v1200_v63 = vld [vmem:[%s1818_s3 + $0x94] ss:$12 sps:$4 sm:$0xff]  }
  0xa4   :  { %v1426_v3 = vsub.f32 %v1078_v13, %v106_v0  ;;  %162 = vadd.xlane.f32.xlu1 %v139_v61  ;;  %164 = vadd.xlane.f32.xlu0 %v140_v1  ;;  %v1430_v4 = vsub.f32 %v1079_v14, %v107_v2  ;;  %v1184_v13 = vld [vmem:[%s1818_s3 + $0x34] ss:$12 sps:$4 sm:$0xff]   ;;  %v1196_v61 = vld [vmem:[%s1818_s3 + $0x7c] ss:$12 sps:$4 sm:$0xff]   ;;  %v1203_v1 = vld [vmem:[%s1818_s3 + $0x98] ss:$12 sps:$4 sm:$0xff]  }
  0xa5   :  { %v82_v8 = vpop.xlane.xlu0 %81  ;;  %v84_v9 = vpop.xlane.xlu1 %83  ;;  %518 = vmatprep.subr.bf16.mxu0 %v1184_v13  ;;  %v1202_v0 = vld [vmem:[%s1818_s3 + $0x90] ss:$12 sps:$4 sm:$0xff]   ;;  %v1204_v2 = vld [vmem:[%s1818_s3 + $0xac] ss:$12 sps:$4 sm:$0xff]  }
  0xa6   :  { %v108_v10 = vmul.f32 0.0078125, %v82_v8  ;;  %v142_v11 = vmul.f32 %v1426_v3, %v1426_v3  ;;  %v109_v12 = vmul.f32 0.0078125, %v84_v9  ;;  %v143_v29 = vmul.f32 %v1430_v4, %v1430_v4  ;;  %519 = vmatpush1.bf16.msra.mxu0 %v1186_v32 }
  0xa7   :  { %520 = vmatprep.subr.bf16.mxu0 %v1188_v39 }
  0xa8   :  { %v1448_v14 = vsub.f32 %v1082_v16, %v108_v10  ;;  %166 = vadd.xlane.f32.xlu1 %v141_v5  ;;  %168 = vadd.xlane.f32.xlu0 %v142_v11  ;;  %v1452_v27 = vsub.f32 %v1083_v17, %v109_v12  ;;  %v1187_v16 = vld [vmem:[%s1818_s3 + $0x38] ss:$12 sps:$4 sm:$0xff]   ;;  %v1206_v5 = vld [vmem:[%s1818_s3 + $0xa8] ss:$12 sps:$4 sm:$0xff]  }
  0xa9   :  { %v86_v30 = vpop.xlane.xlu0 %85  ;;  %v88_v31 = vpop.xlane.xlu1 %87  ;;  %1126 = vmatpush3.bf16.msra.mxu1 %v1187_v16 }
  0xaa   :  { %v110_v33 = vmul.f32 0.0078125, %v86_v30  ;;  %v144_v15 = vmul.f32 %v1448_v14, %v1448_v14  ;;  %v111_v17 = vmul.f32 0.0078125, %v88_v31  ;;  %v145_v38 = vmul.f32 %v1452_v27, %v1452_v27  ;;  %1127 = vmatprep.subr.bf16.mxu1 %v1244_v28 }
  0xac   :  { %v1466_v34 = vsub.f32 %v1086_v19, %v110_v33  ;;  %170 = vadd.xlane.f32.xlu1 %v143_v29  ;;  %172 = vadd.xlane.f32.xlu0 %v144_v15  ;;  %v1470_v35 = vsub.f32 %v1087_v20, %v111_v17  ;;  %v1190_v19 = vld [vmem:[%s1818_s3 + $0x48] ss:$12 sps:$4 sm:$0xff]  }
  0xad   :  { %v90_v40 = vpop.xlane.xlu0 %89  ;;  %v92_v41 = vpop.xlane.xlu1 %91  ;;  %521 = vmatpush1.bf16.msra.mxu0 %v1190_v19  ;;  %1128 = vmatpush3.bf16.msra.mxu1 %v1191_v18 }
  0xae   :  { %v112_v20 = vmul.f32 0.0078125, %v90_v40  ;;  %v146_v42 = vmul.f32 %v1466_v34, %v1466_v34  ;;  %v113_v45 = vmul.f32 0.0078125, %v92_v41  ;;  %v147_v48 = vmul.f32 %v1470_v35, %v1470_v35  ;;  %1129 = vmatprep.subr.bf16.mxu1 %v1244_v28  ;;  %522 = vmatprep.subr.bf16.mxu0 %v1192_v49  ;;  %v1559_v49 = vld [vmem:[%s1819_s1] ss:$0 sm:$0xff] }
  0xb0   :  { %v1488_v46 = vsub.f32 %v1090_v22, %v112_v20  ;;  %174 = vadd.xlane.f32.xlu1 %v145_v38  ;;  %176 = vadd.xlane.f32.xlu0 %v146_v42  ;;  %v1492_v47 = vsub.f32 %v1091_v23, %v113_v45  ;;  %v1194_v22 = vld [vmem:[%s1818_s3 + $0x60] ss:$12 sps:$4 sm:$0xff]  }
  0xb1   :  { %v94_v50 = vpop.xlane.xlu0 %93  ;;  %v96_v53 = vpop.xlane.xlu1 %95  ;;  %523 = vmatpush1.bf16.msra.mxu0 %v1194_v22  ;;  %1130 = vmatpush3.bf16.msra.mxu1 %v1195_v21 }
  0xb2   :  { %v114_v23 = vmul.f32 0.0078125, %v94_v50  ;;  %v148_v54 = vmul.f32 %v1488_v46, %v1488_v46  ;;  %v115_v55 = vmul.f32 0.0078125, %v96_v53  ;;  %v149_v58 = vmul.f32 %v1492_v47, %v1492_v47  ;;  %1131 = vmatprep.subr.bf16.mxu1 %v1244_v28  ;;  %524 = vmatprep.subr.bf16.mxu0 %v1196_v61 }
  0xb4   :  { %v1510_v56 = vsub.f32 %v1094_v25, %v114_v23  ;;  %178 = vadd.xlane.f32.xlu1 %v147_v48  ;;  %180 = vadd.xlane.f32.xlu0 %v148_v54  ;;  %v1514_v57 = vsub.f32 %v1095_v26, %v115_v55  ;;  %v1198_v25 = vld [vmem:[%s1818_s3 + $0x78] ss:$12 sps:$4 sm:$0xff]  }
  0xb5   :  { %525 = vmatpush1.bf16.msra.mxu0 %v1198_v25  ;;  %1132 = vmatpush3.bf16.msra.mxu1 %v1199_v62 }
  0xb6   :  { %v150_v24 = vmul.f32 %v1510_v56, %v1510_v56  ;;  %v151_v26 = vmul.f32 %v1514_v57, %v1514_v57  ;;  %1133 = vmatprep.subr.bf16.mxu1 %v1244_v28  ;;  %526 = vmatprep.subr.bf16.mxu0 %v1200_v63 }
  0xb8   :  { %182 = vadd.xlane.f32.xlu1 %v149_v58  ;;  %184 = vadd.xlane.f32.xlu0 %v150_v24 }
  0xb9   :  { %527 = vmatpush1.bf16.msra.mxu0 %v1202_v0  ;;  %1134 = vmatpush3.bf16.msra.mxu1 %v1203_v1 }
  0xba   :  { %1135 = vmatprep.subr.bf16.mxu1 %v1244_v28  ;;  %528 = vmatprep.subr.bf16.mxu0 %v1204_v2 }
  0xbc   :  { %186 = vadd.xlane.f32.xlu1 %v151_v26 }
  0xbd   :  { %529 = vmatpush1.bf16.msra.mxu0 %v1206_v5  ;;  %1136 = vmatpush3.bf16.msra.mxu1 %v1207_v6 }
 0x125   :  { %v153_v8 = vpop.xlane.xlu0 %152 }
 0x126   :  { %v188_v9 = vmul.f32 0.0078125, %v153_v8 }
 0x128   :  { %v206_v10 = vadd.f32 1e-06, %v188_v9 }
 0x129   :  { %v155_v11 = vpop.xlane.xlu1 %154  ;;  %v157_v12 = vpop.xlane.xlu0 %156 }
 0x12a   :  { %1208 = vrsqrt.f32 %v206_v10  ;;  %v189_v13 = vmul.f32 0.0078125, %v155_v11  ;;  %v190_v29 = vmul.f32 0.0078125, %v157_v12 }
 0x12c   :  { %v207_v30 = vadd.f32 1e-06, %v189_v13  ;;  %v208_v31 = vadd.f32 1e-06, %v190_v29 }
 0x12d   :  { %v159_v32 = vpop.xlane.xlu1 %158  ;;  %v161_v16 = vpop.xlane.xlu0 %160 }
 0x12e   :  { %1210 = vrsqrt.f32 %v207_v30  ;;  %v191_v33 = vmul.f32 0.0078125, %v159_v32  ;;  %v192_v17 = vmul.f32 0.0078125, %v161_v16 }
 0x12f   :  { %1212 = vrsqrt.f32 %v208_v31 }
 0x130   :  { %v209_v15 = vadd.f32 1e-06, %v191_v33  ;;  %v210_v19 = vadd.f32 1e-06, %v192_v17 }
 0x131   :  { %v163_v38 = vpop.xlane.xlu1 %162  ;;  %v165_v39 = vpop.xlane.xlu0 %164 }
 0x132   :  { %1214 = vrsqrt.f32 %v209_v15  ;;  %v193_v40 = vmul.f32 0.0078125, %v163_v38  ;;  %v194_v53 = vmul.f32 0.0078125, %v165_v39 }
 0x134   :  { %v1209_v41 = vpop.eup %1208  ;;  %v211_v18 = vadd.f32 1e-06, %v193_v40  ;;  %v212_v62 = vadd.f32 1e-06, %v194_v53 }
 0x135   :  { %v167_v20 = vpop.xlane.xlu1 %166  ;;  %v169_v42 = vpop.xlane.xlu0 %168  ;;  %v242_v45 = vmul.f32 %v1209_v41, %v1384_v36  ;;  %v1566_v36 = vld [vmem:[%s1820_s2] ss:$0 sm:$0xff] }
 0x136   :  { %1216 = vrsqrt.f32 %v211_v18  ;;  %v195_v48 = vmul.f32 0.0078125, %v167_v20  ;;  %v196_v9 = vmul.f32 0.0078125, %v169_v42 }
 0x137   :  { %1218 = vrsqrt.f32 %v210_v19  ;;  %v267_v54 = vmul.f32 %v1559_v49, %v242_v45 }
 0x138   :  { %v1211_v50 = vpop.eup %1210  ;;  %v213_v58 = vadd.f32 1e-06, %v195_v48  ;;  %v214_v30 = vadd.f32 1e-06, %v196_v9 }
 0x139   :  { %v171_v22 = vpop.xlane.xlu1 %170  ;;  %v173_v21 = vpop.xlane.xlu0 %172  ;;  %v243_v23 = vmul.f32 %v1211_v50, %v1390_v43  ;;  %v292_v63 = vadd.f32 %v1566_v36, %v267_v54 }
 0x13a   :  { %v1213_v55 = vpop.eup %1212  ;;  %1220 = vrsqrt.f32 %v213_v58  ;;  %v197_v2 = vmul.f32 0.0078125, %v171_v22  ;;  %v198_v41 = vmul.f32 0.0078125, %v173_v21 }
 0x13b   :  { %v268_v61 = vmul.f32 %v1559_v49, %v243_v23  ;;  %v244_v43 = vmul.f32 %v1213_v55, %v1386_v37  ;;  %1222 = vrsqrt.f32 %v212_v62 }
 0x13c   :  { %v1215_v25 = vpop.eup %1214  ;;  %v215_v29 = vadd.f32 1e-06, %v197_v2  ;;  %v216_v50 = vadd.f32 1e-06, %v198_v41 }
 0x13d   :  { %v175_v24 = vpop.xlane.xlu1 %174  ;;  %v177_v26 = vpop.xlane.xlu0 %176  ;;  %v293_v0 = vadd.f32 %v1566_v36, %v268_v61  ;;  %v245_v1 = vmul.f32 %v1215_v25, %v1394_v44  ;;  %v269_v12 = vmul.f32 %v1559_v49, %v244_v43 }
 0x13e   :  { %v199_v31 = vmul.f32 0.0078125, %v175_v24  ;;  %1224 = vrsqrt.f32 %v215_v29  ;;  %v200_v61 = vmul.f32 0.0078125, %v177_v26 }
 0x13f   :  { %v310_v5 = vpack.c.bf16 %v293_v0, %v292_v63  ;;  %v270_v6 = vmul.f32 %v1559_v49, %v245_v1  ;;  %v294_v33 = vadd.f32 %v1566_v36, %v269_v12  ;;  %1226 = vrsqrt.f32 %v214_v30 }
 0x140   :  { %v1217_v8 = vpop.eup %1216  ;;  %v217_v18 = vadd.f32 1e-06, %v199_v31  ;;  %v218_v63 = vadd.f32 1e-06, %v200_v61 }
 0x141   :  { %v179_v10 = vpop.xlane.xlu1 %178  ;;  %547 = vmatmul.mubr.bf16.vlgmr.msra.gmra.mrb[0].mxu0 %v310_v5  ;;  %1138 = vmatmul.mubr.bf16.vlgmr.msra.gmra.mrb[0].mxu1 %v310_v5  ;;  %v1574_v11 = vpop.xlane.xlu0 %180  ;;  %v295_v37 = vadd.f32 %v1566_v36, %v270_v6  ;;  %v247_v44 = vmul.f32 %v1217_v8, %v1406_v52 }
 0x142   :  { %v1219_v13 = vpop.eup %1218  ;;  %556 = vmatprep.mubr.bf16.mxu0 %v1245_v7  ;;  %1141 = vmatprep.mubr.msk.bf16.mxu1 %vm1246_vm0, %v1244_v28  ;;  %v201_v23 = vmul.f32 0.0078125, %v179_v10  ;;  %v202_v10 = vmul.f32 0.0078125, %v1574_v11 }
 0x143   :  { %v246_v15 = vmul.f32 %v1219_v13, %v1402_v51  ;;  %v311_v38 = vpack.c.bf16 %v295_v37, %v294_v33  ;;  %v272_v39 = vmul.f32 %v1559_v49, %v247_v44 }
 0x144   :  { %v1221_v40 = vpop.eup %1220  ;;  %v219_v62 = vadd.f32 1e-06, %v201_v23  ;;  %v220_v30 = vadd.f32 1e-06, %v202_v10 }
 0x145   :  { %v183_v32 = vpop.xlane.xlu1 %182  ;;  %v185_v16 = vpop.xlane.xlu0 %184  ;;  %v271_v52 = vmul.f32 %v1559_v49, %v246_v15  ;;  %v297_v51 = vadd.f32 %v1566_v36, %v272_v39  ;;  %v249_v48 = vmul.f32 %v1221_v40, %v1418_v60 }
 0x146   :  { %v204_v17 = vmul.f32 0.0078125, %v185_v16  ;;  %v1223_v42 = vpop.eup %1222  ;;  %v203_v1 = vmul.f32 0.0078125, %v183_v32 }
 0x147   :  { %v296_v22 = vadd.f32 %v1566_v36, %v271_v52  ;;  %v248_v21 = vmul.f32 %v1223_v42, %v1414_v59  ;;  %v274_v55 = vmul.f32 %v1559_v49, %v249_v48 }
 0x148   :  { %v222_v19 = vadd.f32 1e-06, %v204_v17  ;;  %v1225_v58 = vpop.eup %1224  ;;  %v221_v29 = vadd.f32 1e-06, %v203_v1 }
 0x149   :  { %v187_v20 = vpop.xlane.xlu1 %186  ;;  %557 = vmatmul.mubr.bf16.gmra.mrb[4].mxu0 %v311_v38  ;;  %1142 = vmatmul.mubr.bf16.gmra.mrb[4].mxu1 %v311_v38  ;;  %v312_v54 = vpack.c.bf16 %v297_v51, %v296_v22  ;;  %v273_v25 = vmul.f32 %v1559_v49, %v248_v21  ;;  %v1227_v60 = vpop.eup %1226  ;;  %v299_v59 = vadd.f32 %v1566_v36, %v274_v55  ;;  %v369_v55 = vld [vmem:[%s1821_s4] sm:$0x7] }
 0x14a   :  { %v205_v45 = vmul.f32 0.0078125, %v187_v20  ;;  %566 = vmatprep.mubr.bf16.mxu0 %v1245_v7  ;;  %1145 = vmatprep.mubr.msk.bf16.mxu1 %vm1246_vm0, %v1244_v28  ;;  %1228 = vrsqrt.f32 %v222_v19  ;;  %v251_v24 = vmul.f32 %v1225_v58, %v1430_v4  ;;  %v250_v26 = vmul.f32 %v1227_v60, %v1426_v3 }
 0x14b   :  { %1230 = vrsqrt.f32 %v217_v18  ;;  %v298_v43 = vadd.f32 %v1566_v36, %v273_v25 }
 0x14c   :  { %v223_v53 = vadd.f32 1e-06, %v205_v45  ;;  %v276_v8 = vmul.f32 %v1559_v49, %v251_v24  ;;  %v275_v12 = vmul.f32 %v1559_v49, %v250_v26 }
 0x14d   :  { %v313_v6 = vpack.c.bf16 %v299_v59, %v298_v43 }
 0x14e   :  { %1232 = vrsqrt.f32 %v223_v53  ;;  %v301_v37 = vadd.f32 %v1566_v36, %v276_v8  ;;  %v300_v31 = vadd.f32 %v1566_v36, %v275_v12 }
 0x14f   :  { %1234 = vrsqrt.f32 %v216_v50 }
 0x150   :  { %1236 = vrsqrt.f32 %v219_v62  ;;  %v314_v16 = vpack.c.bf16 %v301_v37, %v300_v31 }
 0x151   :  { %567 = vmatmul.mubr.bf16.gmra.mrb[8].mxu0 %v312_v54  ;;  %1146 = vmatmul.mubr.bf16.gmra.mrb[8].mxu1 %v312_v54  ;;  %1238 = vrsqrt.f32 %v218_v63 }
 0x152   :  { %576 = vmatprep.mubr.bf16.mxu0 %v1245_v7  ;;  %1149 = vmatprep.mubr.msk.bf16.mxu1 %vm1246_vm0, %v1244_v28  ;;  %1240 = vrsqrt.f32 %v221_v29 }
 0x153   :  { %1242 = vrsqrt.f32 %v220_v30 }
 0x154   :  { %v1229_v0 = vpop.eup %1228 }
 0x155   :  { %v258_v2 = vmul.f32 %v1229_v0, %v1510_v56  ;;  %v1231_v5 = vpop.eup %1230 }
 0x156   :  { %v253_v11 = vmul.f32 %v1231_v5, %v1452_v27 }
 0x157   :  { %v283_v4 = vmul.f32 %v1559_v49, %v258_v2 }
 0x158   :  { %v1233_v9 = vpop.eup %1232  ;;  %v278_v33 = vmul.f32 %v1559_v49, %v253_v11 }
 0x159   :  { %577 = vmatmul.mubr.bf16.gmra.mrb[12].mxu0 %v313_v6  ;;  %1150 = vmatmul.mubr.bf16.gmra.mrb[12].mxu1 %v313_v6  ;;  %v259_v3 = vmul.f32 %v1233_v9, %v1514_v57  ;;  %v1235_v13 = vpop.eup %1234  ;;  %v308_v56 = vadd.f32 %v1566_v36, %v283_v4 }
 0x15a   :  { %586 = vmatprep.mubr.bf16.mxu0 %v1245_v7  ;;  %1153 = vmatprep.mubr.msk.bf16.mxu1 %vm1246_vm0, %v1244_v28  ;;  %v252_v57 = vmul.f32 %v1235_v13, %v1448_v14  ;;  %v1237_v17 = vpop.eup %1236  ;;  %v303_v14 = vadd.f32 %v1566_v36, %v278_v33 }
 0x15b   :  { %v284_v44 = vmul.f32 %v1559_v49, %v259_v3  ;;  %v1239_v38 = vpop.eup %1238  ;;  %v255_v39 = vmul.f32 %v1237_v17, %v1470_v35 }
 0x15c   :  { %v277_v27 = vmul.f32 %v1559_v49, %v252_v57  ;;  %v254_v41 = vmul.f32 %v1239_v38, %v1466_v34  ;;  %v1241_v20 = vpop.eup %1240 }
 0x15d   :  { %v309_v32 = vadd.f32 %v1566_v36, %v284_v44  ;;  %v280_v18 = vmul.f32 %v1559_v49, %v255_v39  ;;  %v1243_v42 = vpop.eup %1242  ;;  %v257_v45 = vmul.f32 %v1241_v20, %v1492_v47 }
 0x15e   :  { %v302_v40 = vadd.f32 %v1566_v36, %v277_v27  ;;  %v279_v52 = vmul.f32 %v1559_v49, %v254_v41  ;;  %v256_v51 = vmul.f32 %v1243_v42, %v1488_v46  ;;  %v371_v46 = vlaneseq }
 0x15f   :  { %v318_v15 = vpack.c.bf16 %v309_v32, %v308_v56  ;;  %v305_v35 = vadd.f32 %v1566_v36, %v280_v18  ;;  %v282_v50 = vmul.f32 %v1559_v49, %v257_v45 }
 0x160   :  { %v315_v19 = vpack.c.bf16 %v303_v14, %v302_v40  ;;  %v304_v34 = vadd.f32 %v1566_v36, %v279_v52  ;;  %v281_v53 = vmul.f32 %v1559_v49, %v256_v51  ;;  %v372_v49 = vshrl.u32 %v371_v46, 7 }
 0x161   :  { %587 = vmatmul.mubr.bf16.gmra.mrb[16].mxu0 %v314_v16  ;;  %1154 = vmatmul.mubr.bf16.gmra.mrb[16].mxu1 %v314_v16  ;;  %v307_v22 = vadd.f32 %v1566_v36, %v282_v50 }
 0x162   :  { %596 = vmatprep.mubr.bf16.mxu0 %v1245_v7  ;;  %1157 = vmatprep.mubr.msk.bf16.mxu1 %vm1246_vm0, %v1244_v28  ;;  %v316_v48 = vpack.c.bf16 %v305_v35, %v304_v34  ;;  %v306_v47 = vadd.f32 %v1566_v36, %v281_v53  ;;  %v373_v23 = vsub.s32 0, %v372_v49  ;;  %v381_v54 = vsub.s32 2, %v372_v49 }
 0x163   :  { %v377_v58 = vsub.s32 1, %v372_v49 }
 0x164   :  { %v317_v21 = vpack.c.bf16 %v307_v22, %v306_v47  ;;  %v1649_v36 = vrot.slane %v369_v55, %v373_v23  ;;  %v1651_v61 = vrot.slane %v369_v55, %v381_v54 }
 0x165   :  { %v1653_v25 = vrot.slane %v369_v55, %v377_v58 }
 0x169   :  { %597 = vmatmul.mubr.bf16.gmra.mrb[20].mxu0 %v315_v19  ;;  %1158 = vmatmul.mubr.bf16.gmra.mrb[20].mxu1 %v315_v19 }
 0x16a   :  { %606 = vmatprep.mubr.bf16.mxu0 %v1245_v7  ;;  %1161 = vmatprep.mubr.msk.bf16.mxu1 %vm1246_vm0, %v1244_v28 }
 0x171   :  { %607 = vmatmul.mubr.bf16.gmra.mrb[24].mxu0 %v316_v48  ;;  %1162 = vmatmul.mubr.bf16.gmra.mrb[24].mxu1 %v316_v48 }
 0x172   :  { %616 = vmatprep.mubr.bf16.mxu0 %v1245_v7  ;;  %1165 = vmatprep.mubr.msk.bf16.mxu1 %vm1246_vm0, %v1244_v28 }
 0x179   :  { %617 = vmatmul.mubr.bf16.gmra.mrb[28].mxu0 %v317_v21  ;;  %1166 = vmatmul.mubr.bf16.gmra.mrb[28].mxu1 %v317_v21 }
 0x17a   :  { %626 = vmatprep.mubr.bf16.mxu0 %v1245_v7  ;;  %1169 = vmatprep.mubr.msk.bf16.mxu1 %vm1246_vm0, %v1244_v28 }
 0x181   :  { %627 = vmatmul.mubr.bf16.gmra.mrb[32].mxu0 %v318_v15  ;;  %1170 = vmatmul.mubr.bf16.gmra.mrb[32].mxu1 %v318_v15 }
 0x214   :  { %v548_v7 = vpop.f32.mrb[0].mxu0  ;;  %v671_v60 = vpop.f32.mrb[0].mxu1 }
 0x215   :  { %v549_v28 = vadd.f32 %v548_v7, %v1649_v36  ;;  %v672_v62 = vadd.f32 %v671_v60, %v1651_v61  ;;  %v550_v59 = vpop.f32.mrb[1].mxu0  ;;  %v1139_v24 = vpop.f32.mrb[1].mxu1 }
 0x216   :  { %v551_v63 = vadd.f32 %v550_v59, %v1653_v25  ;;  %v552_v0 = vpop.f32.mrb[2].mxu0  ;;  %v674_v43 = vpop.f32.mrb[2].mxu1 }
 0x217   :  { %v1025_v26 = vpack.c.bf16 %v672_v62, %v672_v62  ;;  %v553_v1 = vadd.f32 %v552_v0, %v1649_v36  ;;  %v675_v2 = vadd.f32 %v674_v43, %v1651_v61  ;;  %v554_v5 = vpop.f32.mrb[3].mxu0  ;;  %v1140_v6 = vpop.f32.mrb[3].mxu1 }
 0x218   :  { %v1024_v8 = vpack.c.bf16 %v551_v63, %v549_v28  ;;  %v555_v9 = vadd.f32 %v554_v5, %v1653_v25 }
 0x219   :  { %923 = vst [vmem:[%s1822_s5 + $0x8] sm:$0xf] %v1025_v26  ;;  %v1027_v10 = vpack.c.bf16 %v675_v2, %v675_v2 }
 0x21a   :  { %922 = vst [vmem:[%s1822_s5] sm:$0xff] %v1024_v8  ;;  %v1026_v4 = vpack.c.bf16 %v555_v9, %v553_v1 }
 0x21b   :  { %925 = vst [vmem:[%s1822_s5 + $0x14] sm:$0xf] %v1027_v10 }
 0x21c   :  { %924 = vst [vmem:[%s1822_s5 + $0xc] sm:$0xff] %v1026_v4  ;;  %v558_v12 = vpop.f32.mrb[4].mxu0  ;;  %v679_v3 = vpop.f32.mrb[4].mxu1 }
 0x21d   :  { %v559_v13 = vadd.f32 %v558_v12, %v1649_v36  ;;  %v680_v29 = vadd.f32 %v679_v3, %v1651_v61  ;;  %v560_v56 = vpop.f32.mrb[5].mxu0  ;;  %v1143_v37 = vpop.f32.mrb[5].mxu1 }
 0x21e   :  { %v561_v11 = vadd.f32 %v560_v56, %v1653_v25  ;;  %v562_v44 = vpop.f32.mrb[6].mxu0  ;;  %v682_v30 = vpop.f32.mrb[6].mxu1 }
 0x21f   :  { %v1029_v31 = vpack.c.bf16 %v680_v29, %v680_v29  ;;  %v563_v57 = vadd.f32 %v562_v44, %v1649_v36  ;;  %v683_v32 = vadd.f32 %v682_v30, %v1651_v61  ;;  %v564_v16 = vpop.f32.mrb[7].mxu0  ;;  %v1144_v33 = vpop.f32.mrb[7].mxu1 }
 0x220   :  { %v1028_v15 = vpack.c.bf16 %v561_v11, %v559_v13  ;;  %v565_v17 = vadd.f32 %v564_v16, %v1653_v25 }
 0x221   :  { %927 = vst [vmem:[%s1822_s5 + $0x20] sm:$0xf] %v1029_v31  ;;  %v1031_v27 = vpack.c.bf16 %v683_v32, %v683_v32 }
 0x222   :  { %926 = vst [vmem:[%s1822_s5 + $0x18] sm:$0xff] %v1028_v15  ;;  %v1030_v38 = vpack.c.bf16 %v565_v17, %v563_v57 }
 0x223   :  { %929 = vst [vmem:[%s1822_s5 + $0x2c] sm:$0xf] %v1031_v27 }
 0x224   :  { %928 = vst [vmem:[%s1822_s5 + $0x24] sm:$0xff] %v1030_v38  ;;  %v568_v14 = vpop.f32.mrb[8].mxu0  ;;  %v687_v39 = vpop.f32.mrb[8].mxu1 }
 0x225   :  { %v569_v40 = vadd.f32 %v568_v14, %v1649_v36  ;;  %v688_v41 = vadd.f32 %v687_v39, %v1651_v61  ;;  %v570_v19 = vpop.f32.mrb[9].mxu0  ;;  %v1147_v18 = vpop.f32.mrb[9].mxu1 }
 0x226   :  { %v571_v20 = vadd.f32 %v570_v19, %v1653_v25  ;;  %v572_v52 = vpop.f32.mrb[10].mxu0  ;;  %v690_v42 = vpop.f32.mrb[10].mxu1 }
 0x227   :  { %v1033_v35 = vpack.c.bf16 %v688_v41, %v688_v41  ;;  %v573_v45 = vadd.f32 %v572_v52, %v1649_v36  ;;  %v691_v34 = vadd.f32 %v690_v42, %v1651_v61  ;;  %v574_v51 = vpop.f32.mrb[11].mxu0  ;;  %v1148_v48 = vpop.f32.mrb[11].mxu1 }
 0x228   :  { %v1032_v50 = vpack.c.bf16 %v571_v20, %v569_v40  ;;  %v575_v53 = vadd.f32 %v574_v51, %v1653_v25 }
 0x229   :  { %931 = vst [vmem:[%s1822_s5 + $0x38] sm:$0xf] %v1033_v35  ;;  %v1035_v22 = vpack.c.bf16 %v691_v34, %v691_v34 }
 0x22a   :  { %930 = vst [vmem:[%s1822_s5 + $0x30] sm:$0xff] %v1032_v50  ;;  %v1034_v47 = vpack.c.bf16 %v575_v53, %v573_v45 }
 0x22b   :  { %933 = vst [vmem:[%s1822_s5 + $0x44] sm:$0xf] %v1035_v22 }
 0x22c   :  { %932 = vst [vmem:[%s1822_s5 + $0x3c] sm:$0xff] %v1034_v47  ;;  %v578_v21 = vpop.f32.mrb[12].mxu0  ;;  %v695_v46 = vpop.f32.mrb[12].mxu1 }
 0x22d   :  { %v579_v49 = vadd.f32 %v578_v21, %v1649_v36  ;;  %v696_v23 = vadd.f32 %v695_v46, %v1651_v61  ;;  %v580_v54 = vpop.f32.mrb[13].mxu0  ;;  %v1151_v55 = vpop.f32.mrb[13].mxu1 }
 0x22e   :  { %v581_v58 = vadd.f32 %v580_v54, %v1653_v25  ;;  %v582_v7 = vpop.f32.mrb[14].mxu0  ;;  %v698_v60 = vpop.f32.mrb[14].mxu1 }
 0x22f   :  { %v1037_v28 = vpack.c.bf16 %v696_v23, %v696_v23  ;;  %v583_v62 = vadd.f32 %v582_v7, %v1649_v36  ;;  %v699_v59 = vadd.f32 %v698_v60, %v1651_v61  ;;  %v584_v24 = vpop.f32.mrb[15].mxu0  ;;  %v1152_v63 = vpop.f32.mrb[15].mxu1 }
 0x230   :  { %v1036_v0 = vpack.c.bf16 %v581_v58, %v579_v49  ;;  %v585_v43 = vadd.f32 %v584_v24, %v1653_v25 }
 0x231   :  { %935 = vst [vmem:[%s1822_s5 + $0x50] sm:$0xf] %v1037_v28  ;;  %v1039_v26 = vpack.c.bf16 %v699_v59, %v699_v59 }
 0x232   :  { %934 = vst [vmem:[%s1822_s5 + $0x48] sm:$0xff] %v1036_v0  ;;  %v1038_v1 = vpack.c.bf16 %v585_v43, %v583_v62 }
 0x233   :  { %937 = vst [vmem:[%s1822_s5 + $0x5c] sm:$0xf] %v1039_v26 }
 0x234   :  { %936 = vst [vmem:[%s1822_s5 + $0x54] sm:$0xff] %v1038_v1  ;;  %v588_v2 = vpop.f32.mrb[16].mxu0  ;;  %v703_v5 = vpop.f32.mrb[16].mxu1 }
 0x235   :  { %v589_v6 = vadd.f32 %v588_v2, %v1649_v36  ;;  %v704_v8 = vadd.f32 %v703_v5, %v1651_v61  ;;  %v590_v9 = vpop.f32.mrb[17].mxu0  ;;  %v1155_v10 = vpop.f32.mrb[17].mxu1 }
 0x236   :  { %v591_v4 = vadd.f32 %v590_v9, %v1653_v25  ;;  %v592_v12 = vpop.f32.mrb[18].mxu0  ;;  %v706_v3 = vpop.f32.mrb[18].mxu1 }
 0x237   :  { %v1041_v13 = vpack.c.bf16 %v704_v8, %v704_v8  ;;  %v593_v29 = vadd.f32 %v592_v12, %v1649_v36  ;;  %v707_v56 = vadd.f32 %v706_v3, %v1651_v61  ;;  %v594_v37 = vpop.f32.mrb[19].mxu0  ;;  %v1156_v11 = vpop.f32.mrb[19].mxu1 }
 0x238   :  { %v1040_v44 = vpack.c.bf16 %v591_v4, %v589_v6  ;;  %v595_v30 = vadd.f32 %v594_v37, %v1653_v25 }
 0x239   :  { %939 = vst [vmem:[%s1822_s5 + $0x68] sm:$0xf] %v1041_v13  ;;  %v1043_v31 = vpack.c.bf16 %v707_v56, %v707_v56 }
 0x23a   :  { %938 = vst [vmem:[%s1822_s5 + $0x60] sm:$0xff] %v1040_v44  ;;  %v1042_v57 = vpack.c.bf16 %v595_v30, %v593_v29 }
 0x23b   :  { %941 = vst [vmem:[%s1822_s5 + $0x74] sm:$0xf] %v1043_v31 }
 0x23c   :  { %940 = vst [vmem:[%s1822_s5 + $0x6c] sm:$0xff] %v1042_v57  ;;  %v598_v32 = vpop.f32.mrb[20].mxu0  ;;  %v711_v16 = vpop.f32.mrb[20].mxu1 }
 0x23d   :  { %v599_v33 = vadd.f32 %v598_v32, %v1649_v36  ;;  %v712_v15 = vadd.f32 %v711_v16, %v1651_v61  ;;  %v600_v17 = vpop.f32.mrb[21].mxu0  ;;  %v1159_v27 = vpop.f32.mrb[21].mxu1 }
 0x23e   :  { %v601_v38 = vadd.f32 %v600_v17, %v1653_v25  ;;  %v602_v14 = vpop.f32.mrb[22].mxu0  ;;  %v714_v39 = vpop.f32.mrb[22].mxu1 }
 0x23f   :  { %v1045_v40 = vpack.c.bf16 %v712_v15, %v712_v15  ;;  %v603_v41 = vadd.f32 %v602_v14, %v1649_v36  ;;  %v715_v19 = vadd.f32 %v714_v39, %v1651_v61  ;;  %v604_v18 = vpop.f32.mrb[23].mxu0  ;;  %v1160_v20 = vpop.f32.mrb[23].mxu1 }
 0x240   :  { %v1044_v52 = vpack.c.bf16 %v601_v38, %v599_v33  ;;  %v605_v42 = vadd.f32 %v604_v18, %v1653_v25 }
 0x241   :  { %943 = vst [vmem:[%s1822_s5 + $0x80] sm:$0xf] %v1045_v40  ;;  %v1047_v35 = vpack.c.bf16 %v715_v19, %v715_v19 }
 0x242   :  { %942 = vst [vmem:[%s1822_s5 + $0x78] sm:$0xff] %v1044_v52  ;;  %v1046_v45 = vpack.c.bf16 %v605_v42, %v603_v41 }
 0x243   :  { %945 = vst [vmem:[%s1822_s5 + $0x8c] sm:$0xf] %v1047_v35 }
 0x244   :  { %944 = vst [vmem:[%s1822_s5 + $0x84] sm:$0xff] %v1046_v45  ;;  %v608_v34 = vpop.f32.mrb[24].mxu0  ;;  %v719_v51 = vpop.f32.mrb[24].mxu1 }
 0x245   :  { %v609_v48 = vadd.f32 %v608_v34, %v1649_v36  ;;  %v720_v50 = vadd.f32 %v719_v51, %v1651_v61  ;;  %v610_v53 = vpop.f32.mrb[25].mxu0  ;;  %v1163_v22 = vpop.f32.mrb[25].mxu1 }
 0x246   :  { %v611_v47 = vadd.f32 %v610_v53, %v1653_v25  ;;  %v612_v21 = vpop.f32.mrb[26].mxu0  ;;  %v722_v46 = vpop.f32.mrb[26].mxu1 }
 0x247   :  { %v1049_v49 = vpack.c.bf16 %v720_v50, %v720_v50  ;;  %v613_v23 = vadd.f32 %v612_v21, %v1649_v36  ;;  %v723_v54 = vadd.f32 %v722_v46, %v1651_v61  ;;  %v614_v55 = vpop.f32.mrb[27].mxu0  ;;  %v1164_v58 = vpop.f32.mrb[27].mxu1 }
 0x248   :  { %v1048_v7 = vpack.c.bf16 %v611_v47, %v609_v48  ;;  %v615_v60 = vadd.f32 %v614_v55, %v1653_v25 }
 0x249   :  { %947 = vst [vmem:[%s1822_s5 + $0x98] sm:$0xf] %v1049_v49  ;;  %v1051_v28 = vpack.c.bf16 %v723_v54, %v723_v54 }
 0x24a   :  { %946 = vst [vmem:[%s1822_s5 + $0x90] sm:$0xff] %v1048_v7  ;;  %v1050_v62 = vpack.c.bf16 %v615_v60, %v613_v23 }
 0x24b   :  { %949 = vst [vmem:[%s1822_s5 + $0xa4] sm:$0xf] %v1051_v28 }
 0x24c   :  { %948 = vst [vmem:[%s1822_s5 + $0x9c] sm:$0xff] %v1050_v62  ;;  %v618_v59 = vpop.f32.mrb[28].mxu0  ;;  %v727_v24 = vpop.f32.mrb[28].mxu1 }
 0x24d   :  { %v619_v63 = vadd.f32 %v618_v59, %v1649_v36  ;;  %v728_v0 = vadd.f32 %v727_v24, %v1651_v61  ;;  %v620_v43 = vpop.f32.mrb[29].mxu0  ;;  %v1167_v26 = vpop.f32.mrb[29].mxu1 }
 0x24e   :  { %v621_v1 = vadd.f32 %v620_v43, %v1653_v25  ;;  %v622_v2 = vpop.f32.mrb[30].mxu0  ;;  %v730_v5 = vpop.f32.mrb[30].mxu1 }
 0x24f   :  { %v1053_v6 = vpack.c.bf16 %v728_v0, %v728_v0  ;;  %v623_v8 = vadd.f32 %v622_v2, %v1649_v36  ;;  %v731_v9 = vadd.f32 %v730_v5, %v1651_v61  ;;  %v624_v10 = vpop.f32.mrb[31].mxu0  ;;  %v1168_v4 = vpop.f32.mrb[31].mxu1 }
 0x250   :  { %v1052_v12 = vpack.c.bf16 %v621_v1, %v619_v63  ;;  %v625_v3 = vadd.f32 %v624_v10, %v1653_v25 }
 0x251   :  { %951 = vst [vmem:[%s1822_s5 + $0xb0] sm:$0xf] %v1053_v6  ;;  %v1055_v13 = vpack.c.bf16 %v731_v9, %v731_v9 }
 0x252   :  { %950 = vst [vmem:[%s1822_s5 + $0xa8] sm:$0xff] %v1052_v12  ;;  %v1054_v29 = vpack.c.bf16 %v625_v3, %v623_v8 }
 0x253   :  { %953 = vst [vmem:[%s1822_s5 + $0xbc] sm:$0xf] %v1055_v13 }
 0x254   :  { %952 = vst [vmem:[%s1822_s5 + $0xb4] sm:$0xff] %v1054_v29  ;;  %v628_v56 = vpop.f32.mrb[32].mxu0  ;;  %v735_v37 = vpop.f32.mrb[32].mxu1 }
 0x255   :  { %v629_v11 = vadd.f32 %v628_v56, %v1649_v36  ;;  %v736_v44 = vadd.f32 %v735_v37, %v1651_v61  ;;  %v630_v30 = vpop.f32.mrb[33].mxu0  ;;  %v1171_v31 = vpop.f32.mrb[33].mxu1 }
 0x256   :  { %v631_v57 = vadd.f32 %v630_v30, %v1653_v25  ;;  %v632_v32 = vpop.f32.mrb[34].mxu0  ;;  %v738_v16 = vpop.f32.mrb[34].mxu1 }
 0x257   :  { %v1057_v33 = vpack.c.bf16 %v736_v44, %v736_v44  ;;  %v633_v15 = vadd.f32 %v632_v32, %v1649_v36  ;;  %v739_v17 = vadd.f32 %v738_v16, %v1651_v61  ;;  %v634_v27 = vpop.f32.mrb[35].mxu0  ;;  %v1172_v38 = vpop.f32.mrb[35].mxu1 }
 0x258   :  { %v1056_v14 = vpack.c.bf16 %v631_v57, %v629_v11  ;;  %v635_v39 = vadd.f32 %v634_v27, %v1653_v25 }
 0x259   :  { %955 = vst [vmem:[%s1822_s5 + $0xc8] sm:$0xf] %v1057_v33  ;;  %v1059_v40 = vpack.c.bf16 %v739_v17, %v739_v17 }
 0x25a   :  { %954 = vst [vmem:[%s1822_s5 + $0xc0] sm:$0xff] %v1056_v14  ;;  %v1058_v41 = vpack.c.bf16 %v635_v39, %v633_v15 }
 0x25b   :  { %957 = vst [vmem:[%s1822_s5 + $0xd4] sm:$0xf] %v1059_v40 }
 0x25c   :  { %956 = vst [vmem:[%s1822_s5 + $0xcc] sm:$0xff] %v1058_v41 }

// kernel: pdn_wrapper_forward.14
= control target key start
LH: loop header
LB: loop body
LE: loop exit
PB: predicated region body
PF: predicated region fallthrough
CT: control target
= control target key end

     0   :  { %s2781_s12 = smov 0   ;;  %s2783_s13 = smov 0   ;;  %s3705_s0 = inlined_call_operand.vmem [shape: f32[1,72], index: 0, kind: input, shape index: {}]   ;;  %s3706_s1 = inlined_call_operand.vmem [shape: bf16[2,72,384], index: 1, kind: input, shape index: {}, may-alias: {1,2}]   ;;  %s3707_s2 = inlined_call_operand.vmem [shape: bf16[2,72,384], index: 2, kind: input, shape index: {}, may-alias: {1,2}]   ;;  %s3708_s3 = inlined_call_operand.vmem [shape: bf16[2,72,128], index: 3, kind: output, shape index: {}]  }
   0x1   :  { %s2785_s14 = smov 0   ;;  %s2787_s15 = smov 0  }
   0x2   :  { %s2789_s16 = smov 0  }
   0x3 LB: > { %s25_s17 = sadd.s32 1, %s2750_s15  ;;  %p62_p1 = scmp.ne.s32.totalorder %s2742_s13, %s2738_s12  ;;  %s2754_s16 = sphi %s2789_s16, %s13_s16   ;;  %s2750_s15 = sphi %s2787_s15, %s3712_s15   ;;  %s2746_s14 = sphi %s2785_s14, %s3711_s14   ;;  %s2742_s13 = sphi %s2783_s13, %s3710_s13   ;;  %s2738_s12 = sphi %s2781_s12, %s3709_s12  }
   0x4   : > { %p27_p0 = scmp.ge.s32.totalorder %s25_s17, 2  ;;  %p63_p2 = scmp.eq.s32.totalorder %s2754_s16, 0 }
   0x5   : > { %s55_s19 = sadd.s32 1, %s2742_s13  ;;  %p2038_p5 = scmp.ge.s32.totalorder %s2754_s16, 2 }
   0x6   : > { %s3714_s17 = smov (%p27_p0, %s25_s17), 0  ;;  %p64_p3 = por %p63_p2, %p62_p1 }
   0x7   : > { %s50_s18 = ssub.s32 %s2750_s15, %s3714_s17  ;;  %145 = sbr.rel (%p2038_p5) target bundleno = 25 (0x19), region = 20 }
   0x8   : > { %p53_p4 = scmp.eq.s32.totalorder %s50_s18, 0 }
   0xa   : > { %s2816_s20 = scalar_select %p53_p4, %s2742_s13, %s55_s19  }
   0xe   : > { %148 = sbr.rel (!%p64_p3) target bundleno = 25 (0x19), region = 24  ;;  %s150_s21 = sand.u32 (%p64_p3), 1, %s2742_s13  }
   0xf   : > { %s2504_s22 = smul.u32 (%p64_p3), 108, %s2750_s15 }
  0x10   : > { %s2503_s23 = smul.u32 (%p64_p3), 36, %s150_s21 }
  0x11   : > { %s158_s26 = scalar_lea.vmem (%p64_p3), %s3706_s1, %s2504_s22 }
  0x12   : > { %v174_v0 = vld [vmem:[%s158_s26] sm:$0xf] (%p64_p3)  ;;  %v176_v1 = vld [vmem:[%s158_s26 + $0xc] sm:$0xf] (%p64_p3)  ;;  %s152_s27 = scalar_lea.vmem (%p64_p3), [#allocation2], %s2503_s23 }
  0x13   : > { %175 = vst [vmem:[%s152_s27] sm:$0xf] (%p64_p3), %v174_v0  ;;  %177 = vst [vmem:[%s152_s27 + $0x4] sm:$0xf] (%p64_p3), %v176_v1  ;;  %v178_v2 = vld [vmem:[%s158_s26 + $0x18] sm:$0xf] (%p64_p3) }
  0x14   : > { %v180_v3 = vld [vmem:[%s158_s26 + $0x24] sm:$0xf] (%p64_p3)  ;;  %v182_v4 = vld [vmem:[%s158_s26 + $0x30] sm:$0xf] (%p64_p3)  ;;  %179 = vst [vmem:[%s152_s27 + $0x8] sm:$0xf] (%p64_p3), %v178_v2 }
  0x15   : > { %181 = vst [vmem:[%s152_s27 + $0xc] sm:$0xf] %v180_v3  ;;  %183 = vst [vmem:[%s152_s27 + $0x10] sm:$0xf] %v182_v4  ;;  %v184_v5 = vld [vmem:[%s158_s26 + $0x3c] sm:$0xf] }
  0x16   : > { %v186_v6 = vld [vmem:[%s158_s26 + $0x48] sm:$0xf]  ;;  %v188_v7 = vld [vmem:[%s158_s26 + $0x54] sm:$0xf]  ;;  %185 = vst [vmem:[%s152_s27 + $0x14] sm:$0xf] %v184_v5 }
  0x17   : > { %187 = vst [vmem:[%s152_s27 + $0x18] sm:$0xf] %v186_v6  ;;  %189 = vst [vmem:[%s152_s27 + $0x1c] sm:$0xf] %v188_v7  ;;  %v190_v8 = vld [vmem:[%s158_s26 + $0x60] sm:$0xf] }
  0x18   : > { %191 = vst [vmem:[%s152_s27 + $0x20] sm:$0xf] %v190_v8 }
  0x19 PF: > { %p2040_p6 = scmp.ge.s32.totalorder %s2754_s16, 1  ;;  %p239_p7 = scmp.lt.s32.totalorder %s2754_s16, 3 }
  0x1b   : > { %p240_p8 = pnand %p2040_p6, %p239_p7 }
  0x1c   : > { %p279_p9 = scmp.lt.s32.totalorder (!%p240_p8), %s2746_s14, 1  ;;  %s246_s28 = sand.u32 (!%p240_p8), 1, %s2738_s12   ;;  %v2756_v9 = vmov (!%p240_p8), 0.0   ;;  %vm2757_vm0 = vmmov (!%p240_p8), 0   ;;  %vm375_vm1 = vcmask (!%p240_p8), 261120   ;;  %vm478_vm2 = vcmask (!%p240_p8), 588800  }
  0x1d   : > { %243 = sbr.rel (%p240_p8) target bundleno = 1722 (0x6ba), region = 69  ;;  %2253 = vmatprep.subr.bf16.mxu0 (!%p240_p8), %v2756_v9  ;;  %2263 = vmatprep.mubr.msk.bf16.mxu0 (!%p240_p8), %vm2757_vm0, %v2756_v9  ;;  %v2913_v25 = vld [vmem:[%s3705_s0] ss:$0 sm:$0xff] (!%p240_p8)  ;;  %s2758_s10 = smov (!%p240_p8), 96   ;;  %vm625_vm3 = vcmask (!%p240_p8), 1043456   ;;  %vm738_vm4 = vcmask (!%p240_p8), 257024  }
  0x1e   : > { %s2505_s29 = smul.u32 (!%p240_p8), 36, %s246_s28  ;;  %2283 = vmatprep.subr.bf16.mxu1 (!%p240_p8), %v2756_v9  ;;  %2293 = vmatprep.mubr.msk.bf16.mxu1 (!%p240_p8), %vm2757_vm0, %v2756_v9  ;;  %s2759_s11 = smov (!%p240_p8), 64   ;;  %vm1133_vm5 = vcmask (!%p240_p8), 519424   ;;  %vm1528_vm6 = vcmask (!%p240_p8), 781824   ;;  %vm1923_vm7 = vcmask (!%p240_p8), 1044224  }
  0x1f   : > { %s2760_s12 = smov (!%p240_p8), 32  }
  0x20   : > { %s2838_s4 = scalar_lea.vmem (!%p240_p8), [#allocation2], %s2505_s29 }
  0x21   : > { %v2876_v20 = vld [vmem:[%s2838_s4] sm:$0xff] (!%p240_p8)   ;;  %v2883_v21 = vld [vmem:[%s2838_s4 + $0x8] sm:$0xff] (!%p240_p8)   ;;  %v2890_v22 = vld [vmem:[%s2838_s4 + $0x10] sm:$0xff] (!%p240_p8)  }
  0x22   : > { %v2897_v23 = vld [vmem:[%s2838_s4 + $0x18] sm:$0xff] (!%p240_p8)   ;;  %v2904_v24 = vld [vmem:[%s2838_s4 + $0x20] ss:$0 sps:$4 sm:$0xff] (!%p240_p8)  }
  0x24   : > { %s3716_s14 = smov (!%p279_p9, %s2746_s14), 1 }
  0x25   : > { %s2506_s30 = smul.u32 108, %s3716_s14 }
  0x26   : > { %s2507_s18 = smul.u32 36, %s3716_s14 }
  0x27   : > { %s2843_s7 = scalar_lea.vmem %s3707_s2, %s2506_s30 }
  0x28   : > { %v2846_v10 = vld [vmem:[%s2843_s7 + $0x4] ss:$12 sps:$4 sm:$0xff]   ;;  %v2851_v12 = vld [vmem:[%s2843_s7 + $0x1c] ss:$12 sps:$4 sm:$0xff]   ;;  %v2858_v14 = vld [vmem:[%s2843_s7 + $0x34] ss:$12 sps:$4 sm:$0xff]   ;;  %s3177_s22 = scalar_lea.vmem %s3708_s3, %s2507_s18 }
  0x29   : > { %v392_v11 = vsel %vm375_vm1, %v2846_v10, 0  ;;  %v395_v13 = vsel %vm375_vm1, %v2851_v12, 0  ;;  %v398_v15 = vsel %vm375_vm1, %v2858_v14, 0  ;;  %v2864_v16 = vld [vmem:[%s2843_s7 + $0x4c] ss:$12 sps:$4 sm:$0xff]  }
  0x2a   : > { %2254 = vmatpush3.bf16.xpose.msra.mxu0 %v392_v11  ;;  %v401_v17 = vsel %vm375_vm1, %v2864_v16, 0  ;;  %v2870_v18 = vld [vmem:[%s2843_s7 + $0x64] ss:$0 sps:$4 sm:$0xff]   ;;  %v2939_v0 = vld [vmem:[%s2843_s7 + $0x8] ss:$12 sps:$4 sm:$0xff]  }
  0x2b   : > { %2255 = vmatprep.subr.bf16.mxu0 %v2756_v9  ;;  %v404_v19 = vsel %vm375_vm1, %v2870_v18, 0  ;;  %2284 = vmatpush3.bf16.msra.mxu1 %v2939_v0  ;;  %v2943_v1 = vld [vmem:[%s2843_s7 + $0x20] ss:$12 sps:$4 sm:$0xff]  }
  0x2c   : > { %2285 = vmatprep.subr.bf16.mxu1 %v2756_v9 }
  0x2f   : > { %2286 = vmatpush3.bf16.msra.mxu1 %v2943_v1 }
  0x30   : > { %2287 = vmatprep.subr.bf16.mxu1 %v2756_v9 }
  0x32   : > { %2256 = vmatpush3.bf16.xpose.msra.mxu0 %v395_v13 }
  0x33   : > { %2257 = vmatprep.subr.bf16.mxu0 %v2756_v9 }
  0x3a   : > { %2258 = vmatpush3.bf16.xpose.msra.mxu0 %v398_v15 }
  0x3b   : > { %2259 = vmatprep.subr.bf16.mxu0 %v2756_v9 }
  0x42   : > { %2260 = vmatpush3.bf16.xpose.msra.mxu0 %v401_v17 }
  0x43   : > { %2261 = vmatprep.subr.bf16.mxu0 %v2756_v9 }
  0x4a   : > { %2262 = vmatpush3.bf16.xpose.msra.mxu0 %v404_v19 }
  0x4b   : > { %2343 = vmatprep.subr.bf16.mxu0 %v2756_v9 }
  0x51   : > { %2264 = vmatmul.mubr.msk.bf16.vlgmr.msra.gmra.mrb[0].mxu0 %vm375_vm1, %v2876_v20 }
  0x52   : > { %2267 = vmatprep.mubr.msk.bf16.mxu0 %vm2757_vm0, %v2756_v9 }
  0x59   : > { %2268 = vmatmul.mubr.msk.bf16.gmra.mrb[4].mxu0 %vm375_vm1, %v2883_v21 }
  0x5a   : > { %2271 = vmatprep.mubr.msk.bf16.mxu0 %vm2757_vm0, %v2756_v9 }
  0x61   : > { %2272 = vmatmul.mubr.msk.bf16.gmra.mrb[8].mxu0 %vm375_vm1, %v2890_v22 }
  0x62   : > { %2275 = vmatprep.mubr.msk.bf16.mxu0 %vm2757_vm0, %v2756_v9 }
  0x69   : > { %2276 = vmatmul.mubr.msk.bf16.gmra.mrb[12].mxu0 %vm375_vm1, %v2897_v23 }
  0x6a   : > { %2279 = vmatprep.mubr.msk.bf16.mxu0 %vm2757_vm0, %v2756_v9 }
  0x71   : > { %2280 = vmatmul.mubr.msk.bf16.gmra.mrb[16].mxu0 %vm375_vm1, %v2904_v24 }
  0x72   : > { %2353 = vmatprep.mubr.msk.bf16.mxu0 %vm2757_vm0, %v2756_v9 }
 0x124   : > { %v440_v26 = vpop.f32.mrb[0].mxu0 }
 0x125   : > { %v441_v27 = vadd.f32 %v2913_v25, %v440_v26  ;;  %v2265_v28 = vpop.f32.mrb[1].mxu0 }
 0x126   : > { %v443_v29 = vpop.f32.mrb[2].mxu0 }
 0x127   : > { %v444_v30 = vadd.f32 %v2913_v25, %v443_v29  ;;  %v2266_v31 = vpop.f32.mrb[3].mxu0  ;;  %v479_v32 = vsel %vm478_vm2, %v441_v27, -inf }
 0x128   : > { %480 = vmax.xlane.f32.xlu0 %v479_v32 }
 0x129   : > { %v482_v33 = vsel %vm478_vm2, %v444_v30, -inf }
 0x12c   : > { %483 = vmax.xlane.f32.xlu0 %v482_v33  ;;  %v448_v34 = vpop.f32.mrb[4].mxu0 }
 0x12d   : > { %v449_v35 = vadd.f32 %v2913_v25, %v448_v34  ;;  %v2269_v36 = vpop.f32.mrb[5].mxu0 }
 0x12e   : > { %v451_v37 = vpop.f32.mrb[6].mxu0 }
 0x12f   : > { %v452_v38 = vadd.f32 %v2913_v25, %v451_v37  ;;  %v2270_v39 = vpop.f32.mrb[7].mxu0  ;;  %v485_v40 = vsel %vm478_vm2, %v449_v35, -inf }
 0x130   : > { %486 = vmax.xlane.f32.xlu1 %v485_v40 }
 0x131   : > { %v488_v41 = vsel %vm478_vm2, %v452_v38, -inf }
 0x134   : > { %489 = vmax.xlane.f32.xlu1 %v488_v41  ;;  %v456_v42 = vpop.f32.mrb[8].mxu0 }
 0x135   : > { %v457_v43 = vadd.f32 %v2913_v25, %v456_v42  ;;  %v2273_v44 = vpop.f32.mrb[9].mxu0 }
 0x136   : > { %v459_v45 = vpop.f32.mrb[10].mxu0 }
 0x137   : > { %v460_v46 = vadd.f32 %v2913_v25, %v459_v45  ;;  %v2274_v47 = vpop.f32.mrb[11].mxu0  ;;  %v491_v48 = vsel %vm478_vm2, %v457_v43, -inf }
 0x138   : > { %492 = vmax.xlane.f32.xlu0 %v491_v48  ;;  %v2967_v47 = vld [vmem:[%s2843_s7 + $0x38] ss:$12 sps:$4 sm:$0xff]  }
 0x139   : > { %v494_v49 = vsel %vm478_vm2, %v460_v46, -inf  ;;  %2288 = vmatpush3.bf16.msra.mxu1 %v2967_v47 }
 0x13a   : > { %495 = vmax.xlane.f32.xlu1 %v494_v49  ;;  %2289 = vmatprep.subr.bf16.mxu1 %v2756_v9 }
 0x13c   : > { %v464_v50 = vpop.f32.mrb[12].mxu0 }
 0x13d   : > { %v465_v51 = vadd.f32 %v2913_v25, %v464_v50  ;;  %v2277_v52 = vpop.f32.mrb[13].mxu0 }
 0x13e   : > { %v467_v53 = vpop.f32.mrb[14].mxu0 }
 0x13f   : > { %v468_v54 = vadd.f32 %v2913_v25, %v467_v53  ;;  %v2278_v55 = vpop.f32.mrb[15].mxu0  ;;  %v497_v56 = vsel %vm478_vm2, %v465_v51, -inf }
 0x140   : > { %498 = vmax.xlane.f32.xlu0 %v497_v56  ;;  %v2981_v55 = vld [vmem:[%s2843_s7 + $0x68] ss:$0 sps:$4 sm:$0xff]  }
 0x141   : > { %v500_v57 = vsel %vm478_vm2, %v468_v54, -inf }
 0x142   : > { %501 = vmax.xlane.f32.xlu1 %v500_v57 }
 0x144   : > { %v472_v58 = vpop.f32.mrb[16].mxu0 }
 0x145   : > { %v2932_v59 = vadd.f32 %v2913_v25, %v472_v58  ;;  %v2281_v60 = vpop.f32.mrb[17].mxu0  ;;  %v627_v58 = vsel %vm625_vm3, %v2981_v55, 0 }
 0x146   : > { %v475_v61 = vpop.f32.mrb[18].mxu0 }
 0x147   : > { %v2282_v62 = vpop.f32.mrb[19].mxu0  ;;  %v503_v63 = vsel %vm478_vm2, %v2932_v59, -inf }
 0x148   : > { %504 = vmax.xlane.f32.xlu0 %v503_v63 }
 0x153   : > { %758 = vrot.lane.b32.xlu1 %v2846_v10, %s2758_s10 }
 0x1b5   : > { %v481_v2 = vpop.xlane.xlu0 %480 }
 0x1b6   : > { %v506_v3 = vsub.f32 %v441_v27, %v481_v2 }
 0x1b8   : > { %v515_v4 = vmul.f32 1.442695, %v506_v3 }
 0x1b9   : > { %v484_v5 = vpop.xlane.xlu0 %483 }
 0x1ba   : > { %2568 = vpow2.f32 %v515_v4  ;;  %v507_v6 = vsub.f32 %v444_v30, %v484_v5 }
 0x1bc   : > { %v517_v7 = vmul.f32 1.442695, %v507_v6 }
 0x1bd   : > { %v487_v8 = vpop.xlane.xlu1 %486 }
 0x1be   : > { %2570 = vpow2.f32 %v517_v7  ;;  %v508_v11 = vsub.f32 %v449_v35, %v487_v8 }
 0x1c0   : > { %v519_v13 = vmul.f32 1.442695, %v508_v11 }
 0x1c1   : > { %v490_v15 = vpop.xlane.xlu1 %489 }
 0x1c2   : > { %2572 = vpow2.f32 %v519_v13  ;;  %v509_v17 = vsub.f32 %v452_v38, %v490_v15 }
 0x1c4   : > { %v2948_v19 = vpop.eup %2568  ;;  %v521_v26 = vmul.f32 1.442695, %v509_v17 }
 0x1c5   : > { %v493_v28 = vpop.xlane.xlu0 %492  ;;  %v533_v29 = vsel %vm478_vm2, %v2948_v19, 0.0 }
 0x1c6   : > { %2574 = vpow2.f32 %v521_v26  ;;  %v510_v27 = vsub.f32 %v457_v43, %v493_v28  ;;  %534 = vadd.xlane.f32.xlu1 %v533_v29 }
 0x1c7   : > { %v496_v31 = vpop.xlane.xlu1 %495 }
 0x1c8   : > { %v2952_v30 = vpop.eup %2570  ;;  %v523_v32 = vmul.f32 1.442695, %v510_v27  ;;  %v511_v33 = vsub.f32 %v460_v46, %v496_v31 }
 0x1c9   : > { %v536_v34 = vsel %vm478_vm2, %v2952_v30, 0.0 }
 0x1ca   : > { %2576 = vpow2.f32 %v523_v32  ;;  %v525_v35 = vmul.f32 1.442695, %v511_v33  ;;  %537 = vadd.xlane.f32.xlu0 %v536_v34 }
 0x1cc   : > { %v2956_v36 = vpop.eup %2572  ;;  %2578 = vpow2.f32 %v525_v35 }
 0x1cd   : > { %v499_v37 = vpop.xlane.xlu0 %498  ;;  %v539_v38 = vsel %vm478_vm2, %v2956_v36, 0.0 }
 0x1ce   : > { %v512_v39 = vsub.f32 %v465_v51, %v499_v37  ;;  %540 = vadd.xlane.f32.xlu1 %v539_v38 }
 0x1cf   : > { %v502_v40 = vpop.xlane.xlu1 %501 }
 0x1d0   : > { %v2960_v41 = vpop.eup %2574  ;;  %v527_v42 = vmul.f32 1.442695, %v512_v39  ;;  %v513_v43 = vsub.f32 %v468_v54, %v502_v40  ;;  %v2566_v54 = vld [vmem:[%s2843_s7 + $0x50] ss:$12 sps:$4 sm:$0xff]  }
 0x1d1   : > { %v542_v44 = vsel %vm478_vm2, %v2960_v41, 0.0  ;;  %2290 = vmatpush3.bf16.msra.mxu1 %v2566_v54 }
 0x1d2   : > { %2580 = vpow2.f32 %v527_v42  ;;  %v529_v45 = vmul.f32 1.442695, %v513_v43  ;;  %543 = vadd.xlane.f32.xlu0 %v542_v44  ;;  %2291 = vmatprep.subr.bf16.mxu1 %v2756_v9 }
 0x1d4   : > { %v2964_v46 = vpop.eup %2576  ;;  %2582 = vpow2.f32 %v529_v45 }
 0x1d5   : > { %v505_v48 = vpop.xlane.xlu0 %504  ;;  %v545_v49 = vsel %vm478_vm2, %v2964_v46, 0.0  ;;  %2292 = vmatpush3.bf16.msra.mxu1 %v627_v58 }
 0x1d6   : > { %v2971_v50 = vpop.eup %2578  ;;  %v514_v51 = vsub.f32 %v2932_v59, %v505_v48  ;;  %546 = vadd.xlane.f32.xlu1 %v545_v49  ;;  %2313 = vmatprep.subr.bf16.mxu1 %v2756_v9 }
 0x1d7   : > { %v548_v52 = vsel %vm478_vm2, %v2971_v50, 0.0 }
 0x1d8   : > { %v531_v53 = vmul.f32 1.442695, %v514_v51  ;;  %549 = vadd.xlane.f32.xlu0 %v548_v52 }
 0x1da   : > { %2584 = vpow2.f32 %v531_v53 }
 0x1dc   : > { %v2983_v56 = vpop.eup %2580 }
 0x1dd   : > { %v551_v57 = vsel %vm478_vm2, %v2983_v56, 0.0 }
 0x1de   : > { %v2989_v59 = vpop.eup %2582  ;;  %552 = vadd.xlane.f32.xlu1 %v551_v57 }
 0x1df   : > { %v554_v60 = vsel %vm478_vm2, %v2989_v59, 0.0 }
 0x1e0   : > { %555 = vadd.xlane.f32.xlu0 %v554_v60 }
 0x1e4   : > { %v2994_v61 = vpop.eup %2584 }
 0x1e5   : > { %v557_v62 = vsel %vm478_vm2, %v2994_v61, 0.0 }
 0x1e6   : > { %558 = vadd.xlane.f32.xlu0 %v557_v62 }
 0x1ef   : > { %762 = vrot.lane.b32.xlu1 %v2858_v14, %s2758_s10 }
 0x1f3   : > { %764 = vrot.lane.b32.xlu1 %v2864_v16, %s2758_s10 }
 0x1f7   : > { %766 = vrot.lane.b32.xlu1 %v2870_v18, %s2758_s10 }
 0x1fb   : > { %748 = vrot.lane.b32.xlu1 %v2876_v20, %s2758_s10 }
 0x1fc   : > { %760 = vrot.lane.b32.xlu0 %v2851_v12, %s2758_s10 }
 0x1ff   : > { %750 = vrot.lane.b32.xlu1 %v2883_v21, %s2758_s10 }
 0x200   : > { %1153 = vrot.lane.b32.xlu0 %v2846_v10, %s2759_s11 }
 0x203   : > { %752 = vrot.lane.b32.xlu1 %v2890_v22, %s2758_s10 }
 0x204   : > { %1155 = vrot.lane.b32.xlu0 %v2851_v12, %s2759_s11 }
 0x207   : > { %754 = vrot.lane.b32.xlu1 %v2897_v23, %s2758_s10 }
 0x208   : > { %1157 = vrot.lane.b32.xlu0 %v2858_v14, %s2759_s11 }
 0x20b   : > { %756 = vrot.lane.b32.xlu1 %v2904_v24, %s2758_s10 }
 0x20c   : > { %1159 = vrot.lane.b32.xlu0 %v2864_v16, %s2759_s11 }
 0x20f   : > { %1143 = vrot.lane.b32.xlu1 %v2876_v20, %s2759_s11 }
 0x210   : > { %1161 = vrot.lane.b32.xlu0 %v2870_v18, %s2759_s11 }
 0x213   : > { %1145 = vrot.lane.b32.xlu1 %v2883_v21, %s2759_s11 }
 0x214   : > { %1548 = vrot.lane.b32.xlu0 %v2846_v10, %s2760_s12  ;;  %v759_v10 = vpop.permute.xlu1 %758 }
 0x215   : > { %v784_v2 = vsel %vm375_vm1, %v759_v10, 0 }
 0x217   : > { %1147 = vrot.lane.b32.xlu1 %v2890_v22, %s2759_s11 }
 0x218   : > { %1550 = vrot.lane.b32.xlu0 %v2851_v12, %s2760_s12 }
 0x21b   : > { %1149 = vrot.lane.b32.xlu1 %v2897_v23, %s2759_s11 }
 0x21c   : > { %1552 = vrot.lane.b32.xlu0 %v2858_v14, %s2760_s12 }
 0x21f   : > { %1151 = vrot.lane.b32.xlu1 %v2904_v24, %s2759_s11 }
 0x220   : > { %1554 = vrot.lane.b32.xlu0 %v2864_v16, %s2760_s12 }
 0x223   : > { %1538 = vrot.lane.b32.xlu1 %v2876_v20, %s2760_s12 }
 0x224   : > { %1556 = vrot.lane.b32.xlu0 %v2870_v18, %s2760_s12 }
 0x227   : > { %1542 = vrot.lane.b32.xlu1 %v2890_v22, %s2760_s12 }
 0x228   : > { %1540 = vrot.lane.b32.xlu0 %v2883_v21, %s2760_s12 }
 0x22b   : > { %1546 = vrot.lane.b32.xlu1 %v2904_v24, %s2760_s12 }
 0x22c   : > { %1544 = vrot.lane.b32.xlu0 %v2897_v23, %s2760_s12 }
 0x22f   : > { %976 = vrot.lane.b32.xlu1 %v2943_v1, %s2758_s10 }
 0x230   : > { %974 = vrot.lane.b32.xlu0 %v2939_v0, %s2758_s10 }
 0x233   : > { %980 = vrot.lane.b32.xlu1 %v2566_v54, %s2758_s10 }
 0x234   : > { %978 = vrot.lane.b32.xlu0 %v2967_v47, %s2758_s10 }
 0x237   : > { %1371 = vrot.lane.b32.xlu1 %v2943_v1, %s2759_s11 }
 0x238   : > { %982 = vrot.lane.b32.xlu0 %v2981_v55, %s2758_s10 }
 0x23b   : > { %1375 = vrot.lane.b32.xlu1 %v2566_v54, %s2759_s11 }
 0x23c   : > { %1369 = vrot.lane.b32.xlu0 %v2939_v0, %s2759_s11 }
 0x240   : > { %1373 = vrot.lane.b32.xlu0 %v2967_v47, %s2759_s11 }
 0x253   : > { %v535_v12 = vpop.xlane.xlu1 %534 }
 0x254   : > { %2586 = vrcp.f32 %v535_v12 }
 0x257   : > { %v538_v14 = vpop.xlane.xlu0 %537 }
 0x258   : > { %2588 = vrcp.f32 %v538_v14 }
 0x25b   : > { %v541_v16 = vpop.xlane.xlu1 %540 }
 0x25c   : > { %2590 = vrcp.f32 %v541_v16 }
 0x25e   : > { %v2587_v20 = vpop.eup %2586 }
 0x25f   : > { %v544_v18 = vpop.xlane.xlu0 %543  ;;  %v569_v23 = vmul.f32 %v2587_v20, %v2948_v19 }
 0x260   : > { %2592 = vrcp.f32 %v544_v18 }
 0x262   : > { %v2589_v21 = vpop.eup %2588 }
 0x263   : > { %v547_v22 = vpop.xlane.xlu1 %546  ;;  %v570_v24 = vmul.f32 %v2589_v21, %v2952_v30 }
 0x264   : > { %2594 = vrcp.f32 %v547_v22 }
 0x265   : > { %v550_v63 = vpop.xlane.xlu0 %549  ;;  %v578_v1 = vpack.c.bf16 %v570_v24, %v569_v23 }
 0x266   : > { %2596 = vrcp.f32 %v550_v63  ;;  %v2591_v3 = vpop.eup %2590 }
 0x267   : > { %2294 = vmatmul.mubr.msk.bf16.vlgmr.msra.gmra.mrb[0].mxu1 %vm478_vm2, %v578_v1  ;;  %v571_v6 = vmul.f32 %v2591_v3, %v2956_v36 }
 0x268   : > { %2314 = vmatpush3.bf16.xpose.msra.mxu1 %v784_v2  ;;  %2297 = vmatprep.mubr.msk.bf16.mxu1 %vm2757_vm0, %v2756_v9 }
 0x269   : > { %2315 = vmatprep.subr.bf16.mxu1 %v2756_v9 }
 0x26a   : > { %v2593_v4 = vpop.eup %2592 }
 0x26b   : > { %v553_v5 = vpop.xlane.xlu1 %552  ;;  %v572_v7 = vmul.f32 %v2593_v4, %v2960_v41 }
 0x26c   : > { %2598 = vrcp.f32 %v553_v5 }
 0x26d   : > { %v556_v8 = vpop.xlane.xlu0 %555  ;;  %v579_v11 = vpack.c.bf16 %v572_v7, %v571_v6 }
 0x26e   : > { %2600 = vrcp.f32 %v556_v8  ;;  %v2595_v13 = vpop.eup %2594 }
 0x26f   : > { %2298 = vmatmul.mubr.msk.bf16.gmra.mrb[4].mxu1 %vm478_vm2, %v579_v11  ;;  %v573_v26 = vmul.f32 %v2595_v13, %v2964_v46  ;;  %v763_v33 = vpop.permute.xlu1 %762 }
 0x270   : > { %v2597_v15 = vpop.eup %2596  ;;  %2301 = vmatprep.mubr.msk.bf16.mxu1 %vm2757_vm0, %v2756_v9  ;;  %v790_v37 = vsel %vm375_vm1, %v763_v33, 0 }
 0x271   : > { %v574_v17 = vmul.f32 %v2597_v15, %v2971_v50 }
 0x273   : > { %v559_v19 = vpop.xlane.xlu0 %558  ;;  %v580_v28 = vpack.c.bf16 %v574_v17, %v573_v26  ;;  %v765_v39 = vpop.permute.xlu1 %764 }
 0x274   : > { %2602 = vrcp.f32 %v559_v19  ;;  %v793_v41 = vsel %vm375_vm1, %v765_v39, 0 }
 0x276   : > { %v2599_v29 = vpop.eup %2598 }
 0x277   : > { %2302 = vmatmul.mubr.msk.bf16.gmra.mrb[8].mxu1 %vm478_vm2, %v580_v28  ;;  %v761_v27 = vpop.permute.xlu0 %760  ;;  %v575_v34 = vmul.f32 %v2599_v29, %v2983_v56  ;;  %v767_v42 = vpop.permute.xlu1 %766 }
 0x278   : > { %v2601_v31 = vpop.eup %2600  ;;  %v787_v30 = vsel %vm375_vm1, %v761_v27, 0  ;;  %2305 = vmatprep.mubr.msk.bf16.mxu1 %vm2757_vm0, %v2756_v9  ;;  %v796_v43 = vsel %vm375_vm1, %v767_v42, 0 }
 0x279   : > { %2316 = vmatpush3.bf16.xpose.msra.mxu1 %v787_v30  ;;  %v576_v32 = vmul.f32 %v2601_v31, %v2989_v59 }
 0x27a   : > { %2317 = vmatprep.subr.bf16.mxu1 %v2756_v9 }
 0x27b   : > { %v581_v35 = vpack.c.bf16 %v576_v32, %v575_v34  ;;  %v1154_v44 = vpop.permute.xlu0 %1153  ;;  %v749_v45 = vpop.permute.xlu1 %748 }
 0x27c   : > { %v1179_v46 = vsel %vm375_vm1, %v1154_v44, 0 }
 0x27e   : > { %v2603_v36 = vpop.eup %2602 }
 0x27f   : > { %2306 = vmatmul.mubr.msk.bf16.gmra.mrb[12].mxu1 %vm478_vm2, %v581_v35  ;;  %v577_v38 = vmul.f32 %v2603_v36, %v2994_v61  ;;  %v1156_v48 = vpop.permute.xlu0 %1155  ;;  %v751_v49 = vpop.permute.xlu1 %750 }
 0x280   : > { %2309 = vmatprep.mubr.msk.bf16.mxu1 %vm2757_vm0, %v2756_v9  ;;  %v1182_v50 = vsel %vm375_vm1, %v1156_v48, 0 }
 0x281   : > { %2318 = vmatpush3.bf16.xpose.msra.mxu1 %v790_v37  ;;  %v582_v40 = vpack.c.bf16 %v577_v38, %v577_v38 }
 0x282   : > { %2319 = vmatprep.subr.bf16.mxu1 %v2756_v9 }
 0x283   : > { %v1158_v51 = vpop.permute.xlu0 %1157  ;;  %v753_v52 = vpop.permute.xlu1 %752 }
 0x284   : > { %v1185_v53 = vsel %vm375_vm1, %v1158_v51, 0 }
 0x287   : > { %2310 = vmatmul.mubr.msk.bf16.gmra.mrb[16].mxu1 %vm478_vm2, %v582_v40  ;;  %v1160_v54 = vpop.permute.xlu0 %1159  ;;  %v755_v56 = vpop.permute.xlu1 %754 }
 0x288   : > { %2323 = vmatprep.mubr.msk.bf16.mxu1 %vm2757_vm0, %v2756_v9  ;;  %v1188_v57 = vsel %vm375_vm1, %v1160_v54, 0 }
 0x289   : > { %2320 = vmatpush3.bf16.xpose.msra.mxu1 %v793_v41 }
 0x28a   : > { %2321 = vmatprep.subr.bf16.mxu1 %v2756_v9 }
 0x28b   : > { %v1162_v58 = vpop.permute.xlu0 %1161  ;;  %v757_v59 = vpop.permute.xlu1 %756 }
 0x28c   : > { %v1191_v60 = vsel %vm375_vm1, %v1162_v58, 0 }
 0x28f   : > { %v1549_v61 = vpop.permute.xlu0 %1548  ;;  %v1144_v62 = vpop.permute.xlu1 %1143 }
 0x290   : > { %v1574_v10 = vsel %vm375_vm1, %v1549_v61, 0 }
 0x291   : > { %2322 = vmatpush3.bf16.xpose.msra.mxu1 %v796_v43 }
 0x292   : > { %2373 = vmatprep.subr.bf16.mxu1 %v2756_v9 }
 0x293   : > { %v1551_v12 = vpop.permute.xlu0 %1550  ;;  %v1146_v14 = vpop.permute.xlu1 %1145 }
 0x294   : > { %v1577_v16 = vsel %vm375_vm1, %v1551_v12, 0 }
 0x297   : > { %v1553_v18 = vpop.permute.xlu0 %1552  ;;  %v1148_v20 = vpop.permute.xlu1 %1147 }
 0x298   : > { %2324 = vmatmul.mubr.msk.bf16.vlgmr.msra.gmra.mrb[20].mxu1 %vm375_vm1, %v749_v45  ;;  %v1580_v21 = vsel %vm375_vm1, %v1553_v18, 0 }
 0x299   : > { %2374 = vmatpush3.bf16.xpose.msra.mxu1 %v1179_v46  ;;  %2327 = vmatprep.mubr.msk.bf16.mxu1 %vm2757_vm0, %v2756_v9 }
 0x29a   : > { %2375 = vmatprep.subr.bf16.mxu1 %v2756_v9 }
 0x29b   : > { %v1555_v22 = vpop.permute.xlu0 %1554  ;;  %v1150_v23 = vpop.permute.xlu1 %1149 }
 0x29c   : > { %v1583_v24 = vsel %vm375_vm1, %v1555_v22, 0 }
 0x29f   : > { %v1557_v63 = vpop.permute.xlu0 %1556  ;;  %v1152_v1 = vpop.permute.xlu1 %1151 }
 0x2a0   : > { %2328 = vmatmul.mubr.msk.bf16.gmra.mrb[24].mxu1 %vm375_vm1, %v751_v49  ;;  %v1586_v2 = vsel %vm375_vm1, %v1557_v63, 0 }
 0x2a1   : > { %2376 = vmatpush3.bf16.xpose.msra.mxu1 %v1182_v50  ;;  %2331 = vmatprep.mubr.msk.bf16.mxu1 %vm2757_vm0, %v2756_v9 }
 0x2a2   : > { %2377 = vmatprep.subr.bf16.mxu1 %v2756_v9 }
 0x2a3   : > { %v1539_v3 = vpop.permute.xlu1 %1538  ;;  %v1541_v4 = vpop.permute.xlu0 %1540 }
 0x2a7   : > { %v1543_v5 = vpop.permute.xlu1 %1542  ;;  %v1545_v6 = vpop.permute.xlu0 %1544 }
 0x2a8   : > { %2332 = vmatmul.mubr.msk.bf16.gmra.mrb[28].mxu1 %vm375_vm1, %v753_v52 }
 0x2a9   : > { %2378 = vmatpush3.bf16.xpose.msra.mxu1 %v1185_v53  ;;  %2335 = vmatprep.mubr.msk.bf16.mxu1 %vm2757_vm0, %v2756_v9 }
 0x2aa   : > { %2379 = vmatprep.subr.bf16.mxu1 %v2756_v9 }
 0x2ab   : > { %v1547_v7 = vpop.permute.xlu1 %1546  ;;  %v975_v8 = vpop.permute.xlu0 %974 }
 0x2ac   : > { %2344 = vmatpush3.bf16.msra.mxu0 %v975_v8 }
 0x2ad   : > { %2345 = vmatprep.subr.bf16.mxu0 %v2756_v9 }
 0x2af   : > { %v977_v11 = vpop.permute.xlu1 %976  ;;  %v979_v13 = vpop.permute.xlu0 %978 }
 0x2b0   : > { %2336 = vmatmul.mubr.msk.bf16.gmra.mrb[32].mxu1 %vm375_vm1, %v755_v56  ;;  %2346 = vmatpush3.bf16.msra.mxu0 %v977_v11 }
 0x2b1   : > { %2380 = vmatpush3.bf16.xpose.msra.mxu1 %v1188_v57  ;;  %2339 = vmatprep.mubr.msk.bf16.mxu1 %vm2757_vm0, %v2756_v9 }
 0x2b2   : > { %2381 = vmatprep.subr.bf16.mxu1 %v2756_v9  ;;  %2347 = vmatprep.subr.bf16.mxu0 %v2756_v9 }
 0x2b3   : > { %v981_v17 = vpop.permute.xlu1 %980  ;;  %v983_v31 = vpop.permute.xlu0 %982 }
 0x2b4   : > { %2348 = vmatpush3.bf16.msra.mxu0 %v979_v13  ;;  %v1004_v30 = vsel %vm625_vm3, %v983_v31, 0 }
 0x2b5   : > { %2349 = vmatprep.subr.bf16.mxu0 %v2756_v9 }
 0x2b8   : > { %2340 = vmatmul.mubr.msk.bf16.gmra.mrb[36].mxu1 %vm375_vm1, %v757_v59  ;;  %2350 = vmatpush3.bf16.msra.mxu0 %v981_v17 }
 0x2b9   : > { %2382 = vmatpush3.bf16.xpose.msra.mxu1 %v1191_v60  ;;  %2383 = vmatprep.mubr.msk.bf16.mxu1 %vm2757_vm0, %v2756_v9 }
 0x2ba   : > { %2433 = vmatprep.subr.bf16.mxu1 %v2756_v9  ;;  %2351 = vmatprep.subr.bf16.mxu0 %v2756_v9 }
 0x2bc   : > { %2352 = vmatpush3.bf16.msra.mxu0 %v1004_v30 }
 0x2bd   : > { %2403 = vmatprep.subr.bf16.mxu0 %v2756_v9 }
 0x2c0   : > { %2384 = vmatmul.mubr.msk.bf16.vlgmr.msra.gmra.mrb[40].mxu1 %vm375_vm1, %v1144_v62 }
 0x2c1   : > { %2434 = vmatpush3.bf16.xpose.msra.mxu1 %v1574_v10  ;;  %2387 = vmatprep.mubr.msk.bf16.mxu1 %vm2757_vm0, %v2756_v9 }
 0x2c2   : > { %2435 = vmatprep.subr.bf16.mxu1 %v2756_v9 }
 0x2c8   : > { %2388 = vmatmul.mubr.msk.bf16.gmra.mrb[44].mxu1 %vm375_vm1, %v1146_v14 }
 0x2c9   : > { %2436 = vmatpush3.bf16.xpose.msra.mxu1 %v1577_v16  ;;  %2391 = vmatprep.mubr.msk.bf16.mxu1 %vm2757_vm0, %v2756_v9 }
 0x2ca   : > { %2437 = vmatprep.subr.bf16.mxu1 %v2756_v9 }
 0x2d0   : > { %2392 = vmatmul.mubr.msk.bf16.gmra.mrb[48].mxu1 %vm375_vm1, %v1148_v20 }
 0x2d1   : > { %2438 = vmatpush3.bf16.xpose.msra.mxu1 %v1580_v21  ;;  %2395 = vmatprep.mubr.msk.bf16.mxu1 %vm2757_vm0, %v2756_v9 }
 0x2d2   : > { %2439 = vmatprep.subr.bf16.mxu1 %v2756_v9 }
 0x2d8   : > { %2396 = vmatmul.mubr.msk.bf16.gmra.mrb[52].mxu1 %vm375_vm1, %v1150_v23 }
 0x2d9   : > { %2440 = vmatpush3.bf16.xpose.msra.mxu1 %v1583_v24  ;;  %2399 = vmatprep.mubr.msk.bf16.mxu1 %vm2757_vm0, %v2756_v9 }
 0x2da   : > { %2441 = vmatprep.subr.bf16.mxu1 %v2756_v9 }
 0x2e0   : > { %2400 = vmatmul.mubr.msk.bf16.gmra.mrb[56].mxu1 %vm375_vm1, %v1152_v1 }
 0x2e1   : > { %2442 = vmatpush3.bf16.xpose.msra.mxu1 %v1586_v2  ;;  %2443 = vmatprep.mubr.msk.bf16.mxu1 %vm2757_vm0, %v2756_v9 }
 0x2e2   : > { %2493 = vmatprep.subr.bf16.mxu1 %v2756_v9 }
 0x2e8   : > { %2444 = vmatmul.mubr.msk.bf16.vlgmr.msra.gmra.mrb[60].mxu1 %vm375_vm1, %v1539_v3 }
 0x2e9   : > { %2447 = vmatprep.mubr.msk.bf16.mxu1 %vm2757_vm0, %v2756_v9 }
 0x2f0   : > { %2448 = vmatmul.mubr.msk.bf16.gmra.mrb[64].mxu1 %vm375_vm1, %v1541_v4 }
 0x2f1   : > { %2451 = vmatprep.mubr.msk.bf16.mxu1 %vm2757_vm0, %v2756_v9 }
 0x2f8   : > { %2452 = vmatmul.mubr.msk.bf16.gmra.mrb[68].mxu1 %vm375_vm1, %v1543_v5 }
 0x2f9   : > { %2455 = vmatprep.mubr.msk.bf16.mxu1 %vm2757_vm0, %v2756_v9 }
 0x300   : > { %2456 = vmatmul.mubr.msk.bf16.gmra.mrb[72].mxu1 %vm375_vm1, %v1545_v6 }
 0x301   : > { %2459 = vmatprep.mubr.msk.bf16.mxu1 %vm2757_vm0, %v2756_v9 }
 0x308   : > { %2460 = vmatmul.mubr.msk.bf16.gmra.mrb[76].mxu1 %vm375_vm1, %v1547_v7 }
 0x309   : > { %2489 = vmatprep.mubr.msk.bf16.mxu1 %vm2757_vm0, %v2756_v9 }
 0x33a   : > { %v663_v15 = vpop.f32.mrb[0].mxu1 }
 0x33b   : > { %v2137_v19 = vpack.c.bf16 %v663_v15, %v663_v15  ;;  %v2295_v26 = vpop.f32.mrb[1].mxu1 }
 0x33c   : > { %v666_v28 = vpop.f32.mrb[2].mxu1 }
 0x33d   : > { %739 = vst.msk [vmem:[%s3177_s22] sm:$0xf] %vm738_vm4, %v2137_v19  ;;  %v2138_v29 = vpack.c.bf16 %v666_v28, %v666_v28  ;;  %v2296_v27 = vpop.f32.mrb[3].mxu1 }
 0x33f   : > { %740 = vst.msk [vmem:[%s3177_s22 + $0x4] sm:$0xf] %vm738_vm4, %v2138_v29 }
 0x342   : > { %v671_v32 = vpop.f32.mrb[4].mxu1 }
 0x343   : > { %v2139_v33 = vpack.c.bf16 %v671_v32, %v671_v32  ;;  %v2299_v34 = vpop.f32.mrb[5].mxu1 }
 0x344   : > { %v674_v35 = vpop.f32.mrb[6].mxu1 }
 0x345   : > { %741 = vst.msk [vmem:[%s3177_s22 + $0x8] sm:$0xf] %vm738_vm4, %v2139_v33  ;;  %v2140_v36 = vpack.c.bf16 %v674_v35, %v674_v35  ;;  %v2300_v37 = vpop.f32.mrb[7].mxu1 }
 0x347   : > { %742 = vst.msk [vmem:[%s3177_s22 + $0xc] sm:$0xf] %vm738_vm4, %v2140_v36 }
 0x34a   : > { %v679_v38 = vpop.f32.mrb[8].mxu1 }
 0x34b   : > { %v2141_v39 = vpack.c.bf16 %v679_v38, %v679_v38  ;;  %v2303_v40 = vpop.f32.mrb[9].mxu1 }
 0x34c   : > { %v682_v41 = vpop.f32.mrb[10].mxu1 }
 0x34d   : > { %743 = vst.msk [vmem:[%s3177_s22 + $0x10] sm:$0xf] %vm738_vm4, %v2141_v39  ;;  %v2142_v42 = vpack.c.bf16 %v682_v41, %v682_v41  ;;  %v2304_v43 = vpop.f32.mrb[11].mxu1 }
 0x34f   : > { %744 = vst.msk [vmem:[%s3177_s22 + $0x14] sm:$0xf] %vm738_vm4, %v2142_v42 }
 0x352   : > { %v687_v44 = vpop.f32.mrb[12].mxu1 }
 0x353   : > { %v2143_v45 = vpack.c.bf16 %v687_v44, %v687_v44  ;;  %v2307_v46 = vpop.f32.mrb[13].mxu1 }
 0x354   : > { %v690_v48 = vpop.f32.mrb[14].mxu1 }
 0x355   : > { %745 = vst.msk [vmem:[%s3177_s22 + $0x18] sm:$0xf] %vm738_vm4, %v2143_v45  ;;  %v2144_v49 = vpack.c.bf16 %v690_v48, %v690_v48  ;;  %v2308_v50 = vpop.f32.mrb[15].mxu1 }
 0x357   : > { %746 = vst.msk [vmem:[%s3177_s22 + $0x1c] sm:$0xf] %vm738_vm4, %v2144_v49 }
 0x35a   : > { %v695_v51 = vpop.f32.mrb[16].mxu1 }
 0x35b   : > { %v2145_v52 = vpack.c.bf16 %v695_v51, %v695_v51  ;;  %v2311_v53 = vpop.f32.mrb[17].mxu1 }
 0x35c   : > { %v698_v54 = vpop.f32.mrb[18].mxu1 }
 0x35d   : > { %747 = vst.msk [vmem:[%s3177_s22 + $0x20] sm:$0xf] %vm738_vm4, %v2145_v52  ;;  %v2312_v56 = vpop.f32.mrb[19].mxu1 }
 0x36b   : > { %v832_v57 = vpop.f32.mrb[20].mxu1 }
 0x36c   : > { %v3202_v58 = vadd.f32 %v2913_v25, %v832_v57  ;;  %v2325_v59 = vpop.f32.mrb[21].mxu1 }
 0x36d   : > { %v835_v60 = vpop.f32.mrb[22].mxu1 }
 0x36e   : > { %v3205_v61 = vadd.f32 %v2913_v25, %v835_v60  ;;  %v2326_v62 = vpop.f32.mrb[23].mxu1  ;;  %v870_v10 = vsel %vm478_vm2, %v3202_v58, -inf }
 0x36f   : > { %871 = vmax.xlane.f32.xlu0 %v870_v10 }
 0x370   : > { %v873_v12 = vsel %vm478_vm2, %v3205_v61, -inf }
 0x371   : > { %874 = vmax.xlane.f32.xlu1 %v873_v12 }
 0x373   : > { %v840_v14 = vpop.f32.mrb[24].mxu1 }
 0x374   : > { %v3212_v16 = vadd.f32 %v2913_v25, %v840_v14  ;;  %v2329_v18 = vpop.f32.mrb[25].mxu1 }
 0x375   : > { %v843_v20 = vpop.f32.mrb[26].mxu1 }
 0x376   : > { %v3215_v21 = vadd.f32 %v2913_v25, %v843_v20  ;;  %v2330_v22 = vpop.f32.mrb[27].mxu1  ;;  %v876_v23 = vsel %vm478_vm2, %v3212_v16, -inf }
 0x377   : > { %877 = vmax.xlane.f32.xlu0 %v876_v23 }
 0x378   : > { %v879_v24 = vsel %vm478_vm2, %v3215_v21, -inf }
 0x37b   : > { %880 = vmax.xlane.f32.xlu0 %v879_v24  ;;  %v848_v63 = vpop.f32.mrb[28].mxu1 }
 0x37c   : > { %v2333_v1 = vpop.f32.mrb[29].mxu1  ;;  %v3239_v39 = vadd.f32 %v2913_v25, %v848_v63 }
 0x37d   : > { %v851_v2 = vpop.f32.mrb[30].mxu1 }
 0x37e   : > { %v2334_v3 = vpop.f32.mrb[31].mxu1  ;;  %v882_v48 = vsel %vm478_vm2, %v3239_v39, -inf }
 0x382   : > { %1764 = vrot.lane.b32.xlu1 %v2939_v0, %s2760_s12  ;;  %v3226_v0 = vadd.f32 %v2913_v25, %v851_v2 }
 0x383   : > { %v856_v4 = vpop.f32.mrb[32].mxu1 }
 0x384   : > { %v2337_v5 = vpop.f32.mrb[33].mxu1  ;;  %v885_v33 = vsel %vm478_vm2, %v3226_v0, -inf  ;;  %v3247_v46 = vadd.f32 %v2913_v25, %v856_v4 }
 0x385   : > { %v859_v6 = vpop.f32.mrb[34].mxu1 }
 0x386   : > { %v2338_v7 = vpop.f32.mrb[35].mxu1  ;;  %v3229_v32 = vadd.f32 %v2913_v25, %v859_v6  ;;  %v888_v52 = vsel %vm478_vm2, %v3247_v46, -inf }
 0x388   : > { %v891_v38 = vsel %vm478_vm2, %v3229_v32, -inf }
 0x38b   : > { %v864_v8 = vpop.f32.mrb[36].mxu1 }
 0x38c   : > { %v2341_v11 = vpop.f32.mrb[37].mxu1  ;;  %v3257_v51 = vadd.f32 %v2913_v25, %v864_v8 }
 0x38d   : > { %v867_v13 = vpop.f32.mrb[38].mxu1 }
 0x38e   : > { %v2342_v15 = vpop.f32.mrb[39].mxu1  ;;  %v894_v60 = vsel %vm478_vm2, %v3257_v51, -inf }
 0x391   : > { %1377 = vrot.lane.b32.xlu0 %v2981_v55, %s2759_s11 }
 0x393   : > { %v1227_v17 = vpop.f32.mrb[40].mxu1 }
 0x394   : > { %v2385_v19 = vpop.f32.mrb[41].mxu1  ;;  %v3234_v37 = vadd.f32 %v2913_v25, %v1227_v17 }
 0x395   : > { %v1230_v26 = vpop.f32.mrb[42].mxu1 }
 0x396   : > { %v2386_v28 = vpop.f32.mrb[43].mxu1  ;;  %v1265_v41 = vsel %vm478_vm2, %v3234_v37, -inf  ;;  %v3267_v59 = vadd.f32 %v2913_v25, %v1230_v26 }
 0x398   : > { %v1268_v20 = vsel %vm478_vm2, %v3267_v59, -inf }
 0x39b   : > { %v1235_v29 = vpop.f32.mrb[44].mxu1 }
 0x39c   : > { %v2389_v27 = vpop.f32.mrb[45].mxu1  ;;  %v3242_v40 = vadd.f32 %v2913_v25, %v1235_v29 }
 0x39d   : > { %v1238_v31 = vpop.f32.mrb[46].mxu1 }
 0x39e   : > { %v2390_v30 = vpop.f32.mrb[47].mxu1  ;;  %v1271_v50 = vsel %vm478_vm2, %v3242_v40, -inf  ;;  %v3277_v18 = vadd.f32 %v2913_v25, %v1238_v31 }
 0x3a0   : > { %v1274_v2 = vsel %vm478_vm2, %v3277_v18, -inf }
 0x3a3   : > { %v1243_v34 = vpop.f32.mrb[48].mxu1 }
 0x3a4   : > { %v2393_v35 = vpop.f32.mrb[49].mxu1  ;;  %v3252_v49 = vadd.f32 %v2913_v25, %v1243_v34 }
 0x3a5   : > { %v1246_v55 = vpop.f32.mrb[50].mxu1 }
 0x3a6   : > { %886 = vmax.xlane.f32.xlu1 %v885_v33  ;;  %v2394_v36 = vpop.f32.mrb[51].mxu1  ;;  %v1277_v54 = vsel %vm478_vm2, %v3252_v49, -inf  ;;  %v3284_v63 = vadd.f32 %v2913_v25, %v1246_v55 }
 0x3a8   : > { %v1280_v7 = vsel %vm478_vm2, %v3284_v63, -inf }
 0x3aa   : > { %892 = vmax.xlane.f32.xlu1 %v891_v38 }
 0x3ab   : > { %v1251_v42 = vpop.f32.mrb[52].mxu1 }
 0x3ac   : > { %v2397_v43 = vpop.f32.mrb[53].mxu1  ;;  %v3262_v53 = vadd.f32 %v2913_v25, %v1251_v42 }
 0x3ad   : > { %v1254_v44 = vpop.f32.mrb[54].mxu1 }
 0x3ae   : > { %1266 = vmax.xlane.f32.xlu1 %v1265_v41  ;;  %v2398_v45 = vpop.f32.mrb[55].mxu1  ;;  %v1283_v14 = vsel %vm478_vm2, %v3262_v53, -inf  ;;  %v3294_v6 = vadd.f32 %v2913_v25, %v1254_v44 }
 0x3b0   : > { %883 = vmax.xlane.f32.xlu0 %v882_v48  ;;  %v1286_v17 = vsel %vm478_vm2, %v3294_v6, -inf  ;;  %v2712_v48 = vld [vmem:[%s3705_s0] ss:$0 sm:$0xff] }
 0x3b2   : > { %1272 = vmax.xlane.f32.xlu1 %v1271_v50 }
 0x3b3   : > { %v1259_v56 = vpop.f32.mrb[56].mxu1 }
 0x3b4   : > { %889 = vmax.xlane.f32.xlu0 %v888_v52  ;;  %v2401_v57 = vpop.f32.mrb[57].mxu1  ;;  %v3272_v12 = vadd.f32 %v2913_v25, %v1259_v56 }
 0x3b5   : > { %v1262_v62 = vpop.f32.mrb[58].mxu1 }
 0x3b6   : > { %1278 = vmax.xlane.f32.xlu1 %v1277_v54  ;;  %v2402_v10 = vpop.f32.mrb[59].mxu1  ;;  %v1289_v23 = vsel %vm478_vm2, %v3272_v12, -inf }
 0x3b8   : > { %895 = vmax.xlane.f32.xlu0 %v894_v60 }
 0x3ba   : > { %1284 = vmax.xlane.f32.xlu1 %v1283_v14 }
 0x3bb   : > { %v1622_v22 = vpop.f32.mrb[60].mxu1 }
 0x3bc   : > { %1269 = vmax.xlane.f32.xlu0 %v1268_v20  ;;  %v2445_v24 = vpop.f32.mrb[61].mxu1  ;;  %v3299_v13 = vadd.f32 %v2913_v25, %v1622_v22  ;;  %v3341_v20 = vpop.permute.xlu0 %1369 }
 0x3bd   : > { %v1625_v1 = vpop.f32.mrb[62].mxu1  ;;  %v3343_v22 = vpop.permute.xlu1 %1371 }
 0x3be   : > { %1290 = vmax.xlane.f32.xlu1 %v1289_v23  ;;  %v3289_v3 = vadd.f32 %v2913_v25, %v1625_v1  ;;  %v2446_v4 = vpop.f32.mrb[63].mxu1  ;;  %v1660_v27 = vsel %vm478_vm2, %v3299_v13, -inf }
 0x3c0   : > { %1275 = vmax.xlane.f32.xlu0 %v1274_v2  ;;  %v1663_v5 = vsel %vm478_vm2, %v3289_v3, -inf  ;;  %v3345_v23 = vpop.permute.xlu0 %1373 }
 0x3c1   : > { %v3347_v24 = vpop.permute.xlu1 %1375 }
 0x3c2   : > { %1664 = vmax.xlane.f32.xlu1 %v1663_v5 }
 0x3c3   : > { %v1630_v8 = vpop.f32.mrb[64].mxu1 }
 0x3c4   : > { %1281 = vmax.xlane.f32.xlu0 %v1280_v7  ;;  %v2449_v11 = vpop.f32.mrb[65].mxu1  ;;  %v3309_v29 = vadd.f32 %v2913_v25, %v1630_v8 }
 0x3c5   : > { %v1633_v15 = vpop.f32.mrb[66].mxu1 }
 0x3c6   : > { %v3304_v19 = vadd.f32 %v2913_v25, %v1633_v15  ;;  %v2450_v26 = vpop.f32.mrb[67].mxu1  ;;  %v1666_v35 = vsel %vm478_vm2, %v3309_v29, -inf }
 0x3c8   : > { %1287 = vmax.xlane.f32.xlu0 %v1286_v17  ;;  %v1669_v28 = vsel %vm478_vm2, %v3304_v19, -inf }
 0x3c9   : > { %1670 = vmax.xlane.f32.xlu1 %v1669_v28 }
 0x3cb   : > { %v1638_v31 = vpop.f32.mrb[68].mxu1 }
 0x3cc   : > { %1661 = vmax.xlane.f32.xlu0 %v1660_v27  ;;  %v2453_v30 = vpop.f32.mrb[69].mxu1  ;;  %v3314_v33 = vadd.f32 %v2913_v25, %v1638_v31 }
 0x3cd   : > { %v1641_v34 = vpop.f32.mrb[70].mxu1 }
 0x3ce   : > { %v3319_v55 = vadd.f32 %v2913_v25, %v1641_v34  ;;  %v2454_v36 = vpop.f32.mrb[71].mxu1  ;;  %v1672_v41 = vsel %vm478_vm2, %v3314_v33, -inf }
 0x3d0   : > { %1667 = vmax.xlane.f32.xlu0 %v1666_v35  ;;  %v1675_v38 = vsel %vm478_vm2, %v3319_v55, -inf }
 0x3d1   : > { %1676 = vmax.xlane.f32.xlu1 %v1675_v38 }
 0x3d3   : > { %v1646_v42 = vpop.f32.mrb[72].mxu1 }
 0x3d4   : > { %v3326_v43 = vadd.f32 %v2913_v25, %v1646_v42  ;;  %1673 = vmax.xlane.f32.xlu0 %v1672_v41  ;;  %v2457_v44 = vpop.f32.mrb[73].mxu1 }
 0x3d5   : > { %v1649_v45 = vpop.f32.mrb[74].mxu1 }
 0x3d6   : > { %v3331_v50 = vadd.f32 %v2712_v48, %v1649_v45  ;;  %v1678_v52 = vsel %vm478_vm2, %v3326_v43, -inf  ;;  %v2458_v54 = vpop.f32.mrb[75].mxu1 }
 0x3d8   : > { %1679 = vmax.xlane.f32.xlu0 %v1678_v52  ;;  %v1681_v56 = vsel %vm478_vm2, %v3331_v50, -inf }
 0x3d9   : > { %1682 = vmax.xlane.f32.xlu1 %v1681_v56 }
 0x3db   : > { %v1654_v25 = vpop.f32.mrb[76].mxu1 }
 0x3dc   : > { %v3337_v57 = vadd.f32 %v2712_v48, %v1654_v25  ;;  %v2461_v60 = vpop.f32.mrb[77].mxu1 }
 0x3dd   : > { %v1657_v62 = vpop.f32.mrb[78].mxu1 }
 0x3de   : > { %v1684_v10 = vsel %vm478_vm2, %v3337_v57, -inf  ;;  %v2462_v14 = vpop.f32.mrb[79].mxu1 }
 0x3df   : > { %1685 = vmax.xlane.f32.xlu1 %v1684_v10 }
 0x3fc   : > { %v872_v1 = vpop.xlane.xlu0 %871 }
 0x3fd   : > { %v897_v2 = vsub.f32 %v3202_v58, %v872_v1 }
 0x3fe   : > { %v875_v4 = vpop.xlane.xlu1 %874 }
 0x3ff   : > { %v906_v5 = vmul.f32 1.442695, %v897_v2  ;;  %v898_v7 = vsub.f32 %v3205_v61, %v875_v4 }
 0x401   : > { %2604 = vpow2.f32 %v906_v5  ;;  %v908_v8 = vmul.f32 1.442695, %v898_v7 }
 0x402   : > { %v3351_v11 = vpop.permute.xlu1 %1764 }
 0x403   : > { %2606 = vpow2.f32 %v908_v8  ;;  %2498 = vmatpush3.bf16.msra.mxu1 %v3351_v11 }
 0x404   : > { %v878_v15 = vpop.xlane.xlu0 %877  ;;  %2494 = vmatprep.subr.bf16.mxu1 %v2756_v9 }
 0x405   : > { %v899_v17 = vsub.f32 %v3212_v16, %v878_v15 }
 0x407   : > { %v910_v26 = vmul.f32 1.442695, %v899_v17 }
 0x408   : > { %v881_v28 = vpop.xlane.xlu0 %880 }
 0x409   : > { %2608 = vpow2.f32 %v910_v26  ;;  %v900_v58 = vsub.f32 %v3215_v21, %v881_v28 }
 0x40b   : > { %v3357_v27 = vpop.eup %2604  ;;  %v912_v61 = vmul.f32 1.442695, %v900_v58  ;;  %v2713_v58 = vld [vmem:[%s2843_s7 + $0x20] ss:$12 sps:$4 sm:$0xff]  }
 0x40c   : > { %v924_v31 = vsel %vm478_vm2, %v3357_v27, 0.0  ;;  %v3375_v48 = vpop.permute.xlu0 %1377 }
 0x40d   : > { %v3361_v30 = vpop.eup %2606  ;;  %2610 = vpow2.f32 %v912_v61  ;;  %925 = vadd.xlane.f32.xlu0 %v924_v31 }
 0x40e   : > { %v927_v34 = vsel %vm478_vm2, %v3361_v30, 0.0 }
 0x40f   : > { %928 = vadd.xlane.f32.xlu1 %v927_v34 }
 0x413   : > { %v3365_v16 = vpop.eup %2608 }
 0x414   : > { %v930_v35 = vsel %vm478_vm2, %v3365_v16, 0.0 }
 0x415   : > { %931 = vadd.xlane.f32.xlu0 %v930_v35 }
 0x417   : > { %v3369_v21 = vpop.eup %2610 }
 0x418   : > { %v933_v36 = vsel %vm478_vm2, %v3369_v21, 0.0 }
 0x419   : > { %934 = vadd.xlane.f32.xlu1 %v933_v36 }
 0x433   : > { %v887_v38 = vpop.xlane.xlu1 %886 }
 0x434   : > { %v902_v41 = vsub.f32 %v3226_v0, %v887_v38 }
 0x436   : > { %v916_v42 = vmul.f32 1.442695, %v902_v41 }
 0x437   : > { %v893_v44 = vpop.xlane.xlu1 %892 }
 0x438   : > { %2612 = vpow2.f32 %v916_v42  ;;  %v904_v45 = vsub.f32 %v3229_v32, %v893_v44 }
 0x43a   : > { %v920_v52 = vmul.f32 1.442695, %v904_v45 }
 0x43c   : > { %2614 = vpow2.f32 %v920_v52 }
 0x43d   : > { %v884_v54 = vpop.xlane.xlu0 %883 }
 0x43e   : > { %v901_v56 = vsub.f32 %v3239_v39, %v884_v54  ;;  %v1267_v39 = vpop.xlane.xlu1 %1266 }
 0x440   : > { %v914_v25 = vmul.f32 1.442695, %v901_v56 }
 0x441   : > { %v890_v60 = vpop.xlane.xlu0 %889 }
 0x442   : > { %v3378_v62 = vpop.eup %2612  ;;  %2616 = vpow2.f32 %v914_v25  ;;  %v903_v10 = vsub.f32 %v3247_v46, %v890_v60  ;;  %v1273_v7 = vpop.xlane.xlu1 %1272 }
 0x443   : > { %v939_v0 = vsel %vm478_vm2, %v3378_v62, 0.0 }
 0x444   : > { %v918_v14 = vmul.f32 1.442695, %v903_v10  ;;  %940 = vadd.xlane.f32.xlu0 %v939_v0 }
 0x445   : > { %v896_v46 = vpop.xlane.xlu0 %895 }
 0x446   : > { %v3383_v32 = vpop.eup %2614  ;;  %2618 = vpow2.f32 %v918_v14  ;;  %v1279_v17 = vpop.xlane.xlu1 %1278  ;;  %v905_v56 = vsub.f32 %v3257_v51, %v896_v46 }
 0x447   : > { %v945_v1 = vsel %vm478_vm2, %v3383_v32, 0.0  ;;  %v1296_v35 = vsub.f32 %v3252_v49, %v1279_v17  ;;  %v1292_v49 = vsub.f32 %v3234_v37, %v1267_v39 }
 0x448   : > { %946 = vadd.xlane.f32.xlu0 %v945_v1  ;;  %v922_v60 = vmul.f32 1.442695, %v905_v56 }
 0x449   : > { %v1270_v15 = vpop.xlane.xlu0 %1269  ;;  %v1309_v38 = vmul.f32 1.442695, %v1296_v35  ;;  %v1301_v0 = vmul.f32 1.442695, %v1292_v49 }
 0x44a   : > { %v1285_v28 = vpop.xlane.xlu1 %1284  ;;  %v1293_v14 = vsub.f32 %v3267_v59, %v1270_v15 }
 0x44b   : > { %v1298_v41 = vsub.f32 %v3262_v53, %v1285_v28  ;;  %2620 = vpow2.f32 %v1309_v38 }
 0x44c   : > { %v3387_v2 = vpop.eup %2616  ;;  %v1303_v1 = vmul.f32 1.442695, %v1293_v14 }
 0x44d   : > { %v936_v4 = vsel %vm478_vm2, %v3387_v2, 0.0  ;;  %v1276_v26 = vpop.xlane.xlu0 %1275  ;;  %v1313_v45 = vmul.f32 1.442695, %v1298_v41 }
 0x44e   : > { %937 = vadd.xlane.f32.xlu1 %v936_v4  ;;  %v3397_v31 = vpop.xlane.xlu1 %1290  ;;  %v1295_v59 = vsub.f32 %v3277_v18, %v1276_v26 }
 0x44f   : > { %2622 = vpow2.f32 %v1313_v45 }
 0x450   : > { %v3391_v5 = vpop.eup %2618 }
 0x451   : > { %v942_v8 = vsel %vm478_vm2, %v3391_v5, 0.0  ;;  %v1282_v61 = vpop.xlane.xlu0 %1281 }
 0x452   : > { %943 = vadd.xlane.f32.xlu1 %v942_v8  ;;  %v3402_v36 = vpop.xlane.xlu1 %1664 }
 0x455   : > { %v1288_v34 = vpop.xlane.xlu0 %1287  ;;  %v3411_v53 = vpop.eup %2620 }
 0x456   : > { %v3405_v42 = vpop.xlane.xlu1 %1670 }
 0x459   : > { %v1662_v44 = vpop.xlane.xlu0 %1661  ;;  %v3416_v51 = vpop.eup %2622 }
 0x45a   : > { %v1687_v52 = vsub.f32 %v3299_v13, %v1662_v44  ;;  %v1331_v13 = vsel %vm478_vm2, %v3411_v53, 0.0  ;;  %v1337_v37 = vsel %vm478_vm2, %v3416_v51, 0.0 }
 0x45d   : > { %v1668_v35 = vpop.xlane.xlu0 %1667 }
 0x45e   : > { %1766 = vrot.lane.b32.xlu0 %v2713_v58, %s2760_s12  ;;  %v1677_v54 = vpop.xlane.xlu1 %1676  ;;  %v1299_v58 = vsub.f32 %v3294_v6, %v1288_v34 }
 0x45f   : > { %v1692_v25 = vsub.f32 %v3319_v55, %v1677_v54  ;;  %v1294_v55 = vsub.f32 %v3242_v40, %v1273_v7  ;;  %v1307_v40 = vmul.f32 1.442695, %v1295_v59  ;;  %v1297_v7 = vsub.f32 %v3284_v63, %v1282_v61 }
 0x460   : > { %v1300_v61 = vsub.f32 %v3272_v12, %v3397_v31  ;;  %v1315_v41 = vmul.f32 1.442695, %v1299_v58  ;;  %v1689_v12 = vsub.f32 %v3309_v29, %v1668_v35 }
 0x461   : > { %v1706_v10 = vmul.f32 1.442695, %v1692_v25  ;;  %v1305_v4 = vmul.f32 1.442695, %v1294_v55  ;;  %v1311_v26 = vmul.f32 1.442695, %v1297_v7  ;;  %v1674_v6 = vpop.xlane.xlu0 %1673 }
 0x462   : > { %v1317_v34 = vmul.f32 1.442695, %v1300_v61 }
 0x463   : > { %1768 = vrot.lane.b32.xlu1 %v2967_v47, %s2760_s12  ;;  %v1696_v47 = vmul.f32 1.442695, %v1687_v52  ;;  %v1688_v52 = vsub.f32 %v3289_v3, %v3402_v36  ;;  %v1700_v3 = vmul.f32 1.442695, %v1689_v12 }
 0x465   : > { %2624 = vpow2.f32 %v1696_v47  ;;  %v1698_v47 = vmul.f32 1.442695, %v1688_v52  ;;  %v1680_v25 = vpop.xlane.xlu0 %1679 }
 0x466   : > { %2626 = vpow2.f32 %v922_v60  ;;  %v1683_v31 = vpop.xlane.xlu1 %1682  ;;  %v1693_v59 = vsub.f32 %v3326_v43, %v1680_v25 }
 0x467   : > { %2628 = vpow2.f32 %v1706_v10  ;;  %v1690_v10 = vsub.f32 %v3304_v19, %v3405_v42  ;;  %v2714_v19 = vld [vmem:[%s2843_s7 + $0x50] ss:$12 sps:$4 sm:$0xff]   ;;  %v1694_v43 = vsub.f32 %v3331_v50, %v1683_v31 }
 0x468   : > { %2630 = vpow2.f32 %v1301_v0 }
 0x469   : > { %2632 = vpow2.f32 %v1303_v1  ;;  %v1702_v1 = vmul.f32 1.442695, %v1690_v10 }
 0x46a   : > { %2634 = vpow2.f32 %v1305_v4 }
 0x46b   : > { %2636 = vpow2.f32 %v1307_v40 }
 0x46c   : > { %2638 = vpow2.f32 %v1311_v26  ;;  %v1686_v36 = vpop.xlane.xlu1 %1685 }
 0x46d   : > { %2640 = vpow2.f32 %v1315_v41  ;;  %v1695_v52 = vsub.f32 %v3337_v57, %v1686_v36 }
 0x46e   : > { %2642 = vpow2.f32 %v1317_v34  ;;  %v1710_v34 = vmul.f32 1.442695, %v1694_v43 }
 0x46f   : > { %v3421_v39 = vpop.eup %2624  ;;  %2644 = vpow2.f32 %v1698_v47 }
 0x470   : > { %v3424_v46 = vpop.eup %2626  ;;  %v1714_v8 = vsel %vm478_vm2, %v3421_v39, 0.0 }
 0x471   : > { %v3428_v15 = vpop.eup %2628  ;;  %v948_v17 = vsel %vm478_vm2, %v3424_v46, 0.0 }
 0x472   : > { %v3433_v28 = vpop.eup %2630  ;;  %v1729_v18 = vsel %vm478_vm2, %v3428_v15, 0.0 }
 0x473   : > { %v1319_v38 = vsel %vm478_vm2, %v3433_v28, 0.0  ;;  %v3440_v63 = vpop.eup %2632 }
 0x474   : > { %v1322_v44 = vsel %vm478_vm2, %v3440_v63, 0.0  ;;  %v3446_v45 = vpop.eup %2634 }
 0x475   : > { %v1325_v54 = vsel %vm478_vm2, %v3446_v45, 0.0  ;;  %v3452_v56 = vpop.eup %2636 }
 0x476   : > { %v1328_v49 = vsel %vm478_vm2, %v3452_v56, 0.0  ;;  %v3457_v60 = vpop.eup %2638 }
 0x477   : > { %v1334_v29 = vsel %vm478_vm2, %v3457_v60, 0.0  ;;  %v3463_v14 = vpop.eup %2640 }
 0x478   : > { %v3468_v4 = vpop.eup %2642 }
 0x479   : > { %v3475_v40 = vpop.eup %2644 }
 0x47a   : > { %v1717_v58 = vsel %vm478_vm2, %v3475_v40, 0.0 }
 0x47d   : > { %1332 = vadd.xlane.f32.xlu0 %v1331_v13  ;;  %v1691_v13 = vsub.f32 %v3314_v33, %v1674_v6  ;;  %v1343_v33 = vsel %vm478_vm2, %v3468_v4, 0.0 }
 0x47f   : > { %v1704_v42 = vmul.f32 1.442695, %v1691_v13 }
 0x481   : > { %1338 = vadd.xlane.f32.xlu0 %v1337_v37  ;;  %v1340_v37 = vsel %vm478_vm2, %v3463_v14, 0.0 }
 0x485   : > { %1715 = vadd.xlane.f32.xlu0 %v1714_v8 }
 0x487   : > { %949 = vadd.xlane.f32.xlu1 %v948_v17  ;;  %v1708_v17 = vmul.f32 1.442695, %v1693_v59 }
 0x489   : > { %1730 = vadd.xlane.f32.xlu0 %v1729_v18 }
 0x48b   : > { %1320 = vadd.xlane.f32.xlu1 %v1319_v38 }
 0x48f   : > { %1323 = vadd.xlane.f32.xlu1 %v1322_v44 }
 0x493   : > { %1326 = vadd.xlane.f32.xlu1 %v1325_v54  ;;  %v1712_v54 = vmul.f32 1.442695, %v1695_v52 }
 0x497   : > { %1329 = vadd.xlane.f32.xlu1 %v1328_v49 }
 0x49a   : > { %v926_v0 = vpop.xlane.xlu0 %925 }
 0x49b   : > { %2646 = vrcp.f32 %v926_v0  ;;  %1335 = vadd.xlane.f32.xlu1 %v1334_v29 }
 0x49c   : > { %2648 = vpow2.f32 %v1700_v3  ;;  %v929_v55 = vpop.xlane.xlu1 %928 }
 0x49d   : > { %2650 = vrcp.f32 %v929_v55 }
 0x49e   : > { %2652 = vpow2.f32 %v1702_v1 }
 0x49f   : > { %1341 = vadd.xlane.f32.xlu1 %v1340_v37  ;;  %1770 = vrot.lane.b32.xlu0 %v2714_v19, %s2760_s12  ;;  %2654 = vpow2.f32 %v1704_v42 }
 0x4a2   : > { %v932_v8 = vpop.xlane.xlu0 %931 }
 0x4a3   : > { %1344 = vadd.xlane.f32.xlu1 %v1343_v33  ;;  %2656 = vrcp.f32 %v932_v8 }
 0x4a5   : > { %v2647_v7 = vpop.eup %2646 }
 0x4a6   : > { %v3477_v18 = vpop.eup %2648  ;;  %v935_v26 = vpop.xlane.xlu1 %934  ;;  %v960_v38 = vmul.f32 %v2647_v7, %v3357_v27 }
 0x4a7   : > { %v2651_v35 = vpop.eup %2650  ;;  %2658 = vrcp.f32 %v935_v26  ;;  %1718 = vadd.xlane.f32.xlu1 %v1717_v58  ;;  %v1720_v44 = vsel %vm478_vm2, %v3477_v18, 0.0 }
 0x4a8   : > { %v961_v61 = vmul.f32 %v2651_v35, %v3361_v30  ;;  %2660 = vpow2.f32 %v1708_v17  ;;  %v3486_v6 = vpop.eup %2652 }
 0x4a9   : > { %v3493_v50 = vpop.eup %2654  ;;  %v1723_v27 = vsel %vm478_vm2, %v3486_v6, 0.0  ;;  %2662 = vpow2.f32 %v1710_v34 }
 0x4aa   : > { %v969_v41 = vpack.c.bf16 %v961_v61, %v960_v38  ;;  %v1726_v57 = vsel %vm478_vm2, %v3493_v50, 0.0  ;;  %2664 = vpow2.f32 %v1712_v54 }
 0x4ab   : > { %1721 = vadd.xlane.f32.xlu1 %v1720_v44 }
 0x4ac   : > { %2354 = vmatmul.mubr.msk.bf16.vlgmr.msra.gmra.mrb[20].mxu0 %vm478_vm2, %v969_v41 }
 0x4ad   : > { %2404 = vmatpush3.bf16.msra.mxu0 %v3341_v20  ;;  %2357 = vmatprep.mubr.msk.bf16.mxu0 %vm2757_vm0, %v2756_v9  ;;  %v2657_v30 = vpop.eup %2656 }
 0x4ae   : > { %2405 = vmatprep.subr.bf16.mxu0 %v2756_v9  ;;  %v962_v20 = vmul.f32 %v2657_v30, %v3365_v16 }
 0x4af   : > { %1724 = vadd.xlane.f32.xlu1 %v1723_v27 }
 0x4b1   : > { %v2659_v12 = vpop.eup %2658  ;;  %2406 = vmatpush3.bf16.msra.mxu0 %v3343_v22 }
 0x4b2   : > { %2407 = vmatprep.subr.bf16.mxu0 %v2756_v9  ;;  %v963_v31 = vmul.f32 %v2659_v12, %v3369_v21  ;;  %v3504_v47 = vpop.eup %2660 }
 0x4b3   : > { %1727 = vadd.xlane.f32.xlu1 %v1726_v57  ;;  %v1732_v22 = vsel %vm478_vm2, %v3504_v47, 0.0  ;;  %v3514_v16 = vpop.eup %2662 }
 0x4b4   : > { %v970_v25 = vpack.c.bf16 %v963_v31, %v962_v20  ;;  %v1735_v21 = vsel %vm478_vm2, %v3514_v16, 0.0  ;;  %v3521_v49 = vpop.eup %2664 }
 0x4b5   : > { %2408 = vmatpush3.bf16.msra.mxu0 %v3345_v23  ;;  %v1399_v23 = vsel %vm625_vm3, %v3375_v48, 0  ;;  %v1738_v3 = vsel %vm478_vm2, %v3521_v49, 0.0 }
 0x4b6   : > { %2358 = vmatmul.mubr.msk.bf16.gmra.mrb[24].mxu0 %vm478_vm2, %v970_v25  ;;  %2409 = vmatprep.subr.bf16.mxu0 %v2756_v9 }
 0x4b7   : > { %1733 = vadd.xlane.f32.xlu1 %v1732_v22  ;;  %2361 = vmatprep.mubr.msk.bf16.mxu0 %vm2757_vm0, %v2756_v9 }
 0x4b9   : > { %2410 = vmatpush3.bf16.msra.mxu0 %v3347_v24  ;;  %v2715_v24 = vld [vmem:[%s2843_s7 + $0x68] ss:$0 sps:$4 sm:$0xff]  }
 0x4ba   : > { %2411 = vmatprep.subr.bf16.mxu0 %v2756_v9 }
 0x4bd   : > { %2412 = vmatpush3.bf16.msra.mxu0 %v1399_v23 }
 0x4be   : > { %1736 = vadd.xlane.f32.xlu0 %v1735_v21  ;;  %2463 = vmatprep.subr.bf16.mxu0 %v2756_v9 }
 0x4c2   : > { %1739 = vadd.xlane.f32.xlu0 %v1738_v3 }
 0x4c8   : > { %1772 = vrot.lane.b32.xlu1 %v2715_v24, %s2760_s12 }
 0x4d1   : > { %v941_v36 = vpop.xlane.xlu0 %940 }
 0x4d2   : > { %2666 = vrcp.f32 %v941_v36 }
 0x4d5   : > { %v947_v10 = vpop.xlane.xlu0 %946 }
 0x4d9   : > { %v3528_v0 = vpop.permute.xlu0 %1766 }
 0x4da   : > { %2499 = vmatpush3.bf16.msra.mxu1 %v3528_v0 }
 0x4db   : > { %v938_v48 = vpop.xlane.xlu1 %937  ;;  %2495 = vmatprep.subr.bf16.mxu1 %v2756_v9 }
 0x4dc   : > { %2668 = vrcp.f32 %v938_v48  ;;  %v2667_v55 = vpop.eup %2666 }
 0x4dd   : > { %v965_v19 = vmul.f32 %v2667_v55, %v3378_v62 }
 0x4df   : > { %v944_v29 = vpop.xlane.xlu1 %943 }
 0x4e0   : > { %2670 = vrcp.f32 %v944_v29 }
 0x4e1   : > { %2672 = vrcp.f32 %v947_v10 }
 0x4e3   : > { %v3532_v13 = vpop.permute.xlu1 %1768 }
 0x4e4   : > { %2500 = vmatpush3.bf16.msra.mxu1 %v3532_v13 }
 0x4e5   : > { %2496 = vmatprep.subr.bf16.mxu1 %v2756_v9 }
 0x4e6   : > { %v2669_v1 = vpop.eup %2668 }
 0x4e7   : > { %v964_v37 = vmul.f32 %v2669_v1, %v3387_v2 }
 0x4e9   : > { %v971_v42 = vpack.c.bf16 %v965_v19, %v964_v37 }
 0x4ea   : > { %v2671_v59 = vpop.eup %2670 }
 0x4eb   : > { %2362 = vmatmul.mubr.msk.bf16.gmra.mrb[28].mxu0 %vm478_vm2, %v971_v42  ;;  %v2673_v8 = vpop.eup %2672  ;;  %v966_v33 = vmul.f32 %v2671_v59, %v3391_v5 }
 0x4ec   : > { %2365 = vmatprep.mubr.msk.bf16.mxu0 %vm2757_vm0, %v2756_v9  ;;  %v967_v7 = vmul.f32 %v2673_v8, %v3383_v32 }
 0x4ee   : > { %v972_v17 = vpack.c.bf16 %v967_v7, %v966_v33 }
 0x4f3   : > { %2366 = vmatmul.mubr.msk.bf16.gmra.mrb[32].mxu0 %vm478_vm2, %v972_v17 }
 0x4f4   : > { %2369 = vmatprep.mubr.msk.bf16.mxu0 %vm2757_vm0, %v2756_v9 }
 0x50a   : > { %v1333_v2 = vpop.xlane.xlu0 %1332 }
 0x50e   : > { %v1339_v62 = vpop.xlane.xlu0 %1338 }
 0x512   : > { %v3546_v26 = vpop.xlane.xlu0 %1715 }
 0x514   : > { %v950_v58 = vpop.xlane.xlu1 %949 }
 0x515   : > { %2674 = vrcp.f32 %v950_v58 }
 0x516   : > { %v3548_v35 = vpop.xlane.xlu0 %1730 }
 0x518   : > { %v1321_v43 = vpop.xlane.xlu1 %1320 }
 0x519   : > { %2676 = vrcp.f32 %v1321_v43 }
 0x51a   : > { %v1771_v38 = vpop.permute.xlu0 %1770 }
 0x51b   : > { %2501 = vmatpush3.bf16.msra.mxu1 %v1771_v38 }
 0x51c   : > { %v1324_v5 = vpop.xlane.xlu1 %1323  ;;  %2497 = vmatprep.subr.bf16.mxu1 %v2756_v9 }
 0x51d   : > { %2678 = vrcp.f32 %v1324_v5 }
 0x51f   : > { %v2675_v32 = vpop.eup %2674 }
 0x520   : > { %v1327_v61 = vpop.xlane.xlu1 %1326  ;;  %v968_v41 = vmul.f32 %v2675_v32, %v3424_v46 }
 0x521   : > { %2680 = vrcp.f32 %v1327_v61 }
 0x522   : > { %v973_v44 = vpack.c.bf16 %v968_v41, %v968_v41 }
 0x523   : > { %v2677_v52 = vpop.eup %2676 }
 0x524   : > { %v1330_v34 = vpop.xlane.xlu1 %1329  ;;  %2370 = vmatmul.mubr.msk.bf16.gmra.mrb[36].mxu0 %vm478_vm2, %v973_v44  ;;  %v1355_v30 = vmul.f32 %v2677_v52, %v3433_v28 }
 0x525   : > { %2682 = vrcp.f32 %v1330_v34  ;;  %2413 = vmatprep.mubr.msk.bf16.mxu0 %vm2757_vm0, %v2756_v9 }
 0x527   : > { %v2679_v27 = vpop.eup %2678 }
 0x528   : > { %v1356_v54 = vmul.f32 %v2679_v27, %v3440_v63  ;;  %v1336_v12 = vpop.xlane.xlu1 %1335 }
 0x529   : > { %2684 = vrcp.f32 %v1336_v12 }
 0x52a   : > { %v1364_v57 = vpack.c.bf16 %v1356_v54, %v1355_v30  ;;  %2686 = vrcp.f32 %v1333_v2 }
 0x52b   : > { %v2681_v20 = vpop.eup %2680 }
 0x52c   : > { %v1342_v46 = vpop.xlane.xlu1 %1341  ;;  %2414 = vmatmul.mubr.msk.bf16.vlgmr.msra.gmra.mrb[40].mxu0 %vm478_vm2, %v1364_v57  ;;  %v1357_v28 = vmul.f32 %v2681_v20, %v3446_v45 }
 0x52d   : > { %2464 = vmatpush3.bf16.msra.mxu0 %v3351_v11  ;;  %2417 = vmatprep.mubr.msk.bf16.mxu0 %vm2757_vm0, %v2756_v9  ;;  %2688 = vrcp.f32 %v1342_v46 }
 0x52e   : > { %2465 = vmatprep.subr.bf16.mxu0 %v2756_v9  ;;  %2690 = vrcp.f32 %v1339_v62 }
 0x52f   : > { %v2683_v31 = vpop.eup %2682 }
 0x530   : > { %v1345_v25 = vpop.xlane.xlu1 %1344  ;;  %v1358_v63 = vmul.f32 %v2683_v31, %v3452_v56 }
 0x531   : > { %2466 = vmatpush3.bf16.msra.mxu0 %v3528_v0  ;;  %2692 = vrcp.f32 %v1345_v25 }
 0x532   : > { %2467 = vmatprep.subr.bf16.mxu0 %v2756_v9  ;;  %v1365_v22 = vpack.c.bf16 %v1358_v63, %v1357_v28 }
 0x533   : > { %v2685_v23 = vpop.eup %2684 }
 0x534   : > { %v1719_v11 = vpop.xlane.xlu1 %1718  ;;  %2418 = vmatmul.mubr.msk.bf16.gmra.mrb[44].mxu0 %vm478_vm2, %v1365_v22  ;;  %v2687_v21 = vpop.eup %2686  ;;  %v1360_v45 = vmul.f32 %v2685_v23, %v3457_v60 }
 0x535   : > { %2468 = vmatpush3.bf16.msra.mxu0 %v3532_v13  ;;  %2421 = vmatprep.mubr.msk.bf16.mxu0 %vm2757_vm0, %v2756_v9  ;;  %v1359_v3 = vmul.f32 %v2687_v21, %v3411_v53  ;;  %2694 = vrcp.f32 %v1719_v11 }
 0x536   : > { %2469 = vmatprep.subr.bf16.mxu0 %v2756_v9  ;;  %2696 = vrcp.f32 %v3546_v26 }
 0x537   : > { %v1366_v24 = vpack.c.bf16 %v1360_v45, %v1359_v3  ;;  %v2689_v36 = vpop.eup %2688 }
 0x538   : > { %v1722_v56 = vpop.xlane.xlu1 %1721  ;;  %v2691_v0 = vpop.eup %2690  ;;  %v1362_v48 = vmul.f32 %v2689_v36, %v3463_v14 }
 0x539   : > { %2470 = vmatpush3.bf16.msra.mxu0 %v1771_v38  ;;  %v1361_v60 = vmul.f32 %v2691_v0, %v3416_v51 }
 0x53a   : > { %2471 = vmatprep.subr.bf16.mxu0 %v2756_v9 }
 0x53b   : > { %v1367_v53 = vpack.c.bf16 %v1362_v48, %v1361_v60  ;;  %v2693_v13 = vpop.eup %2692 }
 0x53c   : > { %v1725_v10 = vpop.xlane.xlu1 %1724  ;;  %2422 = vmatmul.mubr.msk.bf16.gmra.mrb[48].mxu0 %vm478_vm2, %v1366_v24  ;;  %v1363_v1 = vmul.f32 %v2693_v13, %v3468_v4 }
 0x53d   : > { %2425 = vmatprep.mubr.msk.bf16.mxu0 %vm2757_vm0, %v2756_v9  ;;  %2698 = vrcp.f32 %v1725_v10 }
 0x53e   : > { %v1368_v19 = vpack.c.bf16 %v1363_v1, %v1363_v1  ;;  %2700 = vrcp.f32 %v1722_v56 }
 0x53f   : > { %v2695_v51 = vpop.eup %2694 }
 0x540   : > { %v1728_v29 = vpop.xlane.xlu1 %1727  ;;  %v2697_v59 = vpop.eup %2696  ;;  %v1751_v8 = vmul.f32 %v2695_v51, %v3475_v40 }
 0x541   : > { %v1750_v4 = vmul.f32 %v2697_v59, %v3421_v39 }
 0x543   : > { %v1759_v7 = vpack.c.bf16 %v1751_v8, %v1750_v4 }
 0x544   : > { %v1734_v55 = vpop.xlane.xlu1 %1733  ;;  %2426 = vmatmul.mubr.msk.bf16.gmra.mrb[52].mxu0 %vm478_vm2, %v1367_v53 }
 0x545   : > { %2429 = vmatprep.mubr.msk.bf16.mxu0 %vm2757_vm0, %v2756_v9 }
 0x547   : > { %v2699_v17 = vpop.eup %2698 }
 0x548   : > { %v1773_v37 = vpop.permute.xlu1 %1772  ;;  %v2701_v2 = vpop.eup %2700  ;;  %v1753_v62 = vmul.f32 %v2699_v17, %v3486_v6 }
 0x549   : > { %v1794_v14 = vsel %vm625_vm3, %v1773_v37, 0  ;;  %v1752_v26 = vmul.f32 %v2701_v2, %v3477_v18 }
 0x54a   : > { %2472 = vmatpush3.bf16.msra.mxu0 %v1794_v14  ;;  %2502 = vmatpush3.bf16.msra.mxu1 %v1794_v14 }
 0x54b   : > { %v1737_v42 = vpop.xlane.xlu0 %1736  ;;  %v1760_v58 = vpack.c.bf16 %v1753_v62, %v1752_v26 }
 0x54c   : > { %2430 = vmatmul.mubr.msk.bf16.gmra.mrb[56].mxu0 %vm478_vm2, %v1368_v19 }
 0x54d   : > { %2473 = vmatprep.mubr.msk.bf16.mxu0 %vm2757_vm0, %v2756_v9 }
 0x54f   : > { %v1740_v33 = vpop.xlane.xlu0 %1739 }
 0x550   : > { %2702 = vrcp.f32 %v1740_v33 }
 0x551   : > { %2704 = vrcp.f32 %v1728_v29 }
 0x552   : > { %2706 = vrcp.f32 %v3548_v35 }
 0x553   : > { %2708 = vrcp.f32 %v1737_v42 }
 0x554   : > { %2474 = vmatmul.mubr.msk.bf16.vlgmr.msra.gmra.mrb[60].mxu0 %vm478_vm2, %v1759_v7  ;;  %2710 = vrcp.f32 %v1734_v55 }
 0x555   : > { %2477 = vmatprep.mubr.msk.bf16.mxu0 %vm2757_vm0, %v2756_v9 }
 0x55a   : > { %v2703_v40 = vpop.eup %2702 }
 0x55b   : > { %v2705_v39 = vpop.eup %2704  ;;  %v1758_v43 = vmul.f32 %v2703_v40, %v3521_v49 }
 0x55c   : > { %2478 = vmatmul.mubr.msk.bf16.gmra.mrb[64].mxu0 %vm478_vm2, %v1760_v58  ;;  %v2707_v35 = vpop.eup %2706  ;;  %v1754_v5 = vmul.f32 %v2705_v39, %v3493_v50 }
 0x55d   : > { %v1763_v38 = vpack.c.bf16 %v1758_v43, %v1758_v43  ;;  %2481 = vmatprep.mubr.msk.bf16.mxu0 %vm2757_vm0, %v2756_v9  ;;  %v1755_v18 = vmul.f32 %v2707_v35, %v3428_v15  ;;  %v2709_v32 = vpop.eup %2708 }
 0x55e   : > { %v2711_v61 = vpop.eup %2710  ;;  %v1757_v49 = vmul.f32 %v2709_v32, %v3514_v16 }
 0x55f   : > { %2490 = vmatmul.mubr.msk.bf16.vlgmr.msra.gmra.mrb[80].mxu1 %vm478_vm2, %v1763_v38  ;;  %v1761_v6 = vpack.c.bf16 %v1755_v18, %v1754_v5  ;;  %v1756_v41 = vmul.f32 %v2711_v61, %v3504_v47 }
 0x561   : > { %v1762_v44 = vpack.c.bf16 %v1757_v49, %v1756_v41 }
 0x564   : > { %2482 = vmatmul.mubr.msk.bf16.gmra.mrb[68].mxu0 %vm478_vm2, %v1761_v6 }
 0x565   : > { %2485 = vmatprep.mubr.msk.bf16.mxu0 %vm2757_vm0, %v2756_v9 }
 0x56c   : > { %2486 = vmatmul.mubr.msk.bf16.gmra.mrb[72].mxu0 %vm478_vm2, %v1762_v44 }
 0x57f   : > { %v1040_v50 = vpop.f32.mrb[20].mxu0 }
 0x580   : > { %v2146_v34 = vpack.c.bf16 %v1040_v50, %v1040_v50  ;;  %v2355_v52 = vpop.f32.mrb[21].mxu0 }
 0x581   : > { %v1043_v27 = vpop.f32.mrb[22].mxu0 }
 0x582   : > { %v2147_v15 = vpack.c.bf16 %v1043_v27, %v1043_v27  ;;  %1106 = vrot.lane.b32.xlu1 %v2146_v34, %s2760_s12  ;;  %v2356_v30 = vpop.f32.mrb[23].mxu0 }
 0x584   : > { %1108 = vrot.lane.b32.xlu0 %v2147_v15, %s2760_s12 }
 0x589   : > { %v1048_v54 = vpop.f32.mrb[24].mxu0 }
 0x58a   : > { %v2148_v12 = vpack.c.bf16 %v1048_v54, %v1048_v54  ;;  %v2359_v9 = vpop.f32.mrb[25].mxu0 }
 0x58b   : > { %v1051_v57 = vpop.f32.mrb[26].mxu0 }
 0x58c   : > { %1110 = vrot.lane.b32.xlu1 %v2148_v12, %s2760_s12  ;;  %v2360_v47 = vpop.f32.mrb[27].mxu0  ;;  %v2149_v16 = vpack.c.bf16 %v1051_v57, %v1051_v57 }
 0x590   : > { %1112 = vrot.lane.b32.xlu1 %v2149_v16, %s2760_s12 }
 0x5be   : > { %v1056_v46 = vpop.f32.mrb[28].mxu0 }
 0x5bf   : > { %v2150_v20 = vpack.c.bf16 %v1056_v46, %v1056_v46  ;;  %v2363_v31 = vpop.f32.mrb[29].mxu0 }
 0x5c0   : > { %v1059_v25 = vpop.f32.mrb[30].mxu0 }
 0x5c1   : > { %1114 = vrot.lane.b32.xlu1 %v2150_v20, %s2760_s12  ;;  %v2364_v28 = vpop.f32.mrb[31].mxu0  ;;  %v2151_v63 = vpack.c.bf16 %v1059_v25, %v1059_v25 }
 0x5c5   : > { %1116 = vrot.lane.b32.xlu1 %v2151_v63, %s2760_s12 }
 0x5c6   : > { %v1064_v22 = vpop.f32.mrb[32].mxu0 }
 0x5c7   : > { %v2152_v23 = vpack.c.bf16 %v1064_v22, %v1064_v22  ;;  %v2367_v11 = vpop.f32.mrb[33].mxu0 }
 0x5c8   : > { %v1067_v21 = vpop.f32.mrb[34].mxu0 }
 0x5c9   : > { %1118 = vrot.lane.b32.xlu1 %v2152_v23, %s2760_s12  ;;  %v2368_v45 = vpop.f32.mrb[35].mxu0  ;;  %v2153_v56 = vpack.c.bf16 %v1067_v21, %v1067_v21 }
 0x5cd   : > { %1120 = vrot.lane.b32.xlu1 %v2153_v56, %s2760_s12 }
 0x5f4   : > { %v1107_v3 = vpop.permute.xlu1 %1106 }
 0x5f5   : > { %1134 = vst.msk [vmem:[%s3177_s22] sm:$0xf] %vm1133_vm5, %v1107_v3 }
 0x5f6   : > { %v1109_v24 = vpop.permute.xlu0 %1108 }
 0x5f7   : > { %1135 = vst.msk [vmem:[%s3177_s22 + $0x4] sm:$0xf] %vm1133_vm5, %v1109_v24  ;;  %v1072_v36 = vpop.f32.mrb[36].mxu0 }
 0x5f8   : > { %v2154_v10 = vpack.c.bf16 %v1072_v36, %v1072_v36  ;;  %v2371_v0 = vpop.f32.mrb[37].mxu0 }
 0x5f9   : > { %v1075_v48 = vpop.f32.mrb[38].mxu0 }
 0x5fa   : > { %1122 = vrot.lane.b32.xlu0 %v2154_v10, %s2760_s12  ;;  %v2372_v29 = vpop.f32.mrb[39].mxu0 }
 0x5fe   : > { %v1111_v60 = vpop.permute.xlu1 %1110 }
 0x5ff   : > { %1136 = vst.msk [vmem:[%s3177_s22 + $0x8] sm:$0xf] %vm1133_vm5, %v1111_v60  ;;  %v1435_v53 = vpop.f32.mrb[40].mxu0 }
 0x600   : > { %v2155_v13 = vpack.c.bf16 %v1435_v53, %v1435_v53  ;;  %v2415_v55 = vpop.f32.mrb[41].mxu0 }
 0x601   : > { %v1438_v1 = vpop.f32.mrb[42].mxu0 }
 0x602   : > { %v2156_v37 = vpack.c.bf16 %v1438_v1, %v1438_v1  ;;  %v1113_v14 = vpop.permute.xlu1 %1112  ;;  %1501 = vrot.lane.b32.xlu1 %v2155_v13, %s2759_s11  ;;  %v2416_v19 = vpop.f32.mrb[43].mxu0 }
 0x603   : > { %1137 = vst.msk [vmem:[%s3177_s22 + $0xc] sm:$0xf] %vm1133_vm5, %v1113_v14 }
 0x604   : > { %1503 = vrot.lane.b32.xlu0 %v2156_v37, %s2759_s11 }
 0x607   : > { %v1443_v51 = vpop.f32.mrb[44].mxu0 }
 0x608   : > { %v2157_v42 = vpack.c.bf16 %v1443_v51, %v1443_v51  ;;  %v2419_v59 = vpop.f32.mrb[45].mxu0 }
 0x609   : > { %v1446_v8 = vpop.f32.mrb[46].mxu0 }
 0x60a   : > { %v2158_v33 = vpack.c.bf16 %v1446_v8, %v1446_v8  ;;  %1505 = vrot.lane.b32.xlu1 %v2157_v42, %s2759_s11  ;;  %v2420_v4 = vpop.f32.mrb[47].mxu0 }
 0x60c   : > { %1507 = vrot.lane.b32.xlu0 %v2158_v33, %s2759_s11 }
 0x60f   : > { %v1451_v7 = vpop.f32.mrb[48].mxu0 }
 0x610   : > { %v2159_v17 = vpack.c.bf16 %v1451_v7, %v1451_v7  ;;  %v2423_v2 = vpop.f32.mrb[49].mxu0 }
 0x611   : > { %v1454_v62 = vpop.f32.mrb[50].mxu0 }
 0x612   : > { %v2160_v26 = vpack.c.bf16 %v1454_v62, %v1454_v62  ;;  %1509 = vrot.lane.b32.xlu1 %v2159_v17, %s2759_s11  ;;  %v2424_v40 = vpop.f32.mrb[51].mxu0 }
 0x614   : > { %1511 = vrot.lane.b32.xlu0 %v2160_v26, %s2759_s11 }
 0x617   : > { %v1459_v58 = vpop.f32.mrb[52].mxu0 }
 0x618   : > { %v2161_v39 = vpack.c.bf16 %v1459_v58, %v1459_v58  ;;  %v2427_v43 = vpop.f32.mrb[53].mxu0 }
 0x619   : > { %v1462_v35 = vpop.f32.mrb[54].mxu0 }
 0x61a   : > { %v2162_v38 = vpack.c.bf16 %v1462_v35, %v1462_v35  ;;  %1513 = vrot.lane.b32.xlu1 %v2161_v39, %s2759_s11  ;;  %v2428_v5 = vpop.f32.mrb[55].mxu0 }
 0x61c   : > { %1515 = vrot.lane.b32.xlu0 %v2162_v38, %s2759_s11 }
 0x61f   : > { %v1467_v18 = vpop.f32.mrb[56].mxu0 }
 0x620   : > { %v2163_v6 = vpack.c.bf16 %v1467_v18, %v1467_v18  ;;  %v2431_v32 = vpop.f32.mrb[57].mxu0 }
 0x621   : > { %v1470_v61 = vpop.f32.mrb[58].mxu0 }
 0x622   : > { %1517 = vrot.lane.b32.xlu1 %v2163_v6, %s2759_s11  ;;  %v2432_v49 = vpop.f32.mrb[59].mxu0 }
 0x627   : > { %v1830_v41 = vpop.f32.mrb[60].mxu0 }
 0x628   : > { %v2164_v44 = vpack.c.bf16 %v1830_v41, %v1830_v41  ;;  %v2475_v50 = vpop.f32.mrb[61].mxu0 }
 0x629   : > { %v1833_v34 = vpop.f32.mrb[62].mxu0 }
 0x62a   : > { %v2165_v52 = vpack.c.bf16 %v1833_v34, %v1833_v34  ;;  %1896 = vrot.lane.b32.xlu0 %v2164_v44, %s2758_s10  ;;  %v2476_v27 = vpop.f32.mrb[63].mxu0 }
 0x62c   : > { %1898 = vrot.lane.b32.xlu1 %v2165_v52, %s2758_s10 }
 0x62f   : > { %v1838_v15 = vpop.f32.mrb[64].mxu0 }
 0x630   : > { %v2166_v30 = vpack.c.bf16 %v1838_v15, %v1838_v15  ;;  %v2479_v54 = vpop.f32.mrb[65].mxu0 }
 0x631   : > { %v1841_v12 = vpop.f32.mrb[66].mxu0 }
 0x632   : > { %v2167_v9 = vpack.c.bf16 %v1841_v12, %v1841_v12  ;;  %v1862_v57 = vpop.f32.mrb[80].mxu1  ;;  %1900 = vrot.lane.b32.xlu0 %v2166_v30, %s2758_s10  ;;  %v2480_v47 = vpop.f32.mrb[67].mxu0 }
 0x633   : > { %v2491_v16 = vpop.f32.mrb[81].mxu1  ;;  %v1115_v46 = vpop.permute.xlu1 %1114  ;;  %v2172_v29 = vpack.c.bf16 %v1862_v57, %v1862_v57 }
 0x634   : > { %1138 = vst.msk [vmem:[%s3177_s22 + $0x10] sm:$0xf] %vm1133_vm5, %v1115_v46  ;;  %v1865_v20 = vpop.f32.mrb[82].mxu1  ;;  %1902 = vrot.lane.b32.xlu1 %v2167_v9, %s2758_s10 }
 0x635   : > { %v2492_v31 = vpop.f32.mrb[83].mxu1 }
 0x637   : > { %v1117_v25 = vpop.permute.xlu1 %1116  ;;  %v1846_v28 = vpop.f32.mrb[68].mxu0 }
 0x638   : > { %1139 = vst.msk [vmem:[%s3177_s22 + $0x14] sm:$0xf] %vm1133_vm5, %v1117_v25  ;;  %v2168_v63 = vpack.c.bf16 %v1846_v28, %v1846_v28  ;;  %v2483_v22 = vpop.f32.mrb[69].mxu0 }
 0x639   : > { %v1849_v23 = vpop.f32.mrb[70].mxu0 }
 0x63a   : > { %v2169_v11 = vpack.c.bf16 %v1849_v23, %v1849_v23  ;;  %1904 = vrot.lane.b32.xlu0 %v2168_v63, %s2758_s10  ;;  %v2484_v21 = vpop.f32.mrb[71].mxu0 }
 0x63b   : > { %v1119_v45 = vpop.permute.xlu1 %1118 }
 0x63c   : > { %1140 = vst.msk [vmem:[%s3177_s22 + $0x18] sm:$0xf] %vm1133_vm5, %v1119_v45  ;;  %1906 = vrot.lane.b32.xlu1 %v2169_v11, %s2758_s10 }
 0x63f   : > { %v1121_v56 = vpop.permute.xlu1 %1120  ;;  %v1854_v3 = vpop.f32.mrb[72].mxu0 }
 0x640   : > { %1141 = vst.msk [vmem:[%s3177_s22 + $0x1c] sm:$0xf] %vm1133_vm5, %v1121_v56  ;;  %v2170_v24 = vpack.c.bf16 %v1854_v3, %v1854_v3  ;;  %v2487_v36 = vpop.f32.mrb[73].mxu0 }
 0x641   : > { %v1857_v10 = vpop.f32.mrb[74].mxu0 }
 0x642   : > { %v2171_v0 = vpack.c.bf16 %v1857_v10, %v1857_v10  ;;  %1908 = vrot.lane.b32.xlu0 %v2170_v24, %s2758_s10  ;;  %v2488_v48 = vpop.f32.mrb[75].mxu0 }
 0x644   : > { %1910 = vrot.lane.b32.xlu1 %v2171_v0, %s2758_s10 }
 0x646   : > { %1912 = vrot.lane.b32.xlu0 %v2172_v29, %s2758_s10 }
 0x66c   : > { %v1123_v60 = vpop.permute.xlu0 %1122 }
 0x66d   : > { %1142 = vst.msk [vmem:[%s3177_s22 + $0x20] sm:$0xf] %vm1133_vm5, %v1123_v60 }
 0x674   : > { %v1502_v53 = vpop.permute.xlu1 %1501 }
 0x675   : > { %1529 = vst.msk [vmem:[%s3177_s22] sm:$0xf] %vm1528_vm6, %v1502_v53 }
 0x676   : > { %v1504_v13 = vpop.permute.xlu0 %1503 }
 0x677   : > { %1530 = vst.msk [vmem:[%s3177_s22 + $0x4] sm:$0xf] %vm1528_vm6, %v1504_v13 }
 0x67c   : > { %v1506_v55 = vpop.permute.xlu1 %1505 }
 0x67d   : > { %1531 = vst.msk [vmem:[%s3177_s22 + $0x8] sm:$0xf] %vm1528_vm6, %v1506_v55 }
 0x67e   : > { %v1508_v1 = vpop.permute.xlu0 %1507 }
 0x67f   : > { %1532 = vst.msk [vmem:[%s3177_s22 + $0xc] sm:$0xf] %vm1528_vm6, %v1508_v1 }
 0x684   : > { %v1510_v37 = vpop.permute.xlu1 %1509 }
 0x685   : > { %1533 = vst.msk [vmem:[%s3177_s22 + $0x10] sm:$0xf] %vm1528_vm6, %v1510_v37 }
 0x686   : > { %v1512_v14 = vpop.permute.xlu0 %1511 }
 0x687   : > { %1534 = vst.msk [vmem:[%s3177_s22 + $0x14] sm:$0xf] %vm1528_vm6, %v1512_v14 }
 0x68c   : > { %v1514_v19 = vpop.permute.xlu1 %1513 }
 0x68d   : > { %1535 = vst.msk [vmem:[%s3177_s22 + $0x18] sm:$0xf] %vm1528_vm6, %v1514_v19 }
 0x68e   : > { %v1516_v51 = vpop.permute.xlu0 %1515 }
 0x68f   : > { %1536 = vst.msk [vmem:[%s3177_s22 + $0x1c] sm:$0xf] %vm1528_vm6, %v1516_v51 }
 0x694   : > { %v1518_v42 = vpop.permute.xlu1 %1517 }
 0x695   : > { %1537 = vst.msk [vmem:[%s3177_s22 + $0x20] sm:$0xf] %vm1528_vm6, %v1518_v42 }
 0x69c   : > { %v1897_v59 = vpop.permute.xlu0 %1896 }
 0x69d   : > { %1924 = vst.msk [vmem:[%s3177_s22] sm:$0xf] %vm1923_vm7, %v1897_v59 }
 0x69e   : > { %v1899_v8 = vpop.permute.xlu1 %1898 }
 0x69f   : > { %1925 = vst.msk [vmem:[%s3177_s22 + $0x4] sm:$0xf] %vm1923_vm7, %v1899_v8 }
 0x6a4   : > { %v1901_v33 = vpop.permute.xlu0 %1900 }
 0x6a5   : > { %1926 = vst.msk [vmem:[%s3177_s22 + $0x8] sm:$0xf] %vm1923_vm7, %v1901_v33 }
 0x6a6   : > { %v1903_v4 = vpop.permute.xlu1 %1902 }
 0x6a7   : > { %1927 = vst.msk [vmem:[%s3177_s22 + $0xc] sm:$0xf] %vm1923_vm7, %v1903_v4 }
 0x6ac   : > { %v1905_v7 = vpop.permute.xlu0 %1904 }
 0x6ad   : > { %1928 = vst.msk [vmem:[%s3177_s22 + $0x10] sm:$0xf] %vm1923_vm7, %v1905_v7 }
 0x6ae   : > { %v1907_v17 = vpop.permute.xlu1 %1906 }
 0x6af   : > { %1929 = vst.msk [vmem:[%s3177_s22 + $0x14] sm:$0xf] %vm1923_vm7, %v1907_v17 }
 0x6b4   : > { %v1909_v2 = vpop.permute.xlu0 %1908 }
 0x6b5   : > { %1930 = vst.msk [vmem:[%s3177_s22 + $0x18] sm:$0xf] %vm1923_vm7, %v1909_v2 }
 0x6b6   : > { %v1911_v62 = vpop.permute.xlu1 %1910 }
 0x6b7   : > { %1931 = vst.msk [vmem:[%s3177_s22 + $0x1c] sm:$0xf] %vm1923_vm7, %v1911_v62 }
 0x6b8   : > { %v1913_v26 = vpop.permute.xlu0 %1912 }
 0x6b9   : > { %1932 = vst.msk [vmem:[%s3177_s22 + $0x20] sm:$0xf] %vm1923_vm7, %v1913_v26 }
 0x6ba PF: > { %s13_s16 = sadd.s32 1, %s2754_s16   ;;  %s3709_s12 = smov %s2742_s13 }
 0x6bb   : > { %p10_p10 = scmp.ge.s32.totalorder %s13_s16, 4   ;;  %s3710_s13 = smov %s2816_s20 }
 0x6bc   : > { %s3711_s14 = smov %s2750_s15  ;;  %s3712_s15 = smov %s3714_s17 }
 0x6bd   :  { %12 = sbr.rel (!%p10_p10) target bundleno = 3 (0x3), region = 111 }

// kernel: pdn_wrapper_forward.23
= control target key start
LH: loop header
LB: loop body
LE: loop exit
PB: predicated region body
PF: predicated region fallthrough
CT: control target
= control target key end

     0   :  { %s704_s0 = inlined_call_operand.vmem [shape: bf16[144,128], index: 0, kind: input, shape index: {}]   ;;  %s705_s1 = inlined_call_operand.vmem [shape: f32[1,128], index: 1, kind: input, shape index: {}]   ;;  %s706_s2 = inlined_call_operand.vmem [shape: f32[1,128], index: 2, kind: input, shape index: {}]   ;;  %s707_s3 = inlined_call_operand.vmem [shape: f32[144,128], index: 3, kind: output, shape index: {}]  }
   0x1   :  { %v324_v0 = vld [vmem:[%s704_s0] sm:$0xff]   ;;  %v359_v1 = vld [vmem:[%s704_s0 + $0x8] sm:$0xff]   ;;  %v360_v6 = vld [vmem:[%s704_s0 + $0x10] sm:$0xff]  }
   0x2   :  { %v325_v2 = vunpack.c.l.bf16 %v324_v0  ;;  %v329_v3 = vunpack.c.l.bf16 %v359_v1  ;;  %v326_v4 = vunpack.c.h.bf16 %v324_v0  ;;  %v330_v5 = vunpack.c.h.bf16 %v359_v1  ;;  %v435_v9 = vld [vmem:[%s704_s0 + $0x18] sm:$0xff]   ;;  %v442_v12 = vld [vmem:[%s704_s0 + $0x20] sm:$0xff]   ;;  %v449_v15 = vld [vmem:[%s704_s0 + $0x28] sm:$0xff]  }
   0x3   :  { %v333_v7 = vunpack.c.l.bf16 %v360_v6  ;;  %v334_v8 = vunpack.c.h.bf16 %v360_v6  ;;  %v337_v10 = vunpack.c.l.bf16 %v435_v9  ;;  %v338_v11 = vunpack.c.h.bf16 %v435_v9  ;;  %v460_v18 = vld [vmem:[%s704_s0 + $0x30] sm:$0xff]   ;;  %v471_v21 = vld [vmem:[%s704_s0 + $0x38] sm:$0xff]   ;;  %v482_v24 = vld [vmem:[%s704_s0 + $0x40] sm:$0xff]  }
   0x4   :  { %50 = vadd.xlane.f32.xlu0 %v325_v2  ;;  %54 = vadd.xlane.f32.xlu1 %v329_v3  ;;  %v341_v13 = vunpack.c.l.bf16 %v442_v12  ;;  %v342_v14 = vunpack.c.h.bf16 %v442_v12  ;;  %v345_v16 = vunpack.c.l.bf16 %v449_v15  ;;  %v346_v17 = vunpack.c.h.bf16 %v449_v15 }
   0x5   :  { %v349_v19 = vunpack.c.l.bf16 %v460_v18  ;;  %v350_v20 = vunpack.c.h.bf16 %v460_v18  ;;  %v353_v22 = vunpack.c.l.bf16 %v471_v21  ;;  %v354_v23 = vunpack.c.h.bf16 %v471_v21 }
   0x6   :  { %v357_v25 = vunpack.c.l.bf16 %v482_v24  ;;  %v358_v26 = vunpack.c.h.bf16 %v482_v24 }
   0x8   :  { %52 = vadd.xlane.f32.xlu0 %v326_v4  ;;  %56 = vadd.xlane.f32.xlu1 %v330_v5 }
   0xc   :  { %58 = vadd.xlane.f32.xlu0 %v333_v7  ;;  %60 = vadd.xlane.f32.xlu1 %v334_v8 }
  0x10   :  { %62 = vadd.xlane.f32.xlu0 %v337_v10  ;;  %64 = vadd.xlane.f32.xlu1 %v338_v11 }
  0x14   :  { %66 = vadd.xlane.f32.xlu0 %v341_v13  ;;  %68 = vadd.xlane.f32.xlu1 %v342_v14 }
  0x18   :  { %70 = vadd.xlane.f32.xlu0 %v345_v16  ;;  %72 = vadd.xlane.f32.xlu1 %v346_v17 }
  0x1c   :  { %74 = vadd.xlane.f32.xlu0 %v349_v19  ;;  %76 = vadd.xlane.f32.xlu1 %v350_v20 }
  0x20   :  { %78 = vadd.xlane.f32.xlu0 %v353_v22  ;;  %80 = vadd.xlane.f32.xlu1 %v354_v23 }
  0x24   :  { %82 = vadd.xlane.f32.xlu0 %v357_v25  ;;  %84 = vadd.xlane.f32.xlu1 %v358_v26 }
  0x91   :  { %v51_v27 = vpop.xlane.xlu0 %50  ;;  %v55_v28 = vpop.xlane.xlu1 %54 }
  0x92   :  { %v87_v29 = vmul.f32 0.0078125, %v51_v27  ;;  %v89_v30 = vmul.f32 0.0078125, %v55_v28 }
  0x94   :  { %v494_v31 = vsub.f32 %v325_v2, %v87_v29  ;;  %v496_v32 = vsub.f32 %v329_v3, %v89_v30 }
  0x95   :  { %v53_v33 = vpop.xlane.xlu0 %52  ;;  %v57_v34 = vpop.xlane.xlu1 %56 }
  0x96   :  { %v88_v35 = vmul.f32 0.0078125, %v53_v33  ;;  %v123_v36 = vmul.f32 %v494_v31, %v494_v31  ;;  %v90_v37 = vmul.f32 0.0078125, %v57_v34  ;;  %v125_v40 = vmul.f32 %v496_v32, %v496_v32 }
  0x98   :  { %v500_v38 = vsub.f32 %v326_v4, %v88_v35  ;;  %141 = vadd.xlane.f32.xlu0 %v123_v36  ;;  %v502_v39 = vsub.f32 %v330_v5, %v90_v37 }
  0x99   :  { %v59_v41 = vpop.xlane.xlu0 %58  ;;  %v61_v42 = vpop.xlane.xlu1 %60 }
  0x9a   :  { %v91_v43 = vmul.f32 0.0078125, %v59_v41  ;;  %v124_v44 = vmul.f32 %v500_v38, %v500_v38  ;;  %v92_v45 = vmul.f32 0.0078125, %v61_v42  ;;  %v126_v48 = vmul.f32 %v502_v39, %v502_v39 }
  0x9c   :  { %v508_v46 = vsub.f32 %v333_v7, %v91_v43  ;;  %145 = vadd.xlane.f32.xlu0 %v125_v40  ;;  %143 = vadd.xlane.f32.xlu1 %v124_v44  ;;  %v510_v47 = vsub.f32 %v334_v8, %v92_v45 }
  0x9d   :  { %v63_v49 = vpop.xlane.xlu0 %62  ;;  %v65_v50 = vpop.xlane.xlu1 %64 }
  0x9e   :  { %v93_v51 = vmul.f32 0.0078125, %v63_v49  ;;  %v127_v52 = vmul.f32 %v508_v46, %v508_v46  ;;  %v94_v53 = vmul.f32 0.0078125, %v65_v50  ;;  %v128_v56 = vmul.f32 %v510_v47, %v510_v47 }
  0xa0   :  { %v516_v54 = vsub.f32 %v337_v10, %v93_v51  ;;  %147 = vadd.xlane.f32.xlu1 %v126_v48  ;;  %149 = vadd.xlane.f32.xlu0 %v127_v52  ;;  %v518_v55 = vsub.f32 %v338_v11, %v94_v53 }
  0xa1   :  { %v67_v57 = vpop.xlane.xlu0 %66  ;;  %v69_v58 = vpop.xlane.xlu1 %68 }
  0xa2   :  { %v95_v59 = vmul.f32 0.0078125, %v67_v57  ;;  %v129_v60 = vmul.f32 %v516_v54, %v516_v54  ;;  %v96_v61 = vmul.f32 0.0078125, %v69_v58  ;;  %v130_v0 = vmul.f32 %v518_v55, %v518_v55 }
  0xa4   :  { %v526_v62 = vsub.f32 %v341_v13, %v95_v59  ;;  %151 = vadd.xlane.f32.xlu1 %v128_v56  ;;  %153 = vadd.xlane.f32.xlu0 %v129_v60  ;;  %v530_v63 = vsub.f32 %v342_v14, %v96_v61 }
  0xa5   :  { %v71_v1 = vpop.xlane.xlu0 %70  ;;  %v73_v2 = vpop.xlane.xlu1 %72 }
  0xa6   :  { %v97_v3 = vmul.f32 0.0078125, %v71_v1  ;;  %v131_v4 = vmul.f32 %v526_v62, %v526_v62  ;;  %v98_v5 = vmul.f32 0.0078125, %v73_v2  ;;  %v132_v8 = vmul.f32 %v530_v63, %v530_v63  ;;  %v589_v1 = vld [vmem:[%s705_s1] ss:$0 sm:$0xff] }
  0xa8   :  { %v538_v6 = vsub.f32 %v345_v16, %v97_v3  ;;  %155 = vadd.xlane.f32.xlu1 %v130_v0  ;;  %157 = vadd.xlane.f32.xlu0 %v131_v4  ;;  %v542_v7 = vsub.f32 %v346_v17, %v98_v5 }
  0xa9   :  { %v75_v9 = vpop.xlane.xlu0 %74  ;;  %v77_v10 = vpop.xlane.xlu1 %76 }
  0xaa   :  { %v99_v11 = vmul.f32 0.0078125, %v75_v9  ;;  %v133_v12 = vmul.f32 %v538_v6, %v538_v6  ;;  %v100_v13 = vmul.f32 0.0078125, %v77_v10  ;;  %v134_v16 = vmul.f32 %v542_v7, %v542_v7  ;;  %v595_v9 = vld [vmem:[%s706_s2] ss:$0 sm:$0xff] }
  0xac   :  { %v550_v14 = vsub.f32 %v349_v19, %v99_v11  ;;  %159 = vadd.xlane.f32.xlu1 %v132_v8  ;;  %161 = vadd.xlane.f32.xlu0 %v133_v12  ;;  %v554_v15 = vsub.f32 %v350_v20, %v100_v13 }
  0xad   :  { %v79_v17 = vpop.xlane.xlu0 %78  ;;  %v81_v27 = vpop.xlane.xlu1 %80 }
  0xae   :  { %v101_v28 = vmul.f32 0.0078125, %v79_v17  ;;  %v135_v29 = vmul.f32 %v550_v14, %v550_v14  ;;  %v102_v30 = vmul.f32 0.0078125, %v81_v27  ;;  %v136_v20 = vmul.f32 %v554_v15, %v554_v15 }
  0xb0   :  { %v562_v19 = vsub.f32 %v353_v22, %v101_v28  ;;  %163 = vadd.xlane.f32.xlu1 %v134_v16  ;;  %165 = vadd.xlane.f32.xlu0 %v135_v29  ;;  %v566_v18 = vsub.f32 %v354_v23, %v102_v30 }
  0xb1   :  { %v83_v33 = vpop.xlane.xlu0 %82  ;;  %v85_v34 = vpop.xlane.xlu1 %84 }
  0xb2   :  { %v103_v35 = vmul.f32 0.0078125, %v83_v33  ;;  %v137_v36 = vmul.f32 %v562_v19, %v562_v19  ;;  %v104_v37 = vmul.f32 0.0078125, %v85_v34  ;;  %v138_v23 = vmul.f32 %v566_v18, %v566_v18 }
  0xb4   :  { %v574_v22 = vsub.f32 %v357_v25, %v103_v35  ;;  %167 = vadd.xlane.f32.xlu1 %v136_v20  ;;  %169 = vadd.xlane.f32.xlu0 %v137_v36  ;;  %v578_v21 = vsub.f32 %v358_v26, %v104_v37 }
  0xb6   :  { %v139_v40 = vmul.f32 %v574_v22, %v574_v22  ;;  %v140_v41 = vmul.f32 %v578_v21, %v578_v21 }
  0xb8   :  { %171 = vadd.xlane.f32.xlu1 %v138_v23  ;;  %173 = vadd.xlane.f32.xlu0 %v139_v40 }
  0xbc   :  { %175 = vadd.xlane.f32.xlu1 %v140_v41 }
 0x125   :  { %v142_v25 = vpop.xlane.xlu0 %141 }
 0x126   :  { %v177_v42 = vmul.f32 0.0078125, %v142_v25 }
 0x128   :  { %v195_v43 = vadd.f32 1e-06, %v177_v42 }
 0x129   :  { %v144_v44 = vpop.xlane.xlu1 %143  ;;  %v146_v45 = vpop.xlane.xlu0 %145 }
 0x12a   :  { %367 = vrsqrt.f32 %v195_v43  ;;  %v178_v24 = vmul.f32 0.0078125, %v144_v44  ;;  %v179_v26 = vmul.f32 0.0078125, %v146_v45 }
 0x12c   :  { %v196_v48 = vadd.f32 1e-06, %v178_v24  ;;  %v197_v49 = vadd.f32 1e-06, %v179_v26 }
 0x12d   :  { %v148_v50 = vpop.xlane.xlu1 %147  ;;  %v150_v51 = vpop.xlane.xlu0 %149 }
 0x12e   :  { %369 = vrsqrt.f32 %v196_v48  ;;  %v180_v52 = vmul.f32 0.0078125, %v148_v50  ;;  %v181_v53 = vmul.f32 0.0078125, %v150_v51 }
 0x12f   :  { %371 = vrsqrt.f32 %v197_v49 }
 0x130   :  { %v198_v56 = vadd.f32 1e-06, %v180_v52  ;;  %v199_v57 = vadd.f32 1e-06, %v181_v53 }
 0x131   :  { %v152_v58 = vpop.xlane.xlu1 %151  ;;  %v154_v59 = vpop.xlane.xlu0 %153 }
 0x132   :  { %373 = vrsqrt.f32 %v198_v56  ;;  %v182_v60 = vmul.f32 0.0078125, %v152_v58  ;;  %v183_v61 = vmul.f32 0.0078125, %v154_v59 }
 0x133   :  { %375 = vrsqrt.f32 %v199_v57 }
 0x134   :  { %v368_v0 = vpop.eup %367  ;;  %v200_v2 = vadd.f32 1e-06, %v182_v60  ;;  %v201_v3 = vadd.f32 1e-06, %v183_v61 }
 0x135   :  { %v231_v4 = vmul.f32 %v368_v0, %v494_v31  ;;  %v156_v5 = vpop.xlane.xlu1 %155  ;;  %v158_v8 = vpop.xlane.xlu0 %157 }
 0x136   :  { %377 = vrsqrt.f32 %v200_v2  ;;  %v184_v10 = vmul.f32 0.0078125, %v156_v5  ;;  %v185_v11 = vmul.f32 0.0078125, %v158_v8 }
 0x137   :  { %v256_v12 = vmul.f32 %v589_v1, %v231_v4  ;;  %379 = vrsqrt.f32 %v201_v3 }
 0x138   :  { %v370_v13 = vpop.eup %369  ;;  %v202_v16 = vadd.f32 1e-06, %v184_v10  ;;  %v203_v17 = vadd.f32 1e-06, %v185_v11 }
 0x139   :  { %v372_v27 = vpop.eup %371  ;;  %v281_v28 = vadd.f32 %v595_v9, %v256_v12  ;;  %v232_v31 = vmul.f32 %v370_v13, %v500_v38  ;;  %v160_v29 = vpop.xlane.xlu1 %159 }
 0x13a   :  { %v162_v30 = vpop.xlane.xlu0 %161  ;;  %v233_v20 = vmul.f32 %v372_v27, %v496_v32  ;;  %381 = vrsqrt.f32 %v202_v16  ;;  %v186_v33 = vmul.f32 0.0078125, %v160_v29 }
 0x13b   :  { %v187_v34 = vmul.f32 0.0078125, %v162_v30  ;;  %299 = vst [vmem:[%s707_s3] sm:$0xff] %v281_v28  ;;  %v257_v35 = vmul.f32 %v589_v1, %v232_v31  ;;  %383 = vrsqrt.f32 %v203_v17 }
 0x13c   :  { %v374_v36 = vpop.eup %373  ;;  %v258_v37 = vmul.f32 %v589_v1, %v233_v20  ;;  %v204_v23 = vadd.f32 1e-06, %v186_v33 }
 0x13d   :  { %v205_v40 = vadd.f32 1e-06, %v187_v34  ;;  %v376_v38 = vpop.eup %375  ;;  %v282_v41 = vadd.f32 %v595_v9, %v257_v35  ;;  %v234_v32 = vmul.f32 %v374_v36, %v502_v39  ;;  %v164_v25 = vpop.xlane.xlu1 %163 }
 0x13e   :  { %v166_v42 = vpop.xlane.xlu0 %165  ;;  %v283_v43 = vadd.f32 %v595_v9, %v258_v37  ;;  %v235_v44 = vmul.f32 %v376_v38, %v508_v46  ;;  %385 = vrsqrt.f32 %v204_v23  ;;  %v188_v45 = vmul.f32 0.0078125, %v164_v25 }
 0x13f   :  { %300 = vst [vmem:[%s707_s3 + $0x8] sm:$0xff] %v282_v41  ;;  %v259_v24 = vmul.f32 %v589_v1, %v234_v32  ;;  %387 = vrsqrt.f32 %v205_v40  ;;  %v189_v26 = vmul.f32 0.0078125, %v166_v42 }
 0x140   :  { %v378_v48 = vpop.eup %377  ;;  %301 = vst [vmem:[%s707_s3 + $0x10] sm:$0xff] %v283_v43  ;;  %v260_v39 = vmul.f32 %v589_v1, %v235_v44  ;;  %v206_v49 = vadd.f32 1e-06, %v188_v45 }
 0x141   :  { %v380_v50 = vpop.eup %379  ;;  %v284_v46 = vadd.f32 %v595_v9, %v259_v24  ;;  %v236_v51 = vmul.f32 %v378_v48, %v510_v47  ;;  %v207_v52 = vadd.f32 1e-06, %v189_v26  ;;  %v168_v53 = vpop.xlane.xlu1 %167 }
 0x142   :  { %v170_v56 = vpop.xlane.xlu0 %169  ;;  %v285_v57 = vadd.f32 %v595_v9, %v260_v39  ;;  %v237_v58 = vmul.f32 %v380_v50, %v516_v54  ;;  %389 = vrsqrt.f32 %v206_v49  ;;  %v190_v59 = vmul.f32 0.0078125, %v168_v53 }
 0x143   :  { %302 = vst [vmem:[%s707_s3 + $0x18] sm:$0xff] %v284_v46  ;;  %v261_v60 = vmul.f32 %v589_v1, %v236_v51  ;;  %391 = vrsqrt.f32 %v207_v52  ;;  %v191_v61 = vmul.f32 0.0078125, %v170_v56 }
 0x144   :  { %v382_v0 = vpop.eup %381  ;;  %303 = vst [vmem:[%s707_s3 + $0x20] sm:$0xff] %v285_v57  ;;  %v262_v47 = vmul.f32 %v589_v1, %v237_v58  ;;  %v208_v2 = vadd.f32 1e-06, %v190_v59 }
 0x145   :  { %v384_v3 = vpop.eup %383  ;;  %v286_v54 = vadd.f32 %v595_v9, %v261_v60  ;;  %v238_v4 = vmul.f32 %v382_v0, %v518_v55  ;;  %v209_v5 = vadd.f32 1e-06, %v191_v61  ;;  %v172_v8 = vpop.xlane.xlu1 %171 }
 0x146   :  { %v174_v10 = vpop.xlane.xlu0 %173  ;;  %v287_v11 = vadd.f32 %v595_v9, %v262_v47  ;;  %v239_v12 = vmul.f32 %v384_v3, %v526_v62  ;;  %393 = vrsqrt.f32 %v208_v2  ;;  %v192_v13 = vmul.f32 0.0078125, %v172_v8 }
 0x147   :  { %304 = vst [vmem:[%s707_s3 + $0x28] sm:$0xff] %v286_v54  ;;  %v263_v16 = vmul.f32 %v589_v1, %v238_v4  ;;  %395 = vrsqrt.f32 %v209_v5  ;;  %v193_v17 = vmul.f32 0.0078125, %v174_v10 }
 0x148   :  { %v386_v27 = vpop.eup %385  ;;  %305 = vst [vmem:[%s707_s3 + $0x30] sm:$0xff] %v287_v11  ;;  %v264_v55 = vmul.f32 %v589_v1, %v239_v12  ;;  %v210_v28 = vadd.f32 1e-06, %v192_v13 }
 0x149   :  { %v388_v31 = vpop.eup %387  ;;  %v288_v62 = vadd.f32 %v595_v9, %v263_v16  ;;  %v240_v29 = vmul.f32 %v386_v27, %v530_v63  ;;  %v211_v30 = vadd.f32 1e-06, %v193_v17  ;;  %v176_v20 = vpop.xlane.xlu1 %175 }
 0x14a   :  { %v289_v33 = vadd.f32 %v595_v9, %v264_v55  ;;  %v241_v34 = vmul.f32 %v388_v31, %v538_v6  ;;  %397 = vrsqrt.f32 %v210_v28  ;;  %v194_v35 = vmul.f32 0.0078125, %v176_v20 }
 0x14b   :  { %306 = vst [vmem:[%s707_s3 + $0x38] sm:$0xff] %v288_v62  ;;  %v265_v36 = vmul.f32 %v589_v1, %v240_v29  ;;  %399 = vrsqrt.f32 %v211_v30 }
 0x14c   :  { %v390_v37 = vpop.eup %389  ;;  %307 = vst [vmem:[%s707_s3 + $0x40] sm:$0xff] %v289_v33  ;;  %v266_v63 = vmul.f32 %v589_v1, %v241_v34  ;;  %v212_v23 = vadd.f32 1e-06, %v194_v35 }
 0x14d   :  { %v392_v40 = vpop.eup %391  ;;  %v290_v6 = vadd.f32 %v595_v9, %v265_v36  ;;  %v242_v38 = vmul.f32 %v390_v37, %v542_v7 }
 0x14e   :  { %v291_v41 = vadd.f32 %v595_v9, %v266_v63  ;;  %v243_v32 = vmul.f32 %v392_v40, %v550_v14  ;;  %401 = vrsqrt.f32 %v212_v23 }
 0x14f   :  { %308 = vst [vmem:[%s707_s3 + $0x48] sm:$0xff] %v290_v6  ;;  %v267_v25 = vmul.f32 %v589_v1, %v242_v38 }
 0x150   :  { %v394_v42 = vpop.eup %393  ;;  %309 = vst [vmem:[%s707_s3 + $0x50] sm:$0xff] %v291_v41  ;;  %v268_v43 = vmul.f32 %v589_v1, %v243_v32 }
 0x151   :  { %v396_v44 = vpop.eup %395  ;;  %v292_v7 = vadd.f32 %v595_v9, %v267_v25  ;;  %v244_v45 = vmul.f32 %v394_v42, %v554_v15 }
 0x152   :  { %v293_v14 = vadd.f32 %v595_v9, %v268_v43  ;;  %v245_v24 = vmul.f32 %v396_v44, %v562_v19 }
 0x153   :  { %310 = vst [vmem:[%s707_s3 + $0x58] sm:$0xff] %v292_v7  ;;  %v269_v26 = vmul.f32 %v589_v1, %v244_v45 }
 0x154   :  { %v398_v48 = vpop.eup %397  ;;  %311 = vst [vmem:[%s707_s3 + $0x60] sm:$0xff] %v293_v14  ;;  %v270_v39 = vmul.f32 %v589_v1, %v245_v24 }
 0x155   :  { %v400_v49 = vpop.eup %399  ;;  %v294_v15 = vadd.f32 %v595_v9, %v269_v26  ;;  %v246_v50 = vmul.f32 %v398_v48, %v566_v18 }
 0x156   :  { %v295_v19 = vadd.f32 %v595_v9, %v270_v39  ;;  %v247_v46 = vmul.f32 %v400_v49, %v574_v22 }
 0x157   :  { %312 = vst [vmem:[%s707_s3 + $0x68] sm:$0xff] %v294_v15  ;;  %v271_v51 = vmul.f32 %v589_v1, %v246_v50 }
 0x158   :  { %v402_v52 = vpop.eup %401  ;;  %313 = vst [vmem:[%s707_s3 + $0x70] sm:$0xff] %v295_v19  ;;  %v272_v53 = vmul.f32 %v589_v1, %v247_v46 }
 0x159   :  { %v296_v56 = vadd.f32 %v595_v9, %v271_v51  ;;  %v248_v18 = vmul.f32 %v402_v52, %v578_v21 }
 0x15a   :  { %v297_v57 = vadd.f32 %v595_v9, %v272_v53 }
 0x15b   :  { %314 = vst [vmem:[%s707_s3 + $0x78] sm:$0xff] %v296_v56  ;;  %v273_v22 = vmul.f32 %v589_v1, %v248_v18 }
 0x15c   :  { %315 = vst [vmem:[%s707_s3 + $0x80] sm:$0xff] %v297_v57 }
 0x15d   :  { %v298_v58 = vadd.f32 %v595_v9, %v273_v22 }
 0x15f   :  { %316 = vst [vmem:[%s707_s3 + $0x88] sm:$0xff] %v298_v58 }

// kernel: pdn_wrapper_forward.17
= control target key start
LH: loop header
LB: loop body
LE: loop exit
PB: predicated region body
PF: predicated region fallthrough
CT: control target
= control target key end

     0   :  { %s1704_s1 = inlined_call_operand.vmem [shape: bf16[512,128], index: 1, kind: input, shape index: {}]   ;;  %s1705_s0 = inlined_call_operand.vmem [shape: bf16[144,512], index: 0, kind: input, shape index: {}]   ;;  %s1706_s2 = inlined_call_operand.vmem [shape: f32[1,128], index: 2, kind: input, shape index: {}]   ;;  %s1707_s3 = inlined_call_operand.vmem [shape: bf16[144,128], index: 3, kind: input, shape index: {}]   ;;  %s1708_s4 = inlined_call_operand.vmem [shape: bf16[144,128], index: 4, kind: output, shape index: {}]  }
   0x1   :  { %v1312_v0 = vld [vmem:[%s1704_s1 + $0x40] sm:$0xff]   ;;  %v1316_v4 = vld [vmem:[%s1704_s1 + $0x48] sm:$0xff]   ;;  %v1320_v8 = vld [vmem:[%s1704_s1 + $0x50] sm:$0xff]  }
   0x2   :  { %v1313_v1 = vld [vmem:[%s1704_s1 + $0xc0] sm:$0xff]   ;;  %1172 = vmatprep.subr.bf16.mxu0 %v1312_v0  ;;  %v1317_v5 = vld [vmem:[%s1704_s1 + $0xc8] sm:$0xff]   ;;  %v1321_v9 = vld [vmem:[%s1704_s1 + $0xd0] sm:$0xff]  }
   0x3   :  { %v1314_v2 = vld [vmem:[%s1704_s1] sm:$0xff]   ;;  %1242 = vmatprep.subr.bf16.mxu1 %v1313_v1  ;;  %v1318_v6 = vld [vmem:[%s1704_s1 + $0x8] sm:$0xff]   ;;  %v1322_v10 = vld [vmem:[%s1704_s1 + $0x10] sm:$0xff]  }
   0x4   :  { %v1315_v3 = vld [vmem:[%s1704_s1 + $0x80] sm:$0xff]   ;;  %1173 = vmatpush3.bf16.msra.mxu0 %v1314_v2  ;;  %v1319_v7 = vld [vmem:[%s1704_s1 + $0x88] sm:$0xff]   ;;  %v1323_v11 = vld [vmem:[%s1704_s1 + $0x90] sm:$0xff]  }
   0x5   :  { %1243 = vmatpush3.bf16.msra.mxu1 %v1315_v3  ;;  %1174 = vmatprep.subr.bf16.mxu0 %v1316_v4  ;;  %v1324_v12 = vld [vmem:[%s1704_s1 + $0x58] sm:$0xff]   ;;  %v1328_v16 = vld [vmem:[%s1704_s1 + $0x60] sm:$0xff]   ;;  %v1332_v20 = vld [vmem:[%s1704_s1 + $0x68] sm:$0xff]  }
   0x6   :  { %1244 = vmatprep.subr.bf16.mxu1 %v1317_v5  ;;  %v1325_v13 = vld [vmem:[%s1704_s1 + $0xd8] sm:$0xff]   ;;  %v1329_v17 = vld [vmem:[%s1704_s1 + $0xe0] sm:$0xff]   ;;  %v1333_v21 = vld [vmem:[%s1704_s1 + $0xe8] sm:$0xff]  }
   0x7   :  { %v1326_v14 = vld [vmem:[%s1704_s1 + $0x18] sm:$0xff]   ;;  %v1330_v18 = vld [vmem:[%s1704_s1 + $0x20] sm:$0xff]   ;;  %v1334_v22 = vld [vmem:[%s1704_s1 + $0x28] sm:$0xff]  }
   0x8   :  { %1175 = vmatpush3.bf16.msra.mxu0 %v1318_v6  ;;  %v1327_v15 = vld [vmem:[%s1704_s1 + $0x98] sm:$0xff]   ;;  %v1331_v19 = vld [vmem:[%s1704_s1 + $0xa0] sm:$0xff]   ;;  %v1335_v23 = vld [vmem:[%s1704_s1 + $0xa8] sm:$0xff]  }
   0x9   :  { %1245 = vmatpush3.bf16.msra.mxu1 %v1319_v7  ;;  %1176 = vmatprep.subr.bf16.mxu0 %v1320_v8  ;;  %v1336_v24 = vld [vmem:[%s1704_s1 + $0x70] sm:$0xff]   ;;  %v1340_v28 = vld [vmem:[%s1704_s1 + $0x78] sm:$0xff]  }
   0xa   :  { %1246 = vmatprep.subr.bf16.mxu1 %v1321_v9  ;;  %v1337_v25 = vld [vmem:[%s1704_s1 + $0xf0] sm:$0xff]   ;;  %v1341_v29 = vld [vmem:[%s1704_s1 + $0xf8] sm:$0xff]  }
   0xb   :  { %v1338_v26 = vld [vmem:[%s1704_s1 + $0x30] sm:$0xff]   ;;  %v1342_v30 = vld [vmem:[%s1704_s1 + $0x38] sm:$0xff]  }
   0xc   :  { %1177 = vmatpush3.bf16.msra.mxu0 %v1322_v10  ;;  %v1339_v27 = vld [vmem:[%s1704_s1 + $0xb0] sm:$0xff]   ;;  %v1343_v31 = vld [vmem:[%s1704_s1 + $0xb8] sm:$0xff]  }
   0xd   :  { %1247 = vmatpush3.bf16.msra.mxu1 %v1323_v11  ;;  %1178 = vmatprep.subr.bf16.mxu0 %v1324_v12  ;;  %v1344_v32 = vld [vmem:[%s1705_s0] ss:$16 sps:$4 sm:$0xff]   ;;  %v1346_v33 = vld [vmem:[%s1705_s0 + $0x4] ss:$16 sps:$4 sm:$0xff]   ;;  %v1347_v34 = vld [vmem:[%s1705_s0 + $0x8] ss:$16 sps:$4 sm:$0xff]  }
   0xe   :  { %1248 = vmatprep.subr.bf16.mxu1 %v1325_v13  ;;  %v1349_v35 = vld [vmem:[%s1705_s0 + $0xc] ss:$16 sps:$4 sm:$0xff]   ;;  %562 = vmatprep.mubr.bf16.mxu0 %v1346_v33  ;;  %v1350_v36 = vld [vmem:[%s1705_s0 + $0x24] ss:$16 sps:$4 sm:$0xff]   ;;  %v1354_v38 = vld [vmem:[%s1705_s0 + $0x20] ss:$16 sps:$4 sm:$0xff]  }
   0xf   :  { %667 = vmatprep.mubr.bf16.mxu1 %v1349_v35  ;;  %v1352_v37 = vld [vmem:[%s1705_s0 + $0x2c] ss:$16 sps:$4 sm:$0xff]   ;;  %v1355_v39 = vld [vmem:[%s1705_s0 + $0x28] ss:$16 sps:$4 sm:$0xff]   ;;  %v1356_v40 = vld [vmem:[%s1705_s0 + $0x44] ss:$16 sps:$4 sm:$0xff]  }
  0x10   :  { %1179 = vmatpush3.bf16.msra.mxu0 %v1326_v14  ;;  %v1358_v41 = vld [vmem:[%s1705_s0 + $0x4c] ss:$16 sps:$4 sm:$0xff]   ;;  %v1360_v42 = vld [vmem:[%s1705_s0 + $0x40] ss:$16 sps:$4 sm:$0xff]   ;;  %v1361_v43 = vld [vmem:[%s1705_s0 + $0x48] ss:$16 sps:$4 sm:$0xff]  }
  0x11   :  { %1249 = vmatpush3.bf16.msra.mxu1 %v1327_v15  ;;  %1180 = vmatprep.subr.bf16.mxu0 %v1328_v16  ;;  %v1362_v44 = vld [vmem:[%s1705_s0 + $0x64] ss:$16 sps:$4 sm:$0xff]   ;;  %v1364_v45 = vld [vmem:[%s1705_s0 + $0x6c] ss:$16 sps:$4 sm:$0xff]   ;;  %v1366_v46 = vld [vmem:[%s1705_s0 + $0x60] ss:$16 sps:$4 sm:$0xff]  }
  0x12   :  { %1250 = vmatprep.subr.bf16.mxu1 %v1329_v17  ;;  %v1367_v47 = vld [vmem:[%s1705_s0 + $0x68] ss:$16 sps:$4 sm:$0xff]   ;;  %v1368_v48 = vld [vmem:[%s1705_s0 + $0x84] ss:$16 sps:$4 sm:$0xff]   ;;  %v1370_v49 = vld [vmem:[%s1705_s0 + $0x8c] ss:$16 sps:$4 sm:$0xff]  }
  0x13   :  { %v1372_v50 = vld [vmem:[%s1705_s0 + $0x80] ss:$16 sps:$4 sm:$0xff]   ;;  %v1373_v51 = vld [vmem:[%s1705_s0 + $0x88] ss:$16 sps:$4 sm:$0xff]   ;;  %v1374_v52 = vld [vmem:[%s1705_s0 + $0xa4] ss:$16 sps:$4 sm:$0xff]  }
  0x14   :  { %1181 = vmatpush3.bf16.msra.mxu0 %v1330_v18  ;;  %v1376_v53 = vld [vmem:[%s1705_s0 + $0xac] ss:$16 sps:$4 sm:$0xff]   ;;  %v1378_v54 = vld [vmem:[%s1705_s0 + $0xa0] ss:$16 sps:$4 sm:$0xff]   ;;  %v1379_v55 = vld [vmem:[%s1705_s0 + $0xa8] ss:$16 sps:$4 sm:$0xff]  }
  0x15   :  { %1251 = vmatpush3.bf16.msra.mxu1 %v1331_v19  ;;  %1182 = vmatprep.subr.bf16.mxu0 %v1332_v20  ;;  %v1380_v56 = vld [vmem:[%s1705_s0 + $0xc4] ss:$16 sps:$4 sm:$0xff]   ;;  %v1382_v57 = vld [vmem:[%s1705_s0 + $0xcc] ss:$16 sps:$4 sm:$0xff]   ;;  %v1384_v58 = vld [vmem:[%s1705_s0 + $0xc0] ss:$16 sps:$4 sm:$0xff]  }
  0x16   :  { %1252 = vmatprep.subr.bf16.mxu1 %v1333_v21  ;;  %v1385_v59 = vld [vmem:[%s1705_s0 + $0xc8] ss:$16 sps:$4 sm:$0xff]   ;;  %v1386_v60 = vld [vmem:[%s1705_s0 + $0xe4] ss:$16 sps:$4 sm:$0xff]   ;;  %v1388_v61 = vld [vmem:[%s1705_s0 + $0xec] ss:$16 sps:$4 sm:$0xff]  }
  0x17   :  { %v1390_v62 = vld [vmem:[%s1705_s0 + $0xe0] ss:$16 sps:$4 sm:$0xff]   ;;  %v1391_v63 = vld [vmem:[%s1705_s0 + $0xe8] ss:$16 sps:$4 sm:$0xff]   ;;  %v1392_v0 = vld [vmem:[%s1705_s0 + $0x104] ss:$16 sps:$4 sm:$0xff]  }
  0x18   :  { %1183 = vmatpush3.bf16.msra.mxu0 %v1334_v22  ;;  %v1394_v1 = vld [vmem:[%s1705_s0 + $0x10c] ss:$16 sps:$4 sm:$0xff]   ;;  %v1396_v2 = vld [vmem:[%s1705_s0 + $0x100] ss:$16 sps:$4 sm:$0xff]   ;;  %v1397_v3 = vld [vmem:[%s1705_s0 + $0x108] ss:$16 sps:$4 sm:$0xff]  }
  0x19   :  { %1253 = vmatpush3.bf16.msra.mxu1 %v1335_v23  ;;  %1184 = vmatprep.subr.bf16.mxu0 %v1336_v24  ;;  %v1630_v13 = vld [vmem:[%s1706_s2] ss:$0 sm:$0xff]  ;;  %v1156_v35 = vld [vmem:[%s1707_s3 + $0x8] sm:$0xff]  }
  0x1a   :  { %1254 = vmatprep.subr.bf16.mxu1 %v1337_v25  ;;  %v1076_v14 = vld [vmem:[%s1707_s3] sm:$0xff]  }
  0x1b   :  { %v1077_v20 = vunpack.c.l.bf16 %v1076_v14  ;;  %v1078_v22 = vunpack.c.h.bf16 %v1076_v14 }
  0x1c   :  { %1185 = vmatpush3.bf16.msra.mxu0 %v1338_v26 }
  0x1d   :  { %1255 = vmatpush3.bf16.msra.mxu1 %v1339_v27  ;;  %1186 = vmatprep.subr.bf16.mxu0 %v1340_v28 }
  0x1e   :  { %1256 = vmatprep.subr.bf16.mxu1 %v1341_v29 }
  0x20   :  { %1187 = vmatpush3.bf16.msra.mxu0 %v1342_v30 }
  0x21   :  { %1257 = vmatpush3.bf16.msra.mxu1 %v1343_v31 }
  0x23   :  { %563 = vmatmul.mubr.bf16.vlgmr.msra.gmra.mrb[0].mxu0 %v1344_v32 }
  0x24   :  { %668 = vmatmul.mubr.bf16.vlgmr.msra.gmra.mrb[0].mxu1 %v1347_v34  ;;  %570 = vmatprep.mubr.bf16.mxu0 %v1350_v36 }
  0x25   :  { %675 = vmatprep.mubr.bf16.mxu1 %v1352_v37 }
  0x2b   :  { %571 = vmatmul.mubr.bf16.gmra.mrb[4].mxu0 %v1354_v38 }
  0x2c   :  { %676 = vmatmul.mubr.bf16.gmra.mrb[4].mxu1 %v1355_v39  ;;  %578 = vmatprep.mubr.bf16.mxu0 %v1356_v40 }
  0x2d   :  { %683 = vmatprep.mubr.bf16.mxu1 %v1358_v41 }
  0x33   :  { %579 = vmatmul.mubr.bf16.gmra.mrb[8].mxu0 %v1360_v42  ;;  %v1081_v42 = vunpack.c.l.bf16 %v1156_v35 }
  0x34   :  { %684 = vmatmul.mubr.bf16.gmra.mrb[8].mxu1 %v1361_v43  ;;  %586 = vmatprep.mubr.bf16.mxu0 %v1362_v44  ;;  %v1082_v44 = vunpack.c.h.bf16 %v1156_v35 }
  0x35   :  { %691 = vmatprep.mubr.bf16.mxu1 %v1364_v45 }
  0x3b   :  { %587 = vmatmul.mubr.bf16.gmra.mrb[12].mxu0 %v1366_v46 }
  0x3c   :  { %692 = vmatmul.mubr.bf16.gmra.mrb[12].mxu1 %v1367_v47  ;;  %594 = vmatprep.mubr.bf16.mxu0 %v1368_v48 }
  0x3d   :  { %699 = vmatprep.mubr.bf16.mxu1 %v1370_v49 }
  0x43   :  { %595 = vmatmul.mubr.bf16.gmra.mrb[16].mxu0 %v1372_v50 }
  0x44   :  { %700 = vmatmul.mubr.bf16.gmra.mrb[16].mxu1 %v1373_v51  ;;  %602 = vmatprep.mubr.bf16.mxu0 %v1374_v52 }
  0x45   :  { %707 = vmatprep.mubr.bf16.mxu1 %v1376_v53 }
  0x4b   :  { %603 = vmatmul.mubr.bf16.gmra.mrb[20].mxu0 %v1378_v54 }
  0x4c   :  { %708 = vmatmul.mubr.bf16.gmra.mrb[20].mxu1 %v1379_v55  ;;  %610 = vmatprep.mubr.bf16.mxu0 %v1380_v56 }
  0x4d   :  { %715 = vmatprep.mubr.bf16.mxu1 %v1382_v57  ;;  %v1157_v57 = vld [vmem:[%s1707_s3 + $0x10] sm:$0xff]  }
  0x53   :  { %611 = vmatmul.mubr.bf16.gmra.mrb[24].mxu0 %v1384_v58 }
  0x54   :  { %716 = vmatmul.mubr.bf16.gmra.mrb[24].mxu1 %v1385_v59  ;;  %618 = vmatprep.mubr.bf16.mxu0 %v1386_v60 }
  0x55   :  { %723 = vmatprep.mubr.bf16.mxu1 %v1388_v61 }
  0x5b   :  { %619 = vmatmul.mubr.bf16.gmra.mrb[28].mxu0 %v1390_v62 }
  0x5c   :  { %724 = vmatmul.mubr.bf16.gmra.mrb[28].mxu1 %v1391_v63  ;;  %626 = vmatprep.mubr.bf16.mxu0 %v1392_v0  ;;  %v1085_v0 = vunpack.c.l.bf16 %v1157_v57 }
  0x5d   :  { %731 = vmatprep.mubr.bf16.mxu1 %v1394_v1 }
  0x63   :  { %627 = vmatmul.mubr.bf16.gmra.mrb[32].mxu0 %v1396_v2  ;;  %v1086_v2 = vunpack.c.h.bf16 %v1157_v57 }
  0x64   :  { %732 = vmatmul.mubr.bf16.gmra.mrb[32].mxu1 %v1397_v3 }
  0xf6   :  { %v1188_v4 = vpop.f32.mrb[0].mxu0 }
  0xf7   :  { %v1258_v5 = vpop.f32.mrb[0].mxu1  ;;  %v1189_v6 = vpop.f32.mrb[1].mxu0 }
  0xf8   :  { %v1190_v7 = vadd.f32 %v1189_v6, %v1188_v4  ;;  %v1259_v8 = vpop.f32.mrb[1].mxu1  ;;  %v1191_v9 = vpop.f32.mrb[2].mxu0 }
  0xf9   :  { %v1260_v10 = vadd.f32 %v1259_v8, %v1258_v5  ;;  %v1261_v11 = vpop.f32.mrb[2].mxu1  ;;  %v1192_v12 = vpop.f32.mrb[3].mxu0 }
  0xfa   :  { %v1193_v15 = vadd.f32 %v1192_v12, %v1191_v9  ;;  %v1262_v16 = vpop.f32.mrb[3].mxu1 }
  0xfb   :  { %v670_v17 = vadd.f32 %v1260_v10, %v1190_v7  ;;  %v1263_v18 = vadd.f32 %v1262_v16, %v1261_v11  ;;  %v1158_v16 = vld [vmem:[%s1707_s3 + $0x18] sm:$0xff]  }
  0xfd   :  { %v804_v19 = vadd.f32 %v1630_v13, %v670_v17  ;;  %v673_v21 = vadd.f32 %v1263_v18, %v1193_v15 }
  0xfe   :  { %v1194_v23 = vpop.f32.mrb[4].mxu0 }
  0xff   :  { %v805_v24 = vadd.f32 %v1630_v13, %v673_v21  ;;  %v1264_v25 = vpop.f32.mrb[4].mxu1  ;;  %v1195_v26 = vpop.f32.mrb[5].mxu0  ;;  %v858_v30 = vadd.f32 %v1077_v20, %v804_v19 }
 0x100   :  { %v1196_v27 = vadd.f32 %v1195_v26, %v1194_v23  ;;  %v1265_v28 = vpop.f32.mrb[5].mxu1  ;;  %v1197_v29 = vpop.f32.mrb[6].mxu0  ;;  %v1089_v23 = vunpack.c.l.bf16 %v1158_v16 }
 0x101   :  { %v859_v31 = vadd.f32 %v1078_v22, %v805_v24  ;;  %v1266_v32 = vadd.f32 %v1265_v28, %v1264_v25  ;;  %v1267_v33 = vpop.f32.mrb[6].mxu1  ;;  %v1198_v34 = vpop.f32.mrb[7].mxu0  ;;  %v1090_v25 = vunpack.c.h.bf16 %v1158_v16 }
 0x102   :  { %v1199_v36 = vadd.f32 %v1198_v34, %v1197_v29  ;;  %v1268_v37 = vpop.f32.mrb[7].mxu1 }
 0x103   :  { %v1114_v38 = vpack.c.bf16 %v859_v31, %v858_v30  ;;  %v678_v39 = vadd.f32 %v1266_v32, %v1196_v27  ;;  %v1269_v40 = vadd.f32 %v1268_v37, %v1267_v33 }
 0x105   :  { %1115 = vst [vmem:[%s1708_s4] sm:$0xff] %v1114_v38   ;;  %v806_v41 = vadd.f32 %v1630_v13, %v678_v39  ;;  %v681_v43 = vadd.f32 %v1269_v40, %v1199_v36  ;;  %v1159_v38 = vld [vmem:[%s1707_s3 + $0x20] sm:$0xff]  }
 0x106   :  { %v1200_v45 = vpop.f32.mrb[8].mxu0 }
 0x107   :  { %v807_v46 = vadd.f32 %v1630_v13, %v681_v43  ;;  %v1270_v47 = vpop.f32.mrb[8].mxu1  ;;  %v1201_v48 = vpop.f32.mrb[9].mxu0  ;;  %v860_v52 = vadd.f32 %v1081_v42, %v806_v41 }
 0x108   :  { %v1202_v49 = vadd.f32 %v1201_v48, %v1200_v45  ;;  %v1271_v50 = vpop.f32.mrb[9].mxu1  ;;  %v1203_v51 = vpop.f32.mrb[10].mxu0  ;;  %v1093_v45 = vunpack.c.l.bf16 %v1159_v38 }
 0x109   :  { %v861_v53 = vadd.f32 %v1082_v44, %v807_v46  ;;  %v1272_v54 = vadd.f32 %v1271_v50, %v1270_v47  ;;  %v1273_v55 = vpop.f32.mrb[10].mxu1  ;;  %v1204_v56 = vpop.f32.mrb[11].mxu0  ;;  %v1094_v47 = vunpack.c.h.bf16 %v1159_v38 }
 0x10a   :  { %v1205_v58 = vadd.f32 %v1204_v56, %v1203_v51  ;;  %v1274_v59 = vpop.f32.mrb[11].mxu1 }
 0x10b   :  { %v1119_v60 = vpack.c.bf16 %v861_v53, %v860_v52  ;;  %v686_v61 = vadd.f32 %v1272_v54, %v1202_v49  ;;  %v1275_v62 = vadd.f32 %v1274_v59, %v1273_v55 }
 0x10d   :  { %1164 = vst [vmem:[%s1708_s4 + $0x8] sm:$0xff] %v1119_v60   ;;  %v808_v63 = vadd.f32 %v1630_v13, %v686_v61  ;;  %v689_v1 = vadd.f32 %v1275_v62, %v1205_v58  ;;  %v1160_v60 = vld [vmem:[%s1707_s3 + $0x28] sm:$0xff]  }
 0x10e   :  { %v1206_v3 = vpop.f32.mrb[12].mxu0 }
 0x10f   :  { %v809_v4 = vadd.f32 %v1630_v13, %v689_v1  ;;  %v1276_v5 = vpop.f32.mrb[12].mxu1  ;;  %v1207_v6 = vpop.f32.mrb[13].mxu0  ;;  %v862_v10 = vadd.f32 %v1085_v0, %v808_v63 }
 0x110   :  { %v1208_v7 = vadd.f32 %v1207_v6, %v1206_v3  ;;  %v1277_v8 = vpop.f32.mrb[13].mxu1  ;;  %v1209_v9 = vpop.f32.mrb[14].mxu0  ;;  %v1097_v3 = vunpack.c.l.bf16 %v1160_v60 }
 0x111   :  { %v863_v11 = vadd.f32 %v1086_v2, %v809_v4  ;;  %v1278_v12 = vadd.f32 %v1277_v8, %v1276_v5  ;;  %v1279_v14 = vpop.f32.mrb[14].mxu1  ;;  %v1210_v15 = vpop.f32.mrb[15].mxu0  ;;  %v1098_v5 = vunpack.c.h.bf16 %v1160_v60 }
 0x112   :  { %v1211_v17 = vadd.f32 %v1210_v15, %v1209_v9  ;;  %v1280_v18 = vpop.f32.mrb[15].mxu1 }
 0x113   :  { %v1124_v19 = vpack.c.bf16 %v863_v11, %v862_v10  ;;  %v694_v20 = vadd.f32 %v1278_v12, %v1208_v7  ;;  %v1281_v21 = vadd.f32 %v1280_v18, %v1279_v14 }
 0x115   :  { %1165 = vst [vmem:[%s1708_s4 + $0x10] sm:$0xff] %v1124_v19   ;;  %v810_v22 = vadd.f32 %v1630_v13, %v694_v20  ;;  %v697_v24 = vadd.f32 %v1281_v21, %v1211_v17  ;;  %v1161_v19 = vld [vmem:[%s1707_s3 + $0x30] sm:$0xff]  }
 0x116   :  { %v1212_v26 = vpop.f32.mrb[16].mxu0 }
 0x117   :  { %v811_v27 = vadd.f32 %v1630_v13, %v697_v24  ;;  %v1282_v28 = vpop.f32.mrb[16].mxu1  ;;  %v1213_v29 = vpop.f32.mrb[17].mxu0  ;;  %v864_v33 = vadd.f32 %v1089_v23, %v810_v22 }
 0x118   :  { %v1214_v30 = vadd.f32 %v1213_v29, %v1212_v26  ;;  %v1283_v31 = vpop.f32.mrb[17].mxu1  ;;  %v1215_v32 = vpop.f32.mrb[18].mxu0  ;;  %v1101_v26 = vunpack.c.l.bf16 %v1161_v19 }
 0x119   :  { %v865_v34 = vadd.f32 %v1090_v25, %v811_v27  ;;  %v1284_v35 = vadd.f32 %v1283_v31, %v1282_v28  ;;  %v1285_v36 = vpop.f32.mrb[18].mxu1  ;;  %v1216_v37 = vpop.f32.mrb[19].mxu0  ;;  %v1102_v28 = vunpack.c.h.bf16 %v1161_v19 }
 0x11a   :  { %v1217_v39 = vadd.f32 %v1216_v37, %v1215_v32  ;;  %v1286_v40 = vpop.f32.mrb[19].mxu1 }
 0x11b   :  { %v1129_v41 = vpack.c.bf16 %v865_v34, %v864_v33  ;;  %v702_v42 = vadd.f32 %v1284_v35, %v1214_v30  ;;  %v1287_v43 = vadd.f32 %v1286_v40, %v1285_v36 }
 0x11d   :  { %1166 = vst [vmem:[%s1708_s4 + $0x18] sm:$0xff] %v1129_v41   ;;  %v812_v44 = vadd.f32 %v1630_v13, %v702_v42  ;;  %v705_v46 = vadd.f32 %v1287_v43, %v1217_v39  ;;  %v1162_v41 = vld [vmem:[%s1707_s3 + $0x38] sm:$0xff]  }
 0x11e   :  { %v1218_v48 = vpop.f32.mrb[20].mxu0 }
 0x11f   :  { %v813_v49 = vadd.f32 %v1630_v13, %v705_v46  ;;  %v1288_v50 = vpop.f32.mrb[20].mxu1  ;;  %v1219_v51 = vpop.f32.mrb[21].mxu0  ;;  %v866_v55 = vadd.f32 %v1093_v45, %v812_v44 }
 0x120   :  { %v1220_v52 = vadd.f32 %v1219_v51, %v1218_v48  ;;  %v1289_v53 = vpop.f32.mrb[21].mxu1  ;;  %v1221_v54 = vpop.f32.mrb[22].mxu0  ;;  %v1105_v48 = vunpack.c.l.bf16 %v1162_v41 }
 0x121   :  { %v867_v56 = vadd.f32 %v1094_v47, %v813_v49  ;;  %v1290_v57 = vadd.f32 %v1289_v53, %v1288_v50  ;;  %v1291_v58 = vpop.f32.mrb[22].mxu1  ;;  %v1222_v59 = vpop.f32.mrb[23].mxu0  ;;  %v1106_v50 = vunpack.c.h.bf16 %v1162_v41 }
 0x122   :  { %v1223_v61 = vadd.f32 %v1222_v59, %v1221_v54  ;;  %v1292_v62 = vpop.f32.mrb[23].mxu1 }
 0x123   :  { %v1134_v63 = vpack.c.bf16 %v867_v56, %v866_v55  ;;  %v710_v0 = vadd.f32 %v1290_v57, %v1220_v52  ;;  %v1293_v1 = vadd.f32 %v1292_v62, %v1291_v58  ;;  %v1163_v57 = vld [vmem:[%s1707_s3 + $0x40] sm:$0xff]  }
 0x125   :  { %1167 = vst [vmem:[%s1708_s4 + $0x20] sm:$0xff] %v1134_v63   ;;  %v814_v2 = vadd.f32 %v1630_v13, %v710_v0  ;;  %v713_v4 = vadd.f32 %v1293_v1, %v1223_v61 }
 0x126   :  { %v1224_v6 = vpop.f32.mrb[24].mxu0 }
 0x127   :  { %v815_v7 = vadd.f32 %v1630_v13, %v713_v4  ;;  %v1294_v8 = vpop.f32.mrb[24].mxu1  ;;  %v1225_v9 = vpop.f32.mrb[25].mxu0  ;;  %v868_v14 = vadd.f32 %v1097_v3, %v814_v2  ;;  %v1109_v4 = vunpack.c.l.bf16 %v1163_v57 }
 0x128   :  { %v1226_v10 = vadd.f32 %v1225_v9, %v1224_v6  ;;  %v1295_v11 = vpop.f32.mrb[25].mxu1  ;;  %v1227_v12 = vpop.f32.mrb[26].mxu0 }
 0x129   :  { %v869_v15 = vadd.f32 %v1098_v5, %v815_v7  ;;  %v1296_v16 = vadd.f32 %v1295_v11, %v1294_v8  ;;  %v1297_v17 = vpop.f32.mrb[26].mxu1  ;;  %v1228_v18 = vpop.f32.mrb[27].mxu0  ;;  %v1110_v8 = vunpack.c.h.bf16 %v1163_v57 }
 0x12a   :  { %v1229_v20 = vadd.f32 %v1228_v18, %v1227_v12  ;;  %v1298_v21 = vpop.f32.mrb[27].mxu1 }
 0x12b   :  { %v1139_v22 = vpack.c.bf16 %v869_v15, %v868_v14  ;;  %v718_v23 = vadd.f32 %v1296_v16, %v1226_v10  ;;  %v1299_v24 = vadd.f32 %v1298_v21, %v1297_v17 }
 0x12d   :  { %1168 = vst [vmem:[%s1708_s4 + $0x28] sm:$0xff] %v1139_v22   ;;  %v816_v25 = vadd.f32 %v1630_v13, %v718_v23  ;;  %v721_v27 = vadd.f32 %v1299_v24, %v1229_v20 }
 0x12e   :  { %v1230_v29 = vpop.f32.mrb[28].mxu0 }
 0x12f   :  { %v817_v30 = vadd.f32 %v1630_v13, %v721_v27  ;;  %v1300_v31 = vpop.f32.mrb[28].mxu1  ;;  %v1231_v32 = vpop.f32.mrb[29].mxu0  ;;  %v870_v36 = vadd.f32 %v1101_v26, %v816_v25 }
 0x130   :  { %v1232_v33 = vadd.f32 %v1231_v32, %v1230_v29  ;;  %v1301_v34 = vpop.f32.mrb[29].mxu1  ;;  %v1233_v35 = vpop.f32.mrb[30].mxu0 }
 0x131   :  { %v871_v37 = vadd.f32 %v1102_v28, %v817_v30  ;;  %v1302_v38 = vadd.f32 %v1301_v34, %v1300_v31  ;;  %v1303_v39 = vpop.f32.mrb[30].mxu1  ;;  %v1234_v40 = vpop.f32.mrb[31].mxu0 }
 0x132   :  { %v1235_v42 = vadd.f32 %v1234_v40, %v1233_v35  ;;  %v1304_v43 = vpop.f32.mrb[31].mxu1 }
 0x133   :  { %v1144_v44 = vpack.c.bf16 %v871_v37, %v870_v36  ;;  %v726_v45 = vadd.f32 %v1302_v38, %v1232_v33  ;;  %v1305_v46 = vadd.f32 %v1304_v43, %v1303_v39 }
 0x135   :  { %1169 = vst [vmem:[%s1708_s4 + $0x30] sm:$0xff] %v1144_v44   ;;  %v818_v47 = vadd.f32 %v1630_v13, %v726_v45  ;;  %v729_v49 = vadd.f32 %v1305_v46, %v1235_v42 }
 0x136   :  { %v1236_v51 = vpop.f32.mrb[32].mxu0 }
 0x137   :  { %v819_v52 = vadd.f32 %v1630_v13, %v729_v49  ;;  %v1306_v53 = vpop.f32.mrb[32].mxu1  ;;  %v1237_v54 = vpop.f32.mrb[33].mxu0  ;;  %v872_v59 = vadd.f32 %v1105_v48, %v818_v47 }
 0x138   :  { %v1238_v55 = vadd.f32 %v1237_v54, %v1236_v51  ;;  %v1307_v56 = vpop.f32.mrb[33].mxu1  ;;  %v1239_v58 = vpop.f32.mrb[34].mxu0 }
 0x139   :  { %v873_v60 = vadd.f32 %v1106_v50, %v819_v52  ;;  %v1308_v61 = vadd.f32 %v1307_v56, %v1306_v53  ;;  %v1309_v62 = vpop.f32.mrb[34].mxu1  ;;  %v1240_v63 = vpop.f32.mrb[35].mxu0 }
 0x13a   :  { %v1241_v0 = vadd.f32 %v1240_v63, %v1239_v58  ;;  %v1310_v1 = vpop.f32.mrb[35].mxu1 }
 0x13b   :  { %v1149_v2 = vpack.c.bf16 %v873_v60, %v872_v59  ;;  %v734_v3 = vadd.f32 %v1308_v61, %v1238_v55  ;;  %v1311_v5 = vadd.f32 %v1310_v1, %v1309_v62 }
 0x13d   :  { %1170 = vst [vmem:[%s1708_s4 + $0x38] sm:$0xff] %v1149_v2   ;;  %v820_v6 = vadd.f32 %v1630_v13, %v734_v3  ;;  %v737_v7 = vadd.f32 %v1311_v5, %v1241_v0 }
 0x13f   :  { %v874_v9 = vadd.f32 %v1109_v4, %v820_v6  ;;  %v821_v10 = vadd.f32 %v1630_v13, %v737_v7 }
 0x141   :  { %v875_v11 = vadd.f32 %v1110_v8, %v821_v10 }
 0x143   :  { %v1154_v12 = vpack.c.bf16 %v875_v11, %v874_v9 }
 0x145   :  { %1171 = vst [vmem:[%s1708_s4 + $0x40] sm:$0xff] %v1154_v12  }

// kernel: pdn_wrapper_forward.16
= control target key start
LH: loop header
LB: loop body
LE: loop exit
PB: predicated region body
PF: predicated region fallthrough
CT: control target
= control target key end

     0   :  { %s3353_s0 = inlined_call_operand.vmem [shape: bf16[144,128], index: 0, kind: input, shape index: {}]   ;;  %s3354_s3 = inlined_call_operand.vmem [shape: bf16[128,512], index: 3, kind: input, shape index: {}]   ;;  %s3355_s1 = inlined_call_operand.vmem [shape: f32[1,128], index: 1, kind: input, shape index: {}]   ;;  %s3356_s2 = inlined_call_operand.vmem [shape: f32[1,128], index: 2, kind: input, shape index: {}]   ;;  %s3357_s4 = inlined_call_operand.vmem [shape: f32[1,512], index: 4, kind: input, shape index: {}]   ;;  %s3358_s5 = inlined_call_operand.vmem [shape: bf16[144,512], index: 5, kind: output, shape index: {}]  }
   0x1   :  { %v2114_v0 = vld [vmem:[%s3353_s0] sm:$0xff]   ;;  %v2119_v1 = vld [vmem:[%s3353_s0 + $0x8] sm:$0xff]   ;;  %v2128_v6 = vld [vmem:[%s3353_s0 + $0x10] sm:$0xff]  }
   0x2   :  { %v1809_v2 = vunpack.c.l.bf16 %v2114_v0  ;;  %v1813_v3 = vunpack.c.l.bf16 %v2119_v1  ;;  %v1810_v4 = vunpack.c.h.bf16 %v2114_v0  ;;  %v1814_v5 = vunpack.c.h.bf16 %v2119_v1  ;;  %v2139_v9 = vld [vmem:[%s3353_s0 + $0x18] sm:$0xff]   ;;  %v2150_v12 = vld [vmem:[%s3353_s0 + $0x20] sm:$0xff]   ;;  %v2161_v15 = vld [vmem:[%s3353_s0 + $0x28] sm:$0xff]  }
   0x3   :  { %v1817_v7 = vunpack.c.l.bf16 %v2128_v6  ;;  %v1818_v8 = vunpack.c.h.bf16 %v2128_v6  ;;  %v1821_v10 = vunpack.c.l.bf16 %v2139_v9  ;;  %v1822_v11 = vunpack.c.h.bf16 %v2139_v9  ;;  %v2172_v18 = vld [vmem:[%s3353_s0 + $0x30] sm:$0xff]   ;;  %v2183_v21 = vld [vmem:[%s3353_s0 + $0x38] sm:$0xff]   ;;  %v2194_v24 = vld [vmem:[%s3353_s0 + $0x40] sm:$0xff]  }
   0x4   :  { %61 = vadd.xlane.f32.xlu0 %v1809_v2  ;;  %65 = vadd.xlane.f32.xlu1 %v1813_v3  ;;  %v1825_v13 = vunpack.c.l.bf16 %v2150_v12  ;;  %v1826_v14 = vunpack.c.h.bf16 %v2150_v12  ;;  %v1829_v16 = vunpack.c.l.bf16 %v2161_v15  ;;  %v1830_v17 = vunpack.c.h.bf16 %v2161_v15  ;;  %v1852_v27 = vld [vmem:[%s3354_s3 + $0x4] ss:$16 sps:$4 sm:$0xff]   ;;  %v1854_v28 = vld [vmem:[%s3354_s3 + $0xc] ss:$16 sps:$4 sm:$0xff]   ;;  %v1856_v29 = vld [vmem:[%s3354_s3] ss:$16 sps:$4 sm:$0xff]  }
   0x5   :  { %v1833_v19 = vunpack.c.l.bf16 %v2172_v18  ;;  %v1834_v20 = vunpack.c.h.bf16 %v2172_v18  ;;  %v1837_v22 = vunpack.c.l.bf16 %v2183_v21  ;;  %v1838_v23 = vunpack.c.h.bf16 %v2183_v21  ;;  %551 = vmatprep.subr.bf16.mxu0 %v1852_v27  ;;  %v1857_v30 = vld [vmem:[%s3354_s3 + $0x8] ss:$16 sps:$4 sm:$0xff]   ;;  %674 = vmatprep.subr.bf16.mxu1 %v1854_v28  ;;  %v1858_v31 = vld [vmem:[%s3354_s3 + $0x24] ss:$16 sps:$4 sm:$0xff]   ;;  %v1860_v32 = vld [vmem:[%s3354_s3 + $0x2c] ss:$16 sps:$4 sm:$0xff]  }
   0x6   :  { %v1841_v25 = vunpack.c.l.bf16 %v2194_v24  ;;  %v1842_v26 = vunpack.c.h.bf16 %v2194_v24  ;;  %552 = vmatpush1.bf16.msra.mxu0 %v1856_v29  ;;  %675 = vmatpush1.bf16.msra.mxu1 %v1857_v30  ;;  %v1866_v27 = vld [vmem:[%s3354_s3 + $0x4c] ss:$16 sps:$4 sm:$0xff]   ;;  %v1875_v18 = vld [vmem:[%s3354_s3 + $0x68] ss:$16 sps:$4 sm:$0xff]  }
   0x7   :  { %553 = vmatprep.subr.bf16.mxu0 %v1858_v31  ;;  %676 = vmatprep.subr.bf16.mxu1 %v1860_v32  ;;  %v1881_v21 = vld [vmem:[%s3354_s3 + $0x88] ss:$16 sps:$4 sm:$0xff]  }
   0x8   :  { %63 = vadd.xlane.f32.xlu0 %v1810_v4  ;;  %67 = vadd.xlane.f32.xlu1 %v1814_v5  ;;  %v1887_v24 = vld [vmem:[%s3354_s3 + $0xa8] ss:$16 sps:$4 sm:$0xff]  }
   0xc   :  { %69 = vadd.xlane.f32.xlu0 %v1817_v7  ;;  %71 = vadd.xlane.f32.xlu1 %v1818_v8 }
  0x10   :  { %73 = vadd.xlane.f32.xlu0 %v1821_v10  ;;  %75 = vadd.xlane.f32.xlu1 %v1822_v11 }
  0x14   :  { %77 = vadd.xlane.f32.xlu0 %v1825_v13  ;;  %79 = vadd.xlane.f32.xlu1 %v1826_v14 }
  0x18   :  { %81 = vadd.xlane.f32.xlu0 %v1829_v16  ;;  %83 = vadd.xlane.f32.xlu1 %v1830_v17 }
  0x1c   :  { %85 = vadd.xlane.f32.xlu0 %v1833_v19  ;;  %87 = vadd.xlane.f32.xlu1 %v1834_v20 }
  0x20   :  { %89 = vadd.xlane.f32.xlu0 %v1837_v22  ;;  %91 = vadd.xlane.f32.xlu1 %v1838_v23 }
  0x24   :  { %93 = vadd.xlane.f32.xlu0 %v1841_v25  ;;  %95 = vadd.xlane.f32.xlu1 %v1842_v26 }
  0x91   :  { %v62_v33 = vpop.xlane.xlu0 %61  ;;  %v66_v34 = vpop.xlane.xlu1 %65 }
  0x92   :  { %v98_v35 = vmul.f32 0.0078125, %v62_v33  ;;  %v100_v36 = vmul.f32 0.0078125, %v66_v34  ;;  %v1868_v33 = vld [vmem:[%s3354_s3 + $0x40] ss:$16 sps:$4 sm:$0xff]  }
  0x94   :  { %v2224_v37 = vsub.f32 %v1809_v2, %v98_v35  ;;  %v2226_v38 = vsub.f32 %v1813_v3, %v100_v36 }
  0x95   :  { %v64_v39 = vpop.xlane.xlu0 %63  ;;  %v68_v40 = vpop.xlane.xlu1 %67 }
  0x96   :  { %v99_v41 = vmul.f32 0.0078125, %v64_v39  ;;  %v134_v42 = vmul.f32 %v2224_v37, %v2224_v37  ;;  %v101_v43 = vmul.f32 0.0078125, %v68_v40  ;;  %v136_v46 = vmul.f32 %v2226_v38, %v2226_v38  ;;  %v1870_v40 = vld [vmem:[%s3354_s3 + $0x64] ss:$16 sps:$4 sm:$0xff]  }
  0x98   :  { %v2232_v44 = vsub.f32 %v1810_v4, %v99_v41  ;;  %152 = vadd.xlane.f32.xlu0 %v134_v42  ;;  %v2236_v45 = vsub.f32 %v1814_v5, %v101_v43  ;;  %v1872_v41 = vld [vmem:[%s3354_s3 + $0x6c] ss:$16 sps:$4 sm:$0xff]   ;;  %v1874_v43 = vld [vmem:[%s3354_s3 + $0x60] ss:$16 sps:$4 sm:$0xff]  }
  0x99   :  { %v70_v47 = vpop.xlane.xlu0 %69  ;;  %v72_v48 = vpop.xlane.xlu1 %71 }
  0x9a   :  { %v102_v49 = vmul.f32 0.0078125, %v70_v47  ;;  %v135_v50 = vmul.f32 %v2232_v44, %v2232_v44  ;;  %v103_v51 = vmul.f32 0.0078125, %v72_v48  ;;  %v137_v54 = vmul.f32 %v2236_v45, %v2236_v45 }
  0x9c   :  { %v2244_v52 = vsub.f32 %v1817_v7, %v102_v49  ;;  %156 = vadd.xlane.f32.xlu0 %v136_v46  ;;  %154 = vadd.xlane.f32.xlu1 %v135_v50  ;;  %v2248_v53 = vsub.f32 %v1818_v8, %v103_v51  ;;  %v1862_v7 = vld [vmem:[%s3354_s3 + $0x20] ss:$16 sps:$4 sm:$0xff]   ;;  %v1863_v8 = vld [vmem:[%s3354_s3 + $0x28] ss:$16 sps:$4 sm:$0xff]   ;;  %v1876_v51 = vld [vmem:[%s3354_s3 + $0x84] ss:$16 sps:$4 sm:$0xff]  }
  0x9d   :  { %v74_v55 = vpop.xlane.xlu0 %73  ;;  %v76_v56 = vpop.xlane.xlu1 %75  ;;  %554 = vmatpush1.bf16.msra.mxu0 %v1862_v7  ;;  %677 = vmatpush1.bf16.msra.mxu1 %v1863_v8  ;;  %v1892_v7 = vld [vmem:[%s3354_s3 + $0xc0] ss:$16 sps:$4 sm:$0xff]   ;;  %v1893_v8 = vld [vmem:[%s3354_s3 + $0xc8] ss:$16 sps:$4 sm:$0xff]  }
  0x9e   :  { %v104_v57 = vmul.f32 0.0078125, %v74_v55  ;;  %v138_v58 = vmul.f32 %v2244_v52, %v2244_v52  ;;  %v105_v59 = vmul.f32 0.0078125, %v76_v56  ;;  %v139_v62 = vmul.f32 %v2248_v53, %v2248_v53  ;;  %678 = vmatprep.subr.bf16.mxu1 %v1866_v27  ;;  %v1880_v56 = vld [vmem:[%s3354_s3 + $0x80] ss:$16 sps:$4 sm:$0xff]  }
  0xa0   :  { %v2256_v60 = vsub.f32 %v1821_v10, %v104_v57  ;;  %158 = vadd.xlane.f32.xlu1 %v137_v54  ;;  %160 = vadd.xlane.f32.xlu0 %v138_v58  ;;  %v2260_v61 = vsub.f32 %v1822_v11, %v105_v59  ;;  %v1878_v54 = vld [vmem:[%s3354_s3 + $0x8c] ss:$16 sps:$4 sm:$0xff]  }
  0xa1   :  { %v78_v63 = vpop.xlane.xlu0 %77  ;;  %v80_v0 = vpop.xlane.xlu1 %79 }
  0xa2   :  { %v106_v1 = vmul.f32 0.0078125, %v78_v63  ;;  %v140_v2 = vmul.f32 %v2256_v60, %v2256_v60  ;;  %v107_v3 = vmul.f32 0.0078125, %v80_v0  ;;  %v141_v6 = vmul.f32 %v2260_v61, %v2260_v61  ;;  %v1882_v0 = vld [vmem:[%s3354_s3 + $0xa4] ss:$16 sps:$4 sm:$0xff]  }
  0xa4   :  { %v2268_v4 = vsub.f32 %v1825_v13, %v106_v1  ;;  %162 = vadd.xlane.f32.xlu1 %v139_v62  ;;  %164 = vadd.xlane.f32.xlu0 %v140_v2  ;;  %v2272_v5 = vsub.f32 %v1826_v14, %v107_v3  ;;  %v1864_v14 = vld [vmem:[%s3354_s3 + $0x44] ss:$16 sps:$4 sm:$0xff]   ;;  %v1884_v1 = vld [vmem:[%s3354_s3 + $0xac] ss:$16 sps:$4 sm:$0xff]  }
  0xa5   :  { %v82_v9 = vpop.xlane.xlu0 %81  ;;  %v84_v10 = vpop.xlane.xlu1 %83  ;;  %555 = vmatprep.subr.bf16.mxu0 %v1864_v14  ;;  %v1888_v3 = vld [vmem:[%s3354_s3 + $0xc4] ss:$16 sps:$4 sm:$0xff]  }
  0xa6   :  { %v108_v11 = vmul.f32 0.0078125, %v82_v9  ;;  %v142_v13 = vmul.f32 %v2268_v4, %v2268_v4  ;;  %v109_v12 = vmul.f32 0.0078125, %v84_v10  ;;  %v143_v30 = vmul.f32 %v2272_v5, %v2272_v5  ;;  %556 = vmatpush1.bf16.msra.mxu0 %v1868_v33  ;;  %v1894_v9 = vld [vmem:[%s3354_s3 + $0xe4] ss:$16 sps:$4 sm:$0xff]   ;;  %v1896_v10 = vld [vmem:[%s3354_s3 + $0xec] ss:$16 sps:$4 sm:$0xff]  }
  0xa7   :  { %557 = vmatprep.subr.bf16.mxu0 %v1870_v40 }
  0xa8   :  { %v2292_v28 = vsub.f32 %v1829_v16, %v108_v11  ;;  %166 = vadd.xlane.f32.xlu1 %v141_v6  ;;  %168 = vadd.xlane.f32.xlu0 %v142_v13  ;;  %v2296_v29 = vsub.f32 %v1830_v17, %v109_v12  ;;  %v1869_v16 = vld [vmem:[%s3354_s3 + $0x48] ss:$16 sps:$4 sm:$0xff]   ;;  %v1890_v6 = vld [vmem:[%s3354_s3 + $0xcc] ss:$16 sps:$4 sm:$0xff]   ;;  %v1898_v11 = vld [vmem:[%s3354_s3 + $0xe0] ss:$16 sps:$4 sm:$0xff]  }
  0xa9   :  { %v86_v31 = vpop.xlane.xlu0 %85  ;;  %v88_v32 = vpop.xlane.xlu1 %87  ;;  %679 = vmatpush1.bf16.msra.mxu1 %v1869_v16  ;;  %v1899_v13 = vld [vmem:[%s3354_s3 + $0xe8] ss:$16 sps:$4 sm:$0xff]   ;;  %v2080_v12 = vmov 0  }
  0xaa   :  { %v110_v34 = vmul.f32 0.0078125, %v86_v31  ;;  %v144_v15 = vmul.f32 %v2292_v28, %v2292_v28  ;;  %v111_v17 = vmul.f32 0.0078125, %v88_v32  ;;  %v145_v39 = vmul.f32 %v2296_v29, %v2296_v29  ;;  %680 = vmatprep.subr.bf16.mxu1 %v1872_v41  ;;  %558 = vmatpush1.bf16.msra.mxu0 %v1874_v43 }
  0xab   :  { %559 = vmatprep.subr.bf16.mxu0 %v1876_v51  ;;  %583 = vmatprep.mubr.bf16.mxu0 %v2080_v12 }
  0xac   :  { %v2310_v35 = vsub.f32 %v1833_v19, %v110_v34  ;;  %170 = vadd.xlane.f32.xlu1 %v143_v30  ;;  %172 = vadd.xlane.f32.xlu0 %v144_v15  ;;  %v2314_v36 = vsub.f32 %v1834_v20, %v111_v17 }
  0xad   :  { %v90_v42 = vpop.xlane.xlu0 %89  ;;  %v92_v19 = vpop.xlane.xlu1 %91  ;;  %681 = vmatpush1.bf16.msra.mxu1 %v1875_v18  ;;  %706 = vmatprep.mubr.bf16.mxu1 %v2080_v12 }
  0xae   :  { %v112_v20 = vmul.f32 0.0078125, %v90_v42  ;;  %v146_v46 = vmul.f32 %v2310_v35, %v2310_v35  ;;  %v113_v47 = vmul.f32 0.0078125, %v92_v19  ;;  %v147_v50 = vmul.f32 %v2314_v36, %v2314_v36  ;;  %682 = vmatprep.subr.bf16.mxu1 %v1878_v54  ;;  %560 = vmatpush1.bf16.msra.mxu0 %v1880_v56 }
  0xaf   :  { %561 = vmatprep.subr.bf16.mxu0 %v1882_v0 }
  0xb0   :  { %v2334_v48 = vsub.f32 %v1837_v22, %v112_v20  ;;  %174 = vadd.xlane.f32.xlu1 %v145_v39  ;;  %176 = vadd.xlane.f32.xlu0 %v146_v46  ;;  %v2338_v49 = vsub.f32 %v1838_v23, %v113_v47 }
  0xb1   :  { %v94_v55 = vpop.xlane.xlu0 %93  ;;  %v96_v22 = vpop.xlane.xlu1 %95  ;;  %683 = vmatpush1.bf16.msra.mxu1 %v1881_v21 }
  0xb2   :  { %v114_v23 = vmul.f32 0.0078125, %v94_v55  ;;  %v148_v57 = vmul.f32 %v2334_v48, %v2334_v48  ;;  %v115_v58 = vmul.f32 0.0078125, %v96_v22  ;;  %v149_v63 = vmul.f32 %v2338_v49, %v2338_v49  ;;  %684 = vmatprep.subr.bf16.mxu1 %v1884_v1  ;;  %v2412_v22 = vld [vmem:[%s3355_s1] ss:$0 sm:$0xff] }
  0xb4   :  { %v2358_v59 = vsub.f32 %v1841_v25, %v114_v23  ;;  %178 = vadd.xlane.f32.xlu1 %v147_v50  ;;  %180 = vadd.xlane.f32.xlu0 %v148_v57  ;;  %v2362_v62 = vsub.f32 %v1842_v26, %v115_v58  ;;  %v1886_v25 = vld [vmem:[%s3354_s3 + $0xa0] ss:$16 sps:$4 sm:$0xff]  }
  0xb5   :  { %562 = vmatpush1.bf16.msra.mxu0 %v1886_v25  ;;  %685 = vmatpush1.bf16.msra.mxu1 %v1887_v24 }
  0xb6   :  { %v150_v26 = vmul.f32 %v2358_v59, %v2358_v59  ;;  %v151_v2 = vmul.f32 %v2362_v62, %v2362_v62  ;;  %563 = vmatprep.subr.bf16.mxu0 %v1888_v3  ;;  %686 = vmatprep.subr.bf16.mxu1 %v1890_v6 }
  0xb8   :  { %182 = vadd.xlane.f32.xlu1 %v149_v63  ;;  %184 = vadd.xlane.f32.xlu0 %v150_v26 }
  0xb9   :  { %564 = vmatpush1.bf16.msra.mxu0 %v1892_v7  ;;  %687 = vmatpush1.bf16.msra.mxu1 %v1893_v8 }
  0xba   :  { %565 = vmatprep.subr.bf16.mxu0 %v1894_v9  ;;  %688 = vmatprep.subr.bf16.mxu1 %v1896_v10 }
  0xbc   :  { %186 = vadd.xlane.f32.xlu1 %v151_v2 }
  0xbd   :  { %566 = vmatpush1.bf16.msra.mxu0 %v1898_v11  ;;  %689 = vmatpush1.bf16.msra.mxu1 %v1899_v13 }
 0x125   :  { %v153_v14 = vpop.xlane.xlu0 %152 }
 0x126   :  { %v188_v27 = vmul.f32 0.0078125, %v153_v14 }
 0x128   :  { %v206_v30 = vadd.f32 1e-06, %v188_v27 }
 0x129   :  { %v155_v31 = vpop.xlane.xlu1 %154  ;;  %v157_v32 = vpop.xlane.xlu0 %156 }
 0x12a   :  { %1900 = vrsqrt.f32 %v206_v30  ;;  %v189_v33 = vmul.f32 0.0078125, %v155_v31  ;;  %v190_v16 = vmul.f32 0.0078125, %v157_v32 }
 0x12c   :  { %v207_v34 = vadd.f32 1e-06, %v189_v33  ;;  %v208_v15 = vadd.f32 1e-06, %v190_v16 }
 0x12d   :  { %v159_v17 = vpop.xlane.xlu1 %158  ;;  %v161_v39 = vpop.xlane.xlu0 %160 }
 0x12e   :  { %1902 = vrsqrt.f32 %v207_v34  ;;  %v191_v40 = vmul.f32 0.0078125, %v159_v17  ;;  %v192_v42 = vmul.f32 0.0078125, %v161_v39 }
 0x12f   :  { %1904 = vrsqrt.f32 %v208_v15 }
 0x130   :  { %v209_v41 = vadd.f32 1e-06, %v191_v40  ;;  %v210_v46 = vadd.f32 1e-06, %v192_v42 }
 0x131   :  { %v163_v19 = vpop.xlane.xlu1 %162  ;;  %v165_v43 = vpop.xlane.xlu0 %164 }
 0x132   :  { %1906 = vrsqrt.f32 %v209_v41  ;;  %v193_v18 = vmul.f32 0.0078125, %v163_v19  ;;  %v194_v21 = vmul.f32 0.0078125, %v165_v43 }
 0x134   :  { %v1901_v20 = vpop.eup %1900  ;;  %v211_v47 = vadd.f32 1e-06, %v193_v18  ;;  %v212_v26 = vadd.f32 1e-06, %v194_v21 }
 0x135   :  { %v167_v50 = vpop.xlane.xlu1 %166  ;;  %v169_v51 = vpop.xlane.xlu0 %168  ;;  %v242_v54 = vmul.f32 %v1901_v20, %v2224_v37  ;;  %v2419_v37 = vld [vmem:[%s3356_s2] ss:$0 sm:$0xff] }
 0x136   :  { %1908 = vrsqrt.f32 %v211_v47  ;;  %v195_v55 = vmul.f32 0.0078125, %v167_v50  ;;  %v196_v14 = vmul.f32 0.0078125, %v169_v51 }
 0x137   :  { %1910 = vrsqrt.f32 %v210_v46  ;;  %v267_v63 = vmul.f32 %v2412_v22, %v242_v54 }
 0x138   :  { %v1903_v56 = vpop.eup %1902  ;;  %v213_v1 = vadd.f32 1e-06, %v195_v55  ;;  %v214_v16 = vadd.f32 1e-06, %v196_v14 }
 0x139   :  { %v171_v23 = vpop.xlane.xlu1 %170  ;;  %v173_v57 = vpop.xlane.xlu0 %172  ;;  %v243_v58 = vmul.f32 %v1903_v56, %v2232_v44  ;;  %v292_v6 = vadd.f32 %v2419_v37, %v267_v63 }
 0x13a   :  { %v1905_v0 = vpop.eup %1904  ;;  %1912 = vrsqrt.f32 %v213_v1  ;;  %v197_v9 = vmul.f32 0.0078125, %v171_v23  ;;  %v198_v18 = vmul.f32 0.0078125, %v173_v57 }
 0x13b   :  { %v268_v25 = vmul.f32 %v2412_v22, %v243_v58  ;;  %v244_v44 = vmul.f32 %v1905_v0, %v2226_v38  ;;  %1914 = vrsqrt.f32 %v212_v26 }
 0x13c   :  { %v1907_v24 = vpop.eup %1906  ;;  %v215_v33 = vadd.f32 1e-06, %v197_v9  ;;  %v216_v55 = vadd.f32 1e-06, %v198_v18 }
 0x13d   :  { %v175_v2 = vpop.xlane.xlu1 %174  ;;  %v177_v3 = vpop.xlane.xlu0 %176  ;;  %v293_v7 = vadd.f32 %v2419_v37, %v268_v25  ;;  %v245_v8 = vmul.f32 %v1907_v24, %v2236_v45  ;;  %v269_v31 = vmul.f32 %v2412_v22, %v244_v44 }
 0x13e   :  { %v199_v34 = vmul.f32 0.0078125, %v175_v2  ;;  %1916 = vrsqrt.f32 %v215_v33  ;;  %v200_v1 = vmul.f32 0.0078125, %v177_v3 }
 0x13f   :  { %v310_v10 = vpack.c.bf16 %v293_v7, %v292_v6  ;;  %v270_v11 = vmul.f32 %v2412_v22, %v245_v8  ;;  %v294_v39 = vadd.f32 %v2419_v37, %v269_v31  ;;  %1918 = vrsqrt.f32 %v214_v16 }
 0x140   :  { %v1909_v13 = vpop.eup %1908  ;;  %v217_v46 = vadd.f32 1e-06, %v199_v34  ;;  %v218_v2 = vadd.f32 1e-06, %v200_v1 }
 0x141   :  { %v179_v27 = vpop.xlane.xlu1 %178  ;;  %584 = vmatmul.mubr.bf16.vlgmr.msra.gmra.mrb[0].mxu0 %v310_v10  ;;  %707 = vmatmul.mubr.bf16.vlgmr.msra.gmra.mrb[0].mxu1 %v310_v10  ;;  %v2427_v30 = vpop.xlane.xlu0 %180  ;;  %v295_v38 = vadd.f32 %v2419_v37, %v270_v11  ;;  %v247_v45 = vmul.f32 %v1909_v13, %v2248_v53 }
 0x142   :  { %v1911_v32 = vpop.eup %1910  ;;  %593 = vmatprep.mubr.bf16.mxu0 %v2080_v12  ;;  %716 = vmatprep.mubr.bf16.mxu1 %v2080_v12  ;;  %v201_v57 = vmul.f32 0.0078125, %v179_v27  ;;  %v202_v14 = vmul.f32 0.0078125, %v2427_v30 }
 0x143   :  { %v246_v40 = vmul.f32 %v1911_v32, %v2244_v52  ;;  %v311_v42 = vpack.c.bf16 %v295_v38, %v294_v39  ;;  %v272_v19 = vmul.f32 %v2412_v22, %v247_v45 }
 0x144   :  { %v1913_v43 = vpop.eup %1912  ;;  %v219_v24 = vadd.f32 1e-06, %v201_v57  ;;  %v220_v45 = vadd.f32 1e-06, %v202_v14 }
 0x145   :  { %v183_v15 = vpop.xlane.xlu1 %182  ;;  %v185_v17 = vpop.xlane.xlu0 %184  ;;  %v271_v53 = vmul.f32 %v2412_v22, %v246_v40  ;;  %v297_v52 = vadd.f32 %v2419_v37, %v272_v19  ;;  %v249_v54 = vmul.f32 %v1913_v43, %v2260_v61 }
 0x146   :  { %v204_v41 = vmul.f32 0.0078125, %v185_v17  ;;  %v1915_v50 = vpop.eup %1914  ;;  %v203_v44 = vmul.f32 0.0078125, %v183_v15 }
 0x147   :  { %v296_v21 = vadd.f32 %v2419_v37, %v271_v53  ;;  %v248_v23 = vmul.f32 %v1915_v50, %v2256_v60  ;;  %v274_v63 = vmul.f32 %v2412_v22, %v249_v54 }
 0x148   :  { %v222_v20 = vadd.f32 1e-06, %v204_v41  ;;  %v1917_v0 = vpop.eup %1916  ;;  %v221_v32 = vadd.f32 1e-06, %v203_v44 }
 0x149   :  { %v187_v47 = vpop.xlane.xlu1 %186  ;;  %594 = vmatmul.mubr.bf16.gmra.mrb[4].mxu0 %v311_v42  ;;  %717 = vmatmul.mubr.bf16.gmra.mrb[4].mxu1 %v311_v42  ;;  %v312_v58 = vpack.c.bf16 %v297_v52, %v296_v21  ;;  %v273_v25 = vmul.f32 %v2412_v22, %v248_v23  ;;  %v1919_v61 = vpop.eup %1918  ;;  %v299_v60 = vadd.f32 %v2419_v37, %v274_v63 }
 0x14a   :  { %v205_v51 = vmul.f32 0.0078125, %v187_v47  ;;  %603 = vmatprep.mubr.bf16.mxu0 %v2080_v12  ;;  %726 = vmatprep.mubr.bf16.mxu1 %v2080_v12  ;;  %1920 = vrsqrt.f32 %v222_v20  ;;  %v251_v26 = vmul.f32 %v1917_v0, %v2272_v5  ;;  %v250_v3 = vmul.f32 %v1919_v61, %v2268_v4 }
 0x14b   :  { %1922 = vrsqrt.f32 %v217_v46  ;;  %v298_v7 = vadd.f32 %v2419_v37, %v273_v25 }
 0x14c   :  { %v223_v56 = vadd.f32 1e-06, %v205_v51  ;;  %v276_v11 = vmul.f32 %v2412_v22, %v251_v26  ;;  %v275_v27 = vmul.f32 %v2412_v22, %v250_v3 }
 0x14d   :  { %v313_v10 = vpack.c.bf16 %v299_v60, %v298_v7 }
 0x14e   :  { %1924 = vrsqrt.f32 %v223_v56  ;;  %v301_v33 = vadd.f32 %v2419_v37, %v276_v11  ;;  %v300_v16 = vadd.f32 %v2419_v37, %v275_v27 }
 0x14f   :  { %1926 = vrsqrt.f32 %v216_v55 }
 0x150   :  { %1928 = vrsqrt.f32 %v219_v24  ;;  %v314_v15 = vpack.c.bf16 %v301_v33, %v300_v16 }
 0x151   :  { %604 = vmatmul.mubr.bf16.gmra.mrb[8].mxu0 %v312_v58  ;;  %727 = vmatmul.mubr.bf16.gmra.mrb[8].mxu1 %v312_v58  ;;  %1930 = vrsqrt.f32 %v218_v2  ;;  %v369_v58 = vld [vmem:[%s3357_s4] sm:$0xf] }
 0x152   :  { %613 = vmatprep.mubr.bf16.mxu0 %v2080_v12  ;;  %736 = vmatprep.mubr.bf16.mxu1 %v2080_v12  ;;  %1932 = vrsqrt.f32 %v221_v32 }
 0x153   :  { %1934 = vrsqrt.f32 %v220_v45 }
 0x154   :  { %v1921_v6 = vpop.eup %1920 }
 0x155   :  { %v258_v8 = vmul.f32 %v1921_v6, %v2358_v59  ;;  %v1923_v9 = vpop.eup %1922 }
 0x156   :  { %v253_v30 = vmul.f32 %v1923_v9, %v2296_v29 }
 0x157   :  { %v283_v5 = vmul.f32 %v2412_v22, %v258_v8 }
 0x158   :  { %v1925_v13 = vpop.eup %1924  ;;  %v278_v17 = vmul.f32 %v2412_v22, %v253_v30 }
 0x159   :  { %614 = vmatmul.mubr.bf16.gmra.mrb[12].mxu0 %v313_v10  ;;  %737 = vmatmul.mubr.bf16.gmra.mrb[12].mxu1 %v313_v10  ;;  %v259_v4 = vmul.f32 %v1925_v13, %v2362_v62  ;;  %v1927_v31 = vpop.eup %1926  ;;  %v308_v59 = vadd.f32 %v2419_v37, %v283_v5 }
 0x15a   :  { %623 = vmatprep.mubr.bf16.mxu0 %v2080_v12  ;;  %746 = vmatprep.mubr.bf16.mxu1 %v2080_v12  ;;  %v252_v34 = vmul.f32 %v1927_v31, %v2292_v28  ;;  %v1929_v40 = vpop.eup %1928  ;;  %v303_v28 = vadd.f32 %v2419_v37, %v278_v17 }
 0x15b   :  { %v284_v38 = vmul.f32 %v2412_v22, %v259_v4  ;;  %v1931_v41 = vpop.eup %1930  ;;  %v255_v42 = vmul.f32 %v1929_v40, %v2314_v36 }
 0x15c   :  { %v277_v29 = vmul.f32 %v2412_v22, %v252_v34  ;;  %v254_v43 = vmul.f32 %v1931_v41, %v2310_v35  ;;  %v1933_v46 = vpop.eup %1932 }
 0x15d   :  { %v309_v62 = vadd.f32 %v2419_v37, %v284_v38  ;;  %v280_v20 = vmul.f32 %v2412_v22, %v255_v42  ;;  %v1935_v53 = vpop.eup %1934  ;;  %v257_v36 = vmul.f32 %v1933_v46, %v2338_v49 }
 0x15e   :  { %v302_v19 = vadd.f32 %v2419_v37, %v277_v29  ;;  %v279_v47 = vmul.f32 %v2412_v22, %v254_v43  ;;  %v256_v35 = vmul.f32 %v1935_v53, %v2334_v48  ;;  %v371_v48 = vlaneseq }
 0x15f   :  { %v318_v39 = vpack.c.bf16 %v309_v62, %v308_v59  ;;  %v305_v50 = vadd.f32 %v2419_v37, %v280_v20  ;;  %v282_v54 = vmul.f32 %v2412_v22, %v257_v36 }
 0x160   :  { %v315_v18 = vpack.c.bf16 %v303_v28, %v302_v19  ;;  %v304_v51 = vadd.f32 %v2419_v37, %v279_v47  ;;  %v281_v55 = vmul.f32 %v2412_v22, %v256_v35  ;;  %v372_v23 = vshrl.u32 %v371_v48, 7 }
 0x161   :  { %624 = vmatmul.mubr.bf16.gmra.mrb[16].mxu0 %v314_v15  ;;  %747 = vmatmul.mubr.bf16.gmra.mrb[16].mxu1 %v314_v15  ;;  %v307_v56 = vadd.f32 %v2419_v37, %v282_v54 }
 0x162   :  { %633 = vmatprep.mubr.bf16.mxu0 %v2080_v12  ;;  %756 = vmatprep.mubr.bf16.mxu1 %v2080_v12  ;;  %v316_v52 = vpack.c.bf16 %v305_v50, %v304_v51  ;;  %v306_v21 = vadd.f32 %v2419_v37, %v281_v55  ;;  %v373_v22 = vsub.s32 0, %v372_v23  ;;  %v381_v57 = vsub.s32 2, %v372_v23 }
 0x163   :  { %v377_v63 = vsub.s32 1, %v372_v23  ;;  %v385_v0 = vsub.s32 3, %v372_v23 }
 0x164   :  { %v317_v49 = vpack.c.bf16 %v307_v56, %v306_v21  ;;  %v2494_v37 = vrot.slane %v369_v58, %v373_v22  ;;  %v2496_v1 = vrot.slane %v369_v58, %v381_v57 }
 0x165   :  { %v2498_v25 = vrot.slane %v369_v58, %v377_v63  ;;  %v2500_v61 = vrot.slane %v369_v58, %v385_v0 }
 0x169   :  { %634 = vmatmul.mubr.bf16.gmra.mrb[20].mxu0 %v315_v18  ;;  %757 = vmatmul.mubr.bf16.gmra.mrb[20].mxu1 %v315_v18 }
 0x16a   :  { %643 = vmatprep.mubr.bf16.mxu0 %v2080_v12  ;;  %766 = vmatprep.mubr.bf16.mxu1 %v2080_v12 }
 0x171   :  { %644 = vmatmul.mubr.bf16.gmra.mrb[24].mxu0 %v316_v52  ;;  %767 = vmatmul.mubr.bf16.gmra.mrb[24].mxu1 %v316_v52 }
 0x172   :  { %653 = vmatprep.mubr.bf16.mxu0 %v2080_v12  ;;  %776 = vmatprep.mubr.bf16.mxu1 %v2080_v12 }
 0x179   :  { %654 = vmatmul.mubr.bf16.gmra.mrb[28].mxu0 %v317_v49  ;;  %777 = vmatmul.mubr.bf16.gmra.mrb[28].mxu1 %v317_v49 }
 0x17a   :  { %663 = vmatprep.mubr.bf16.mxu0 %v2080_v12  ;;  %786 = vmatprep.mubr.bf16.mxu1 %v2080_v12 }
 0x181   :  { %664 = vmatmul.mubr.bf16.gmra.mrb[32].mxu0 %v318_v39  ;;  %787 = vmatmul.mubr.bf16.gmra.mrb[32].mxu1 %v318_v39 }
 0x214   :  { %v585_v12 = vpop.f32.mrb[0].mxu0  ;;  %v708_v24 = vpop.f32.mrb[0].mxu1 }
 0x215   :  { %v586_v60 = vadd.f32 %v585_v12, %v2494_v37  ;;  %v709_v26 = vadd.f32 %v708_v24, %v2496_v1  ;;  %v587_v2 = vpop.f32.mrb[1].mxu0  ;;  %v710_v6 = vpop.f32.mrb[1].mxu1 }
 0x216   :  { %v2505_v7 = vadd.f32 %v587_v2, %v2498_v25  ;;  %v2508_v3 = vadd.f32 %v710_v6, %v2500_v61  ;;  %v589_v44 = vpop.f32.mrb[2].mxu0  ;;  %v712_v8 = vpop.f32.mrb[2].mxu1 }
 0x217   :  { %v869_v9 = vmul.f32 0.044715, %v586_v60  ;;  %v871_v10 = vmul.f32 0.044715, %v709_v26  ;;  %v2513_v27 = vadd.f32 %v589_v44, %v2494_v37  ;;  %v2516_v4 = vadd.f32 %v712_v8, %v2496_v1  ;;  %v591_v31 = vpop.f32.mrb[3].mxu0  ;;  %v714_v32 = vpop.f32.mrb[3].mxu1 }
 0x218   :  { %v870_v11 = vmul.f32 0.044715, %v2505_v7  ;;  %v872_v13 = vmul.f32 0.044715, %v2508_v3  ;;  %v2521_v30 = vadd.f32 %v591_v31, %v2498_v25  ;;  %v2529_v28 = vadd.f32 %v714_v32, %v2500_v61 }
 0x219   :  { %v941_v14 = vmul.f32 %v869_v9, %v586_v60  ;;  %v943_v5 = vmul.f32 %v871_v10, %v709_v26  ;;  %v873_v16 = vmul.f32 0.044715, %v2513_v27  ;;  %v875_v15 = vmul.f32 0.044715, %v2516_v4 }
 0x21a   :  { %v942_v59 = vmul.f32 %v870_v11, %v2505_v7  ;;  %v944_v33 = vmul.f32 %v872_v13, %v2508_v3  ;;  %v874_v46 = vmul.f32 0.044715, %v2521_v30  ;;  %v2537_v50 = vmul.f32 0.5, %v586_v60 }
 0x21b   :  { %v1013_v38 = vmul.f32 %v941_v14, %v586_v60  ;;  %v1015_v45 = vmul.f32 %v943_v5, %v709_v26  ;;  %v945_v41 = vmul.f32 %v873_v16, %v2513_v27  ;;  %v947_v20 = vmul.f32 %v875_v15, %v2516_v4 }
 0x21c   :  { %v1014_v34 = vmul.f32 %v942_v59, %v2505_v7  ;;  %v1016_v62 = vmul.f32 %v944_v33, %v2508_v3  ;;  %v595_v17 = vpop.f32.mrb[4].mxu0  ;;  %v718_v39 = vpop.f32.mrb[4].mxu1  ;;  %v946_v21 = vmul.f32 %v874_v46, %v2521_v30  ;;  %v876_v23 = vmul.f32 0.044715, %v2529_v28 }
 0x21d   :  { %v1085_v40 = vadd.f32 %v1013_v38, %v586_v60  ;;  %v1087_v29 = vadd.f32 %v1015_v45, %v709_v26  ;;  %v597_v42 = vpop.f32.mrb[5].mxu0  ;;  %v720_v19 = vpop.f32.mrb[5].mxu1  ;;  %v1017_v35 = vmul.f32 %v945_v41, %v2513_v27  ;;  %v1019_v56 = vmul.f32 %v947_v20, %v2516_v4 }
 0x21e   :  { %v1086_v43 = vadd.f32 %v1014_v34, %v2505_v7  ;;  %v1088_v18 = vadd.f32 %v1016_v62, %v2508_v3  ;;  %v599_v47 = vpop.f32.mrb[6].mxu0  ;;  %v2535_v53 = vpop.f32.mrb[6].mxu1  ;;  %v2549_v22 = vadd.f32 %v595_v17, %v2494_v37  ;;  %v1018_v58 = vmul.f32 %v946_v21, %v2521_v30 }
 0x21f   :  { %v1157_v36 = vmul.f32 0.7978846, %v1085_v40  ;;  %v1159_v51 = vmul.f32 0.7978846, %v1087_v29  ;;  %v2540_v52 = vpop.f32.mrb[7].mxu0  ;;  %v2544_v49 = vpop.f32.mrb[7].mxu1  ;;  %v1089_v48 = vadd.f32 %v1017_v35, %v2513_v27  ;;  %v1091_v57 = vadd.f32 %v1019_v56, %v2516_v4 }
 0x220   :  { %v1158_v54 = vmul.f32 0.7978846, %v1086_v43  ;;  %v1160_v55 = vmul.f32 0.7978846, %v1088_v18  ;;  %v2554_v63 = vadd.f32 %v718_v39, %v2496_v1  ;;  %v2556_v0 = vmul.f32 0.5, %v709_v26 }
 0x221   :  { %1936 = vtanh.f32 %v1157_v36  ;;  %v1161_v12 = vmul.f32 0.7978846, %v1089_v48  ;;  %v948_v24 = vmul.f32 %v876_v23, %v2529_v28  ;;  %v1163_v60 = vmul.f32 0.7978846, %v1091_v57 }
 0x222   :  { %1938 = vtanh.f32 %v1159_v51  ;;  %v1090_v2 = vadd.f32 %v1018_v58, %v2521_v30  ;;  %v877_v6 = vmul.f32 0.044715, %v2549_v22  ;;  %v2566_v9 = vmul.f32 0.5, %v2505_v7 }
 0x223   :  { %1940 = vtanh.f32 %v1158_v54  ;;  %v1020_v26 = vmul.f32 %v948_v24, %v2529_v28  ;;  %v879_v10 = vmul.f32 0.044715, %v2554_v63  ;;  %v2576_v31 = vadd.f32 %v597_v42, %v2498_v25 }
 0x224   :  { %1942 = vtanh.f32 %v1160_v55  ;;  %v2561_v44 = vpop.f32.mrb[8].mxu0  ;;  %v2563_v8 = vpop.f32.mrb[8].mxu1  ;;  %v1162_v14 = vmul.f32 0.7978846, %v1090_v2  ;;  %v949_v5 = vmul.f32 %v877_v6, %v2549_v22  ;;  %v2585_v38 = vadd.f32 %v720_v19, %v2500_v61 }
 0x225   :  { %1944 = vtanh.f32 %v1161_v12  ;;  %v2570_v11 = vpop.f32.mrb[9].mxu0  ;;  %v2572_v13 = vpop.f32.mrb[9].mxu1  ;;  %v1092_v59 = vadd.f32 %v1020_v26, %v2529_v28  ;;  %v951_v33 = vmul.f32 %v879_v10, %v2554_v63  ;;  %v2588_v45 = vadd.f32 %v599_v47, %v2494_v37 }
 0x226   :  { %1946 = vtanh.f32 %v1163_v60  ;;  %v2578_v32 = vpop.f32.mrb[10].mxu0  ;;  %v2580_v7 = vpop.f32.mrb[10].mxu1  ;;  %v800_v62 = vmul.f32 0.5, %v2508_v3  ;;  %v1021_v15 = vmul.f32 %v949_v5, %v2549_v22  ;;  %v878_v17 = vmul.f32 0.044715, %v2576_v31 }
 0x227   :  { %v2590_v16 = vpop.f32.mrb[11].mxu0  ;;  %v2592_v34 = vpop.f32.mrb[11].mxu1  ;;  %1948 = vtanh.f32 %v1162_v14  ;;  %v801_v39 = vmul.f32 0.5, %v2513_v27  ;;  %v1164_v40 = vmul.f32 0.7978846, %v1092_v59  ;;  %v1023_v29 = vmul.f32 %v951_v33, %v2554_v63 }
 0x228   :  { %v880_v41 = vmul.f32 0.044715, %v2585_v38  ;;  %v2601_v42 = vmul.f32 0.5, %v2516_v4  ;;  %v1093_v19 = vadd.f32 %v1021_v15, %v2549_v22  ;;  %v950_v43 = vmul.f32 %v878_v17, %v2576_v31 }
 0x229   :  { %v881_v3 = vmul.f32 0.044715, %v2588_v45  ;;  %v802_v20 = vmul.f32 0.5, %v2521_v30  ;;  %1950 = vtanh.f32 %v1164_v40  ;;  %v1095_v27 = vadd.f32 %v1023_v29, %v2554_v63 }
 0x22a   :  { %v952_v46 = vmul.f32 %v880_v41, %v2585_v38  ;;  %v1165_v51 = vmul.f32 0.7978846, %v1093_v19  ;;  %v1022_v4 = vmul.f32 %v950_v43, %v2576_v31  ;;  %v2618_v23 = vadd.f32 %v2535_v53, %v2496_v1 }
 0x22b   :  { %v1937_v18 = vpop.eup %1936  ;;  %v953_v35 = vmul.f32 %v881_v3, %v2588_v45  ;;  %v1167_v48 = vmul.f32 0.7978846, %v1095_v27  ;;  %v804_v19 = vmul.f32 0.5, %v2529_v28 }
 0x22c   :  { %v1939_v47 = vpop.eup %1938  ;;  %v1301_v36 = vadd.f32 1.0, %v1937_v18  ;;  %v2611_v54 = vpop.f32.mrb[12].mxu0  ;;  %v1024_v30 = vmul.f32 %v952_v46, %v2585_v38  ;;  %1952 = vtanh.f32 %v1165_v51  ;;  %v1094_v2 = vadd.f32 %v1022_v4, %v2576_v31 }
 0x22d   :  { %v2613_v55 = vpop.f32.mrb[12].mxu1  ;;  %v1941_v56 = vpop.eup %1940  ;;  %v1303_v21 = vadd.f32 1.0, %v1939_v47  ;;  %1954 = vtanh.f32 %v1167_v48  ;;  %v1025_v29 = vmul.f32 %v953_v35, %v2588_v45  ;;  %v2651_v4 = vadd.f32 %v2544_v49, %v2500_v61 }
 0x22e   :  { %v2620_v57 = vpop.f32.mrb[13].mxu0  ;;  %v2622_v58 = vpop.f32.mrb[13].mxu1  ;;  %v1373_v24 = vmul.f32 %v1301_v36, %v2537_v50  ;;  %v1302_v60 = vadd.f32 1.0, %v1941_v56  ;;  %v1096_v5 = vadd.f32 %v1024_v30, %v2585_v38  ;;  %v1166_v40 = vmul.f32 0.7978846, %v1094_v2 }
 0x22f   :  { %v1943_v12 = vpop.eup %1942  ;;  %v2626_v6 = vpop.f32.mrb[14].mxu0  ;;  %v1375_v14 = vmul.f32 %v1303_v21, %v2556_v0  ;;  %v883_v0 = vmul.f32 0.044715, %v2618_v23  ;;  %v1097_v46 = vadd.f32 %v1025_v29, %v2588_v45  ;;  %v805_v48 = vmul.f32 0.5, %v2549_v22 }
 0x230   :  { %v2628_v26 = vpop.f32.mrb[14].mxu1  ;;  %v1945_v10 = vpop.eup %1944  ;;  %v1304_v53 = vadd.f32 1.0, %v1943_v12  ;;  %v1374_v15 = vmul.f32 %v1302_v60, %v2566_v9  ;;  %v1168_v43 = vmul.f32 0.7978846, %v1096_v5  ;;  %1956 = vtanh.f32 %v1166_v40 }
 0x231   :  { %v2632_v59 = vpop.f32.mrb[15].mxu0  ;;  %v2634_v33 = vpop.f32.mrb[15].mxu1  ;;  %v1305_v17 = vadd.f32 1.0, %v1945_v10  ;;  %v1169_v9 = vmul.f32 0.7978846, %v1097_v46  ;;  %v955_v28 = vmul.f32 %v883_v0, %v2618_v23  ;;  %v807_v30 = vmul.f32 0.5, %v2554_v63 }
 0x232   :  { %v1947_v50 = vpop.eup %1946  ;;  %v1376_v41 = vmul.f32 %v1304_v53, %v800_v62  ;;  %v1771_v18 = vpack.c.bf16 %v1374_v15, %v1373_v24  ;;  %1958 = vtanh.f32 %v1168_v43  ;;  %v2647_v62 = vadd.f32 %v2540_v52, %v2498_v25 }
 0x233   :  { %v1949_v3 = vpop.eup %1948  ;;  %v1307_v27 = vadd.f32 1.0, %v1947_v50  ;;  %v1377_v36 = vmul.f32 %v1305_v17, %v801_v39  ;;  %v2664_v52 = vadd.f32 %v2561_v44, %v2494_v37  ;;  %v806_v2 = vmul.f32 0.5, %v2576_v31 }
 0x234   :  { %v1772_v47 = vpack.c.bf16 %v1376_v41, %v1375_v14  ;;  %v1306_v51 = vadd.f32 1.0, %v1949_v3  ;;  %1661 = vst [vmem:[%s3358_s5] sm:$0xff] %v1771_v18  ;;  %v2653_v35 = vpop.f32.mrb[16].mxu0  ;;  %v2655_v39 = vpop.f32.mrb[16].mxu1  ;;  %v1027_v10 = vmul.f32 %v955_v28, %v2618_v23  ;;  %v882_v14 = vmul.f32 0.044715, %v2647_v62 }
 0x235   :  { %v1951_v56 = vpop.eup %1950  ;;  %v2666_v49 = vpop.f32.mrb[17].mxu0  ;;  %v1379_v24 = vmul.f32 %v1307_v27, %v2601_v42  ;;  %v884_v44 = vmul.f32 0.044715, %v2651_v4  ;;  %v2681_v53 = vadd.f32 %v2563_v8, %v2496_v1  ;;  %1960 = vtanh.f32 %v1169_v9 }
 0x236   :  { %1662 = vst [vmem:[%s3358_s5 + $0x8] sm:$0xff] %v1772_v47  ;;  %v1378_v21 = vmul.f32 %v1306_v51, %v802_v20  ;;  %v2668_v12 = vpop.f32.mrb[17].mxu1  ;;  %v1308_v60 = vadd.f32 1.0, %v1951_v56  ;;  %v2673_v20 = vpop.f32.mrb[18].mxu0  ;;  %v1099_v31 = vadd.f32 %v1027_v10, %v2618_v23  ;;  %v885_v15 = vmul.f32 0.044715, %v2664_v52 }
 0x237   :  { %v2675_v22 = vpop.f32.mrb[18].mxu1  ;;  %v2683_v5 = vpop.f32.mrb[19].mxu0  ;;  %v954_v8 = vmul.f32 %v882_v14, %v2647_v62  ;;  %v956_v41 = vmul.f32 %v884_v44, %v2651_v4  ;;  %v808_v27 = vmul.f32 0.5, %v2585_v38 }
 0x238   :  { %v1773_v63 = vpack.c.bf16 %v1378_v21, %v1377_v36  ;;  %v1953_v42 = vpop.eup %1952  ;;  %v1380_v50 = vmul.f32 %v1308_v60, %v804_v19  ;;  %v2687_v17 = vpop.f32.mrb[19].mxu1  ;;  %v2696_v19 = vadd.f32 %v2570_v11, %v2498_v25  ;;  %v1171_v3 = vmul.f32 0.7978846, %v1099_v31 }
 0x239   :  { %v1955_v40 = vpop.eup %1954  ;;  %v1309_v29 = vadd.f32 1.0, %v1953_v42  ;;  %v957_v18 = vmul.f32 %v885_v15, %v2664_v52  ;;  %v1026_v46 = vmul.f32 %v954_v8, %v2647_v62  ;;  %v1028_v47 = vmul.f32 %v956_v41, %v2651_v4 }
 0x23a   :  { %1663 = vst [vmem:[%s3358_s5 + $0x10] sm:$0xff] %v1773_v63  ;;  %v1774_v43 = vpack.c.bf16 %v1380_v50, %v1379_v24  ;;  %v1311_v0 = vadd.f32 1.0, %v1955_v40  ;;  %v887_v36 = vmul.f32 0.044715, %v2681_v53  ;;  %v1957_v51 = vpop.eup %1956  ;;  %1962 = vtanh.f32 %v1171_v3 }
 0x23b   :  { %v1381_v11 = vmul.f32 %v1309_v29, %v805_v48  ;;  %v1029_v28 = vmul.f32 %v957_v18, %v2664_v52  ;;  %v1310_v24 = vadd.f32 1.0, %v1957_v51  ;;  %v1098_v60 = vadd.f32 %v1026_v46, %v2647_v62 }
 0x23c   :  { %1664 = vst [vmem:[%s3358_s5 + $0x18] sm:$0xff] %v1774_v43  ;;  %v1383_v9 = vmul.f32 %v1311_v0, %v807_v30  ;;  %v2707_v56 = vpop.f32.mrb[20].mxu0  ;;  %v2709_v21 = vpop.f32.mrb[20].mxu1  ;;  %v1100_v10 = vadd.f32 %v1028_v47, %v2651_v4  ;;  %v959_v63 = vmul.f32 %v887_v36, %v2681_v53  ;;  %v886_v42 = vmul.f32 0.044715, %v2696_v19 }
 0x23d   :  { %v1959_v38 = vpop.eup %1958  ;;  %v2714_v14 = vpop.f32.mrb[21].mxu0  ;;  %v1101_v30 = vadd.f32 %v1029_v28, %v2664_v52  ;;  %v2722_v50 = vadd.f32 %v2572_v13, %v2500_v61  ;;  %v1382_v40 = vmul.f32 %v1310_v24, %v806_v2  ;;  %v1170_v29 = vmul.f32 0.7978846, %v1098_v60 }
 0x23e   :  { %v2716_v44 = vpop.f32.mrb[21].mxu1  ;;  %v1312_v48 = vadd.f32 1.0, %v1959_v38  ;;  %v2724_v31 = vpop.f32.mrb[22].mxu0  ;;  %v1172_v8 = vmul.f32 0.7978846, %v1100_v10  ;;  %v1031_v41 = vmul.f32 %v959_v63, %v2681_v53  ;;  %v809_v18 = vmul.f32 0.5, %v2588_v45 }
 0x23f   :  { %v2726_v15 = vpop.f32.mrb[22].mxu1  ;;  %v2729_v43 = vpop.f32.mrb[23].mxu0  ;;  %v1173_v46 = vmul.f32 0.7978846, %v1101_v30  ;;  %v958_v13 = vmul.f32 %v886_v42, %v2696_v19  ;;  %v1775_v47 = vpack.c.bf16 %v1382_v40, %v1381_v11  ;;  %v811_v36 = vmul.f32 0.5, %v2618_v23 }
 0x240   :  { %v2731_v0 = vpop.f32.mrb[23].mxu1  ;;  %v1384_v3 = vmul.f32 %v1312_v48, %v808_v27  ;;  %1964 = vtanh.f32 %v1170_v29  ;;  %v1103_v2 = vadd.f32 %v1031_v41, %v2681_v53  ;;  %v1961_v51 = vpop.eup %1960  ;;  %v888_v24 = vmul.f32 0.044715, %v2722_v50 }
 0x241   :  { %1966 = vtanh.f32 %v1172_v8  ;;  %v1030_v38 = vmul.f32 %v958_v13, %v2696_v19  ;;  %1665 = vst [vmem:[%s3358_s5 + $0x20] sm:$0xff] %v1775_v47  ;;  %v810_v45 = vmul.f32 0.5, %v2647_v62  ;;  %v2745_v23 = vadd.f32 %v2578_v32, %v2494_v37 }
 0x242   :  { %v1776_v28 = vpack.c.bf16 %v1384_v3, %v1383_v9  ;;  %1968 = vtanh.f32 %v1173_v46  ;;  %v1175_v27 = vmul.f32 0.7978846, %v1103_v2  ;;  %v960_v9 = vmul.f32 %v888_v24, %v2722_v50 }
 0x243   :  { %v1102_v11 = vadd.f32 %v1030_v38, %v2696_v19  ;;  %v2754_v60 = vadd.f32 %v2580_v7, %v2496_v1  ;;  %v2758_v62 = vadd.f32 %v2590_v16, %v2498_v25  ;;  %v1313_v63 = vadd.f32 1.0, %v1961_v51 }
 0x244   :  { %1666 = vst [vmem:[%s3358_s5 + $0x28] sm:$0xff] %v1776_v28  ;;  %v2760_v10 = vpop.f32.mrb[24].mxu0  ;;  %v2762_v32 = vpop.f32.mrb[24].mxu1  ;;  %1970 = vtanh.f32 %v1175_v27  ;;  %v889_v48 = vmul.f32 0.044715, %v2745_v23  ;;  %v2767_v30 = vadd.f32 %v2592_v34, %v2500_v61  ;;  %v812_v16 = vmul.f32 0.5, %v2651_v4 }
 0x245   :  { %v2769_v42 = vpop.f32.mrb[25].mxu0  ;;  %v2771_v7 = vpop.f32.mrb[25].mxu1  ;;  %v1174_v29 = vmul.f32 0.7978846, %v1102_v11  ;;  %v1032_v8 = vmul.f32 %v960_v9, %v2722_v50  ;;  %v891_v41 = vmul.f32 0.044715, %v2754_v60  ;;  %v1385_v27 = vmul.f32 %v1313_v63, %v809_v18 }
 0x246   :  { %v1963_v40 = vpop.eup %1962  ;;  %v2776_v3 = vpop.f32.mrb[26].mxu0  ;;  %v813_v13 = vmul.f32 0.5, %v2664_v52  ;;  %v961_v34 = vmul.f32 %v889_v48, %v2745_v23  ;;  %v890_v47 = vmul.f32 0.044715, %v2758_v62  ;;  %v2786_v4 = vmul.f32 0.5, %v2681_v53 }
 0x247   :  { %3359 = vst [vmem:[#allocation3_spill] sm:$0xff] %v2776_v3  ;;  %v1315_v46 = vadd.f32 1.0, %v1963_v40  ;;  %v2781_v2 = vpop.f32.mrb[26].mxu1  ;;  %v2783_v51 = vpop.f32.mrb[27].mxu0  ;;  %1972 = vtanh.f32 %v1174_v29  ;;  %v1104_v28 = vadd.f32 %v1032_v8, %v2722_v50  ;;  %v963_v38 = vmul.f32 %v891_v41, %v2754_v60 }
 0x248   :  { %3360 = vst [vmem:[#allocation4_spill] sm:$0xff] %v2781_v2  ;;  %3361 = vst [vmem:[#allocation5_spill] sm:$0xff] %v2783_v51  ;;  %v2790_v24 = vpop.f32.mrb[27].mxu1  ;;  %v1033_v52 = vmul.f32 %v961_v34, %v2745_v23  ;;  %v962_v11 = vmul.f32 %v890_v47, %v2758_v62  ;;  %v892_v9 = vmul.f32 0.044715, %v2767_v30  ;;  %v2798_v53 = vadd.f32 %v2611_v54, %v2494_v37 }
 0x249   :  { %3362 = vst [vmem:[#allocation6_spill] sm:$0xff] %v2790_v24  ;;  %v1387_v48 = vmul.f32 %v1315_v46, %v811_v36  ;;  %v1176_v40 = vmul.f32 0.7978846, %v1104_v28  ;;  %v1035_v51 = vmul.f32 %v963_v38, %v2754_v60  ;;  %v2805_v63 = vadd.f32 %v2613_v55, %v2496_v1 }
 0x24a   :  { %v1965_v29 = vpop.eup %1964  ;;  %v1105_v8 = vadd.f32 %v1033_v52, %v2745_v23  ;;  %v1034_v41 = vmul.f32 %v962_v11, %v2758_v62  ;;  %v964_v18 = vmul.f32 %v892_v9, %v2767_v30  ;;  %v2810_v54 = vadd.f32 %v2620_v57, %v2498_v25 }
 0x24b   :  { %v1967_v34 = vpop.eup %1966  ;;  %v1314_v36 = vadd.f32 1.0, %v1965_v29  ;;  %1974 = vtanh.f32 %v1176_v40  ;;  %v1107_v46 = vadd.f32 %v1035_v51, %v2754_v60  ;;  %v893_v57 = vmul.f32 0.044715, %v2798_v53 }
 0x24c   :  { %v2812_v47 = vpop.f32.mrb[28].mxu0  ;;  %v2814_v28 = vpop.f32.mrb[28].mxu1  ;;  %v1316_v52 = vadd.f32 1.0, %v1967_v34  ;;  %v1177_v11 = vmul.f32 0.7978846, %v1105_v8  ;;  %v1106_v9 = vadd.f32 %v1034_v41, %v2758_v62  ;;  %v1036_v55 = vmul.f32 %v964_v18, %v2767_v30 }
 0x24d   :  { %3363 = vst [vmem:[#allocation7_spill] sm:$0xff] %v2812_v47  ;;  %3364 = vst [vmem:[#allocation8_spill] sm:$0xff] %v2814_v28  ;;  %v1969_v38 = vpop.eup %1968  ;;  %v2818_v24 = vpop.f32.mrb[29].mxu0  ;;  %v1386_v51 = vmul.f32 %v1314_v36, %v810_v45  ;;  %v1179_v2 = vmul.f32 0.7978846, %v1107_v46  ;;  %v816_v45 = vmul.f32 0.5, %v2722_v50 }
 0x24e   :  { %3365 = vst [vmem:[#allocation9_spill] sm:$0xff] %v2818_v24  ;;  %v2820_v40 = vpop.f32.mrb[29].mxu1  ;;  %v1317_v29 = vadd.f32 1.0, %v1969_v38  ;;  %v2823_v3 = vpop.f32.mrb[30].mxu0  ;;  %v1388_v28 = vmul.f32 %v1316_v52, %v812_v16  ;;  %1976 = vtanh.f32 %v1177_v11  ;;  %v1178_v34 = vmul.f32 0.7978846, %v1106_v9 }
 0x24f   :  { %3366 = vst [vmem:[#allocation10_spill] sm:$0xff] %v2820_v40  ;;  %v1971_v47 = vpop.eup %1970  ;;  %v1108_v8 = vadd.f32 %v1036_v55, %v2767_v30  ;;  %v2826_v41 = vpop.f32.mrb[30].mxu1  ;;  %v1777_v24 = vpack.c.bf16 %v1386_v51, %v1385_v27  ;;  %v814_v40 = vmul.f32 0.5, %v2696_v19  ;;  %1978 = vtanh.f32 %v1179_v2 }
 0x250   :  { %v2828_v18 = vpop.f32.mrb[31].mxu0  ;;  %v2832_v36 = vpop.f32.mrb[31].mxu1  ;;  %v1778_v46 = vpack.c.bf16 %v1388_v28, %v1387_v48  ;;  %1980 = vtanh.f32 %v1178_v34  ;;  %v965_v16 = vmul.f32 %v893_v57, %v2798_v53  ;;  %v1389_v11 = vmul.f32 %v1317_v29, %v813_v13 }
 0x251   :  { %v1180_v38 = vmul.f32 0.7978846, %v1108_v8  ;;  %v1973_v52 = vpop.eup %1972  ;;  %1667 = vst [vmem:[%s3358_s5 + $0x30] sm:$0xff] %v1777_v24  ;;  %v1319_v9 = vadd.f32 1.0, %v1971_v47  ;;  %v817_v27 = vmul.f32 0.5, %v2745_v23  ;;  %v819_v28 = vmul.f32 0.5, %v2754_v60 }
 0x252   :  { %v895_v19 = vmul.f32 0.044715, %v2805_v63  ;;  %1668 = vst [vmem:[%s3358_s5 + $0x38] sm:$0xff] %v1778_v46  ;;  %v1318_v50 = vadd.f32 1.0, %v1973_v52  ;;  %v1037_v2 = vmul.f32 %v965_v16, %v2798_v53  ;;  %v894_v48 = vmul.f32 0.044715, %v2810_v54 }
 0x253   :  { %1982 = vtanh.f32 %v1180_v38  ;;  %v2849_v13 = vadd.f32 %v2622_v58, %v2500_v61  ;;  %v2853_v23 = vadd.f32 %v2626_v6, %v2494_v37  ;;  %v2863_v60 = vadd.f32 %v2628_v26, %v2496_v1 }
 0x254   :  { %v967_v24 = vmul.f32 %v895_v19, %v2805_v63  ;;  %v2855_v47 = vpop.f32.mrb[32].mxu0  ;;  %v2857_v55 = vpop.f32.mrb[32].mxu1  ;;  %v1390_v51 = vmul.f32 %v1318_v50, %v814_v40  ;;  %v1109_v29 = vadd.f32 %v1037_v2, %v2798_v53  ;;  %v966_v57 = vmul.f32 %v894_v48, %v2810_v54 }
 0x255   :  { %3367 = vst [vmem:[#allocation11_spill] sm:$0xff] %v2857_v55  ;;  %v2865_v34 = vpop.f32.mrb[33].mxu0  ;;  %v2867_v58 = vpop.f32.mrb[33].mxu1  ;;  %v1391_v6 = vmul.f32 %v1319_v9, %v2786_v4  ;;  %v818_v46 = vmul.f32 0.5, %v2758_v62  ;;  %v896_v40 = vmul.f32 0.044715, %v2849_v13 }
 0x256   :  { %3368 = vst [vmem:[#allocation12_spill] sm:$0xff] %v2865_v34  ;;  %3369 = vst [vmem:[#allocation13_spill] sm:$0xff] %v2867_v58  ;;  %v1975_v8 = vpop.eup %1974  ;;  %v1039_v38 = vmul.f32 %v967_v24, %v2805_v63  ;;  %v2873_v16 = vpop.f32.mrb[34].mxu0  ;;  %v1779_v19 = vpack.c.bf16 %v1390_v51, %v1389_v11  ;;  %v1181_v50 = vmul.f32 0.7978846, %v1109_v29  ;;  %v1038_v2 = vmul.f32 %v966_v57, %v2810_v54 }
 0x257   :  { %3370 = vst [vmem:[#allocation14_spill] sm:$0xff] %v2873_v16  ;;  %v2875_v52 = vpop.f32.mrb[34].mxu1  ;;  %v1320_v26 = vadd.f32 1.0, %v1975_v8  ;;  %v2878_v48 = vpop.f32.mrb[35].mxu0  ;;  %v968_v62 = vmul.f32 %v896_v40, %v2849_v13  ;;  %v897_v9 = vmul.f32 0.044715, %v2853_v23  ;;  %v2887_v24 = vadd.f32 %v2632_v59, %v2498_v25 }
 0x258   :  { %3371 = vst [vmem:[#allocation15_spill] sm:$0xff] %v2875_v52  ;;  %3372 = vst [vmem:[#allocation16_spill] sm:$0xff] %v2878_v48  ;;  %v2880_v58 = vpop.f32.mrb[35].mxu1  ;;  %v1111_v4 = vadd.f32 %v1039_v38, %v2805_v63  ;;  %v1977_v52 = vpop.eup %1976  ;;  %1984 = vtanh.f32 %v1181_v50  ;;  %v1110_v51 = vadd.f32 %v1038_v2, %v2810_v54  ;;  %v899_v29 = vmul.f32 0.044715, %v2863_v60 }
 0x259   :  { %3373 = vst [vmem:[#allocation17_spill] sm:$0xff] %v2880_v58  ;;  %1669 = vst [vmem:[%s3358_s5 + $0x40] sm:$0xff] %v1779_v19  ;;  %v1392_v11 = vmul.f32 %v1320_v26, %v816_v45  ;;  %v1979_v57 = vpop.eup %1978  ;;  %v1321_v8 = vadd.f32 1.0, %v1977_v52  ;;  %v1040_v40 = vmul.f32 %v968_v62, %v2849_v13  ;;  %v969_v58 = vmul.f32 %v897_v9, %v2853_v23 }
 0x25a   :  { %v1183_v38 = vmul.f32 0.7978846, %v1111_v4  ;;  %v1981_v59 = vpop.eup %1980  ;;  %v1323_v16 = vadd.f32 1.0, %v1979_v57  ;;  %v1182_v34 = vmul.f32 0.7978846, %v1110_v51  ;;  %v971_v55 = vmul.f32 %v899_v29, %v2863_v60 }
 0x25b   :  { %v1780_v48 = vpack.c.bf16 %v1392_v11, %v1391_v6  ;;  %v1393_v19 = vmul.f32 %v1321_v8, %v817_v27  ;;  %v1322_v45 = vadd.f32 1.0, %v1981_v59  ;;  %v1112_v26 = vadd.f32 %v1040_v40, %v2849_v13 }
 0x25c   :  { %1986 = vtanh.f32 %v1183_v38  ;;  %v820_v52 = vmul.f32 0.5, %v2767_v30  ;;  %v1041_v2 = vmul.f32 %v969_v58, %v2853_v23  ;;  %v1043_v6 = vmul.f32 %v971_v55, %v2863_v60 }
 0x25d   :  { %v1983_v50 = vpop.eup %1982  ;;  %1670 = vst [vmem:[%s3358_s5 + $0x48] sm:$0xff] %v1780_v48  ;;  %1988 = vtanh.f32 %v1182_v34  ;;  %v1395_v4 = vmul.f32 %v1323_v16, %v819_v28  ;;  %v1394_v62 = vmul.f32 %v1322_v45, %v818_v46  ;;  %v1184_v27 = vmul.f32 0.7978846, %v1112_v26 }
 0x25e   :  { %v1324_v9 = vadd.f32 1.0, %v1983_v50  ;;  %v1113_v11 = vadd.f32 %v1041_v2, %v2853_v23  ;;  %v1115_v51 = vadd.f32 %v1043_v6, %v2863_v60  ;;  %v898_v29 = vmul.f32 0.044715, %v2887_v24 }
 0x25f   :  { %v2909_v48 = vadd.f32 %v2634_v33, %v2500_v61  ;;  %v1781_v30 = vpack.c.bf16 %v1394_v62, %v1393_v19  ;;  %1990 = vtanh.f32 %v1184_v27  ;;  %v2913_v55 = vadd.f32 %v2653_v35, %v2494_v37 }
 0x260   :  { %v1396_v34 = vmul.f32 %v1324_v9, %v820_v52  ;;  %v821_v28 = vmul.f32 0.5, %v2798_v53  ;;  %v1185_v58 = vmul.f32 0.7978846, %v1113_v11  ;;  %v1187_v46 = vmul.f32 0.7978846, %v1115_v51 }
 0x261   :  { %v970_v16 = vmul.f32 %v898_v29, %v2887_v24  ;;  %1671 = vst [vmem:[%s3358_s5 + $0x50] sm:$0xff] %v1781_v30  ;;  %v823_v33 = vmul.f32 0.5, %v2805_v63  ;;  %v900_v8 = vmul.f32 0.044715, %v2909_v48  ;;  %v901_v38 = vmul.f32 0.044715, %v2913_v55 }
 0x262   :  { %v1782_v57 = vpack.c.bf16 %v1396_v34, %v1395_v4  ;;  %v1985_v40 = vpop.eup %1984  ;;  %1992 = vtanh.f32 %v1185_v58  ;;  %v749_v53 = vadd.f32 %v2655_v39, %v2496_v1  ;;  %v2928_v59 = vadd.f32 %v2666_v49, %v2498_v25 }
 0x263   :  { %v1042_v35 = vmul.f32 %v970_v16, %v2887_v24  ;;  %v1325_v63 = vadd.f32 1.0, %v1985_v40  ;;  %v822_v19 = vmul.f32 0.5, %v2810_v54  ;;  %v972_v45 = vmul.f32 %v900_v8, %v2909_v48 }
 0x264   :  { %1672 = vst [vmem:[%s3358_s5 + $0x58] sm:$0xff] %v1782_v57  ;;  %v973_v26 = vmul.f32 %v901_v38, %v2913_v55  ;;  %v824_v50 = vmul.f32 0.5, %v2849_v13  ;;  %1994 = vtanh.f32 %v1187_v46  ;;  %v903_v52 = vmul.f32 0.044715, %v749_v53 }
 0x265   :  { %v1114_v39 = vadd.f32 %v1042_v35, %v2887_v24  ;;  %v1397_v49 = vmul.f32 %v1325_v63, %v821_v28  ;;  %v1044_v6 = vmul.f32 %v972_v45, %v2909_v48  ;;  %v902_v62 = vmul.f32 0.044715, %v2928_v59 }
 0x266   :  { %v1987_v2 = vpop.eup %1986  ;;  %v1045_v4 = vmul.f32 %v973_v26, %v2913_v55  ;;  %v975_v11 = vmul.f32 %v903_v52, %v749_v53  ;;  %v2943_v51 = vadd.f32 %v2668_v12, %v2500_v61  ;;  %v825_v58 = vmul.f32 0.5, %v2853_v23 }
 0x267   :  { %v1989_v9 = vpop.eup %1988  ;;  %v1327_v54 = vadd.f32 1.0, %v1987_v2  ;;  %v1186_v27 = vmul.f32 0.7978846, %v1114_v39  ;;  %v1116_v29 = vadd.f32 %v1044_v6, %v2909_v48  ;;  %v974_v34 = vmul.f32 %v902_v62, %v2928_v59 }
 0x268   :  { %v1326_v13 = vadd.f32 1.0, %v1989_v9  ;;  %v1117_v30 = vadd.f32 %v1045_v4, %v2913_v55  ;;  %v1047_v46 = vmul.f32 %v975_v11, %v749_v53  ;;  %v904_v63 = vmul.f32 0.044715, %v2943_v51 }
 0x269   :  { %v1399_v28 = vmul.f32 %v1327_v54, %v823_v33  ;;  %1996 = vtanh.f32 %v1186_v27  ;;  %v1991_v16 = vpop.eup %1990  ;;  %v1188_v8 = vmul.f32 0.7978846, %v1116_v29  ;;  %v1046_v40 = vmul.f32 %v974_v34, %v2928_v59 }
 0x26a   :  { %v1398_v57 = vmul.f32 %v1326_v13, %v822_v19  ;;  %v1189_v38 = vmul.f32 0.7978846, %v1117_v30  ;;  %v1328_v12 = vadd.f32 1.0, %v1991_v16  ;;  %v1119_v35 = vadd.f32 %v1047_v46, %v749_v53 }
 0x26b   :  { %v2953_v45 = vadd.f32 %v2673_v20, %v2494_v37  ;;  %1998 = vtanh.f32 %v1188_v8  ;;  %v1118_v23 = vadd.f32 %v1046_v40, %v2928_v59  ;;  %v2958_v33 = vadd.f32 %v2675_v22, %v2496_v1 }
 0x26c   :  { %v1783_v26 = vpack.c.bf16 %v1398_v57, %v1397_v49  ;;  %v1993_v19 = vpop.eup %1992  ;;  %v1400_v39 = vmul.f32 %v1328_v12, %v824_v50  ;;  %2000 = vtanh.f32 %v1189_v38  ;;  %v1191_v52 = vmul.f32 0.7978846, %v1119_v35 }
 0x26d   :  { %v976_v2 = vmul.f32 %v904_v63, %v2943_v51  ;;  %v827_v20 = vmul.f32 0.5, %v2863_v60  ;;  %v826_v49 = vmul.f32 0.5, %v2887_v24  ;;  %v1190_v6 = vmul.f32 0.7978846, %v1118_v23 }
 0x26e   :  { %1673 = vst [vmem:[%s3358_s5 + $0x60] sm:$0xff] %v1783_v26  ;;  %v905_v4 = vmul.f32 0.044715, %v2953_v45  ;;  %v1995_v62 = vpop.eup %1994  ;;  %v1784_v22 = vpack.c.bf16 %v1400_v39, %v1399_v28  ;;  %v828_v9 = vmul.f32 0.5, %v2909_v48  ;;  %2002 = vtanh.f32 %v1191_v52 }
 0x26f   :  { %v1048_v50 = vmul.f32 %v976_v2, %v2943_v51  ;;  %v1329_v54 = vadd.f32 1.0, %v1993_v19  ;;  %v829_v27 = vmul.f32 0.5, %v2913_v55  ;;  %2004 = vtanh.f32 %v1190_v6 }
 0x270   :  { %v977_v11 = vmul.f32 %v905_v4, %v2953_v45  ;;  %1674 = vst [vmem:[%s3358_s5 + $0x68] sm:$0xff] %v1784_v22  ;;  %v2974_v60 = vmul.f32 0.5, %v749_v53  ;;  %v907_v13 = vmul.f32 0.044715, %v2958_v33  ;;  %v2980_v48 = vadd.f32 %v2683_v5, %v2498_v25 }
 0x271   :  { %v1120_v24 = vadd.f32 %v1048_v50, %v2943_v51  ;;  %v830_v29 = vmul.f32 0.5, %v2928_v59  ;;  %v2986_v30 = vadd.f32 %v2687_v17, %v2500_v61  ;;  %v2990_v53 = vadd.f32 %v2707_v56, %v2494_v37 }
 0x272   :  { %v1049_v55 = vmul.f32 %v977_v11, %v2953_v45  ;;  %v1331_v28 = vadd.f32 1.0, %v1995_v62  ;;  %v979_v16 = vmul.f32 %v907_v13, %v2958_v33  ;;  %v906_v5 = vmul.f32 0.044715, %v2980_v48 }
 0x273   :  { %v1997_v34 = vpop.eup %1996  ;;  %v1192_v46 = vmul.f32 0.7978846, %v1120_v24  ;;  %v1401_v57 = vmul.f32 %v1329_v54, %v825_v58  ;;  %v908_v38 = vmul.f32 0.044715, %v2986_v30  ;;  %v3000_v56 = vadd.f32 %v2709_v21, %v2496_v1 }
 0x274   :  { %v1330_v8 = vadd.f32 1.0, %v1997_v34  ;;  %v1121_v59 = vadd.f32 %v1049_v55, %v2953_v45  ;;  %v1051_v17 = vmul.f32 %v979_v16, %v2958_v33  ;;  %v978_v40 = vmul.f32 %v906_v5, %v2980_v48 }
 0x275   :  { %2006 = vtanh.f32 %v1192_v46  ;;  %v1999_v12 = vpop.eup %1998  ;;  %v980_v26 = vmul.f32 %v908_v38, %v2986_v30  ;;  %v909_v58 = vmul.f32 0.044715, %v2990_v53  ;;  %v1403_v19 = vmul.f32 %v1331_v28, %v827_v20 }
 0x276   :  { %v1402_v35 = vmul.f32 %v1330_v8, %v826_v49  ;;  %v1193_v63 = vmul.f32 0.7978846, %v1121_v59  ;;  %v2001_v23 = vpop.eup %2000  ;;  %v1332_v39 = vadd.f32 1.0, %v1999_v12  ;;  %v1123_v52 = vadd.f32 %v1051_v17, %v2958_v33 }
 0x277   :  { %v1050_v2 = vmul.f32 %v978_v40, %v2980_v48  ;;  %v1333_v4 = vadd.f32 1.0, %v2001_v23  ;;  %v1052_v21 = vmul.f32 %v980_v26, %v2986_v30  ;;  %v981_v54 = vmul.f32 %v909_v58, %v2990_v53 }
 0x278   :  { %v1785_v6 = vpack.c.bf16 %v1402_v35, %v1401_v57  ;;  %2008 = vtanh.f32 %v1193_v63  ;;  %v2003_v62 = vpop.eup %2002  ;;  %v1404_v22 = vmul.f32 %v1332_v39, %v828_v9  ;;  %v1195_v49 = vmul.f32 0.7978846, %v1123_v52 }
 0x279   :  { %v1122_v50 = vadd.f32 %v1050_v2, %v2980_v48  ;;  %v2005_v11 = vpop.eup %2004  ;;  %v1405_v20 = vmul.f32 %v1333_v4, %v829_v27  ;;  %v1335_v24 = vadd.f32 1.0, %v2003_v62  ;;  %v1124_v13 = vadd.f32 %v1052_v21, %v2986_v30 }
 0x27a   :  { %1675 = vst [vmem:[%s3358_s5 + $0x70] sm:$0xff] %v1785_v6  ;;  %v911_v55 = vmul.f32 0.044715, %v3000_v56  ;;  %v1786_v34 = vpack.c.bf16 %v1404_v22, %v1403_v19  ;;  %v1334_v28 = vadd.f32 1.0, %v2005_v11  ;;  %2010 = vtanh.f32 %v1195_v49 }
 0x27b   :  { %v1194_v9 = vmul.f32 0.7978846, %v1122_v50  ;;  %v832_v46 = vmul.f32 0.5, %v2943_v51  ;;  %v1196_v16 = vmul.f32 0.7978846, %v1124_v13  ;;  %v1053_v5 = vmul.f32 %v981_v54, %v2990_v53 }
 0x27c   :  { %v983_v57 = vmul.f32 %v911_v55, %v3000_v56  ;;  %1676 = vst [vmem:[%s3358_s5 + $0x78] sm:$0xff] %v1786_v34  ;;  %v1406_v27 = vmul.f32 %v1334_v28, %v830_v29  ;;  %v3022_v8 = vadd.f32 %v2714_v14, %v2498_v25  ;;  %v3026_v59 = vadd.f32 %v2716_v44, %v2500_v61 }
 0x27d   :  { %2012 = vtanh.f32 %v1194_v9  ;;  %v1125_v51 = vadd.f32 %v1053_v5, %v2990_v53  ;;  %v3032_v17 = vadd.f32 %v2724_v31, %v2494_v37  ;;  %v1407_v29 = vmul.f32 %v1335_v24, %v2974_v60 }
 0x27e   :  { %2014 = vtanh.f32 %v1196_v16  ;;  %v1055_v38 = vmul.f32 %v983_v57, %v3000_v56  ;;  %v1787_v12 = vpack.c.bf16 %v1406_v27, %v1405_v20  ;;  %v833_v14 = vmul.f32 0.5, %v2953_v45 }
 0x27f   :  { %v2007_v40 = vpop.eup %2006  ;;  %v910_v35 = vmul.f32 0.044715, %v3022_v8  ;;  %v1197_v44 = vmul.f32 0.7978846, %v1125_v51  ;;  %v912_v58 = vmul.f32 0.044715, %v3026_v59  ;;  %v3047_v45 = vadd.f32 %v2726_v15, %v2496_v1 }
 0x280   :  { %v1336_v63 = vadd.f32 1.0, %v2007_v40  ;;  %v1127_v26 = vadd.f32 %v1055_v38, %v3000_v56  ;;  %1677 = vst [vmem:[%s3358_s5 + $0x80] sm:$0xff] %v1787_v12  ;;  %v835_v31 = vmul.f32 0.5, %v2958_v33  ;;  %v913_v60 = vmul.f32 0.044715, %v3032_v17 }
 0x281   :  { %v982_v23 = vmul.f32 %v910_v35, %v3022_v8  ;;  %2016 = vtanh.f32 %v1197_v44  ;;  %v984_v2 = vmul.f32 %v912_v58, %v3026_v59  ;;  %v834_v4 = vmul.f32 0.5, %v2980_v48 }
 0x282   :  { %v2009_v19 = vpop.eup %2008  ;;  %v1408_v39 = vmul.f32 %v1336_v63, %v832_v46  ;;  %v1199_v52 = vmul.f32 0.7978846, %v1127_v26  ;;  %v985_v33 = vmul.f32 %v913_v60, %v3032_v17  ;;  %v915_v15 = vmul.f32 0.044715, %v3047_v45 }
 0x283   :  { %v1337_v6 = vadd.f32 1.0, %v2009_v19  ;;  %v1054_v21 = vmul.f32 %v982_v23, %v3022_v8  ;;  %v1056_v22 = vmul.f32 %v984_v2, %v3026_v59  ;;  %v836_v50 = vmul.f32 0.5, %v2986_v30 }
 0x284   :  { %v1788_v62 = vpack.c.bf16 %v1408_v39, %v1407_v29  ;;  %2018 = vtanh.f32 %v1199_v52  ;;  %v2011_v49 = vpop.eup %2010  ;;  %v1057_v11 = vmul.f32 %v985_v33, %v3032_v17  ;;  %v3060_v48 = vadd.f32 %v2729_v43, %v2498_v25 }
 0x285   :  { %v1126_v54 = vadd.f32 %v1054_v21, %v3022_v8  ;;  %v1409_v20 = vmul.f32 %v1337_v6, %v833_v14  ;;  %v1339_v24 = vadd.f32 1.0, %v2011_v49  ;;  %v1128_v13 = vadd.f32 %v1056_v22, %v3026_v59  ;;  %v3374_v49 = vld [vmem:[#allocation3_spill] sm:$0xff] }
 0x286   :  { %1678 = vst [vmem:[%s3358_s5 + $0x88] sm:$0xff] %v1788_v62  ;;  %v987_v55 = vmul.f32 %v915_v15, %v3047_v45  ;;  %v1129_v28 = vadd.f32 %v1057_v11, %v3032_v17  ;;  %v914_v9 = vmul.f32 0.044715, %v3060_v48  ;;  %v3071_v43 = vadd.f32 %v2731_v0, %v2500_v61 }
 0x287   :  { %v2013_v34 = vpop.eup %2012  ;;  %v1198_v30 = vmul.f32 0.7978846, %v1126_v54  ;;  %v1411_v16 = vmul.f32 %v1339_v24, %v835_v31  ;;  %v1200_v57 = vmul.f32 0.7978846, %v1128_v13  ;;  %v837_v12 = vmul.f32 0.5, %v2990_v53 }
 0x288   :  { %v2015_v46 = vpop.eup %2014  ;;  %v1338_v5 = vadd.f32 1.0, %v2013_v34  ;;  %v1059_v27 = vmul.f32 %v987_v55, %v3047_v45  ;;  %v1201_v38 = vmul.f32 0.7978846, %v1129_v28  ;;  %v986_v40 = vmul.f32 %v914_v9, %v3060_v48 }
 0x289   :  { %v1340_v51 = vadd.f32 1.0, %v2015_v46  ;;  %2020 = vtanh.f32 %v1198_v30  ;;  %v916_v63 = vmul.f32 0.044715, %v3071_v43  ;;  %v3081_v31 = vadd.f32 %v2760_v10, %v2494_v37 }
 0x28a   :  { %v1410_v29 = vmul.f32 %v1338_v5, %v834_v4  ;;  %2022 = vtanh.f32 %v1200_v57  ;;  %v1131_v14 = vadd.f32 %v1059_v27, %v3047_v45  ;;  %v1058_v0 = vmul.f32 %v986_v40, %v3060_v48 }
 0x28b   :  { %v1412_v35 = vmul.f32 %v1340_v51, %v836_v50  ;;  %2024 = vtanh.f32 %v1201_v38  ;;  %v2017_v44 = vpop.eup %2016  ;;  %v3085_v23 = vadd.f32 %v2762_v32, %v2496_v1  ;;  %v839_v60 = vmul.f32 0.5, %v3000_v56 }
 0x28c   :  { %v1789_v26 = vpack.c.bf16 %v1410_v29, %v1409_v20  ;;  %v1203_v58 = vmul.f32 0.7978846, %v1131_v14  ;;  %v1130_v19 = vadd.f32 %v1058_v0, %v3060_v48  ;;  %v988_v39 = vmul.f32 %v916_v63, %v3071_v43 }
 0x28d   :  { %v1790_v53 = vpack.c.bf16 %v1412_v35, %v1411_v16  ;;  %v838_v2 = vmul.f32 0.5, %v3022_v8  ;;  %v840_v10 = vmul.f32 0.5, %v3026_v59  ;;  %v917_v32 = vmul.f32 0.044715, %v3081_v31 }
 0x28e   :  { %v2019_v52 = vpop.eup %2018  ;;  %1679 = vst [vmem:[%s3358_s5 + $0x90] sm:$0xff] %v1789_v26  ;;  %2026 = vtanh.f32 %v1203_v58  ;;  %v1341_v56 = vadd.f32 1.0, %v2017_v44  ;;  %v1202_v4 = vmul.f32 0.7978846, %v1130_v19  ;;  %v1060_v21 = vmul.f32 %v988_v39, %v3071_v43  ;;  %v3375_v39 = vld [vmem:[#allocation4_spill] sm:$0xff] }
 0x28f   :  { %1680 = vst [vmem:[%s3358_s5 + $0x98] sm:$0xff] %v1790_v53  ;;  %v1343_v6 = vadd.f32 1.0, %v2019_v52  ;;  %v989_v33 = vmul.f32 %v917_v32, %v3081_v31  ;;  %v919_v62 = vmul.f32 0.044715, %v3085_v23  ;;  %v3104_v8 = vadd.f32 %v2769_v42, %v2498_v25 }
 0x290   :  { %v3108_v59 = vadd.f32 %v2771_v7, %v2500_v61  ;;  %v841_v22 = vmul.f32 0.5, %v3032_v17  ;;  %2028 = vtanh.f32 %v1202_v4  ;;  %v1132_v15 = vadd.f32 %v1060_v21, %v3071_v43  ;;  %v3377_v21 = vld [vmem:[#allocation6_spill] sm:$0xff] }
 0x291   :  { %v3114_v50 = vadd.f32 %v3374_v49, %v2494_v37  ;;  %v843_v54 = vmul.f32 0.5, %v3047_v45  ;;  %v1061_v11 = vmul.f32 %v989_v33, %v3081_v31  ;;  %v991_v42 = vmul.f32 %v919_v62, %v3085_v23 }
 0x292   :  { %v918_v20 = vmul.f32 0.044715, %v3104_v8  ;;  %v1413_v7 = vmul.f32 %v1341_v56, %v837_v12  ;;  %v1415_v13 = vmul.f32 %v1343_v6, %v839_v60  ;;  %v1204_v55 = vmul.f32 0.7978846, %v1132_v15 }
 0x293   :  { %v2021_v24 = vpop.eup %2020  ;;  %v920_v17 = vmul.f32 0.044715, %v3108_v59  ;;  %v1133_v28 = vadd.f32 %v1061_v11, %v3081_v31  ;;  %v1063_v9 = vmul.f32 %v991_v42, %v3085_v23  ;;  %v921_v57 = vmul.f32 0.044715, %v3114_v50 }
 0x294   :  { %v2023_v34 = vpop.eup %2022  ;;  %v1342_v30 = vadd.f32 1.0, %v2021_v24  ;;  %v990_v45 = vmul.f32 %v918_v20, %v3104_v8  ;;  %2030 = vtanh.f32 %v1204_v55  ;;  %v842_v51 = vmul.f32 0.5, %v3060_v48 }
 0x295   :  { %v2025_v46 = vpop.eup %2024  ;;  %v1344_v16 = vadd.f32 1.0, %v2023_v34  ;;  %v992_v5 = vmul.f32 %v920_v17, %v3108_v59  ;;  %v1205_v38 = vmul.f32 0.7978846, %v1133_v28  ;;  %v1135_v40 = vadd.f32 %v1063_v9, %v3085_v23  ;;  %v3378_v34 = vld [vmem:[#allocation7_spill] sm:$0xff] }
 0x296   :  { %v1414_v27 = vmul.f32 %v1342_v30, %v838_v2  ;;  %v1062_v12 = vmul.f32 %v990_v45, %v3104_v8  ;;  %v993_v35 = vmul.f32 %v921_v57, %v3114_v50  ;;  %v1345_v44 = vadd.f32 1.0, %v2025_v46  ;;  %v3376_v2 = vld [vmem:[#allocation5_spill] sm:$0xff] }
 0x297   :  { %v1416_v29 = vmul.f32 %v1344_v16, %v840_v10  ;;  %v1064_v14 = vmul.f32 %v992_v5, %v3108_v59  ;;  %2032 = vtanh.f32 %v1205_v38  ;;  %v1207_v26 = vmul.f32 0.7978846, %v1135_v40 }
 0x298   :  { %v2027_v0 = vpop.eup %2026  ;;  %v1791_v63 = vpack.c.bf16 %v1414_v27, %v1413_v7  ;;  %v1134_v60 = vadd.f32 %v1062_v12, %v3104_v8  ;;  %v1065_v19 = vmul.f32 %v993_v35, %v3114_v50  ;;  %v3139_v52 = vadd.f32 %v3375_v39, %v2496_v1 }
 0x299   :  { %v1792_v58 = vpack.c.bf16 %v1416_v29, %v1415_v13  ;;  %v1347_v53 = vadd.f32 1.0, %v2027_v0  ;;  %v1136_v48 = vadd.f32 %v1064_v14, %v3108_v59  ;;  %2034 = vtanh.f32 %v1207_v26 }
 0x29a   :  { %1681 = vst [vmem:[%s3358_s5 + $0xa0] sm:$0xff] %v1791_v63  ;;  %v3143_v10 = vadd.f32 %v3376_v2, %v2498_v25  ;;  %v2029_v32 = vpop.eup %2028  ;;  %v844_v56 = vmul.f32 0.5, %v3071_v43  ;;  %v1206_v6 = vmul.f32 0.7978846, %v1134_v60  ;;  %v3151_v33 = vadd.f32 %v3377_v21, %v2500_v61 }
 0x29b   :  { %1682 = vst [vmem:[%s3358_s5 + $0xa8] sm:$0xff] %v1792_v58  ;;  %v1208_v4 = vmul.f32 0.7978846, %v1136_v48  ;;  %v1417_v62 = vmul.f32 %v1345_v44, %v841_v22  ;;  %v1346_v15 = vadd.f32 1.0, %v2029_v32  ;;  %v1137_v49 = vadd.f32 %v1065_v19, %v3114_v50  ;;  %v3380_v58 = vld [vmem:[#allocation9_spill] sm:$0xff] }
 0x29c   :  { %v923_v11 = vmul.f32 0.044715, %v3139_v52  ;;  %v1419_v42 = vmul.f32 %v1347_v53, %v843_v54  ;;  %v845_v20 = vmul.f32 0.5, %v3081_v31  ;;  %2036 = vtanh.f32 %v1206_v6  ;;  %v3379_v54 = vld [vmem:[#allocation8_spill] sm:$0xff] }
 0x29d   :  { %v922_v24 = vmul.f32 0.044715, %v3143_v10  ;;  %v1418_v7 = vmul.f32 %v1346_v15, %v842_v51  ;;  %2038 = vtanh.f32 %v1208_v4  ;;  %v1209_v43 = vmul.f32 0.7978846, %v1137_v49 }
 0x29e   :  { %v995_v13 = vmul.f32 %v923_v11, %v3139_v52  ;;  %v2031_v55 = vpop.eup %2030  ;;  %v924_v22 = vmul.f32 0.044715, %v3151_v33  ;;  %v3162_v30 = vadd.f32 %v3378_v34, %v2494_v37  ;;  %v3166_v31 = vadd.f32 %v3379_v54, %v2496_v1  ;;  %v3381_v11 = vld [vmem:[#allocation10_spill] sm:$0xff] }
 0x29f   :  { %v994_v17 = vmul.f32 %v922_v24, %v3143_v10  ;;  %v1793_v28 = vpack.c.bf16 %v1418_v7, %v1417_v62  ;;  %v1348_v9 = vadd.f32 1.0, %v2031_v55  ;;  %2040 = vtanh.f32 %v1209_v43 }
 0x2a0   :  { %v1067_v45 = vmul.f32 %v995_v13, %v3139_v52  ;;  %v847_v46 = vmul.f32 0.5, %v3085_v23  ;;  %v996_v5 = vmul.f32 %v924_v22, %v3151_v33  ;;  %v925_v57 = vmul.f32 0.044715, %v3162_v30 }
 0x2a1   :  { %v1066_v16 = vmul.f32 %v994_v17, %v3143_v10  ;;  %v2033_v27 = vpop.eup %2032  ;;  %1683 = vst [vmem:[%s3358_s5 + $0xb0] sm:$0xff] %v1793_v28  ;;  %v1420_v51 = vmul.f32 %v1348_v9, %v844_v56  ;;  %v846_v38 = vmul.f32 0.5, %v3104_v8  ;;  %v927_v29 = vmul.f32 0.044715, %v3166_v31 }
 0x2a2   :  { %v1139_v40 = vadd.f32 %v1067_v45, %v3139_v52  ;;  %v1349_v12 = vadd.f32 1.0, %v2033_v27  ;;  %v1068_v14 = vmul.f32 %v996_v5, %v3151_v33  ;;  %v997_v35 = vmul.f32 %v925_v57, %v3162_v30 }
 0x2a3   :  { %v1138_v23 = vadd.f32 %v1066_v16, %v3143_v10  ;;  %v2035_v0 = vpop.eup %2034  ;;  %v1794_v63 = vpack.c.bf16 %v1420_v51, %v1419_v42  ;;  %v999_v26 = vmul.f32 %v927_v29, %v3166_v31  ;;  %v3185_v53 = vadd.f32 %v3380_v58, %v2498_v25 }
 0x2a4   :  { %v1211_v44 = vmul.f32 0.7978846, %v1139_v40  ;;  %v1351_v8 = vadd.f32 1.0, %v2035_v0  ;;  %v848_v60 = vmul.f32 0.5, %v3108_v59  ;;  %v1140_v19 = vadd.f32 %v1068_v14, %v3151_v33 }
 0x2a5   :  { %v1210_v48 = vmul.f32 0.7978846, %v1138_v23  ;;  %1684 = vst [vmem:[%s3358_s5 + $0xb8] sm:$0xff] %v1794_v63  ;;  %v1421_v39 = vmul.f32 %v1349_v12, %v845_v20  ;;  %v1069_v2 = vmul.f32 %v997_v35, %v3162_v30  ;;  %v1071_v32 = vmul.f32 %v999_v26, %v3166_v31 }
 0x2a6   :  { %2042 = vtanh.f32 %v1211_v44  ;;  %v2037_v56 = vpop.eup %2036  ;;  %v1423_v6 = vmul.f32 %v1351_v8, %v847_v46  ;;  %v1212_v4 = vmul.f32 0.7978846, %v1140_v19  ;;  %v926_v21 = vmul.f32 0.044715, %v3185_v53 }
 0x2a7   :  { %2044 = vtanh.f32 %v1210_v48  ;;  %v2039_v59 = vpop.eup %2038  ;;  %v1350_v62 = vadd.f32 1.0, %v2037_v56  ;;  %v1141_v15 = vadd.f32 %v1069_v2, %v3162_v30  ;;  %v1143_v49 = vadd.f32 %v1071_v32, %v3166_v31 }
 0x2a8   :  { %v3199_v42 = vadd.f32 %v3381_v11, %v2500_v61  ;;  %v1352_v20 = vadd.f32 1.0, %v2039_v59  ;;  %2046 = vtanh.f32 %v1212_v4  ;;  %v998_v24 = vmul.f32 %v926_v21, %v3185_v53  ;;  %v3382_v21 = vld [vmem:[#allocation11_spill] sm:$0xff] }
 0x2a9   :  { %v3204_v7 = vadd.f32 %v2823_v3, %v2494_v37  ;;  %v2041_v43 = vpop.eup %2040  ;;  %v1422_v13 = vmul.f32 %v1350_v62, %v846_v38  ;;  %v1213_v55 = vmul.f32 0.7978846, %v1141_v15  ;;  %v1215_v17 = vmul.f32 0.7978846, %v1143_v49 }
 0x2aa   :  { %v1424_v22 = vmul.f32 %v1352_v20, %v848_v60  ;;  %v849_v34 = vmul.f32 0.5, %v3114_v50  ;;  %v1070_v54 = vmul.f32 %v998_v24, %v3185_v53  ;;  %v928_v28 = vmul.f32 0.044715, %v3199_v42 }
 0x2ab   :  { %v1795_v9 = vpack.c.bf16 %v1422_v13, %v1421_v39  ;;  %v1353_v45 = vadd.f32 1.0, %v2041_v43  ;;  %2048 = vtanh.f32 %v1213_v55  ;;  %v929_v46 = vmul.f32 0.044715, %v3204_v7 }
 0x2ac   :  { %v1796_v16 = vpack.c.bf16 %v1424_v22, %v1423_v6  ;;  %v851_v3 = vmul.f32 0.5, %v3139_v52  ;;  %2050 = vtanh.f32 %v1215_v17  ;;  %v1142_v5 = vadd.f32 %v1070_v54, %v3185_v53 }
 0x2ad   :  { %1685 = vst [vmem:[%s3358_s5 + $0xc0] sm:$0xff] %v1795_v9  ;;  %v1000_v50 = vmul.f32 %v928_v28, %v3199_v42  ;;  %v1001_v57 = vmul.f32 %v929_v46, %v3204_v7  ;;  %v3219_v27 = vadd.f32 %v2826_v41, %v2496_v1  ;;  %v3223_v51 = vadd.f32 %v2828_v18, %v2498_v25 }
 0x2ae   :  { %1686 = vst [vmem:[%s3358_s5 + $0xc8] sm:$0xff] %v1796_v16  ;;  %v850_v52 = vmul.f32 0.5, %v3143_v10  ;;  %v852_v38 = vmul.f32 0.5, %v3151_v33  ;;  %v1214_v40 = vmul.f32 0.7978846, %v1142_v5  ;;  %v3232_v29 = vadd.f32 %v2832_v36, %v2500_v61  ;;  %v3383_v5 = vld [vmem:[#allocation12_spill] sm:$0xff] }
 0x2af   :  { %v1425_v41 = vmul.f32 %v1353_v45, %v849_v34  ;;  %v1072_v23 = vmul.f32 %v1000_v50, %v3199_v42  ;;  %v1073_v18 = vmul.f32 %v1001_v57, %v3204_v7  ;;  %v931_v14 = vmul.f32 0.044715, %v3219_v27 }
 0x2b0   :  { %v2043_v12 = vpop.eup %2042  ;;  %2052 = vtanh.f32 %v1214_v40  ;;  %v930_v10 = vmul.f32 0.044715, %v3223_v51  ;;  %v3240_v33 = vadd.f32 %v2855_v47, %v2494_v37  ;;  %v853_v60 = vmul.f32 0.5, %v3162_v30 }
 0x2b1   :  { %v2045_v35 = vpop.eup %2044  ;;  %v1355_v0 = vadd.f32 1.0, %v2043_v12  ;;  %v1144_v36 = vadd.f32 %v1072_v23, %v3199_v42  ;;  %v1145_v44 = vadd.f32 %v1073_v18, %v3204_v7  ;;  %v1003_v26 = vmul.f32 %v931_v14, %v3219_v27 }
 0x2b2   :  { %v1354_v63 = vadd.f32 1.0, %v2045_v35  ;;  %v2047_v58 = vpop.eup %2046  ;;  %v1002_v48 = vmul.f32 %v930_v10, %v3223_v51  ;;  %v932_v19 = vmul.f32 0.044715, %v3232_v29  ;;  %v3253_v59 = vadd.f32 %v3382_v21, %v2496_v1 }
 0x2b3   :  { %v1427_v8 = vmul.f32 %v1355_v0, %v851_v3  ;;  %v1356_v2 = vadd.f32 1.0, %v2047_v58  ;;  %v1216_v32 = vmul.f32 0.7978846, %v1144_v36  ;;  %v1217_v47 = vmul.f32 0.7978846, %v1145_v44 }
 0x2b4   :  { %v1426_v39 = vmul.f32 %v1354_v63, %v850_v52  ;;  %v1075_v56 = vmul.f32 %v1003_v26, %v3219_v27  ;;  %v1074_v6 = vmul.f32 %v1002_v48, %v3223_v51  ;;  %v1004_v4 = vmul.f32 %v932_v19, %v3232_v29  ;;  %v3385_v52 = vld [vmem:[#allocation14_spill] sm:$0xff] }
 0x2b5   :  { %v2049_v62 = vpop.eup %2048  ;;  %v1428_v15 = vmul.f32 %v1356_v2, %v852_v38  ;;  %2054 = vtanh.f32 %v1216_v32  ;;  %v933_v49 = vmul.f32 0.044715, %v3240_v33  ;;  %v855_v55 = vmul.f32 0.5, %v3166_v31 }
 0x2b6   :  { %v1797_v30 = vpack.c.bf16 %v1426_v39, %v1425_v41  ;;  %v2051_v11 = vpop.eup %2050  ;;  %v1357_v20 = vadd.f32 1.0, %v2049_v62  ;;  %2056 = vtanh.f32 %v1217_v47  ;;  %v1147_v24 = vadd.f32 %v1075_v56, %v3219_v27 }
 0x2b7   :  { %v1146_v43 = vadd.f32 %v1074_v6, %v3223_v51  ;;  %v1798_v13 = vpack.c.bf16 %v1428_v15, %v1427_v8  ;;  %v1076_v17 = vmul.f32 %v1004_v4, %v3232_v29  ;;  %v1005_v22 = vmul.f32 %v933_v49, %v3240_v33  ;;  %v3386_v8 = vld [vmem:[#allocation15_spill] sm:$0xff] }
 0x2b8   :  { %1687 = vst [vmem:[%s3358_s5 + $0xd0] sm:$0xff] %v1797_v30  ;;  %v1359_v34 = vadd.f32 1.0, %v2051_v11  ;;  %v854_v54 = vmul.f32 0.5, %v3185_v53  ;;  %v1219_v28 = vmul.f32 0.7978846, %v1147_v24  ;;  %v1429_v45 = vmul.f32 %v1357_v20, %v853_v60  ;;  %v3384_v53 = vld [vmem:[#allocation13_spill] sm:$0xff] }
 0x2b9   :  { %v1218_v9 = vmul.f32 0.7978846, %v1146_v43  ;;  %1688 = vst [vmem:[%s3358_s5 + $0xd8] sm:$0xff] %v1798_v13  ;;  %v1148_v46 = vadd.f32 %v1076_v17, %v3232_v29  ;;  %v1077_v16 = vmul.f32 %v1005_v22, %v3240_v33  ;;  %v935_v31 = vmul.f32 0.044715, %v3253_v59  ;;  %v3387_v20 = vld [vmem:[#allocation16_spill] sm:$0xff] }
 0x2ba   :  { %v2053_v3 = vpop.eup %2052  ;;  %2058 = vtanh.f32 %v1219_v28  ;;  %v3273_v50 = vadd.f32 %v3383_v5, %v2498_v25  ;;  %v3277_v57 = vadd.f32 %v3384_v53, %v2500_v61  ;;  %v3281_v38 = vadd.f32 %v3385_v52, %v2494_v37 }
 0x2bb   :  { %v1358_v40 = vadd.f32 1.0, %v2053_v3  ;;  %2060 = vtanh.f32 %v1218_v9  ;;  %v1220_v12 = vmul.f32 0.7978846, %v1148_v46  ;;  %v1149_v41 = vadd.f32 %v1077_v16, %v3240_v33 }
 0x2bc   :  { %v856_v23 = vmul.f32 0.5, %v3199_v42  ;;  %v857_v18 = vmul.f32 0.5, %v3204_v7  ;;  %v1007_v14 = vmul.f32 %v935_v31, %v3253_v59  ;;  %v934_v35 = vmul.f32 0.044715, %v3273_v50  ;;  %v3388_v31 = vld [vmem:[#allocation17_spill] sm:$0xff] }
 0x2bd   :  { %v1430_v0 = vmul.f32 %v1358_v40, %v854_v54  ;;  %2062 = vtanh.f32 %v1220_v12  ;;  %v1221_v10 = vmul.f32 0.7978846, %v1149_v41  ;;  %v936_v63 = vmul.f32 0.044715, %v3277_v57 }
 0x2be   :  { %v1431_v37 = vmul.f32 %v1359_v34, %v855_v55  ;;  %v1079_v36 = vmul.f32 %v1007_v14, %v3253_v59  ;;  %v1006_v44 = vmul.f32 %v934_v35, %v3273_v50  ;;  %v937_v26 = vmul.f32 0.044715, %v3281_v38 }
 0x2bf   :  { %v2055_v58 = vpop.eup %2054  ;;  %v1799_v42 = vpack.c.bf16 %v1430_v0, %v1429_v45  ;;  %2064 = vtanh.f32 %v1221_v10  ;;  %v1008_v7 = vmul.f32 %v936_v63, %v3277_v57  ;;  %v3295_v60 = vadd.f32 %v3386_v8, %v2496_v1 }
 0x2c0   :  { %v2057_v48 = vpop.eup %2056  ;;  %v1360_v19 = vadd.f32 1.0, %v2055_v58  ;;  %v1151_v39 = vadd.f32 %v1079_v36, %v3253_v59  ;;  %v1078_v2 = vmul.f32 %v1006_v44, %v3273_v50  ;;  %v1009_v32 = vmul.f32 %v937_v26, %v3281_v38 }
 0x2c1   :  { %1689 = vst [vmem:[%s3358_s5 + $0xe0] sm:$0xff] %v1799_v42  ;;  %v1361_v47 = vadd.f32 1.0, %v2057_v48  ;;  %v859_v56 = vmul.f32 0.5, %v3219_v27  ;;  %v1080_v6 = vmul.f32 %v1008_v7, %v3277_v57  ;;  %v939_v1 = vmul.f32 0.044715, %v3295_v60 }
 0x2c2   :  { %v1432_v4 = vmul.f32 %v1360_v19, %v856_v23  ;;  %v1223_v21 = vmul.f32 0.7978846, %v1151_v39  ;;  %v1150_v62 = vadd.f32 %v1078_v2, %v3273_v50  ;;  %v1081_v30 = vmul.f32 %v1009_v32, %v3281_v38 }
 0x2c3   :  { %v858_v15 = vmul.f32 0.5, %v3223_v51  ;;  %v1152_v49 = vadd.f32 %v1080_v6, %v3277_v57  ;;  %v1011_v11 = vmul.f32 %v939_v1, %v3295_v60  ;;  %v3313_v24 = vadd.f32 %v3387_v20, %v2498_v25 }
 0x2c4   :  { %v2059_v27 = vpop.eup %2058  ;;  %v1800_v43 = vpack.c.bf16 %v1432_v4, %v1431_v37  ;;  %2066 = vtanh.f32 %v1223_v21  ;;  %v1222_v13 = vmul.f32 0.7978846, %v1150_v62  ;;  %v1153_v55 = vadd.f32 %v1081_v30, %v3281_v38 }
 0x2c5   :  { %v2061_v17 = vpop.eup %2060  ;;  %v1433_v22 = vmul.f32 %v1361_v47, %v857_v18  ;;  %v1363_v34 = vadd.f32 1.0, %v2059_v27  ;;  %v1224_v54 = vmul.f32 0.7978846, %v1152_v49  ;;  %v1083_v51 = vmul.f32 %v1011_v11, %v3295_v60 }
 0x2c6   :  { %1690 = vst [vmem:[%s3358_s5 + $0xe8] sm:$0xff] %v1800_v43  ;;  %v1362_v28 = vadd.f32 1.0, %v2061_v17  ;;  %2068 = vtanh.f32 %v1222_v13  ;;  %v1225_v25 = vmul.f32 0.7978846, %v1153_v55  ;;  %v938_v9 = vmul.f32 0.044715, %v3313_v24 }
 0x2c7   :  { %v2063_v45 = vpop.eup %2062  ;;  %v860_v46 = vmul.f32 0.5, %v3232_v29  ;;  %2070 = vtanh.f32 %v1224_v54  ;;  %v1155_v16 = vadd.f32 %v1083_v51, %v3295_v60  ;;  %v795_v3 = vadd.f32 %v3388_v31, %v2500_v61 }
 0x2c8   :  { %v1435_v5 = vmul.f32 %v1363_v34, %v859_v56  ;;  %v1434_v53 = vmul.f32 %v1362_v28, %v858_v15  ;;  %v1364_v52 = vadd.f32 1.0, %v2063_v45  ;;  %v1010_v40 = vmul.f32 %v938_v9, %v3313_v24 }
 0x2c9   :  { %v2065_v12 = vpop.eup %2064  ;;  %v1227_v41 = vmul.f32 0.7978846, %v1155_v16  ;;  %v940_v23 = vmul.f32 0.044715, %v795_v3  ;;  %2072 = vtanh.f32 %v1225_v25  ;;  %v861_v44 = vmul.f32 0.5, %v3240_v33 }
 0x2ca   :  { %v1801_v18 = vpack.c.bf16 %v1434_v53, %v1433_v22  ;;  %v1436_v14 = vmul.f32 %v1364_v52, %v860_v46  ;;  %v1082_v35 = vmul.f32 %v1010_v40, %v3313_v24  ;;  %v1365_v10 = vadd.f32 1.0, %v2065_v12 }
 0x2cb   :  { %v1012_v29 = vmul.f32 %v940_v23, %v795_v3  ;;  %2074 = vtanh.f32 %v1227_v41  ;;  %v863_v7 = vmul.f32 0.5, %v3253_v59  ;;  %v862_v19 = vmul.f32 0.5, %v3273_v50 }
 0x2cc   :  { %1691 = vst [vmem:[%s3358_s5 + $0xf0] sm:$0xff] %v1801_v18  ;;  %v1802_v0 = vpack.c.bf16 %v1436_v14, %v1435_v5  ;;  %v1154_v61 = vadd.f32 %v1082_v35, %v3313_v24  ;;  %v1437_v48 = vmul.f32 %v1365_v10, %v861_v44  ;;  %v864_v47 = vmul.f32 0.5, %v3277_v57 }
 0x2cd   :  { %v1084_v63 = vmul.f32 %v1012_v29, %v795_v3  ;;  %v865_v50 = vmul.f32 0.5, %v3281_v38  ;;  %v866_v49 = vmul.f32 0.5, %v3313_v24  ;;  %v867_v20 = vmul.f32 0.5, %v3295_v60 }
 0x2ce   :  { %v2067_v37 = vpop.eup %2066  ;;  %1692 = vst [vmem:[%s3358_s5 + $0xf8] sm:$0xff] %v1802_v0  ;;  %v1226_v36 = vmul.f32 0.7978846, %v1154_v61  ;;  %v868_v55 = vmul.f32 0.5, %v795_v3 }
 0x2cf   :  { %v1367_v26 = vadd.f32 1.0, %v2067_v37  ;;  %v1156_v58 = vadd.f32 %v1084_v63, %v795_v3 }
 0x2d0   :  { %v2069_v42 = vpop.eup %2068  ;;  %2076 = vtanh.f32 %v1226_v36 }
 0x2d1   :  { %v2071_v8 = vpop.eup %2070  ;;  %v1366_v39 = vadd.f32 1.0, %v2069_v42  ;;  %v1228_v2 = vmul.f32 0.7978846, %v1156_v58  ;;  %v1439_v32 = vmul.f32 %v1367_v26, %v863_v7 }
 0x2d2   :  { %v1368_v56 = vadd.f32 1.0, %v2071_v8 }
 0x2d3   :  { %v1438_v6 = vmul.f32 %v1366_v39, %v862_v19  ;;  %2078 = vtanh.f32 %v1228_v2  ;;  %v2073_v1 = vpop.eup %2072 }
 0x2d4   :  { %v1440_v33 = vmul.f32 %v1368_v56, %v864_v47  ;;  %v1369_v59 = vadd.f32 1.0, %v2073_v1 }
 0x2d5   :  { %v1803_v4 = vpack.c.bf16 %v1438_v6, %v1437_v48  ;;  %v2075_v62 = vpop.eup %2074 }
 0x2d6   :  { %v1804_v21 = vpack.c.bf16 %v1440_v33, %v1439_v32  ;;  %v1371_v30 = vadd.f32 1.0, %v2075_v62  ;;  %v1441_v15 = vmul.f32 %v1369_v59, %v865_v50 }
 0x2d7   :  { %1693 = vst [vmem:[%s3358_s5 + $0x100] sm:$0xff] %v1803_v4 }
 0x2d8   :  { %1694 = vst [vmem:[%s3358_s5 + $0x108] sm:$0xff] %v1804_v21  ;;  %v1443_v13 = vmul.f32 %v1371_v30, %v867_v20 }
 0x2da   :  { %v2077_v57 = vpop.eup %2076 }
 0x2db   :  { %v1370_v11 = vadd.f32 1.0, %v2077_v57 }
 0x2dd   :  { %v2079_v27 = vpop.eup %2078  ;;  %v1442_v43 = vmul.f32 %v1370_v11, %v866_v49 }
 0x2de   :  { %v1372_v17 = vadd.f32 1.0, %v2079_v27 }
 0x2df   :  { %v1805_v22 = vpack.c.bf16 %v1442_v43, %v1441_v15 }
 0x2e0   :  { %v1444_v34 = vmul.f32 %v1372_v17, %v868_v55 }
 0x2e1   :  { %1695 = vst [vmem:[%s3358_s5 + $0x110] sm:$0xff] %v1805_v22 }
 0x2e2   :  { %v1806_v38 = vpack.c.bf16 %v1444_v34, %v1443_v13 }
 0x2e4   :  { %1696 = vst [vmem:[%s3358_s5 + $0x118] sm:$0xff] %v1806_v38 }

</bundles_post_ra>
